<compile_context>
chip_gen: v7x
topology: tpu7x:2x2x1
jax: 0.10.0
libtpu: 0.0.40
codegen_flags: <defaults>
</compile_context>

<pallas_src>
import functools

import jax
import jax.numpy as jnp
from jax.experimental import pallas as pl
from jax.experimental.pallas import tpu as pltpu


_CONV_COUT = (32, 64, 128, 256)      # real output channels per conv layer
_LEAKY_SLOPE = 0.01                  # PyTorch nn.LeakyReLU() default
_VMEM_LIMIT = 32 << 20


def _lane_pad(n):
    return max(128, ((n + 127) // 128) * 128)


# ----------------------------------------------------------------------------
# Kernel 1: fused (M,K)@(K,N) + bias + LeakyReLU, tiled over M.
# ----------------------------------------------------------------------------
def _matmul_bias_act_kernel(x_ref, w_ref, b_ref, o_ref, *, negative_slope):
    acc = jnp.dot(x_ref[...], w_ref[...], preferred_element_type=jnp.float32)
    acc = acc + b_ref[...]                                   # f32 bias
    acc = jnp.where(acc >= 0.0, acc, negative_slope * acc)   # LeakyReLU
    o_ref[...] = acc.astype(o_ref.dtype)


def _pick_tm(m, k, n, *, vmem_budget=8 << 20):
    """Row tile with honest double-buffered VMEM accounting.

    Prefer 4-8 grid steps (pipelining overlap + v7x dual-TC sharding of the
    "parallel" M axis); whole-M single block only for tiny layers.
    """
    def fits(tm):
        act = 2 * tm * k * 2          # bf16 activation block, double-buffered
        out = 2 * tm * n * 4          # output block (f32-sized bound), x2
        wgt = 2 * k * n * 2           # resident bf16 weight block, x2
        bia = 2 * 8 * n * 4           # bias
        return act + out + wgt + bia <= vmem_budget

    if m % 8 or m < 256:
        return m                      # tiny layer: single whole-M block
    for steps in (8, 6, 4, 3, 2):
        if m % steps == 0:
            tm = m // steps
            if tm % 8 == 0 and tm >= 128 and fits(tm):
                return tm
    return m                          # fallback (never hit at these shapes)


def matmul_bias_act(x, w, b, *, out_dtype, negative_slope=_LEAKY_SLOPE):
    m, k = x.shape
    k2, n = w.shape
    assert k == k2, (k, k2)
    assert b.shape == (1, n), (b.shape, n)
    tm = _pick_tm(m, k, n)
    grid = (m // tm,)
    kernel = functools.partial(_matmul_bias_act_kernel,
                               negative_slope=negative_slope)
    cost = pl.CostEstimate(
        flops=2 * m * k * n,
        transcendentals=0,
        bytes_accessed=(m * k + k * n) * 2 + n * 4
                       + m * n * jnp.dtype(out_dtype).itemsize)
    return pl.pallas_call(
        kernel,
        out_shape=jax.ShapeDtypeStruct((m, n), out_dtype),
        grid_spec=pltpu.PrefetchScalarGridSpec(
            num_scalar_prefetch=0,
            grid=grid,
            in_specs=[
                pl.BlockSpec((tm, k), lambda i: (i, 0)),   # activation patches
                pl.BlockSpec((k, n), lambda i: (0, 0)),    # weights (resident)
                pl.BlockSpec((1, n), lambda i: (0, 0)),    # bias (resident)
            ],
            out_specs=pl.BlockSpec((tm, n), lambda i: (i, 0)),
        ),
        compiler_params=pltpu.CompilerParams(
            dimension_semantics=("parallel",),
            vmem_limit_bytes=_VMEM_LIMIT),
        cost_estimate=cost,
    )(x, w, b)


# ----------------------------------------------------------------------------
# Kernel 2: conv layer 4 + FC fused.  cols rows are ordered (h, w, b) so the
# FC can take contiguous per-position slices of the VMEM-resident activation.
# ----------------------------------------------------------------------------
def _conv4_fc_kernel(cols_ref, w4_ref, b4_ref, wfc_ref, bfc_ref, o_ref, *,
                     batch, positions, negative_slope):
    y = jnp.dot(cols_ref[...], w4_ref[...],
                preferred_element_type=jnp.float32)          # (positions*B, 256)
    y = y + b4_ref[...]
    y = jnp.where(y >= 0.0, y, negative_slope * y)           # LeakyReLU
    y = y.astype(jnp.bfloat16)
    n_fc = o_ref.shape[-1]
    acc = jnp.zeros((batch, n_fc), jnp.float32)
    for p in range(positions):                               # static unroll (36)
        yp = y[p * batch:(p + 1) * batch, :]                 # contiguous (B, 256)
        acc = acc + jnp.dot(yp, wfc_ref[p],
                            preferred_element_type=jnp.float32)
    o_ref[...] = acc + bfc_ref[...]


def conv4_fc(cols4, w4, b4, wfc3, bfc, *, batch, negative_slope=_LEAKY_SLOPE):
    m, k = cols4.shape
    n_conv = w4.shape[1]
    positions, c_fc, n_fc = wfc3.shape
    assert m == positions * batch, (m, positions, batch)
    assert c_fc == n_conv, (c_fc, n_conv)
    kernel = functools.partial(_conv4_fc_kernel, batch=batch,
                               positions=positions,
                               negative_slope=negative_slope)
    cost = pl.CostEstimate(
        flops=2 * m * k * n_conv + 2 * batch * positions * n_conv * n_fc,
        transcendentals=0,
        bytes_accessed=(m * k + k * n_conv + wfc3.size) * 2
                       + (n_conv + n_fc) * 4 + batch * n_fc * 4)
    return pl.pallas_call(
        kernel,
        out_shape=jax.ShapeDtypeStruct((batch, n_fc), jnp.float32),
        grid_spec=pltpu.PrefetchScalarGridSpec(
            num_scalar_prefetch=0,
            grid=(1,),
            in_specs=[
                pl.BlockSpec((m, k), lambda i: (0, 0)),            # conv-4 patches
                pl.BlockSpec((k, n_conv), lambda i: (0, 0)),       # conv-4 weight
                pl.BlockSpec((1, n_conv), lambda i: (0, 0)),       # conv-4 bias
                pl.BlockSpec((positions, n_conv, n_fc),
                             lambda i: (0, 0, 0)),                 # FC weight
                pl.BlockSpec((1, n_fc), lambda i: (0, 0)),         # FC bias
            ],
            out_specs=pl.BlockSpec((batch, n_fc), lambda i: (0, 0)),
        ),
        compiler_params=pltpu.CompilerParams(
            dimension_semantics=("arbitrary",),
            vmem_limit_bytes=_VMEM_LIMIT),
        cost_estimate=cost,
    )(cols4, w4, b4, wfc3, bfc)


# ----------------------------------------------------------------------------
# Plain-JAX glue (fused by XLA under jit): im2col for 3x3 / stride-2 / pad-1.
# TODO(synk): on v5e, building these patches in-kernel via manual DMA from a
# pl.ANY-resident activation would remove the residual 2.25x HBM round trip.
# ----------------------------------------------------------------------------
def _im2col(x_nhwc, ksize=3, stride=2, pad=1, pos_major=False):
    b, h, w, c = x_nhwc.shape
    xp = jnp.pad(x_nhwc, ((0, 0), (pad, pad), (pad, pad), (0, 0)))
    ho = (h + 2 * pad - ksize) // stride + 1
    wo = (w + 2 * pad - ksize) // stride + 1
    patches = [xp[:, di:di + stride * ho:stride, dj:dj + stride * wo:stride, :]
               for di in range(ksize) for dj in range(ksize)]
    cols = jnp.stack(patches, axis=3)                 # (B, Ho, Wo, 9, C)
    if pos_major:                                     # rows ordered (h, w, b)
        cols = jnp.transpose(cols, (1, 2, 0, 3, 4))   # (Ho, Wo, B, 9, C)
    return cols.reshape(b * ho * wo, ksize * ksize * c), ho, wo


# ----------------------------------------------------------------------------
# Parameter construction (deterministic, in-script), packed for the kernels:
#   conv weights -> (9*real_Cin, Cout_pad) bf16 (zero-padded OUTPUT lanes only)
#   fc weight    -> (36, 256, 128-pad) bf16, rows ordered (h, w, c).
# ----------------------------------------------------------------------------
def init_encoder_params(key, in_channels, latent_dims):
    chans = [(in_channels, 32), (32, 64), (64, 128), (128, 256)]
    params = {"convs": [], "fc": None}
    for cin, cout in chans:
        key, kw_, kb_ = jax.random.split(key, 3)
        fan_in = 3 * 3 * cin
        w = jax.random.normal(kw_, (3, 3, cin, cout), jnp.float32) / jnp.sqrt(fan_in)
        bias = jax.random.normal(kb_, (cout,), jnp.float32) * 0.01
        cout_pad = _lane_pad(cout)
        w_p = jnp.zeros((3, 3, cin, cout_pad), jnp.float32).at[..., :cout].set(w)
        b_p = jnp.zeros((1, cout_pad), jnp.float32).at[0, :cout].set(bias)
        params["convs"].append(
            (w_p.reshape(9 * cin, cout_pad).astype(jnp.bfloat16), b_p))

    key, kw_, kb_ = jax.random.split(key, 3)
    positions = 6 * 6                       # final 6x6 feature map
    fc_in = positions * 256
    fc_out = 2 * latent_dims
    n_pad = _lane_pad(fc_out)
    fc_w = jax.random.normal(kw_, (positions, 256, fc_out),
                             jnp.float32) / jnp.sqrt(fc_in)
    fc_b = jax.random.normal(kb_, (fc_out,), jnp.float32) * 0.01
    fc_w_p = jnp.zeros((positions, 256, n_pad), jnp.float32).at[..., :fc_out].set(fc_w)
    fc_b_p = jnp.zeros((1, n_pad), jnp.float32).at[0, :fc_out].set(fc_b)
    params["fc"] = (fc_w_p.astype(jnp.bfloat16), fc_b_p)
    return params


# ----------------------------------------------------------------------------
# Forward pass equivalent to Encoder.forward (jitted end-to-end).
# ----------------------------------------------------------------------------
def _encoder_forward(params, x_nchw, latent_dims):
    x = jnp.transpose(x_nchw, (0, 2, 3, 1)).astype(jnp.bfloat16)   # NCHW -> NHWC
    b = x.shape[0]

    # Conv layers 1-3: im2col + fused matmul/bias/LeakyReLU kernel.  The store
    # stays lane-dense (128 wide) but we slice back to the real channel count
    # so padding is not dragged into the next layer's contraction.
    for layer in range(3):
        wm, bias = params["convs"][layer]
        cols, ho, wo = _im2col(x)
        y = matmul_bias_act(cols, wm, bias, out_dtype=jnp.bfloat16)
        x = y.reshape(b, ho, wo, y.shape[-1])[..., :_CONV_COUT[layer]]

    # Conv layer 4 + FC fused in a single kernel; patch rows ordered (h, w, b).
    w4, b4 = params["convs"][3]
    cols4, ho, wo = _im2col(x, pos_major=True)
    wfc3, bfc = params["fc"]
    out = conv4_fc(cols4, w4, b4, wfc3, bfc, batch=b)              # (B, 128) f32

    mu = out[:, :latent_dims]
    logvar = out[:, latent_dims:2 * latent_dims]
    return mu, logvar
    # NOTE: self.softplus is defined in __init__ but unused in forward; omitted.


encoder_forward = jax.jit(_encoder_forward, static_argnums=2)


if __name__ == "__main__":
    in_channels = 3
    latent_dims = 8
    batch = 2
    # fc expects 6*6*256 features => input spatial must be 96 (96->48->24->12->6)
    key = jax.random.PRNGKey(0)
    key, kx = jax.random.split(key)
    x = jax.random.normal(kx, (batch, in_channels, 96, 96), jnp.float32)

    params = init_encoder_params(key, in_channels, latent_dims)

    mu, logvar = encoder_forward(params, x, latent_dims)
    mu, logvar = jax.block_until_ready((mu, logvar))

    assert mu.shape == (batch, latent_dims), mu.shape
    assert logvar.shape == (batch, latent_dims), logvar.shape
    assert jnp.all(jnp.isfinite(mu)) and jnp.all(jnp.isfinite(logvar))
    print("KERNEL_OK")
</pallas_src>

<mosaic_0001>
module attributes {stable_mosaic.version = 11 : i64} {
  func.func @_matmul_bias_act_kernel(%arg0: i32, %arg1: memref<576x27xbf16, #tpu.memory_space<vmem>>, %arg2: memref<27x128xbf16, #tpu.memory_space<vmem>>, %arg3: memref<1x128xf32, #tpu.memory_space<vmem>>, %arg4: memref<576x128xbf16, #tpu.memory_space<vmem>>) attributes {dimension_semantics = [#tpu.dimension_semantics<parallel>], iteration_bounds = array<i64: 8>, scalar_prefetch = 0 : i64, scratch_operands = 0 : i64, tpu.core_type = #tpu.core_type<tc>, window_params = [{transform_indices = @transform_0, window_bounds = array<i64: 576, 27>}, {pipeline_mode = #tpu.pipeline_mode<synchronous>, transform_indices = @transform_1, window_bounds = array<i64: 27, 128>}, {pipeline_mode = #tpu.pipeline_mode<synchronous>, transform_indices = @transform_2, window_bounds = array<i64: 1, 128>}, {transform_indices = @transform_3, window_bounds = array<i64: 576, 128>}]} {
    %c0 = arith.constant 0 : index
    %c0_0 = arith.constant 0 : index
    %0 = vector.load %arg1[%c0, %c0_0] : memref<576x27xbf16, #tpu.memory_space<vmem>>, vector<576x27xbf16>
    %c0_1 = arith.constant 0 : index
    %c0_2 = arith.constant 0 : index
    %1 = vector.load %arg2[%c0_1, %c0_2] : memref<27x128xbf16, #tpu.memory_space<vmem>>, vector<27x128xbf16>
    %cst = arith.constant dense<0.000000e+00> : vector<576x128xf32>
    %2 = tpu.matmul %0, %1, %cst {dimension_numbers = #tpu.dot_dimension_numbers<[1], [0], [0], [1], [0, 0, 1, 1], [], []>} : vector<576x27xbf16>, vector<27x128xbf16>, vector<576x128xf32> -> vector<576x128xf32>
    %c0_3 = arith.constant 0 : index
    %c0_4 = arith.constant 0 : index
    %3 = vector.load %arg3[%c0_3, %c0_4] : memref<1x128xf32, #tpu.memory_space<vmem>>, vector<1x128xf32>
    %4 = vector.broadcast %3 : vector<1x128xf32> to vector<576x128xf32>
    %5 = arith.addf %2, %4 : vector<576x128xf32>
    %cst_5 = arith.constant 0.000000e+00 : f32
    %6 = vector.broadcast %cst_5 : f32 to vector<576x128xf32>
    %7 = arith.cmpf oge, %5, %6 : vector<576x128xf32>
    %cst_6 = arith.constant 0.00999999977 : f32
    %8 = vector.broadcast %cst_6 : f32 to vector<576x128xf32>
    %9 = arith.mulf %8, %5 : vector<576x128xf32>
    %10 = arith.select %7, %5, %9 : vector<576x128xi1>, vector<576x128xf32>
    %11 = arith.truncf %10 : vector<576x128xf32> to vector<576x128xbf16>
    %c0_7 = arith.constant 0 : index
    %c0_8 = arith.constant 0 : index
    %12 = vector.load %arg4[%c0_7, %c0_8] : memref<576x128xbf16, #tpu.memory_space<vmem>>, vector<576x128xbf16>
    tpu.vector_store %arg4[%c0_7, %c0_8], %11 {strides = array<i32>} : memref<576x128xbf16, #tpu.memory_space<vmem>>, vector<576x128xbf16>,
    return
  }
  func.func @transform_0(%arg0: i32) -> (i32, i32) {
    %c0_i32 = arith.constant 0 : i32
    %c0_i32_0 = arith.constant 0 : i32
    return %arg0, %c0_i32 : i32, i32
  }
  func.func @transform_1(%arg0: i32) -> (i32, i32) {
    %c0_i32 = arith.constant 0 : i32
    %c0_i32_0 = arith.constant 0 : i32
    %c0_i32_1 = arith.constant 0 : i32
    return %c0_i32, %c0_i32_0 : i32, i32
  }
  func.func @transform_2(%arg0: i32) -> (i32, i32) {
    %c0_i32 = arith.constant 0 : i32
    %c0_i32_0 = arith.constant 0 : i32
    %c0_i32_1 = arith.constant 0 : i32
    return %c0_i32, %c0_i32_0 : i32, i32
  }
  func.func @transform_3(%arg0: i32) -> (i32, i32) {
    %c0_i32 = arith.constant 0 : i32
    %c0_i32_0 = arith.constant 0 : i32
    return %arg0, %c0_i32 : i32, i32
  }
}

module attributes {stable_mosaic.version = 11 : i64} {
  func.func @_matmul_bias_act_kernel(%arg0: i32, %arg1: memref<144x288xbf16, #tpu.memory_space<vmem>>, %arg2: memref<288x128xbf16, #tpu.memory_space<vmem>>, %arg3: memref<1x128xf32, #tpu.memory_space<vmem>>, %arg4: memref<144x128xbf16, #tpu.memory_space<vmem>>) attributes {dimension_semantics = [#tpu.dimension_semantics<parallel>], iteration_bounds = array<i64: 8>, scalar_prefetch = 0 : i64, scratch_operands = 0 : i64, tpu.core_type = #tpu.core_type<tc>, window_params = [{transform_indices = @transform_0, window_bounds = array<i64: 144, 288>}, {pipeline_mode = #tpu.pipeline_mode<synchronous>, transform_indices = @transform_1, window_bounds = array<i64: 288, 128>}, {pipeline_mode = #tpu.pipeline_mode<synchronous>, transform_indices = @transform_2, window_bounds = array<i64: 1, 128>}, {transform_indices = @transform_3, window_bounds = array<i64: 144, 128>}]} {
    %c0 = arith.constant 0 : index
    %c0_0 = arith.constant 0 : index
    %0 = vector.load %arg1[%c0, %c0_0] : memref<144x288xbf16, #tpu.memory_space<vmem>>, vector<144x288xbf16>
    %c0_1 = arith.constant 0 : index
    %c0_2 = arith.constant 0 : index
    %1 = vector.load %arg2[%c0_1, %c0_2] : memref<288x128xbf16, #tpu.memory_space<vmem>>, vector<288x128xbf16>
    %cst = arith.constant dense<0.000000e+00> : vector<144x128xf32>
    %2 = tpu.matmul %0, %1, %cst {dimension_numbers = #tpu.dot_dimension_numbers<[1], [0], [0], [1], [0, 0, 1, 1], [], []>} : vector<144x288xbf16>, vector<288x128xbf16>, vector<144x128xf32> -> vector<144x128xf32>
    %c0_3 = arith.constant 0 : index
    %c0_4 = arith.constant 0 : index
    %3 = vector.load %arg3[%c0_3, %c0_4] : memref<1x128xf32, #tpu.memory_space<vmem>>, vector<1x128xf32>
    %4 = vector.broadcast %3 : vector<1x128xf32> to vector<144x128xf32>
    %5 = arith.addf %2, %4 : vector<144x128xf32>
    %cst_5 = arith.constant 0.000000e+00 : f32
    %6 = vector.broadcast %cst_5 : f32 to vector<144x128xf32>
    %7 = arith.cmpf oge, %5, %6 : vector<144x128xf32>
    %cst_6 = arith.constant 0.00999999977 : f32
    %8 = vector.broadcast %cst_6 : f32 to vector<144x128xf32>
    %9 = arith.mulf %8, %5 : vector<144x128xf32>
    %10 = arith.select %7, %5, %9 : vector<144x128xi1>, vector<144x128xf32>
    %11 = arith.truncf %10 : vector<144x128xf32> to vector<144x128xbf16>
    %c0_7 = arith.constant 0 : index
    %c0_8 = arith.constant 0 : index
    %12 = vector.load %arg4[%c0_7, %c0_8] : memref<144x128xbf16, #tpu.memory_space<vmem>>, vector<144x128xbf16>
    tpu.vector_store %arg4[%c0_7, %c0_8], %11 {strides = array<i32>} : memref<144x128xbf16, #tpu.memory_space<vmem>>, vector<144x128xbf16>,
    return
  }
  func.func @transform_0(%arg0: i32) -> (i32, i32) {
    %c0_i32 = arith.constant 0 : i32
    %c0_i32_0 = arith.constant 0 : i32
    return %arg0, %c0_i32 : i32, i32
  }
  func.func @transform_1(%arg0: i32) -> (i32, i32) {
    %c0_i32 = arith.constant 0 : i32
    %c0_i32_0 = arith.constant 0 : i32
    %c0_i32_1 = arith.constant 0 : i32
    return %c0_i32, %c0_i32_0 : i32, i32
  }
  func.func @transform_2(%arg0: i32) -> (i32, i32) {
    %c0_i32 = arith.constant 0 : i32
    %c0_i32_0 = arith.constant 0 : i32
    %c0_i32_1 = arith.constant 0 : i32
    return %c0_i32, %c0_i32_0 : i32, i32
  }
  func.func @transform_3(%arg0: i32) -> (i32, i32) {
    %c0_i32 = arith.constant 0 : i32
    %c0_i32_0 = arith.constant 0 : i32
    return %arg0, %c0_i32 : i32, i32
  }
}

module attributes {stable_mosaic.version = 11 : i64} {
  func.func @_matmul_bias_act_kernel(%arg0: i32, %arg1: memref<144x576xbf16, #tpu.memory_space<vmem>>, %arg2: memref<576x128xbf16, #tpu.memory_space<vmem>>, %arg3: memref<1x128xf32, #tpu.memory_space<vmem>>, %arg4: memref<144x128xbf16, #tpu.memory_space<vmem>>) attributes {dimension_semantics = [#tpu.dimension_semantics<parallel>], iteration_bounds = array<i64: 2>, scalar_prefetch = 0 : i64, scratch_operands = 0 : i64, tpu.core_type = #tpu.core_type<tc>, window_params = [{transform_indices = @transform_0, window_bounds = array<i64: 144, 576>}, {pipeline_mode = #tpu.pipeline_mode<synchronous>, transform_indices = @transform_1, window_bounds = array<i64: 576, 128>}, {pipeline_mode = #tpu.pipeline_mode<synchronous>, transform_indices = @transform_2, window_bounds = array<i64: 1, 128>}, {transform_indices = @transform_3, window_bounds = array<i64: 144, 128>}]} {
    %c0 = arith.constant 0 : index
    %c0_0 = arith.constant 0 : index
    %0 = vector.load %arg1[%c0, %c0_0] : memref<144x576xbf16, #tpu.memory_space<vmem>>, vector<144x576xbf16>
    %c0_1 = arith.constant 0 : index
    %c0_2 = arith.constant 0 : index
    %1 = vector.load %arg2[%c0_1, %c0_2] : memref<576x128xbf16, #tpu.memory_space<vmem>>, vector<576x128xbf16>
    %cst = arith.constant dense<0.000000e+00> : vector<144x128xf32>
    %2 = tpu.matmul %0, %1, %cst {dimension_numbers = #tpu.dot_dimension_numbers<[1], [0], [0], [1], [0, 0, 1, 1], [], []>} : vector<144x576xbf16>, vector<576x128xbf16>, vector<144x128xf32> -> vector<144x128xf32>
    %c0_3 = arith.constant 0 : index
    %c0_4 = arith.constant 0 : index
    %3 = vector.load %arg3[%c0_3, %c0_4] : memref<1x128xf32, #tpu.memory_space<vmem>>, vector<1x128xf32>
    %4 = vector.broadcast %3 : vector<1x128xf32> to vector<144x128xf32>
    %5 = arith.addf %2, %4 : vector<144x128xf32>
    %cst_5 = arith.constant 0.000000e+00 : f32
    %6 = vector.broadcast %cst_5 : f32 to vector<144x128xf32>
    %7 = arith.cmpf oge, %5, %6 : vector<144x128xf32>
    %cst_6 = arith.constant 0.00999999977 : f32
    %8 = vector.broadcast %cst_6 : f32 to vector<144x128xf32>
    %9 = arith.mulf %8, %5 : vector<144x128xf32>
    %10 = arith.select %7, %5, %9 : vector<144x128xi1>, vector<144x128xf32>
    %11 = arith.truncf %10 : vector<144x128xf32> to vector<144x128xbf16>
    %c0_7 = arith.constant 0 : index
    %c0_8 = arith.constant 0 : index
    %12 = vector.load %arg4[%c0_7, %c0_8] : memref<144x128xbf16, #tpu.memory_space<vmem>>, vector<144x128xbf16>
    tpu.vector_store %arg4[%c0_7, %c0_8], %11 {strides = array<i32>} : memref<144x128xbf16, #tpu.memory_space<vmem>>, vector<144x128xbf16>,
    return
  }
  func.func @transform_0(%arg0: i32) -> (i32, i32) {
    %c0_i32 = arith.constant 0 : i32
    %c0_i32_0 = arith.constant 0 : i32
    return %arg0, %c0_i32 : i32, i32
  }
  func.func @transform_1(%arg0: i32) -> (i32, i32) {
    %c0_i32 = arith.constant 0 : i32
    %c0_i32_0 = arith.constant 0 : i32
    %c0_i32_1 = arith.constant 0 : i32
    return %c0_i32, %c0_i32_0 : i32, i32
  }
  func.func @transform_2(%arg0: i32) -> (i32, i32) {
    %c0_i32 = arith.constant 0 : i32
    %c0_i32_0 = arith.constant 0 : i32
    %c0_i32_1 = arith.constant 0 : i32
    return %c0_i32, %c0_i32_0 : i32, i32
  }
  func.func @transform_3(%arg0: i32) -> (i32, i32) {
    %c0_i32 = arith.constant 0 : i32
    %c0_i32_0 = arith.constant 0 : i32
    return %arg0, %c0_i32 : i32, i32
  }
}

module attributes {stable_mosaic.version = 11 : i64} {
  func.func @_conv4_fc_kernel(%arg0: i32, %arg1: memref<72x1152xbf16, #tpu.memory_space<vmem>>, %arg2: memref<1152x256xbf16, #tpu.memory_space<vmem>>, %arg3: memref<1x256xf32, #tpu.memory_space<vmem>>, %arg4: memref<36x256x128xbf16, #tpu.memory_space<vmem>>, %arg5: memref<1x128xf32, #tpu.memory_space<vmem>>, %arg6: memref<2x128xf32, #tpu.memory_space<vmem>>) attributes {dimension_semantics = [#tpu.dimension_semantics<arbitrary>], iteration_bounds = array<i64: 1>, scalar_prefetch = 0 : i64, scratch_operands = 0 : i64, tpu.core_type = #tpu.core_type<tc>, window_params = [{pipeline_mode = #tpu.pipeline_mode<synchronous>, transform_indices = @transform_0, window_bounds = array<i64: 72, 1152>}, {pipeline_mode = #tpu.pipeline_mode<synchronous>, transform_indices = @transform_1, window_bounds = array<i64: 1152, 256>}, {pipeline_mode = #tpu.pipeline_mode<synchronous>, transform_indices = @transform_2, window_bounds = array<i64: 1, 256>}, {pipeline_mode = #tpu.pipeline_mode<synchronous>, transform_indices = @transform_3, window_bounds = array<i64: 36, 256, 128>}, {pipeline_mode = #tpu.pipeline_mode<synchronous>, transform_indices = @transform_4, window_bounds = array<i64: 1, 128>}, {pipeline_mode = #tpu.pipeline_mode<synchronous>, transform_indices = @transform_5, window_bounds = array<i64: 2, 128>}]} {
    %c0 = arith.constant 0 : index
    %c0_0 = arith.constant 0 : index
    %0 = vector.load %arg1[%c0, %c0_0] : memref<72x1152xbf16, #tpu.memory_space<vmem>>, vector<72x1152xbf16>
    %c0_1 = arith.constant 0 : index
    %c0_2 = arith.constant 0 : index
    %1 = vector.load %arg2[%c0_1, %c0_2] : memref<1152x256xbf16, #tpu.memory_space<vmem>>, vector<1152x256xbf16>
    %cst = arith.constant dense<0.000000e+00> : vector<72x256xf32>
    %2 = tpu.matmul %0, %1, %cst {dimension_numbers = #tpu.dot_dimension_numbers<[1], [0], [0], [1], [0, 0, 1, 1], [], []>} : vector<72x1152xbf16>, vector<1152x256xbf16>, vector<72x256xf32> -> vector<72x256xf32>
    %c0_3 = arith.constant 0 : index
    %c0_4 = arith.constant 0 : index
    %3 = vector.load %arg3[%c0_3, %c0_4] : memref<1x256xf32, #tpu.memory_space<vmem>>, vector<1x256xf32>
    %4 = vector.broadcast %3 : vector<1x256xf32> to vector<72x256xf32>
    %5 = arith.addf %2, %4 : vector<72x256xf32>
    %cst_5 = arith.constant 0.000000e+00 : f32
    %6 = vector.broadcast %cst_5 : f32 to vector<72x256xf32>
    %7 = arith.cmpf oge, %5, %6 : vector<72x256xf32>
    %cst_6 = arith.constant 0.00999999977 : f32
    %8 = vector.broadcast %cst_6 : f32 to vector<72x256xf32>
    %9 = arith.mulf %8, %5 : vector<72x256xf32>
    %10 = arith.select %7, %5, %9 : vector<72x256xi1>, vector<72x256xf32>
    %11 = arith.truncf %10 : vector<72x256xf32> to vector<72x256xbf16>
    %cst_7 = arith.constant 0.000000e+00 : f32
    %12 = vector.broadcast %cst_7 : f32 to vector<2x128xf32>
    %13 = vector.extract_strided_slice %11 {offsets = [0, 0], sizes = [2, 256], strides = [1, 1]} : vector<72x256xbf16> to vector<2x256xbf16>
    %c0_8 = arith.constant 0 : index
    %c0_9 = arith.constant 0 : index
    %c0_10 = arith.constant 0 : index
    %14 = vector.load %arg4[%c0_8, %c0_9, %c0_10] : memref<36x256x128xbf16, #tpu.memory_space<vmem>>, vector<1x256x128xbf16>
    %15 = vector.shape_cast %14 : vector<1x256x128xbf16> to vector<256x128xbf16>
    %cst_11 = arith.constant dense<0.000000e+00> : vector<2x128xf32>
    %16 = tpu.matmul %13, %15, %cst_11 {dimension_numbers = #tpu.dot_dimension_numbers<[1], [0], [0], [1], [0, 0, 1, 1], [], []>} : vector<2x256xbf16>, vector<256x128xbf16>, vector<2x128xf32> -> vector<2x128xf32>
    %17 = arith.addf %12, %16 : vector<2x128xf32>
    %18 = vector.extract_strided_slice %11 {offsets = [2, 0], sizes = [2, 256], strides = [1, 1]} : vector<72x256xbf16> to vector<2x256xbf16>
    %c1 = arith.constant 1 : index
    %c0_12 = arith.constant 0 : index
    %c0_13 = arith.constant 0 : index
    %19 = vector.load %arg4[%c1, %c0_12, %c0_13] : memref<36x256x128xbf16, #tpu.memory_space<vmem>>, vector<1x256x128xbf16>
    %20 = vector.shape_cast %19 : vector<1x256x128xbf16> to vector<256x128xbf16>
    %cst_14 = arith.constant dense<0.000000e+00> : vector<2x128xf32>
    %21 = tpu.matmul %18, %20, %cst_14 {dimension_numbers = #tpu.dot_dimension_numbers<[1], [0], [0], [1], [0, 0, 1, 1], [], []>} : vector<2x256xbf16>, vector<256x128xbf16>, vector<2x128xf32> -> vector<2x128xf32>
    %22 = arith.addf %17, %21 : vector<2x128xf32>
    %23 = vector.extract_strided_slice %11 {offsets = [4, 0], sizes = [2, 256], strides = [1, 1]} : vector<72x256xbf16> to vector<2x256xbf16>
    %c2 = arith.constant 2 : index
    %c0_15 = arith.constant 0 : index
    %c0_16 = arith.constant 0 : index
    %24 = vector.load %arg4[%c2, %c0_15, %c0_16] : memref<36x256x128xbf16, #tpu.memory_space<vmem>>, vector<1x256x128xbf16>
    %25 = vector.shape_cast %24 : vector<1x256x128xbf16> to vector<256x128xbf16>
    %cst_17 = arith.constant dense<0.000000e+00> : vector<2x128xf32>
    %26 = tpu.matmul %23, %25, %cst_17 {dimension_numbers = #tpu.dot_dimension_numbers<[1], [0], [0], [1], [0, 0, 1, 1], [], []>} : vector<2x256xbf16>, vector<256x128xbf16>, vector<2x128xf32> -> vector<2x128xf32>
    %27 = arith.addf %22, %26 : vector<2x128xf32>
    %28 = vector.extract_strided_slice %11 {offsets = [6, 0], sizes = [2, 256], strides = [1, 1]} : vector<72x256xbf16> to vector<2x256xbf16>
    %c3 = arith.constant 3 : index
    %c0_18 = arith.constant 0 : index
    %c0_19 = arith.constant 0 : index
    %29 = vector.load %arg4[%c3, %c0_18, %c0_19] : memref<36x256x128xbf16, #tpu.memory_space<vmem>>, vector<1x256x128xbf16>
    %30 = vector.shape_cast %29 : vector<1x256x128xbf16> to vector<256x128xbf16>
    %cst_20 = arith.constant dense<0.000000e+00> : vector<2x128xf32>
    %31 = tpu.matmul %28, %30, %cst_20 {dimension_numbers = #tpu.dot_dimension_numbers<[1], [0], [0], [1], [0, 0, 1, 1], [], []>} : vector<2x256xbf16>, vector<256x128xbf16>, vector<2x128xf32> -> vector<2x128xf32>
    %32 = arith.addf %27, %31 : vector<2x128xf32>
    %33 = vector.extract_strided_slice %11 {offsets = [8, 0], sizes = [2, 256], strides = [1, 1]} : vector<72x256xbf16> to vector<2x256xbf16>
    %c4 = arith.constant 4 : index
    %c0_21 = arith.constant 0 : index
    %c0_22 = arith.constant 0 : index
    %34 = vector.load %arg4[%c4, %c0_21, %c0_22] : memref<36x256x128xbf16, #tpu.memory_space<vmem>>, vector<1x256x128xbf16>
    %35 = vector.shape_cast %34 : vector<1x256x128xbf16> to vector<256x128xbf16>
    %cst_23 = arith.constant dense<0.000000e+00> : vector<2x128xf32>
    %36 = tpu.matmul %33, %35, %cst_23 {dimension_numbers = #tpu.dot_dimension_numbers<[1], [0], [0], [1], [0, 0, 1, 1], [], []>} : vector<2x256xbf16>, vector<256x128xbf16>, vector<2x128xf32> -> vector<2x128xf32>
    %37 = arith.addf %32, %36 : vector<2x128xf32>
    %38 = vector.extract_strided_slice %11 {offsets = [10, 0], sizes = [2, 256], strides = [1, 1]} : vector<72x256xbf16> to vector<2x256xbf16>
    %c5 = arith.constant 5 : index
    %c0_24 = arith.constant 0 : index
    %c0_25 = arith.constant 0 : index
    %39 = vector.load %arg4[%c5, %c0_24, %c0_25] : memref<36x256x128xbf16, #tpu.memory_space<vmem>>, vector<1x256x128xbf16>
    %40 = vector.shape_cast %39 : vector<1x256x128xbf16> to vector<256x128xbf16>
    %cst_26 = arith.constant dense<0.000000e+00> : vector<2x128xf32>
    %41 = tpu.matmul %38, %40, %cst_26 {dimension_numbers = #tpu.dot_dimension_numbers<[1], [0], [0], [1], [0, 0, 1, 1], [], []>} : vector<2x256xbf16>, vector<256x128xbf16>, vector<2x128xf32> -> vector<2x128xf32>
    %42 = arith.addf %37, %41 : vector<2x128xf32>
    %43 = vector.extract_strided_slice %11 {offsets = [12, 0], sizes = [2, 256], strides = [1, 1]} : vector<72x256xbf16> to vector<2x256xbf16>
    %c6 = arith.constant 6 : index
    %c0_27 = arith.constant 0 : index
    %c0_28 = arith.constant 0 : index
    %44 = vector.load %arg4[%c6, %c0_27, %c0_28] : memref<36x256x128xbf16, #tpu.memory_space<vmem>>, vector<1x256x128xbf16>
    %45 = vector.shape_cast %44 : vector<1x256x128xbf16> to vector<256x128xbf16>
    %cst_29 = arith.constant dense<0.000000e+00> : vector<2x128xf32>
    %46 = tpu.matmul %43, %45, %cst_29 {dimension_numbers = #tpu.dot_dimension_numbers<[1], [0], [0], [1], [0, 0, 1, 1], [], []>} : vector<2x256xbf16>, vector<256x128xbf16>, vector<2x128xf32> -> vector<2x128xf32>
    %47 = arith.addf %42, %46 : vector<2x128xf32>
    %48 = vector.extract_strided_slice %11 {offsets = [14, 0], sizes = [2, 256], strides = [1, 1]} : vector<72x256xbf16> to vector<2x256xbf16>
    %c7 = arith.constant 7 : index
    %c0_30 = arith.constant 0 : index
    %c0_31 = arith.constant 0 : index
    %49 = vector.load %arg4[%c7, %c0_30, %c0_31] : memref<36x256x128xbf16, #tpu.memory_space<vmem>>, vector<1x256x128xbf16>
    %50 = vector.shape_cast %49 : vector<1x256x128xbf16> to vector<256x128xbf16>
    %cst_32 = arith.constant dense<0.000000e+00> : vector<2x128xf32>
    %51 = tpu.matmul %48, %50, %cst_32 {dimension_numbers = #tpu.dot_dimension_numbers<[1], [0], [0], [1], [0, 0, 1, 1], [], []>} : vector<2x256xbf16>, vector<256x128xbf16>, vector<2x128xf32> -> vector<2x128xf32>
    %52 = arith.addf %47, %51 : vector<2x128xf32>
    %53 = vector.extract_strided_slice %11 {offsets = [16, 0], sizes = [2, 256], strides = [1, 1]} : vector<72x256xbf16> to vector<2x256xbf16>
    %c8 = arith.constant 8 : index
    %c0_33 = arith.constant 0 : index
    %c0_34 = arith.constant 0 : index
    %54 = vector.load %arg4[%c8, %c0_33, %c0_34] : memref<36x256x128xbf16, #tpu.memory_space<vmem>>, vector<1x256x128xbf16>
    %55 = vector.shape_cast %54 : vector<1x256x128xbf16> to vector<256x128xbf16>
    %cst_35 = arith.constant dense<0.000000e+00> : vector<2x128xf32>
    %56 = tpu.matmul %53, %55, %cst_35 {dimension_numbers = #tpu.dot_dimension_numbers<[1], [0], [0], [1], [0, 0, 1, 1], [], []>} : vector<2x256xbf16>, vector<256x128xbf16>, vector<2x128xf32> -> vector<2x128xf32>
    %57 = arith.addf %52, %56 : vector<2x128xf32>
    %58 = vector.extract_strided_slice %11 {offsets = [18, 0], sizes = [2, 256], strides = [1, 1]} : vector<72x256xbf16> to vector<2x256xbf16>
    %c9 = arith.constant 9 : index
    %c0_36 = arith.constant 0 : index
    %c0_37 = arith.constant 0 : index
    %59 = vector.load %arg4[%c9, %c0_36, %c0_37] : memref<36x256x128xbf16, #tpu.memory_space<vmem>>, vector<1x256x128xbf16>
    %60 = vector.shape_cast %59 : vector<1x256x128xbf16> to vector<256x128xbf16>
    %cst_38 = arith.constant dense<0.000000e+00> : vector<2x128xf32>
    %61 = tpu.matmul %58, %60, %cst_38 {dimension_numbers = #tpu.dot_dimension_numbers<[1], [0], [0], [1], [0, 0, 1, 1], [], []>} : vector<2x256xbf16>, vector<256x128xbf16>, vector<2x128xf32> -> vector<2x128xf32>
    %62 = arith.addf %57, %61 : vector<2x128xf32>
    %63 = vector.extract_strided_slice %11 {offsets = [20, 0], sizes = [2, 256], strides = [1, 1]} : vector<72x256xbf16> to vector<2x256xbf16>
    %c10 = arith.constant 10 : index
    %c0_39 = arith.constant 0 : index
    %c0_40 = arith.constant 0 : index
    %64 = vector.load %arg4[%c10, %c0_39, %c0_40] : memref<36x256x128xbf16, #tpu.memory_space<vmem>>, vector<1x256x128xbf16>
    %65 = vector.shape_cast %64 : vector<1x256x128xbf16> to vector<256x128xbf16>
    %cst_41 = arith.constant dense<0.000000e+00> : vector<2x128xf32>
    %66 = tpu.matmul %63, %65, %cst_41 {dimension_numbers = #tpu.dot_dimension_numbers<[1], [0], [0], [1], [0, 0, 1, 1], [], []>} : vector<2x256xbf16>, vector<256x128xbf16>, vector<2x128xf32> -> vector<2x128xf32>
    %67 = arith.addf %62, %66 : vector<2x128xf32>
    %68 = vector.extract_strided_slice %11 {offsets = [22, 0], sizes = [2, 256], strides = [1, 1]} : vector<72x256xbf16> to vector<2x256xbf16>
    %c11 = arith.constant 11 : index
    %c0_42 = arith.constant 0 : index
    %c0_43 = arith.constant 0 : index
    %69 = vector.load %arg4[%c11, %c0_42, %c0_43] : memref<36x256x128xbf16, #tpu.memory_space<vmem>>, vector<1x256x128xbf16>
    %70 = vector.shape_cast %69 : vector<1x256x128xbf16> to vector<256x128xbf16>
    %cst_44 = arith.constant dense<0.000000e+00> : vector<2x128xf32>
    %71 = tpu.matmul %68, %70, %cst_44 {dimension_numbers = #tpu.dot_dimension_numbers<[1], [0], [0], [1], [0, 0, 1, 1], [], []>} : vector<2x256xbf16>, vector<256x128xbf16>, vector<2x128xf32> -> vector<2x128xf32>
    %72 = arith.addf %67, %71 : vector<2x128xf32>
    %73 = vector.extract_strided_slice %11 {offsets = [24, 0], sizes = [2, 256], strides = [1, 1]} : vector<72x256xbf16> to vector<2x256xbf16>
    %c12 = arith.constant 12 : index
    %c0_45 = arith.constant 0 : index
    %c0_46 = arith.constant 0 : index
    %74 = vector.load %arg4[%c12, %c0_45, %c0_46] : memref<36x256x128xbf16, #tpu.memory_space<vmem>>, vector<1x256x128xbf16>
    %75 = vector.shape_cast %74 : vector<1x256x128xbf16> to vector<256x128xbf16>
    %cst_47 = arith.constant dense<0.000000e+00> : vector<2x128xf32>
    %76 = tpu.matmul %73, %75, %cst_47 {dimension_numbers = #tpu.dot_dimension_numbers<[1], [0], [0], [1], [0, 0, 1, 1], [], []>} : vector<2x256xbf16>, vector<256x128xbf16>, vector<2x128xf32> -> vector<2x128xf32>
    %77 = arith.addf %72, %76 : vector<2x128xf32>
    %78 = vector.extract_strided_slice %11 {offsets = [26, 0], sizes = [2, 256], strides = [1, 1]} : vector<72x256xbf16> to vector<2x256xbf16>
    %c13 = arith.constant 13 : index
    %c0_48 = arith.constant 0 : index
    %c0_49 = arith.constant 0 : index
    %79 = vector.load %arg4[%c13, %c0_48, %c0_49] : memref<36x256x128xbf16, #tpu.memory_space<vmem>>, vector<1x256x128xbf16>
    %80 = vector.shape_cast %79 : vector<1x256x128xbf16> to vector<256x128xbf16>
    %cst_50 = arith.constant dense<0.000000e+00> : vector<2x128xf32>
    %81 = tpu.matmul %78, %80, %cst_50 {dimension_numbers = #tpu.dot_dimension_numbers<[1], [0], [0], [1], [0, 0, 1, 1], [], []>} : vector<2x256xbf16>, vector<256x128xbf16>, vector<2x128xf32> -> vector<2x128xf32>
    %82 = arith.addf %77, %81 : vector<2x128xf32>
    %83 = vector.extract_strided_slice %11 {offsets = [28, 0], sizes = [2, 256], strides = [1, 1]} : vector<72x256xbf16> to vector<2x256xbf16>
    %c14 = arith.constant 14 : index
    %c0_51 = arith.constant 0 : index
    %c0_52 = arith.constant 0 : index
    %84 = vector.load %arg4[%c14, %c0_51, %c0_52] : memref<36x256x128xbf16, #tpu.memory_space<vmem>>, vector<1x256x128xbf16>
    %85 = vector.shape_cast %84 : vector<1x256x128xbf16> to vector<256x128xbf16>
    %cst_53 = arith.constant dense<0.000000e+00> : vector<2x128xf32>
    %86 = tpu.matmul %83, %85, %cst_53 {dimension_numbers = #tpu.dot_dimension_numbers<[1], [0], [0], [1], [0, 0, 1, 1], [], []>} : vector<2x256xbf16>, vector<256x128xbf16>, vector<2x128xf32> -> vector<2x128xf32>
    %87 = arith.addf %82, %86 : vector<2x128xf32>
    %88 = vector.extract_strided_slice %11 {offsets = [30, 0], sizes = [2, 256], strides = [1, 1]} : vector<72x256xbf16> to vector<2x256xbf16>
    %c15 = arith.constant 15 : index
    %c0_54 = arith.constant 0 : index
    %c0_55 = arith.constant 0 : index
    %89 = vector.load %arg4[%c15, %c0_54, %c0_55] : memref<36x256x128xbf16, #tpu.memory_space<vmem>>, vector<1x256x128xbf16>
    %90 = vector.shape_cast %89 : vector<1x256x128xbf16> to vector<256x128xbf16>
    %cst_56 = arith.constant dense<0.000000e+00> : vector<2x128xf32>
    %91 = tpu.matmul %88, %90, %cst_56 {dimension_numbers = #tpu.dot_dimension_numbers<[1], [0], [0], [1], [0, 0, 1, 1], [], []>} : vector<2x256xbf16>, vector<256x128xbf16>, vector<2x128xf32> -> vector<2x128xf32>
    %92 = arith.addf %87, %91 : vector<2x128xf32>
    %93 = vector.extract_strided_slice %11 {offsets = [32, 0], sizes = [2, 256], strides = [1, 1]} : vector<72x256xbf16> to vector<2x256xbf16>
    %c16 = arith.constant 16 : index
    %c0_57 = arith.constant 0 : index
    %c0_58 = arith.constant 0 : index
    %94 = vector.load %arg4[%c16, %c0_57, %c0_58] : memref<36x256x128xbf16, #tpu.memory_space<vmem>>, vector<1x256x128xbf16>
    %95 = vector.shape_cast %94 : vector<1x256x128xbf16> to vector<256x128xbf16>
    %cst_59 = arith.constant dense<0.000000e+00> : vector<2x128xf32>
    %96 = tpu.matmul %93, %95, %cst_59 {dimension_numbers = #tpu.dot_dimension_numbers<[1], [0], [0], [1], [0, 0, 1, 1], [], []>} : vector<2x256xbf16>, vector<256x128xbf16>, vector<2x128xf32> -> vector<2x128xf32>
    %97 = arith.addf %92, %96 : vector<2x128xf32>
    %98 = vector.extract_strided_slice %11 {offsets = [34, 0], sizes = [2, 256], strides = [1, 1]} : vector<72x256xbf16> to vector<2x256xbf16>
    %c17 = arith.constant 17 : index
    %c0_60 = arith.constant 0 : index
    %c0_61 = arith.constant 0 : index
    %99 = vector.load %arg4[%c17, %c0_60, %c0_61] : memref<36x256x128xbf16, #tpu.memory_space<vmem>>, vector<1x256x128xbf16>
    %100 = vector.shape_cast %99 : vector<1x256x128xbf16> to vector<256x128xbf16>
    %cst_62 = arith.constant dense<0.000000e+00> : vector<2x128xf32>
    %101 = tpu.matmul %98, %100, %cst_62 {dimension_numbers = #tpu.dot_dimension_numbers<[1], [0], [0], [1], [0, 0, 1, 1], [], []>} : vector<2x256xbf16>, vector<256x128xbf16>, vector<2x128xf32> -> vector<2x128xf32>
    %102 = arith.addf %97, %101 : vector<2x128xf32>
    %103 = vector.extract_strided_slice %11 {offsets = [36, 0], sizes = [2, 256], strides = [1, 1]} : vector<72x256xbf16> to vector<2x256xbf16>
    %c18 = arith.constant 18 : index
    %c0_63 = arith.constant 0 : index
    %c0_64 = arith.constant 0 : index
    %104 = vector.load %arg4[%c18, %c0_63, %c0_64] : memref<36x256x128xbf16, #tpu.memory_space<vmem>>, vector<1x256x128xbf16>
    %105 = vector.shape_cast %104 : vector<1x256x128xbf16> to vector<256x128xbf16>
    %cst_65 = arith.constant dense<0.000000e+00> : vector<2x128xf32>
    %106 = tpu.matmul %103, %105, %cst_65 {dimension_numbers = #tpu.dot_dimension_numbers<[1], [0], [0], [1], [0, 0, 1, 1], [], []>} : vector<2x256xbf16>, vector<256x128xbf16>, vector<2x128xf32> -> vector<2x128xf32>
    %107 = arith.addf %102, %106 : vector<2x128xf32>
    %108 = vector.extract_strided_slice %11 {offsets = [38, 0], sizes = [2, 256], strides = [1, 1]} : vector<72x256xbf16> to vector<2x256xbf16>
    %c19 = arith.constant 19 : index
    %c0_66 = arith.constant 0 : index
    %c0_67 = arith.constant 0 : index
    %109 = vector.load %arg4[%c19, %c0_66, %c0_67] : memref<36x256x128xbf16, #tpu.memory_space<vmem>>, vector<1x256x128xbf16>
    %110 = vector.shape_cast %109 : vector<1x256x128xbf16> to vector<256x128xbf16>
    %cst_68 = arith.constant dense<0.000000e+00> : vector<2x128xf32>
    %111 = tpu.matmul %108, %110, %cst_68 {dimension_numbers = #tpu.dot_dimension_numbers<[1], [0], [0], [1], [0, 0, 1, 1], [], []>} : vector<2x256xbf16>, vector<256x128xbf16>, vector<2x128xf32> -> vector<2x128xf32>
    %112 = arith.addf %107, %111 : vector<2x128xf32>
    %113 = vector.extract_strided_slice %11 {offsets = [40, 0], sizes = [2, 256], strides = [1, 1]} : vector<72x256xbf16> to vector<2x256xbf16>
    %c20 = arith.constant 20 : index
    %c0_69 = arith.constant 0 : index
    %c0_70 = arith.constant 0 : index
    %114 = vector.load %arg4[%c20, %c0_69, %c0_70] : memref<36x256x128xbf16, #tpu.memory_space<vmem>>, vector<1x256x128xbf16>
    %115 = vector.shape_cast %114 : vector<1x256x128xbf16> to vector<256x128xbf16>
    %cst_71 = arith.constant dense<0.000000e+00> : vector<2x128xf32>
    %116 = tpu.matmul %113, %115, %cst_71 {dimension_numbers = #tpu.dot_dimension_numbers<[1], [0], [0], [1], [0, 0, 1, 1], [], []>} : vector<2x256xbf16>, vector<256x128xbf16>, vector<2x128xf32> -> vector<2x128xf32>
    %117 = arith.addf %112, %116 : vector<2x128xf32>
    %118 = vector.extract_strided_slice %11 {offsets = [42, 0], sizes = [2, 256], strides = [1, 1]} : vector<72x256xbf16> to vector<2x256xbf16>
    %c21 = arith.constant 21 : index
    %c0_72 = arith.constant 0 : index
    %c0_73 = arith.constant 0 : index
    %119 = vector.load %arg4[%c21, %c0_72, %c0_73] : memref<36x256x128xbf16, #tpu.memory_space<vmem>>, vector<1x256x128xbf16>
    %120 = vector.shape_cast %119 : vector<1x256x128xbf16> to vector<256x128xbf16>
    %cst_74 = arith.constant dense<0.000000e+00> : vector<2x128xf32>
    %121 = tpu.matmul %118, %120, %cst_74 {dimension_numbers = #tpu.dot_dimension_numbers<[1], [0], [0], [1], [0, 0, 1, 1], [], []>} : vector<2x256xbf16>, vector<256x128xbf16>, vector<2x128xf32> -> vector<2x128xf32>
    %122 = arith.addf %117, %121 : vector<2x128xf32>
    %123 = vector.extract_strided_slice %11 {offsets = [44, 0], sizes = [2, 256], strides = [1, 1]} : vector<72x256xbf16> to vector<2x256xbf16>
    %c22 = arith.constant 22 : index
    %c0_75 = arith.constant 0 : index
    %c0_76 = arith.constant 0 : index
    %124 = vector.load %arg4[%c22, %c0_75, %c0_76] : memref<36x256x128xbf16, #tpu.memory_space<vmem>>, vector<1x256x128xbf16>
    %125 = vector.shape_cast %124 : vector<1x256x128xbf16> to vector<256x128xbf16>
    %cst_77 = arith.constant dense<0.000000e+00> : vector<2x128xf32>
    %126 = tpu.matmul %123, %125, %cst_77 {dimension_numbers = #tpu.dot_dimension_numbers<[1], [0], [0], [1], [0, 0, 1, 1], [], []>} : vector<2x256xbf16>, vector<256x128xbf16>, vector<2x128xf32> -> vector<2x128xf32>
    %127 = arith.addf %122, %126 : vector<2x128xf32>
    %128 = vector.extract_strided_slice %11 {offsets = [46, 0], sizes = [2, 256], strides = [1, 1]} : vector<72x256xbf16> to vector<2x256xbf16>
    %c23 = arith.constant 23 : index
    %c0_78 = arith.constant 0 : index
    %c0_79 = arith.constant 0 : index
    %129 = vector.load %arg4[%c23, %c0_78, %c0_79] : memref<36x256x128xbf16, #tpu.memory_space<vmem>>, vector<1x256x128xbf16>
    %130 = vector.shape_cast %129 : vector<1x256x128xbf16> to vector<256x128xbf16>
    %cst_80 = arith.constant dense<0.000000e+00> : vector<2x128xf32>
    %131 = tpu.matmul %128, %130, %cst_80 {dimension_numbers = #tpu.dot_dimension_numbers<[1], [0], [0], [1], [0, 0, 1, 1], [], []>} : vector<2x256xbf16>, vector<256x128xbf16>, vector<2x128xf32> -> vector<2x128xf32>
    %132 = arith.addf %127, %131 : vector<2x128xf32>
    %133 = vector.extract_strided_slice %11 {offsets = [48, 0], sizes = [2, 256], strides = [1, 1]} : vector<72x256xbf16> to vector<2x256xbf16>
    %c24 = arith.constant 24 : index
    %c0_81 = arith.constant 0 : index
    %c0_82 = arith.constant 0 : index
    %134 = vector.load %arg4[%c24, %c0_81, %c0_82] : memref<36x256x128xbf16, #tpu.memory_space<vmem>>, vector<1x256x128xbf16>
    %135 = vector.shape_cast %134 : vector<1x256x128xbf16> to vector<256x128xbf16>
    %cst_83 = arith.constant dense<0.000000e+00> : vector<2x128xf32>
    %136 = tpu.matmul %133, %135, %cst_83 {dimension_numbers = #tpu.dot_dimension_numbers<[1], [0], [0], [1], [0, 0, 1, 1], [], []>} : vector<2x256xbf16>, vector<256x128xbf16>, vector<2x128xf32> -> vector<2x128xf32>
    %137 = arith.addf %132, %136 : vector<2x128xf32>
    %138 = vector.extract_strided_slice %11 {offsets = [50, 0], sizes = [2, 256], strides = [1, 1]} : vector<72x256xbf16> to vector<2x256xbf16>
    %c25 = arith.constant 25 : index
    %c0_84 = arith.constant 0 : index
    %c0_85 = arith.constant 0 : index
    %139 = vector.load %arg4[%c25, %c0_84, %c0_85] : memref<36x256x128xbf16, #tpu.memory_space<vmem>>, vector<1x256x128xbf16>
    %140 = vector.shape_cast %139 : vector<1x256x128xbf16> to vector<256x128xbf16>
    %cst_86 = arith.constant dense<0.000000e+00> : vector<2x128xf32>
    %141 = tpu.matmul %138, %140, %cst_86 {dimension_numbers = #tpu.dot_dimension_numbers<[1], [0], [0], [1], [0, 0, 1, 1], [], []>} : vector<2x256xbf16>, vector<256x128xbf16>, vector<2x128xf32> -> vector<2x128xf32>
    %142 = arith.addf %137, %141 : vector<2x128xf32>
    %143 = vector.extract_strided_slice %11 {offsets = [52, 0], sizes = [2, 256], strides = [1, 1]} : vector<72x256xbf16> to vector<2x256xbf16>
    %c26 = arith.constant 26 : index
    %c0_87 = arith.constant 0 : index
    %c0_88 = arith.constant 0 : index
    %144 = vector.load %arg4[%c26, %c0_87, %c0_88] : memref<36x256x128xbf16, #tpu.memory_space<vmem>>, vector<1x256x128xbf16>
    %145 = vector.shape_cast %144 : vector<1x256x128xbf16> to vector<256x128xbf16>
    %cst_89 = arith.constant dense<0.000000e+00> : vector<2x128xf32>
    %146 = tpu.matmul %143, %145, %cst_89 {dimension_numbers = #tpu.dot_dimension_numbers<[1], [0], [0], [1], [0, 0, 1, 1], [], []>} : vector<2x256xbf16>, vector<256x128xbf16>, vector<2x128xf32> -> vector<2x128xf32>
    %147 = arith.addf %142, %146 : vector<2x128xf32>
    %148 = vector.extract_strided_slice %11 {offsets = [54, 0], sizes = [2, 256], strides = [1, 1]} : vector<72x256xbf16> to vector<2x256xbf16>
    %c27 = arith.constant 27 : index
    %c0_90 = arith.constant 0 : index
    %c0_91 = arith.constant 0 : index
    %149 = vector.load %arg4[%c27, %c0_90, %c0_91] : memref<36x256x128xbf16, #tpu.memory_space<vmem>>, vector<1x256x128xbf16>
    %150 = vector.shape_cast %149 : vector<1x256x128xbf16> to vector<256x128xbf16>
    %cst_92 = arith.constant dense<0.000000e+00> : vector<2x128xf32>
    %151 = tpu.matmul %148, %150, %cst_92 {dimension_numbers = #tpu.dot_dimension_numbers<[1], [0], [0], [1], [0, 0, 1, 1], [], []>} : vector<2x256xbf16>, vector<256x128xbf16>, vector<2x128xf32> -> vector<2x128xf32>
    %152 = arith.addf %147, %151 : vector<2x128xf32>
    %153 = vector.extract_strided_slice %11 {offsets = [56, 0], sizes = [2, 256], strides = [1, 1]} : vector<72x256xbf16> to vector<2x256xbf16>
    %c28 = arith.constant 28 : index
    %c0_93 = arith.constant 0 : index
    %c0_94 = arith.constant 0 : index
    %154 = vector.load %arg4[%c28, %c0_93, %c0_94] : memref<36x256x128xbf16, #tpu.memory_space<vmem>>, vector<1x256x128xbf16>
    %155 = vector.shape_cast %154 : vector<1x256x128xbf16> to vector<256x128xbf16>
    %cst_95 = arith.constant dense<0.000000e+00> : vector<2x128xf32>
    %156 = tpu.matmul %153, %155, %cst_95 {dimension_numbers = #tpu.dot_dimension_numbers<[1], [0], [0], [1], [0, 0, 1, 1], [], []>} : vector<2x256xbf16>, vector<256x128xbf16>, vector<2x128xf32> -> vector<2x128xf32>
    %157 = arith.addf %152, %156 : vector<2x128xf32>
    %158 = vector.extract_strided_slice %11 {offsets = [58, 0], sizes = [2, 256], strides = [1, 1]} : vector<72x256xbf16> to vector<2x256xbf16>
    %c29 = arith.constant 29 : index
    %c0_96 = arith.constant 0 : index
    %c0_97 = arith.constant 0 : index
    %159 = vector.load %arg4[%c29, %c0_96, %c0_97] : memref<36x256x128xbf16, #tpu.memory_space<vmem>>, vector<1x256x128xbf16>
    %160 = vector.shape_cast %159 : vector<1x256x128xbf16> to vector<256x128xbf16>
    %cst_98 = arith.constant dense<0.000000e+00> : vector<2x128xf32>
    %161 = tpu.matmul %158, %160, %cst_98 {dimension_numbers = #tpu.dot_dimension_numbers<[1], [0], [0], [1], [0, 0, 1, 1], [], []>} : vector<2x256xbf16>, vector<256x128xbf16>, vector<2x128xf32> -> vector<2x128xf32>
    %162 = arith.addf %157, %161 : vector<2x128xf32>
    %163 = vector.extract_strided_slice %11 {offsets = [60, 0], sizes = [2, 256], strides = [1, 1]} : vector<72x256xbf16> to vector<2x256xbf16>
    %c30 = arith.constant 30 : index
    %c0_99 = arith.constant 0 : index
    %c0_100 = arith.constant 0 : index
    %164 = vector.load %arg4[%c30, %c0_99, %c0_100] : memref<36x256x128xbf16, #tpu.memory_space<vmem>>, vector<1x256x128xbf16>
    %165 = vector.shape_cast %164 : vector<1x256x128xbf16> to vector<256x128xbf16>
    %cst_101 = arith.constant dense<0.000000e+00> : vector<2x128xf32>
    %166 = tpu.matmul %163, %165, %cst_101 {dimension_numbers = #tpu.dot_dimension_numbers<[1], [0], [0], [1], [0, 0, 1, 1], [], []>} : vector<2x256xbf16>, vector<256x128xbf16>, vector<2x128xf32> -> vector<2x128xf32>
    %167 = arith.addf %162, %166 : vector<2x128xf32>
    %168 = vector.extract_strided_slice %11 {offsets = [62, 0], sizes = [2, 256], strides = [1, 1]} : vector<72x256xbf16> to vector<2x256xbf16>
    %c31 = arith.constant 31 : index
    %c0_102 = arith.constant 0 : index
    %c0_103 = arith.constant 0 : index
    %169 = vector.load %arg4[%c31, %c0_102, %c0_103] : memref<36x256x128xbf16, #tpu.memory_space<vmem>>, vector<1x256x128xbf16>
    %170 = vector.shape_cast %169 : vector<1x256x128xbf16> to vector<256x128xbf16>
    %cst_104 = arith.constant dense<0.000000e+00> : vector<2x128xf32>
    %171 = tpu.matmul %168, %170, %cst_104 {dimension_numbers = #tpu.dot_dimension_numbers<[1], [0], [0], [1], [0, 0, 1, 1], [], []>} : vector<2x256xbf16>, vector<256x128xbf16>, vector<2x128xf32> -> vector<2x128xf32>
    %172 = arith.addf %167, %171 : vector<2x128xf32>
    %173 = vector.extract_strided_slice %11 {offsets = [64, 0], sizes = [2, 256], strides = [1, 1]} : vector<72x256xbf16> to vector<2x256xbf16>
    %c32 = arith.constant 32 : index
    %c0_105 = arith.constant 0 : index
    %c0_106 = arith.constant 0 : index
    %174 = vector.load %arg4[%c32, %c0_105, %c0_106] : memref<36x256x128xbf16, #tpu.memory_space<vmem>>, vector<1x256x128xbf16>
    %175 = vector.shape_cast %174 : vector<1x256x128xbf16> to vector<256x128xbf16>
    %cst_107 = arith.constant dense<0.000000e+00> : vector<2x128xf32>
    %176 = tpu.matmul %173, %175, %cst_107 {dimension_numbers = #tpu.dot_dimension_numbers<[1], [0], [0], [1], [0, 0, 1, 1], [], []>} : vector<2x256xbf16>, vector<256x128xbf16>, vector<2x128xf32> -> vector<2x128xf32>
    %177 = arith.addf %172, %176 : vector<2x128xf32>
    %178 = vector.extract_strided_slice %11 {offsets = [66, 0], sizes = [2, 256], strides = [1, 1]} : vector<72x256xbf16> to vector<2x256xbf16>
    %c33 = arith.constant 33 : index
    %c0_108 = arith.constant 0 : index
    %c0_109 = arith.constant 0 : index
    %179 = vector.load %arg4[%c33, %c0_108, %c0_109] : memref<36x256x128xbf16, #tpu.memory_space<vmem>>, vector<1x256x128xbf16>
    %180 = vector.shape_cast %179 : vector<1x256x128xbf16> to vector<256x128xbf16>
    %cst_110 = arith.constant dense<0.000000e+00> : vector<2x128xf32>
    %181 = tpu.matmul %178, %180, %cst_110 {dimension_numbers = #tpu.dot_dimension_numbers<[1], [0], [0], [1], [0, 0, 1, 1], [], []>} : vector<2x256xbf16>, vector<256x128xbf16>, vector<2x128xf32> -> vector<2x128xf32>
    %182 = arith.addf %177, %181 : vector<2x128xf32>
    %183 = vector.extract_strided_slice %11 {offsets = [68, 0], sizes = [2, 256], strides = [1, 1]} : vector<72x256xbf16> to vector<2x256xbf16>
    %c34 = arith.constant 34 : index
    %c0_111 = arith.constant 0 : index
    %c0_112 = arith.constant 0 : index
    %184 = vector.load %arg4[%c34, %c0_111, %c0_112] : memref<36x256x128xbf16, #tpu.memory_space<vmem>>, vector<1x256x128xbf16>
    %185 = vector.shape_cast %184 : vector<1x256x128xbf16> to vector<256x128xbf16>
    %cst_113 = arith.constant dense<0.000000e+00> : vector<2x128xf32>
    %186 = tpu.matmul %183, %185, %cst_113 {dimension_numbers = #tpu.dot_dimension_numbers<[1], [0], [0], [1], [0, 0, 1, 1], [], []>} : vector<2x256xbf16>, vector<256x128xbf16>, vector<2x128xf32> -> vector<2x128xf32>
    %187 = arith.addf %182, %186 : vector<2x128xf32>
    %188 = vector.extract_strided_slice %11 {offsets = [70, 0], sizes = [2, 256], strides = [1, 1]} : vector<72x256xbf16> to vector<2x256xbf16>
    %c35 = arith.constant 35 : index
    %c0_114 = arith.constant 0 : index
    %c0_115 = arith.constant 0 : index
    %189 = vector.load %arg4[%c35, %c0_114, %c0_115] : memref<36x256x128xbf16, #tpu.memory_space<vmem>>, vector<1x256x128xbf16>
    %190 = vector.shape_cast %189 : vector<1x256x128xbf16> to vector<256x128xbf16>
    %cst_116 = arith.constant dense<0.000000e+00> : vector<2x128xf32>
    %191 = tpu.matmul %188, %190, %cst_116 {dimension_numbers = #tpu.dot_dimension_numbers<[1], [0], [0], [1], [0, 0, 1, 1], [], []>} : vector<2x256xbf16>, vector<256x128xbf16>, vector<2x128xf32> -> vector<2x128xf32>
    %192 = arith.addf %187, %191 : vector<2x128xf32>
    %c0_117 = arith.constant 0 : index
    %c0_118 = arith.constant 0 : index
    %193 = vector.load %arg5[%c0_117, %c0_118] : memref<1x128xf32, #tpu.memory_space<vmem>>, vector<1x128xf32>
    %194 = vector.broadcast %193 : vector<1x128xf32> to vector<2x128xf32>
    %195 = arith.addf %192, %194 : vector<2x128xf32>
    %c0_119 = arith.constant 0 : index
    %c0_120 = arith.constant 0 : index
    %196 = vector.load %arg6[%c0_119, %c0_120] : memref<2x128xf32, #tpu.memory_space<vmem>>, vector<2x128xf32>
    tpu.vector_store %arg6[%c0_119, %c0_120], %195 {strides = array<i32>} : memref<2x128xf32, #tpu.memory_space<vmem>>, vector<2x128xf32>,
    return
  }
  func.func @transform_0(%arg0: i32) -> (i32, i32) {
    %c0_i32 = arith.constant 0 : i32
    %c0_i32_0 = arith.constant 0 : i32
    %c0_i32_1 = arith.constant 0 : i32
    return %c0_i32, %c0_i32_0 : i32, i32
  }
  func.func @transform_1(%arg0: i32) -> (i32, i32) {
    %c0_i32 = arith.constant 0 : i32
    %c0_i32_0 = arith.constant 0 : i32
    %c0_i32_1 = arith.constant 0 : i32
    return %c0_i32, %c0_i32_0 : i32, i32
  }
  func.func @transform_2(%arg0: i32) -> (i32, i32) {
    %c0_i32 = arith.constant 0 : i32
    %c0_i32_0 = arith.constant 0 : i32
    %c0_i32_1 = arith.constant 0 : i32
    return %c0_i32, %c0_i32_0 : i32, i32
  }
  func.func @transform_3(%arg0: i32) -> (i32, i32, i32) {
    %c0_i32 = arith.constant 0 : i32
    %c0_i32_0 = arith.constant 0 : i32
    %c0_i32_1 = arith.constant 0 : i32
    %c0_i32_2 = arith.constant 0 : i32
    return %c0_i32, %c0_i32_0, %c0_i32_1 : i32, i32, i32
  }
  func.func @transform_4(%arg0: i32) -> (i32, i32) {
    %c0_i32 = arith.constant 0 : i32
    %c0_i32_0 = arith.constant 0 : i32
    %c0_i32_1 = arith.constant 0 : i32
    return %c0_i32, %c0_i32_0 : i32, i32
  }
  func.func @transform_5(%arg0: i32) -> (i32, i32) {
    %c0_i32 = arith.constant 0 : i32
    %c0_i32_0 = arith.constant 0 : i32
    %c0_i32_1 = arith.constant 0 : i32
    return %c0_i32, %c0_i32_0 : i32, i32
  }
}

</mosaic_0001>

<bundles_post_ra>
// kernel: _encoder_forward.4
= control target key start
LH: loop header
LB: loop body
LE: loop exit
PB: predicated region body
PF: predicated region fallthrough
CT: control target
= control target key end

     0   :  { %s2155_s12 = smov 0   ;;  %s2380_s0 = inlined_call_operand.vmem [shape: bf16[4608,27], index: 0, kind: input, shape index: {}]   ;;  %s2381_s1 = inlined_call_operand.vmem [shape: bf16[27,128], index: 1, kind: input, shape index: {}]   ;;  %s2382_s2 = inlined_call_operand.vmem [shape: f32[1,128], index: 2, kind: input, shape index: {}]   ;;  %s2383_s3 = inlined_call_operand.vmem [shape: bf16[4608,128], index: 3, kind: output, shape index: {}]  }
   0x1 LB: > { %s1518_s13 = sadd.s32 4294967295, %s2132_s12   ;;  %p1522_p0 = scmp.ge.s32.totalorder %s2132_s12, 1  ;;  %s2132_s12 = sphi %s2155_s12, %s13_s12  }
   0x2   : > { %p138_p1 = scmp.lt.s32.totalorder %s2132_s12, 9 }
   0x4   : > { %p139_p2 = pnand %p1522_p0, %p138_p1 }
   0x5   : > { %v2088_v0 = vld [vmem:[%s2381_s1] sm:$0xff] (!%p139_p2)   ;;  %vm558_vm0 = vcmask (!%p139_p2), 1044480   ;;  %v2089_v1 = vld [vmem:[%s2381_s1 + $0x8] sm:$0x3f] (!%p139_p2)   ;;  %vm559_vm1 = vcmask (!%p139_p2), 1045504   ;;  %s162_s18 = smul.u32 (!%p139_p2), 72, %s1518_s13 }
   0x6   : > { %142 = sbr.rel (%p139_p2) target bundleno = 316 (0x13c), region = 32  ;;  %1999 = vmatprep.subr.bf16.mxu0 (!%p139_p2), %v2088_v0  ;;  %2075 = vmatprep.subr.bf16.mxu1 (!%p139_p2), %v2088_v0  ;;  %v2134_v2 = vmov (!%p139_p2), 65535   ;;  %vm449_vm2 = vcmask (!%p139_p2), 220160   ;;  %v2254_v42 = vld [vmem:[%s2382_s2] ss:$0 sm:$0xff] (!%p139_p2) }
   0x7   : > { %2000 = vmatpush3.bf16.msra.mxu0 (!%p139_p2), %v2088_v0  ;;  %2077 = vmatpush3.bf16.msra.mxu1 (!%p139_p2), %v2088_v0  ;;  %v560_v3 = vsel (!%p139_p2), %vm558_vm0, 4294967295, %v2134_v2  ;;  %p163_p3 = scmp.lt.s32.totalorder (!%p139_p2), %s162_s18, 575 }
   0x8   : > { %v561_v4 = vsel (!%p139_p2), %vm559_vm1, %v560_v3, 0 }
   0x9   : > { %v563_v5 = vand.u32 (!%p139_p2), %v2089_v1, %v561_v4 }
   0xb   : > { %2001 = vmatprep.subr.bf16.mxu0 (!%p139_p2), %v563_v5  ;;  %2076 = vmatprep.subr.bf16.mxu1 (!%p139_p2), %v563_v5 }
   0xc   : > { %2002 = vmatpush3.bf16.msra.mxu0 (!%p139_p2), %v563_v5  ;;  %2078 = vmatpush3.bf16.msra.mxu1 (!%p139_p2), %v563_v5 }
   0xd   : > { %s2385_s18 = smov (!%p163_p3, %s162_s18), 575 }
   0xe   : > { %s1523_s19 = sshll.u32 %s2385_s18, 2 }
   0xf   : > { %s2177_s22 = scalar_lea.vmem %s2380_s0, %s1523_s19  ;;  %s2269_s27 = scalar_lea.vmem %s2383_s3, %s1523_s19 }
  0x10   : > { %v2090_v6 = vld [vmem:[%s2177_s22] sm:$0xff]   ;;  %v2091_v7 = vld [vmem:[%s2177_s22 + $0x90] sm:$0xff]   ;;  %v2092_v8 = vld [vmem:[%s2177_s22 + $0x8] sm:$0xff]  }
  0x11   : > { %2003 = vmatprep.mubr.msk.bf16.mxu0 %vm449_vm2, %v2090_v6  ;;  %2039 = vmatprep.mubr.msk.bf16.mxu1 %vm449_vm2, %v2091_v7  ;;  %v2093_v9 = vld [vmem:[%s2177_s22 + $0x98] sm:$0xff]   ;;  %v2094_v10 = vld [vmem:[%s2177_s22 + $0x10] sm:$0xff]   ;;  %v2095_v11 = vld [vmem:[%s2177_s22 + $0xa0] sm:$0xff]  }
  0x12   : > { %2004 = vmatmul.mubr.msk.bf16.vlgmr.msra.gmra.mrb[0].mxu0 %vm449_vm2, %v2092_v8  ;;  %2040 = vmatmul.mubr.msk.bf16.vlgmr.msra.gmra.mrb[0].mxu1 %vm449_vm2, %v2093_v9  ;;  %v2096_v12 = vld [vmem:[%s2177_s22 + $0x18] sm:$0xff]   ;;  %v2097_v13 = vld [vmem:[%s2177_s22 + $0xa8] sm:$0xff]   ;;  %v2098_v14 = vld [vmem:[%s2177_s22 + $0x20] sm:$0xff]  }
  0x13   : > { %2007 = vmatprep.mubr.msk.bf16.mxu0 %vm449_vm2, %v2094_v10  ;;  %2043 = vmatprep.mubr.msk.bf16.mxu1 %vm449_vm2, %v2095_v11  ;;  %v2099_v15 = vld [vmem:[%s2177_s22 + $0xb0] sm:$0xff]   ;;  %v2100_v16 = vld [vmem:[%s2177_s22 + $0x28] sm:$0xff]   ;;  %v2101_v17 = vld [vmem:[%s2177_s22 + $0xb8] sm:$0xff]  }
  0x14   : > { %v2102_v18 = vld [vmem:[%s2177_s22 + $0x30] sm:$0xff]   ;;  %v2103_v19 = vld [vmem:[%s2177_s22 + $0xc0] sm:$0xff]   ;;  %v2104_v20 = vld [vmem:[%s2177_s22 + $0x38] sm:$0xff]  }
  0x15   : > { %v2105_v21 = vld [vmem:[%s2177_s22 + $0xc8] sm:$0xff]   ;;  %v2106_v22 = vld [vmem:[%s2177_s22 + $0x40] sm:$0xff]   ;;  %v2107_v23 = vld [vmem:[%s2177_s22 + $0xd0] sm:$0xff]  }
  0x16   : > { %v2108_v24 = vld [vmem:[%s2177_s22 + $0x48] sm:$0xff]   ;;  %v2109_v25 = vld [vmem:[%s2177_s22 + $0xd8] sm:$0xff]   ;;  %v2110_v26 = vld [vmem:[%s2177_s22 + $0x50] sm:$0xff]  }
  0x17   : > { %v2111_v27 = vld [vmem:[%s2177_s22 + $0xe0] sm:$0xff]   ;;  %v2112_v28 = vld [vmem:[%s2177_s22 + $0x58] sm:$0xff]   ;;  %v2113_v29 = vld [vmem:[%s2177_s22 + $0xe8] sm:$0xff]  }
  0x18   : > { %v2114_v30 = vld [vmem:[%s2177_s22 + $0x60] sm:$0xff]   ;;  %v2115_v31 = vld [vmem:[%s2177_s22 + $0xf0] sm:$0xff]   ;;  %v2116_v32 = vld [vmem:[%s2177_s22 + $0x68] sm:$0xff]  }
  0x19   : > { %v2117_v33 = vld [vmem:[%s2177_s22 + $0xf8] sm:$0xff]   ;;  %v2118_v34 = vld [vmem:[%s2177_s22 + $0x70] sm:$0xff]   ;;  %v2119_v35 = vld [vmem:[%s2177_s22 + $0x100] sm:$0xff]  }
  0x1a   : > { %2008 = vmatmul.mubr.msk.bf16.gmra.mrb[4].mxu0 %vm449_vm2, %v2096_v12  ;;  %2044 = vmatmul.mubr.msk.bf16.gmra.mrb[4].mxu1 %vm449_vm2, %v2097_v13  ;;  %v2120_v36 = vld [vmem:[%s2177_s22 + $0x78] sm:$0xff]   ;;  %v2121_v37 = vld [vmem:[%s2177_s22 + $0x108] sm:$0xff]   ;;  %v2122_v38 = vld [vmem:[%s2177_s22 + $0x80] sm:$0xff]  }
  0x1b   : > { %2011 = vmatprep.mubr.msk.bf16.mxu0 %vm449_vm2, %v2098_v14  ;;  %2047 = vmatprep.mubr.msk.bf16.mxu1 %vm449_vm2, %v2099_v15  ;;  %v2123_v39 = vld [vmem:[%s2177_s22 + $0x110] sm:$0xff]   ;;  %v2124_v40 = vld [vmem:[%s2177_s22 + $0x88] sm:$0xff]   ;;  %v2125_v41 = vld [vmem:[%s2177_s22 + $0x118] sm:$0xff]  }
  0x22   : > { %2012 = vmatmul.mubr.msk.bf16.gmra.mrb[8].mxu0 %vm449_vm2, %v2100_v16  ;;  %2048 = vmatmul.mubr.msk.bf16.gmra.mrb[8].mxu1 %vm449_vm2, %v2101_v17 }
  0x23   : > { %2015 = vmatprep.mubr.msk.bf16.mxu0 %vm449_vm2, %v2102_v18  ;;  %2051 = vmatprep.mubr.msk.bf16.mxu1 %vm449_vm2, %v2103_v19 }
  0x2a   : > { %2016 = vmatmul.mubr.msk.bf16.gmra.mrb[12].mxu0 %vm449_vm2, %v2104_v20  ;;  %2052 = vmatmul.mubr.msk.bf16.gmra.mrb[12].mxu1 %vm449_vm2, %v2105_v21 }
  0x2b   : > { %2019 = vmatprep.mubr.msk.bf16.mxu0 %vm449_vm2, %v2106_v22  ;;  %2055 = vmatprep.mubr.msk.bf16.mxu1 %vm449_vm2, %v2107_v23 }
  0x32   : > { %2020 = vmatmul.mubr.msk.bf16.gmra.mrb[16].mxu0 %vm449_vm2, %v2108_v24  ;;  %2056 = vmatmul.mubr.msk.bf16.gmra.mrb[16].mxu1 %vm449_vm2, %v2109_v25 }
  0x33   : > { %2023 = vmatprep.mubr.msk.bf16.mxu0 %vm449_vm2, %v2110_v26  ;;  %2059 = vmatprep.mubr.msk.bf16.mxu1 %vm449_vm2, %v2111_v27 }
  0x3a   : > { %2024 = vmatmul.mubr.msk.bf16.gmra.mrb[20].mxu0 %vm449_vm2, %v2112_v28  ;;  %2060 = vmatmul.mubr.msk.bf16.gmra.mrb[20].mxu1 %vm449_vm2, %v2113_v29 }
  0x3b   : > { %2027 = vmatprep.mubr.msk.bf16.mxu0 %vm449_vm2, %v2114_v30  ;;  %2063 = vmatprep.mubr.msk.bf16.mxu1 %vm449_vm2, %v2115_v31 }
  0x42   : > { %2028 = vmatmul.mubr.msk.bf16.gmra.mrb[24].mxu0 %vm449_vm2, %v2116_v32  ;;  %2064 = vmatmul.mubr.msk.bf16.gmra.mrb[24].mxu1 %vm449_vm2, %v2117_v33 }
  0x43   : > { %2031 = vmatprep.mubr.msk.bf16.mxu0 %vm449_vm2, %v2118_v34  ;;  %2067 = vmatprep.mubr.msk.bf16.mxu1 %vm449_vm2, %v2119_v35 }
  0x4a   : > { %2032 = vmatmul.mubr.msk.bf16.gmra.mrb[28].mxu0 %vm449_vm2, %v2120_v36  ;;  %2068 = vmatmul.mubr.msk.bf16.gmra.mrb[28].mxu1 %vm449_vm2, %v2121_v37 }
  0x4b   : > { %2035 = vmatprep.mubr.msk.bf16.mxu0 %vm449_vm2, %v2122_v38  ;;  %2071 = vmatprep.mubr.msk.bf16.mxu1 %vm449_vm2, %v2123_v39 }
  0x52   : > { %2036 = vmatmul.mubr.msk.bf16.gmra.mrb[32].mxu0 %vm449_vm2, %v2124_v40  ;;  %2072 = vmatmul.mubr.msk.bf16.gmra.mrb[32].mxu1 %vm449_vm2, %v2125_v41 }
  0xe5   : > { %v2005_v43 = vpop.f32.mrb[0].mxu0  ;;  %v2041_v45 = vpop.f32.mrb[0].mxu1 }
  0xe6   : > { %v608_v44 = vadd.f32 %v2005_v43, %v2254_v42  ;;  %v599_v46 = vpop.f32.mrb[1].mxu0  ;;  %v752_v47 = vadd.f32 %v2041_v45, %v2254_v42  ;;  %v743_v49 = vpop.f32.mrb[1].mxu1 }
  0xe7   : > { %v600_v48 = vadd.f32 %v2254_v42, %v599_v46  ;;  %v2006_v50 = vpop.f32.mrb[2].mxu0  ;;  %v744_v52 = vadd.f32 %v2254_v42, %v743_v49  ;;  %v2042_v54 = vpop.f32.mrb[2].mxu1 }
  0xe8   : > { %vm888_vm3 = vcmp.ge.f32.partialorder %v608_v44, 0.0  ;;  %v960_v51 = vmul.f32 0.01, %v608_v44  ;;  %v611_v53 = vadd.f32 %v2006_v50, %v2254_v42  ;;  %v602_v55 = vpop.f32.mrb[3].mxu0  ;;  %vm924_vm4 = vcmp.ge.f32.partialorder %v752_v47, 0.0  ;;  %v746_v59 = vpop.f32.mrb[3].mxu1 }
  0xe9   : > { %v996_v56 = vmul.f32 0.01, %v752_v47  ;;  %vm886_vm5 = vcmp.ge.f32.partialorder %v600_v48, 0.0  ;;  %v958_v57 = vmul.f32 0.01, %v600_v48  ;;  %vm922_vm6 = vcmp.ge.f32.partialorder %v744_v52, 0.0 }
  0xea   : > { %v994_v58 = vmul.f32 0.01, %v744_v52  ;;  %vm889_vm7 = vcmp.ge.f32.partialorder %v611_v53, 0.0  ;;  %v1032_v60 = vsel %vm888_vm3, %v608_v44, %v960_v51  ;;  %v961_v61 = vmul.f32 0.01, %v611_v53 }
  0xeb   : > { %v755_v62 = vadd.f32 %v2042_v54, %v2254_v42  ;;  %v1068_v63 = vsel %vm924_vm4, %v752_v47, %v996_v56  ;;  %v1030_v0 = vsel %vm886_vm5, %v600_v48, %v958_v57  ;;  %v603_v1 = vadd.f32 %v2254_v42, %v602_v55 }
  0xec   : > { %v747_v2 = vadd.f32 %v2254_v42, %v746_v59  ;;  %v1066_v3 = vsel %vm922_vm6, %v744_v52, %v994_v58  ;;  %v1033_v4 = vsel %vm889_vm7, %v611_v53, %v961_v61 }
  0xed   : > { %vm925_vm8 = vcmp.ge.f32.partialorder %v755_v62, 0.0  ;;  %v997_v5 = vmul.f32 0.01, %v755_v62  ;;  %v2009_v6 = vpop.f32.mrb[4].mxu0  ;;  %v1754_v7 = vpack.c.bf16 %v1033_v4, %v1032_v60  ;;  %vm887_vm9 = vcmp.ge.f32.partialorder %v603_v1, 0.0  ;;  %v2045_v9 = vpop.f32.mrb[4].mxu1 }
  0xee   : > { %v959_v8 = vmul.f32 0.01, %v603_v1  ;;  %vm923_vm10 = vcmp.ge.f32.partialorder %v747_v2, 0.0  ;;  %v615_v10 = vpop.f32.mrb[5].mxu0  ;;  %v995_v12 = vmul.f32 0.01, %v747_v2  ;;  %v624_v13 = vadd.f32 %v2009_v6, %v2254_v42 }
  0xef   : > { %v1069_v11 = vsel %vm925_vm8, %v755_v62, %v997_v5  ;;  %v768_v14 = vadd.f32 %v2045_v9, %v2254_v42  ;;  %v759_v15 = vpop.f32.mrb[5].mxu1  ;;  %v2010_v16 = vpop.f32.mrb[6].mxu0  ;;  %1926 = vst [vmem:[%s2269_s27 + $0x8] sm:$0xff] %v1754_v7   ;;  %v616_v19 = vadd.f32 %v2254_v42, %v615_v10 }
  0xf0   : > { %v1844_v17 = vpack.c.bf16 %v1069_v11, %v1068_v63  ;;  %v1031_v18 = vsel %vm887_vm9, %v603_v1, %v959_v8  ;;  %v760_v20 = vadd.f32 %v2254_v42, %v759_v15  ;;  %v2046_v21 = vpop.f32.mrb[6].mxu1  ;;  %v618_v22 = vpop.f32.mrb[7].mxu0  ;;  %v1067_v24 = vsel %vm923_vm10, %v747_v2, %v995_v12 }
  0xf1   : > { %v1749_v23 = vpack.c.bf16 %v1031_v18, %v1030_v0  ;;  %vm892_vm11 = vcmp.ge.f32.partialorder %v624_v13, 0.0  ;;  %v964_v25 = vmul.f32 0.01, %v624_v13  ;;  %v762_v26 = vpop.f32.mrb[7].mxu1  ;;  %v1839_v27 = vpack.c.bf16 %v1067_v24, %v1066_v3 }
  0xf2   : > { %1944 = vst [vmem:[%s2269_s27 + $0x98] sm:$0xff] %v1844_v17   ;;  %vm928_vm12 = vcmp.ge.f32.partialorder %v768_v14, 0.0  ;;  %v1000_v28 = vmul.f32 0.01, %v768_v14  ;;  %vm890_vm13 = vcmp.ge.f32.partialorder %v616_v19, 0.0  ;;  %v627_v32 = vadd.f32 %v2010_v16, %v2254_v42 }
  0xf3   : > { %1750 = vst [vmem:[%s2269_s27] sm:$0xff] %v1749_v23   ;;  %v1036_v29 = vsel %vm892_vm11, %v624_v13, %v964_v25  ;;  %v962_v30 = vmul.f32 0.01, %v616_v19  ;;  %1943 = vst [vmem:[%s2269_s27 + $0x90] sm:$0xff] %v1839_v27   ;;  %v998_v31 = vmul.f32 0.01, %v760_v20  ;;  %v771_v33 = vadd.f32 %v2046_v21, %v2254_v42 }
  0xf4   : > { %v619_v34 = vadd.f32 %v2254_v42, %v618_v22  ;;  %v1072_v35 = vsel %vm928_vm12, %v768_v14, %v1000_v28  ;;  %vm926_vm14 = vcmp.ge.f32.partialorder %v760_v20, 0.0  ;;  %v763_v37 = vadd.f32 %v2254_v42, %v762_v26 }
  0xf5   : > { %v1034_v36 = vsel %vm890_vm13, %v616_v19, %v962_v30  ;;  %v2013_v38 = vpop.f32.mrb[8].mxu0  ;;  %vm893_vm15 = vcmp.ge.f32.partialorder %v627_v32, 0.0  ;;  %v965_v39 = vmul.f32 0.01, %v627_v32  ;;  %vm929_vm0 = vcmp.ge.f32.partialorder %v771_v33, 0.0  ;;  %v2049_v48 = vpop.f32.mrb[8].mxu1 }
  0xf6   : > { %v1001_v40 = vmul.f32 0.01, %v771_v33  ;;  %vm891_vm1 = vcmp.ge.f32.partialorder %v619_v34, 0.0  ;;  %v963_v41 = vmul.f32 0.01, %v619_v34  ;;  %vm927_vm2 = vcmp.ge.f32.partialorder %v763_v37, 0.0 }
  0xf7   : > { %v999_v43 = vmul.f32 0.01, %v763_v37  ;;  %v1070_v44 = vsel %vm926_vm14, %v760_v20, %v998_v31  ;;  %v1037_v45 = vsel %vm893_vm15, %v627_v32, %v965_v39  ;;  %v640_v47 = vadd.f32 %v2013_v38, %v2254_v42  ;;  %v631_v49 = vpop.f32.mrb[9].mxu0  ;;  %v775_v54 = vpop.f32.mrb[9].mxu1 }
  0xf8   : > { %v1073_v46 = vsel %vm929_vm0, %v771_v33, %v1001_v40  ;;  %v1764_v50 = vpack.c.bf16 %v1037_v45, %v1036_v29  ;;  %v1035_v52 = vsel %vm891_vm1, %v619_v34, %v963_v41  ;;  %v2014_v55 = vpop.f32.mrb[10].mxu0  ;;  %v2050_v59 = vpop.f32.mrb[10].mxu1  ;;  %v784_v61 = vadd.f32 %v2049_v48, %v2254_v42 }
  0xf9   : > { %v1854_v51 = vpack.c.bf16 %v1073_v46, %v1072_v35  ;;  %v1071_v53 = vsel %vm927_vm2, %v763_v37, %v999_v43  ;;  %v1759_v56 = vpack.c.bf16 %v1035_v52, %v1034_v36  ;;  %vm896_vm3 = vcmp.ge.f32.partialorder %v640_v47, 0.0  ;;  %v634_v60 = vpop.f32.mrb[11].mxu0  ;;  %v778_v1 = vpop.f32.mrb[11].mxu1 }
  0xfa   : > { %v1849_v57 = vpack.c.bf16 %v1071_v53, %v1070_v44  ;;  %v968_v58 = vmul.f32 0.01, %v640_v47  ;;  %1928 = vst [vmem:[%s2269_s27 + $0x18] sm:$0xff] %v1764_v50   ;;  %v632_v62 = vadd.f32 %v2254_v42, %v631_v49  ;;  %v776_v63 = vadd.f32 %v2254_v42, %v775_v54 }
  0xfb   : > { %1946 = vst [vmem:[%s2269_s27 + $0xa8] sm:$0xff] %v1854_v51   ;;  %v643_v0 = vadd.f32 %v2014_v55, %v2254_v42  ;;  %1927 = vst [vmem:[%s2269_s27 + $0x10] sm:$0xff] %v1759_v56   ;;  %v787_v3 = vadd.f32 %v2050_v59, %v2254_v42  ;;  %v635_v4 = vadd.f32 %v2254_v42, %v634_v60  ;;  %vm932_vm4 = vcmp.ge.f32.partialorder %v784_v61, 0.0 }
  0xfc   : > { %1945 = vst [vmem:[%s2269_s27 + $0xa0] sm:$0xff] %v1849_v57   ;;  %v1040_v2 = vsel %vm896_vm3, %v640_v47, %v968_v58  ;;  %v779_v5 = vadd.f32 %v2254_v42, %v778_v1  ;;  %v1004_v6 = vmul.f32 0.01, %v784_v61  ;;  %vm894_vm5 = vcmp.ge.f32.partialorder %v632_v62, 0.0 }
  0xfd   : > { %v966_v7 = vmul.f32 0.01, %v632_v62  ;;  %vm930_vm6 = vcmp.ge.f32.partialorder %v776_v63, 0.0  ;;  %v1002_v8 = vmul.f32 0.01, %v776_v63  ;;  %vm897_vm7 = vcmp.ge.f32.partialorder %v643_v0, 0.0 }
  0xfe   : > { %v969_v9 = vmul.f32 0.01, %v643_v0  ;;  %v1076_v10 = vsel %vm932_vm4, %v784_v61, %v1004_v6  ;;  %vm933_vm8 = vcmp.ge.f32.partialorder %v787_v3, 0.0  ;;  %v1005_v12 = vmul.f32 0.01, %v787_v3  ;;  %v2017_v13 = vpop.f32.mrb[12].mxu0 }
  0xff   : > { %v1038_v11 = vsel %vm894_vm5, %v632_v62, %v966_v7  ;;  %v2053_v14 = vpop.f32.mrb[12].mxu1  ;;  %v1074_v15 = vsel %vm930_vm6, %v776_v63, %v1002_v8  ;;  %vm895_vm9 = vcmp.ge.f32.partialorder %v635_v4, 0.0  ;;  %v967_v17 = vmul.f32 0.01, %v635_v4  ;;  %v647_v18 = vpop.f32.mrb[13].mxu0 }
 0x100   : > { %v1041_v16 = vsel %vm897_vm7, %v643_v0, %v969_v9  ;;  %v791_v19 = vpop.f32.mrb[13].mxu1  ;;  %v1077_v21 = vsel %vm933_vm8, %v787_v3, %v1005_v12  ;;  %vm931_vm10 = vcmp.ge.f32.partialorder %v779_v5, 0.0  ;;  %v1003_v22 = vmul.f32 0.01, %v779_v5  ;;  %v2018_v23 = vpop.f32.mrb[14].mxu0 }
 0x101   : > { %v1774_v20 = vpack.c.bf16 %v1041_v16, %v1040_v2  ;;  %v2054_v24 = vpop.f32.mrb[14].mxu1  ;;  %v1864_v25 = vpack.c.bf16 %v1077_v21, %v1076_v10  ;;  %v1039_v26 = vsel %vm895_vm9, %v635_v4, %v967_v17  ;;  %v656_v27 = vadd.f32 %v2017_v13, %v2254_v42  ;;  %v650_v29 = vpop.f32.mrb[15].mxu0 }
 0x102   : > { %v800_v28 = vadd.f32 %v2053_v14, %v2254_v42  ;;  %v794_v30 = vpop.f32.mrb[15].mxu1  ;;  %v1769_v31 = vpack.c.bf16 %v1039_v26, %v1038_v11  ;;  %v1075_v32 = vsel %vm931_vm10, %v779_v5, %v1003_v22  ;;  %v648_v33 = vadd.f32 %v2254_v42, %v647_v18 }
 0x103   : > { %1930 = vst [vmem:[%s2269_s27 + $0x28] sm:$0xff] %v1774_v20   ;;  %v792_v34 = vadd.f32 %v2254_v42, %v791_v19  ;;  %1948 = vst [vmem:[%s2269_s27 + $0xb8] sm:$0xff] %v1864_v25   ;;  %v1859_v35 = vpack.c.bf16 %v1075_v32, %v1074_v15  ;;  %vm900_vm11 = vcmp.ge.f32.partialorder %v656_v27, 0.0  ;;  %v972_v36 = vmul.f32 0.01, %v656_v27 }
 0x104   : > { %vm936_vm12 = vcmp.ge.f32.partialorder %v800_v28, 0.0  ;;  %1929 = vst [vmem:[%s2269_s27 + $0x20] sm:$0xff] %v1769_v31   ;;  %v1008_v37 = vmul.f32 0.01, %v800_v28  ;;  %vm898_vm13 = vcmp.ge.f32.partialorder %v648_v33, 0.0  ;;  %v659_v41 = vadd.f32 %v2018_v23, %v2254_v42 }
 0x105   : > { %v970_v38 = vmul.f32 0.01, %v648_v33  ;;  %vm934_vm14 = vcmp.ge.f32.partialorder %v792_v34, 0.0  ;;  %1947 = vst [vmem:[%s2269_s27 + $0xb0] sm:$0xff] %v1859_v35   ;;  %v1044_v39 = vsel %vm900_vm11, %v656_v27, %v972_v36  ;;  %v1006_v40 = vmul.f32 0.01, %v792_v34 }
 0x106   : > { %v803_v43 = vadd.f32 %v2054_v24, %v2254_v42  ;;  %v2021_v44 = vpop.f32.mrb[16].mxu0  ;;  %v2057_v45 = vpop.f32.mrb[16].mxu1  ;;  %v1080_v46 = vsel %vm936_vm12, %v800_v28, %v1008_v37  ;;  %v651_v48 = vadd.f32 %v2254_v42, %v650_v29  ;;  %v795_v49 = vadd.f32 %v2254_v42, %v794_v30 }
 0x107   : > { %v1042_v47 = vsel %vm898_vm13, %v648_v33, %v970_v38  ;;  %v663_v50 = vpop.f32.mrb[17].mxu0  ;;  %v807_v51 = vpop.f32.mrb[17].mxu1  ;;  %v1078_v52 = vsel %vm934_vm14, %v792_v34, %v1006_v40  ;;  %vm901_vm15 = vcmp.ge.f32.partialorder %v659_v41, 0.0  ;;  %v973_v53 = vmul.f32 0.01, %v659_v41 }
 0x108   : > { %vm937_vm0 = vcmp.ge.f32.partialorder %v803_v43, 0.0  ;;  %v2022_v54 = vpop.f32.mrb[18].mxu0  ;;  %v2058_v55 = vpop.f32.mrb[18].mxu1  ;;  %v1009_v56 = vmul.f32 0.01, %v803_v43  ;;  %vm899_vm1 = vcmp.ge.f32.partialorder %v651_v48, 0.0  ;;  %v672_v60 = vadd.f32 %v2021_v44, %v2254_v42 }
 0x109   : > { %v971_v57 = vmul.f32 0.01, %v651_v48  ;;  %vm935_vm2 = vcmp.ge.f32.partialorder %v795_v49, 0.0  ;;  %v1045_v58 = vsel %vm901_vm15, %v659_v41, %v973_v53  ;;  %v1007_v59 = vmul.f32 0.01, %v795_v49  ;;  %v666_v62 = vpop.f32.mrb[19].mxu0 }
 0x10a   : > { %v816_v61 = vadd.f32 %v2057_v45, %v2254_v42  ;;  %v810_v63 = vpop.f32.mrb[19].mxu1  ;;  %v1784_v0 = vpack.c.bf16 %v1045_v58, %v1044_v39  ;;  %v1081_v1 = vsel %vm937_vm0, %v803_v43, %v1009_v56  ;;  %v664_v3 = vadd.f32 %v2254_v42, %v663_v50 }
 0x10b   : > { %v1043_v2 = vsel %vm899_vm1, %v651_v48, %v971_v57  ;;  %v1874_v4 = vpack.c.bf16 %v1081_v1, %v1080_v46  ;;  %v1079_v6 = vsel %vm935_vm2, %v795_v49, %v1007_v59  ;;  %vm904_vm3 = vcmp.ge.f32.partialorder %v672_v60, 0.0 }
 0x10c   : > { %v1779_v5 = vpack.c.bf16 %v1043_v2, %v1042_v47  ;;  %1932 = vst [vmem:[%s2269_s27 + $0x38] sm:$0xff] %v1784_v0   ;;  %v1869_v7 = vpack.c.bf16 %v1079_v6, %v1078_v52  ;;  %v976_v8 = vmul.f32 0.01, %v672_v60  ;;  %vm940_vm4 = vcmp.ge.f32.partialorder %v816_v61, 0.0 }
 0x10d   : > { %v1012_v9 = vmul.f32 0.01, %v816_v61  ;;  %v2025_v10 = vpop.f32.mrb[20].mxu0  ;;  %1950 = vst [vmem:[%s2269_s27 + $0xc8] sm:$0xff] %v1874_v4   ;;  %vm902_vm5 = vcmp.ge.f32.partialorder %v664_v3, 0.0  ;;  %v808_v12 = vadd.f32 %v2254_v42, %v807_v51  ;;  %v675_v13 = vadd.f32 %v2022_v54, %v2254_v42  ;;  %v2061_v14 = vpop.f32.mrb[20].mxu1 }
 0x10e   : > { %1931 = vst [vmem:[%s2269_s27 + $0x30] sm:$0xff] %v1779_v5   ;;  %v974_v11 = vmul.f32 0.01, %v664_v3  ;;  %v679_v15 = vpop.f32.mrb[21].mxu0  ;;  %1949 = vst [vmem:[%s2269_s27 + $0xc0] sm:$0xff] %v1869_v7   ;;  %v1048_v16 = vsel %vm904_vm3, %v672_v60, %v976_v8  ;;  %v819_v18 = vadd.f32 %v2058_v55, %v2254_v42  ;;  %v667_v19 = vadd.f32 %v2254_v42, %v666_v62  ;;  %v823_v20 = vpop.f32.mrb[21].mxu1 }
 0x10f   : > { %v1084_v17 = vsel %vm940_vm4, %v816_v61, %v1012_v9  ;;  %v2026_v21 = vpop.f32.mrb[22].mxu0  ;;  %vm938_vm6 = vcmp.ge.f32.partialorder %v808_v12, 0.0  ;;  %v1010_v23 = vmul.f32 0.01, %v808_v12  ;;  %vm905_vm7 = vcmp.ge.f32.partialorder %v675_v13, 0.0  ;;  %v2062_v24 = vpop.f32.mrb[22].mxu1 }
 0x110   : > { %v1046_v22 = vsel %vm902_vm5, %v664_v3, %v974_v11  ;;  %v682_v25 = vpop.f32.mrb[23].mxu0  ;;  %v977_v26 = vmul.f32 0.01, %v675_v13  ;;  %vm941_vm8 = vcmp.ge.f32.partialorder %v819_v18, 0.0  ;;  %v1013_v27 = vmul.f32 0.01, %v819_v18 }
 0x111   : > { %vm903_vm9 = vcmp.ge.f32.partialorder %v667_v19, 0.0  ;;  %v1082_v28 = vsel %vm938_vm6, %v808_v12, %v1010_v23  ;;  %v975_v29 = vmul.f32 0.01, %v667_v19  ;;  %v811_v30 = vadd.f32 %v2254_v42, %v810_v63  ;;  %v826_v32 = vpop.f32.mrb[23].mxu1 }
 0x112   : > { %v688_v31 = vadd.f32 %v2025_v10, %v2254_v42  ;;  %v1049_v33 = vsel %vm905_vm7, %v675_v13, %v977_v26  ;;  %v1085_v34 = vsel %vm941_vm8, %v819_v18, %v1013_v27  ;;  %v832_v35 = vadd.f32 %v2061_v14, %v2254_v42 }
 0x113   : > { %v680_v36 = vadd.f32 %v2254_v42, %v679_v15  ;;  %v1794_v37 = vpack.c.bf16 %v1049_v33, %v1048_v16  ;;  %v1884_v38 = vpack.c.bf16 %v1085_v34, %v1084_v17  ;;  %v1047_v39 = vsel %vm903_vm9, %v667_v19, %v975_v29 }
 0x114   : > { %vm939_vm10 = vcmp.ge.f32.partialorder %v811_v30, 0.0  ;;  %v1789_v40 = vpack.c.bf16 %v1047_v39, %v1046_v22  ;;  %v1011_v41 = vmul.f32 0.01, %v811_v30  ;;  %vm908_vm11 = vcmp.ge.f32.partialorder %v688_v31, 0.0 }
 0x115   : > { %v980_v43 = vmul.f32 0.01, %v688_v31  ;;  %v2029_v44 = vpop.f32.mrb[24].mxu0  ;;  %1934 = vst [vmem:[%s2269_s27 + $0x48] sm:$0xff] %v1794_v37   ;;  %1952 = vst [vmem:[%s2269_s27 + $0xd8] sm:$0xff] %v1884_v38   ;;  %vm944_vm12 = vcmp.ge.f32.partialorder %v832_v35, 0.0  ;;  %v824_v49 = vadd.f32 %v2254_v42, %v823_v20  ;;  %v691_v50 = vadd.f32 %v2026_v21, %v2254_v42 }
 0x116   : > { %v1016_v45 = vmul.f32 0.01, %v832_v35  ;;  %vm906_vm13 = vcmp.ge.f32.partialorder %v680_v36, 0.0  ;;  %v978_v46 = vmul.f32 0.01, %v680_v36  ;;  %1933 = vst [vmem:[%s2269_s27 + $0x40] sm:$0xff] %v1789_v40   ;;  %v1083_v47 = vsel %vm939_vm10, %v811_v30, %v1011_v41 }
 0x117   : > { %v1052_v48 = vsel %vm908_vm11, %v688_v31, %v980_v43  ;;  %v2065_v51 = vpop.f32.mrb[24].mxu1  ;;  %v695_v52 = vpop.f32.mrb[25].mxu0  ;;  %v1879_v53 = vpack.c.bf16 %v1083_v47, %v1082_v28  ;;  %v835_v56 = vadd.f32 %v2062_v24, %v2254_v42  ;;  %vm942_vm14 = vcmp.ge.f32.partialorder %v824_v49, 0.0 }
 0x118   : > { %v1088_v54 = vsel %vm944_vm12, %v832_v35, %v1016_v45  ;;  %v1050_v55 = vsel %vm906_vm13, %v680_v36, %v978_v46  ;;  %v839_v57 = vpop.f32.mrb[25].mxu1  ;;  %v2030_v58 = vpop.f32.mrb[26].mxu0  ;;  %v1014_v59 = vmul.f32 0.01, %v824_v49  ;;  %vm909_vm15 = vcmp.ge.f32.partialorder %v691_v50, 0.0 }
 0x119   : > { %v981_v60 = vmul.f32 0.01, %v691_v50  ;;  %1951 = vst [vmem:[%s2269_s27 + $0xd0] sm:$0xff] %v1879_v53   ;;  %vm945_vm0 = vcmp.ge.f32.partialorder %v835_v56, 0.0  ;;  %v1017_v61 = vmul.f32 0.01, %v835_v56  ;;  %v683_v62 = vadd.f32 %v2254_v42, %v682_v25 }
 0x11a   : > { %v827_v63 = vadd.f32 %v2254_v42, %v826_v32  ;;  %v2066_v0 = vpop.f32.mrb[26].mxu1  ;;  %v698_v1 = vpop.f32.mrb[27].mxu0  ;;  %v1086_v2 = vsel %vm942_vm14, %v824_v49, %v1014_v59  ;;  %v704_v4 = vadd.f32 %v2029_v44, %v2254_v42  ;;  %v848_v5 = vadd.f32 %v2065_v51, %v2254_v42 }
 0x11b   : > { %v1053_v3 = vsel %vm909_vm15, %v691_v50, %v981_v60  ;;  %v842_v6 = vpop.f32.mrb[27].mxu1  ;;  %v1089_v8 = vsel %vm945_vm0, %v835_v56, %v1017_v61  ;;  %vm907_vm1 = vcmp.ge.f32.partialorder %v683_v62, 0.0  ;;  %v979_v9 = vmul.f32 0.01, %v683_v62 }
 0x11c   : > { %v1804_v7 = vpack.c.bf16 %v1053_v3, %v1052_v48  ;;  %v1894_v10 = vpack.c.bf16 %v1089_v8, %v1088_v54  ;;  %vm943_vm2 = vcmp.ge.f32.partialorder %v827_v63, 0.0  ;;  %v1015_v11 = vmul.f32 0.01, %v827_v63 }
 0x11d   : > { %vm912_vm3 = vcmp.ge.f32.partialorder %v704_v4, 0.0  ;;  %v2033_v12 = vpop.f32.mrb[28].mxu0  ;;  %v1051_v13 = vsel %vm907_vm1, %v683_v62, %v979_v9  ;;  %v984_v14 = vmul.f32 0.01, %v704_v4  ;;  %vm948_vm4 = vcmp.ge.f32.partialorder %v848_v5, 0.0  ;;  %v2069_v16 = vpop.f32.mrb[28].mxu1 }
 0x11e   : > { %1936 = vst [vmem:[%s2269_s27 + $0x58] sm:$0xff] %v1804_v7   ;;  %v1020_v15 = vmul.f32 0.01, %v848_v5  ;;  %1954 = vst [vmem:[%s2269_s27 + $0xe8] sm:$0xff] %v1894_v10   ;;  %v1799_v17 = vpack.c.bf16 %v1051_v13, %v1050_v55  ;;  %v1087_v18 = vsel %vm943_vm2, %v827_v63, %v1015_v11  ;;  %v696_v19 = vadd.f32 %v2254_v42, %v695_v52  ;;  %v711_v21 = vpop.f32.mrb[29].mxu0  ;;  %v855_v22 = vpop.f32.mrb[29].mxu1 }
 0x11f   : > { %v840_v20 = vadd.f32 %v2254_v42, %v839_v57  ;;  %v1889_v23 = vpack.c.bf16 %v1087_v18, %v1086_v2  ;;  %v1056_v24 = vsel %vm912_vm3, %v704_v4, %v984_v14  ;;  %v707_v25 = vadd.f32 %v2030_v58, %v2254_v42  ;;  %v2034_v26 = vpop.f32.mrb[30].mxu0  ;;  %v2070_v27 = vpop.f32.mrb[30].mxu1 }
 0x120   : > { %1935 = vst [vmem:[%s2269_s27 + $0x50] sm:$0xff] %v1799_v17   ;;  %v1092_v28 = vsel %vm948_vm4, %v848_v5, %v1020_v15  ;;  %vm910_vm5 = vcmp.ge.f32.partialorder %v696_v19, 0.0  ;;  %v982_v29 = vmul.f32 0.01, %v696_v19  ;;  %v851_v32 = vadd.f32 %v2066_v0, %v2254_v42  ;;  %v714_v34 = vpop.f32.mrb[31].mxu0  ;;  %v858_v35 = vpop.f32.mrb[31].mxu1 }
 0x121   : > { %v1018_v30 = vmul.f32 0.01, %v840_v20  ;;  %1953 = vst [vmem:[%s2269_s27 + $0xe0] sm:$0xff] %v1889_v23   ;;  %vm913_vm6 = vcmp.ge.f32.partialorder %v707_v25, 0.0  ;;  %v985_v31 = vmul.f32 0.01, %v707_v25  ;;  %v699_v33 = vadd.f32 %v2254_v42, %v698_v1 }
 0x122   : > { %v1054_v36 = vsel %vm910_vm5, %v696_v19, %v982_v29  ;;  %vm946_vm7 = vcmp.ge.f32.partialorder %v840_v20, 0.0  ;;  %v843_v37 = vadd.f32 %v2254_v42, %v842_v6  ;;  %v720_v38 = vadd.f32 %v2033_v12, %v2254_v42 }
 0x123   : > { %v1057_v39 = vsel %vm913_vm6, %v707_v25, %v985_v31  ;;  %vm949_vm8 = vcmp.ge.f32.partialorder %v851_v32, 0.0  ;;  %v1021_v40 = vmul.f32 0.01, %v851_v32  ;;  %vm911_vm9 = vcmp.ge.f32.partialorder %v699_v33, 0.0 }
 0x124   : > { %v1814_v41 = vpack.c.bf16 %v1057_v39, %v1056_v24  ;;  %v983_v43 = vmul.f32 0.01, %v699_v33  ;;  %vm947_vm10 = vcmp.ge.f32.partialorder %v843_v37, 0.0  ;;  %v1019_v44 = vmul.f32 0.01, %v843_v37 }
 0x125   : > { %v2037_v45 = vpop.f32.mrb[32].mxu0  ;;  %v1090_v46 = vsel %vm946_vm7, %v840_v20, %v1018_v30  ;;  %v1093_v47 = vsel %vm949_vm8, %v851_v32, %v1021_v40  ;;  %v988_v48 = vmul.f32 0.01, %v720_v38  ;;  %v864_v49 = vadd.f32 %v2069_v16, %v2254_v42  ;;  %v2073_v50 = vpop.f32.mrb[32].mxu1 }
 0x126   : > { %v727_v51 = vpop.f32.mrb[33].mxu0  ;;  %1938 = vst [vmem:[%s2269_s27 + $0x68] sm:$0xff] %v1814_v41   ;;  %v1904_v52 = vpack.c.bf16 %v1093_v47, %v1092_v28  ;;  %v1055_v53 = vsel %vm911_vm9, %v699_v33, %v983_v43  ;;  %v1091_v54 = vsel %vm947_vm10, %v843_v37, %v1019_v44  ;;  %v712_v55 = vadd.f32 %v2254_v42, %v711_v21  ;;  %v871_v56 = vpop.f32.mrb[33].mxu1 }
 0x127   : > { %v2038_v57 = vpop.f32.mrb[34].mxu0  ;;  %v1809_v58 = vpack.c.bf16 %v1055_v53, %v1054_v36  ;;  %v1899_v59 = vpack.c.bf16 %v1091_v54, %v1090_v46  ;;  %vm916_vm11 = vcmp.ge.f32.partialorder %v720_v38, 0.0  ;;  %vm952_vm12 = vcmp.ge.f32.partialorder %v864_v49, 0.0  ;;  %v2074_v60 = vpop.f32.mrb[34].mxu1 }
 0x128   : > { %v730_v61 = vpop.f32.mrb[35].mxu0  ;;  %1956 = vst [vmem:[%s2269_s27 + $0xf8] sm:$0xff] %v1904_v52   ;;  %v1024_v62 = vmul.f32 0.01, %v864_v49  ;;  %vm914_vm13 = vcmp.ge.f32.partialorder %v712_v55, 0.0  ;;  %v856_v0 = vadd.f32 %v2254_v42, %v855_v22  ;;  %v874_v1 = vpop.f32.mrb[35].mxu1  ;;  %v723_v2 = vadd.f32 %v2034_v26, %v2254_v42 }
 0x129   : > { %v986_v63 = vmul.f32 0.01, %v712_v55  ;;  %1937 = vst [vmem:[%s2269_s27 + $0x60] sm:$0xff] %v1809_v58   ;;  %1955 = vst [vmem:[%s2269_s27 + $0xf0] sm:$0xff] %v1899_v59   ;;  %v867_v3 = vadd.f32 %v2070_v27, %v2254_v42  ;;  %v715_v4 = vadd.f32 %v2254_v42, %v714_v34  ;;  %v859_v5 = vadd.f32 %v2254_v42, %v858_v35 }
 0x12a   : > { %v1060_v6 = vsel %vm916_vm11, %v720_v38, %v988_v48  ;;  %v1096_v7 = vsel %vm952_vm12, %v864_v49, %v1024_v62  ;;  %v1022_v9 = vmul.f32 0.01, %v856_v0  ;;  %vm917_vm14 = vcmp.ge.f32.partialorder %v723_v2, 0.0 }
 0x12b   : > { %v1058_v8 = vsel %vm914_vm13, %v712_v55, %v986_v63  ;;  %v989_v10 = vmul.f32 0.01, %v723_v2  ;;  %vm953_vm15 = vcmp.ge.f32.partialorder %v867_v3, 0.0  ;;  %v1025_v11 = vmul.f32 0.01, %v867_v3 }
 0x12c   : > { %vm950_vm0 = vcmp.ge.f32.partialorder %v856_v0, 0.0  ;;  %vm915_vm1 = vcmp.ge.f32.partialorder %v715_v4, 0.0  ;;  %v987_v12 = vmul.f32 0.01, %v715_v4  ;;  %vm951_vm2 = vcmp.ge.f32.partialorder %v859_v5, 0.0 }
 0x12d   : > { %v1061_v13 = vsel %vm917_vm14, %v723_v2, %v989_v10  ;;  %v1097_v14 = vsel %vm953_vm15, %v867_v3, %v1025_v11  ;;  %v1023_v15 = vmul.f32 0.01, %v859_v5  ;;  %v736_v16 = vadd.f32 %v2037_v45, %v2254_v42 }
 0x12e   : > { %v1824_v17 = vpack.c.bf16 %v1061_v13, %v1060_v6  ;;  %v1914_v18 = vpack.c.bf16 %v1097_v14, %v1096_v7  ;;  %v1059_v19 = vsel %vm915_vm1, %v715_v4, %v987_v12  ;;  %v880_v20 = vadd.f32 %v2073_v50, %v2254_v42 }
 0x12f   : > { %v1094_v21 = vsel %vm950_vm0, %v856_v0, %v1022_v9  ;;  %v1819_v22 = vpack.c.bf16 %v1059_v19, %v1058_v8  ;;  %v1095_v23 = vsel %vm951_vm2, %v859_v5, %v1023_v15  ;;  %v992_v24 = vmul.f32 0.01, %v736_v16 }
 0x130   : > { %1940 = vst [vmem:[%s2269_s27 + $0x78] sm:$0xff] %v1824_v17   ;;  %1958 = vst [vmem:[%s2269_s27 + $0x108] sm:$0xff] %v1914_v18   ;;  %v1909_v25 = vpack.c.bf16 %v1095_v23, %v1094_v21  ;;  %vm920_vm3 = vcmp.ge.f32.partialorder %v736_v16, 0.0  ;;  %v1028_v26 = vmul.f32 0.01, %v880_v20  ;;  %v728_v27 = vadd.f32 %v2254_v42, %v727_v51 }
 0x131   : > { %1939 = vst [vmem:[%s2269_s27 + $0x70] sm:$0xff] %v1819_v22   ;;  %vm956_vm4 = vcmp.ge.f32.partialorder %v880_v20, 0.0  ;;  %v872_v28 = vadd.f32 %v2254_v42, %v871_v56  ;;  %v739_v29 = vadd.f32 %v2038_v57, %v2254_v42  ;;  %v883_v30 = vadd.f32 %v2074_v60, %v2254_v42 }
 0x132   : > { %1957 = vst [vmem:[%s2269_s27 + $0x100] sm:$0xff] %v1909_v25   ;;  %v990_v31 = vmul.f32 0.01, %v728_v27  ;;  %v731_v32 = vadd.f32 %v2254_v42, %v730_v61  ;;  %v1064_v33 = vsel %vm920_vm3, %v736_v16, %v992_v24  ;;  %vm918_vm5 = vcmp.ge.f32.partialorder %v728_v27, 0.0 }
 0x133   : > { %vm921_vm6 = vcmp.ge.f32.partialorder %v739_v29, 0.0  ;;  %v993_v34 = vmul.f32 0.01, %v739_v29  ;;  %v1100_v35 = vsel %vm956_vm4, %v880_v20, %v1028_v26  ;;  %vm957_vm7 = vcmp.ge.f32.partialorder %v883_v30, 0.0 }
 0x134   : > { %v1029_v36 = vmul.f32 0.01, %v883_v30  ;;  %vm919_vm8 = vcmp.ge.f32.partialorder %v731_v32, 0.0  ;;  %v1026_v37 = vmul.f32 0.01, %v872_v28  ;;  %v875_v40 = vadd.f32 %v2254_v42, %v874_v1 }
 0x135   : > { %v1065_v38 = vsel %vm921_vm6, %v739_v29, %v993_v34  ;;  %v991_v39 = vmul.f32 0.01, %v731_v32  ;;  %v1062_v41 = vsel %vm918_vm5, %v728_v27, %v990_v31  ;;  %vm954_vm9 = vcmp.ge.f32.partialorder %v872_v28, 0.0 }
 0x136   : > { %v1834_v43 = vpack.c.bf16 %v1065_v38, %v1064_v33  ;;  %v1101_v44 = vsel %vm957_vm7, %v883_v30, %v1029_v36  ;;  %vm955_vm10 = vcmp.ge.f32.partialorder %v875_v40, 0.0  ;;  %v1027_v47 = vmul.f32 0.01, %v875_v40 }
 0x137   : > { %v1924_v45 = vpack.c.bf16 %v1101_v44, %v1100_v35  ;;  %v1063_v46 = vsel %vm919_vm8, %v731_v32, %v991_v39  ;;  %v1098_v49 = vsel %vm954_vm9, %v872_v28, %v1026_v37 }
 0x138   : > { %1942 = vst [vmem:[%s2269_s27 + $0x88] sm:$0xff] %v1834_v43   ;;  %v1829_v48 = vpack.c.bf16 %v1063_v46, %v1062_v41  ;;  %v1099_v50 = vsel %vm955_vm10, %v875_v40, %v1027_v47 }
 0x139   : > { %1960 = vst [vmem:[%s2269_s27 + $0x118] sm:$0xff] %v1924_v45   ;;  %v1919_v51 = vpack.c.bf16 %v1099_v50, %v1098_v49 }
 0x13a   : > { %1941 = vst [vmem:[%s2269_s27 + $0x80] sm:$0xff] %v1829_v48  }
 0x13b   : > { %1959 = vst [vmem:[%s2269_s27 + $0x110] sm:$0xff] %v1919_v51  }
 0x13c PF: > { %s13_s12 = sadd.s32 1, %s2132_s12  }
 0x13d   : > { %p10_p4 = scmp.ge.s32.totalorder %s13_s12, 10  }
 0x13f   :  { %12 = sbr.rel (!%p10_p4) target bundleno = 1 (0x1), region = 62 }

// kernel: _encoder_forward.5
= control target key start
LH: loop header
LB: loop body
LE: loop exit
PB: predicated region body
PF: predicated region fallthrough
CT: control target
= control target key end

     0   :  { %s1307_s12 = smov 0   ;;  %s1474_s0 = inlined_call_operand.vmem [shape: bf16[1152,288], index: 0, kind: input, shape index: {}]   ;;  %s1475_s1 = inlined_call_operand.vmem [shape: bf16[288,128], index: 1, kind: input, shape index: {}]   ;;  %s1476_s2 = inlined_call_operand.vmem [shape: f32[1,128], index: 2, kind: input, shape index: {}]   ;;  %s1477_s3 = inlined_call_operand.vmem [shape: bf16[1152,128], index: 3, kind: output, shape index: {}]  }
   0x1 LB: > { %s938_s13 = sadd.s32 4294967295, %s1283_s12   ;;  %p942_p0 = scmp.ge.s32.totalorder %s1283_s12, 1  ;;  %s1283_s12 = sphi %s1307_s12, %s13_s12  }
   0x2   : > { %p139_p1 = scmp.lt.s32.totalorder %s1283_s12, 9 }
   0x4   : > { %p140_p2 = pnand %p942_p0, %p139_p1 }
   0x5   : > { %v1223_v0 = vld [vmem:[%s1475_s1 + $0x40] sm:$0xff] (!%p140_p2)   ;;  %v1285_v2 = vmov (!%p140_p2), 0.0   ;;  %s164_s18 = smul.u32 (!%p140_p2), 18, %s938_s13  ;;  %v1225_v3 = vld [vmem:[%s1475_s1 + $0x48] sm:$0xff] (!%p140_p2)   ;;  %vm1286_vm0 = vmmov (!%p140_p2), 0   ;;  %v1227_v5 = vld [vmem:[%s1475_s1 + $0x50] sm:$0xff] (!%p140_p2)  }
   0x6   : > { %143 = sbr.rel (%p140_p2) target bundleno = 329 (0x149), region = 32  ;;  %v1224_v1 = vld [vmem:[%s1475_s1] sm:$0xff] (!%p140_p2)   ;;  %1172 = vmatprep.subr.bf16.mxu1 (!%p140_p2), %v1285_v2  ;;  %1091 = vmatprep.subr.bf16.mxu0 (!%p140_p2), %v1223_v0  ;;  %v1226_v4 = vld [vmem:[%s1475_s1 + $0x8] sm:$0xff] (!%p140_p2)   ;;  %v1228_v6 = vld [vmem:[%s1475_s1 + $0x10] sm:$0xff] (!%p140_p2)   ;;  %vm500_vm1 = vcmask (!%p140_p2), 261120  }
   0x7   : > { %1092 = vmatpush3.bf16.msra.mxu0 (!%p140_p2), %v1224_v1  ;;  %p165_p3 = scmp.lt.s32.totalorder (!%p140_p2), %s164_s18, 143  ;;  %1176 = vmatprep.mubr.msk.bf16.mxu1 (!%p140_p2), %vm1286_vm0, %v1285_v2  ;;  %v1229_v7 = vld [vmem:[%s1475_s1 + $0x58] sm:$0xff] (!%p140_p2)   ;;  %v1231_v9 = vld [vmem:[%s1475_s1 + $0x60] sm:$0xff] (!%p140_p2)   ;;  %v1233_v12 = vld [vmem:[%s1475_s1 + $0x68] sm:$0xff] (!%p140_p2)  }
   0x8   : > { %1093 = vmatprep.subr.bf16.mxu0 (!%p140_p2), %v1225_v3  ;;  %v1230_v8 = vld [vmem:[%s1475_s1 + $0x18] sm:$0xff] (!%p140_p2)   ;;  %v1237_v10 = vld [vmem:[%s1475_s1 + $0x80] sm:$0xff] (!%p140_p2)   ;;  %v1234_v13 = vld [vmem:[%s1475_s1 + $0x28] sm:$0xff] (!%p140_p2)  }
   0x9   : > { %v1232_v11 = vld [vmem:[%s1475_s1 + $0x20] sm:$0xff] (!%p140_p2)   ;;  %1173 = vmatpush3.bf16.msra.mxu1 (!%p140_p2), %v1237_v10  ;;  %v1235_v14 = vld [vmem:[%s1475_s1 + $0x70] sm:$0xff] (!%p140_p2)   ;;  %v1243_v16 = vld [vmem:[%s1475_s1 + $0x88] sm:$0xff] (!%p140_p2)  }
   0xa   : > { %1174 = vmatprep.subr.bf16.mxu1 (!%p140_p2), %v1285_v2  ;;  %v1236_v18 = vld [vmem:[%s1475_s1 + $0x30] sm:$0xff] (!%p140_p2)   ;;  %v1238_v19 = vld [vmem:[%s1475_s1 + $0x78] sm:$0xff] (!%p140_p2)   ;;  %v1436_v55 = vld [vmem:[%s1476_s2] ss:$0 sm:$0xff] (!%p140_p2) }
   0xb   : > { %1094 = vmatpush3.bf16.msra.mxu0 (!%p140_p2), %v1226_v4  ;;  %v1239_v20 = vld [vmem:[%s1475_s1 + $0x38] sm:$0xff] (!%p140_p2)  }
   0xc   : > { %1095 = vmatprep.subr.bf16.mxu0 (!%p140_p2), %v1227_v5 }
   0xd   : > { %s1479_s18 = smov (!%p165_p3, %s164_s18), 143  ;;  %1175 = vmatpush3.bf16.msra.mxu1 %v1243_v16 }
   0xe   : > { %s1212_s4 = smul.u32 12, %s1479_s18  ;;  %s944_s5 = sshll.u32 %s1479_s18, 2 }
   0xf   : > { %1096 = vmatpush3.bf16.msra.mxu0 %v1228_v6  ;;  %s1444_s8 = scalar_lea.vmem %s1477_s3, %s944_s5 }
  0x10   : > { %1097 = vmatprep.subr.bf16.mxu0 %v1229_v7  ;;  %s1357_s14 = scalar_lea.vmem %s1474_s0, %s1212_s4 }
  0x11   : > { %v1242_v15 = vld [vmem:[%s1357_s14 + $0x4] ss:$12 sps:$4 sm:$0xff]   ;;  %v1244_v17 = vld [vmem:[%s1357_s14 + $0x8] ss:$12 sps:$4 sm:$0xff]   ;;  %v1248_v21 = vld [vmem:[%s1357_s14 + $0x20] ss:$12 sps:$4 sm:$0xff]  }
  0x12   : > { %560 = vmatprep.mubr.bf16.mxu0 %v1242_v15  ;;  %1177 = vmatmul.mubr.msk.bf16.vlgmr.msra.gmra.mrb[0].mxu1 %vm500_vm1, %v1244_v17  ;;  %v1240_v22 = vld [vmem:[%s1357_s14] ss:$12 sps:$4 sm:$0xff]   ;;  %v1245_v23 = vld [vmem:[%s1357_s14 + $0x1c] ss:$12 sps:$4 sm:$0xff]   ;;  %v1252_v24 = vld [vmem:[%s1357_s14 + $0x38] ss:$12 sps:$4 sm:$0xff]  }
  0x13   : > { %1098 = vmatpush3.bf16.msra.mxu0 %v1230_v8  ;;  %1180 = vmatprep.mubr.msk.bf16.mxu1 %vm1286_vm0, %v1285_v2  ;;  %v1247_v25 = vld [vmem:[%s1357_s14 + $0x18] ss:$12 sps:$4 sm:$0xff]   ;;  %v1249_v26 = vld [vmem:[%s1357_s14 + $0x34] ss:$12 sps:$4 sm:$0xff]   ;;  %v1256_v27 = vld [vmem:[%s1357_s14 + $0x50] ss:$12 sps:$4 sm:$0xff]  }
  0x14   : > { %1099 = vmatprep.subr.bf16.mxu0 %v1231_v9  ;;  %v1251_v28 = vld [vmem:[%s1357_s14 + $0x30] ss:$12 sps:$4 sm:$0xff]   ;;  %v1253_v29 = vld [vmem:[%s1357_s14 + $0x4c] ss:$12 sps:$4 sm:$0xff]   ;;  %v1260_v30 = vld [vmem:[%s1357_s14 + $0x68] ss:$12 sps:$4 sm:$0xff]  }
  0x15   : > { %v1255_v31 = vld [vmem:[%s1357_s14 + $0x48] ss:$12 sps:$4 sm:$0xff]   ;;  %v1257_v32 = vld [vmem:[%s1357_s14 + $0x64] ss:$12 sps:$4 sm:$0xff]   ;;  %v1264_v33 = vld [vmem:[%s1357_s14 + $0x80] ss:$12 sps:$4 sm:$0xff]  }
  0x16   : > { %v1259_v34 = vld [vmem:[%s1357_s14 + $0x60] ss:$12 sps:$4 sm:$0xff]   ;;  %v1261_v35 = vld [vmem:[%s1357_s14 + $0x7c] ss:$12 sps:$4 sm:$0xff]   ;;  %v1268_v36 = vld [vmem:[%s1357_s14 + $0x98] ss:$12 sps:$4 sm:$0xff]  }
  0x17   : > { %1100 = vmatpush3.bf16.msra.mxu0 %v1232_v11  ;;  %v1263_v37 = vld [vmem:[%s1357_s14 + $0x78] ss:$12 sps:$4 sm:$0xff]   ;;  %v1265_v38 = vld [vmem:[%s1357_s14 + $0x94] ss:$12 sps:$4 sm:$0xff]   ;;  %v1272_v39 = vld [vmem:[%s1357_s14 + $0xb0] ss:$12 sps:$4 sm:$0xff]  }
  0x18   : > { %1101 = vmatprep.subr.bf16.mxu0 %v1233_v12  ;;  %v1267_v40 = vld [vmem:[%s1357_s14 + $0x90] ss:$12 sps:$4 sm:$0xff]   ;;  %v1269_v41 = vld [vmem:[%s1357_s14 + $0xac] ss:$12 sps:$4 sm:$0xff]   ;;  %v1276_v42 = vld [vmem:[%s1357_s14 + $0xc8] ss:$12 sps:$4 sm:$0xff]  }
  0x19   : > { %v1271_v43 = vld [vmem:[%s1357_s14 + $0xa8] ss:$12 sps:$4 sm:$0xff]   ;;  %v1273_v44 = vld [vmem:[%s1357_s14 + $0xc4] ss:$12 sps:$4 sm:$0xff]   ;;  %v1275_v45 = vld [vmem:[%s1357_s14 + $0xc0] ss:$12 sps:$4 sm:$0xff]  }
  0x1a   : > { %1181 = vmatmul.mubr.msk.bf16.gmra.mrb[4].mxu1 %vm500_vm1, %v1248_v21 }
  0x1b   : > { %1102 = vmatpush3.bf16.msra.mxu0 %v1234_v13  ;;  %1184 = vmatprep.mubr.msk.bf16.mxu1 %vm1286_vm0, %v1285_v2 }
  0x1c   : > { %1103 = vmatprep.subr.bf16.mxu0 %v1235_v14 }
  0x1f   : > { %1104 = vmatpush3.bf16.msra.mxu0 %v1236_v18 }
  0x20   : > { %1105 = vmatprep.subr.bf16.mxu0 %v1238_v19 }
  0x22   : > { %1185 = vmatmul.mubr.msk.bf16.gmra.mrb[8].mxu1 %vm500_vm1, %v1252_v24 }
  0x23   : > { %1106 = vmatpush3.bf16.msra.mxu0 %v1239_v20  ;;  %1188 = vmatprep.mubr.msk.bf16.mxu1 %vm1286_vm0, %v1285_v2 }
  0x26   : > { %561 = vmatmul.mubr.bf16.vlgmr.msra.gmra.mrb[0].mxu0 %v1240_v22 }
  0x27   : > { %568 = vmatprep.mubr.bf16.mxu0 %v1245_v23 }
  0x2a   : > { %1189 = vmatmul.mubr.msk.bf16.gmra.mrb[12].mxu1 %vm500_vm1, %v1256_v27 }
  0x2b   : > { %1192 = vmatprep.mubr.msk.bf16.mxu1 %vm1286_vm0, %v1285_v2 }
  0x2e   : > { %569 = vmatmul.mubr.bf16.gmra.mrb[4].mxu0 %v1247_v25 }
  0x2f   : > { %576 = vmatprep.mubr.bf16.mxu0 %v1249_v26 }
  0x32   : > { %1193 = vmatmul.mubr.msk.bf16.gmra.mrb[16].mxu1 %vm500_vm1, %v1260_v30 }
  0x33   : > { %1196 = vmatprep.mubr.msk.bf16.mxu1 %vm1286_vm0, %v1285_v2 }
  0x36   : > { %577 = vmatmul.mubr.bf16.gmra.mrb[8].mxu0 %v1251_v28 }
  0x37   : > { %584 = vmatprep.mubr.bf16.mxu0 %v1253_v29 }
  0x3a   : > { %1197 = vmatmul.mubr.msk.bf16.gmra.mrb[20].mxu1 %vm500_vm1, %v1264_v33 }
  0x3b   : > { %1200 = vmatprep.mubr.msk.bf16.mxu1 %vm1286_vm0, %v1285_v2 }
  0x3e   : > { %585 = vmatmul.mubr.bf16.gmra.mrb[12].mxu0 %v1255_v31 }
  0x3f   : > { %592 = vmatprep.mubr.bf16.mxu0 %v1257_v32 }
  0x42   : > { %1201 = vmatmul.mubr.msk.bf16.gmra.mrb[24].mxu1 %vm500_vm1, %v1268_v36 }
  0x43   : > { %1204 = vmatprep.mubr.msk.bf16.mxu1 %vm1286_vm0, %v1285_v2 }
  0x46   : > { %593 = vmatmul.mubr.bf16.gmra.mrb[16].mxu0 %v1259_v34 }
  0x47   : > { %600 = vmatprep.mubr.bf16.mxu0 %v1261_v35 }
  0x4a   : > { %1205 = vmatmul.mubr.msk.bf16.gmra.mrb[28].mxu1 %vm500_vm1, %v1272_v39 }
  0x4b   : > { %1208 = vmatprep.mubr.msk.bf16.mxu1 %vm1286_vm0, %v1285_v2 }
  0x4e   : > { %601 = vmatmul.mubr.bf16.gmra.mrb[20].mxu0 %v1263_v37 }
  0x4f   : > { %608 = vmatprep.mubr.bf16.mxu0 %v1265_v38 }
  0x52   : > { %1209 = vmatmul.mubr.msk.bf16.gmra.mrb[32].mxu1 %vm500_vm1, %v1276_v42 }
  0x56   : > { %609 = vmatmul.mubr.bf16.gmra.mrb[24].mxu0 %v1267_v40 }
  0x57   : > { %616 = vmatprep.mubr.bf16.mxu0 %v1269_v41 }
  0x5e   : > { %617 = vmatmul.mubr.bf16.gmra.mrb[28].mxu0 %v1271_v43 }
  0x5f   : > { %624 = vmatprep.mubr.bf16.mxu0 %v1273_v44 }
  0x66   : > { %625 = vmatmul.mubr.bf16.gmra.mrb[32].mxu0 %v1275_v45 }
  0xe5   : > { %v667_v46 = vpop.f32.mrb[0].mxu1 }
  0xe6   : > { %v1178_v47 = vpop.f32.mrb[1].mxu1 }
  0xe7   : > { %v670_v48 = vpop.f32.mrb[2].mxu1 }
  0xe8   : > { %v1179_v49 = vpop.f32.mrb[3].mxu1 }
  0xed   : > { %v675_v50 = vpop.f32.mrb[4].mxu1 }
  0xee   : > { %v1182_v51 = vpop.f32.mrb[5].mxu1 }
  0xef   : > { %v678_v53 = vpop.f32.mrb[6].mxu1 }
  0xf0   : > { %v1183_v56 = vpop.f32.mrb[7].mxu1 }
  0xf5   : > { %v683_v0 = vpop.f32.mrb[8].mxu1 }
  0xf6   : > { %v1186_v1 = vpop.f32.mrb[9].mxu1 }
  0xf7   : > { %v686_v5 = vpop.f32.mrb[10].mxu1 }
  0xf8   : > { %v1187_v7 = vpop.f32.mrb[11].mxu1 }
  0xf9   : > { %v1107_v52 = vpop.f32.mrb[0].mxu0 }
  0xfa   : > { %v1108_v54 = vpop.f32.mrb[1].mxu0 }
  0xfb   : > { %v1109_v57 = vadd.f32 %v1108_v54, %v1107_v52  ;;  %v1110_v58 = vpop.f32.mrb[2].mxu0 }
  0xfc   : > { %v1111_v59 = vpop.f32.mrb[3].mxu0 }
  0xfd   : > { %v563_v60 = vadd.f32 %v1109_v57, %v1436_v55  ;;  %v1112_v61 = vadd.f32 %v1111_v59, %v1110_v58  ;;  %v691_v19 = vpop.f32.mrb[12].mxu1 }
  0xfe   : > { %v1190_v20 = vpop.f32.mrb[13].mxu1 }
  0xff   : > { %v668_v62 = vadd.f32 %v667_v46, %v563_v60  ;;  %v566_v63 = vadd.f32 %v1112_v61, %v1436_v55  ;;  %v694_v24 = vpop.f32.mrb[14].mxu1 }
 0x100   : > { %v1191_v26 = vpop.f32.mrb[15].mxu1 }
 0x101   : > { %v756_v2 = vmul.f32 0.01, %v668_v62  ;;  %v671_v3 = vadd.f32 %v670_v48, %v566_v63  ;;  %v1113_v4 = vpop.f32.mrb[4].mxu0  ;;  %vm738_vm2 = vcmp.ge.f32.partialorder %v668_v62, 0.0 }
 0x102   : > { %v1114_v6 = vpop.f32.mrb[5].mxu0 }
 0x103   : > { %vm739_vm3 = vcmp.ge.f32.partialorder %v671_v3, 0.0  ;;  %v757_v8 = vmul.f32 0.01, %v671_v3  ;;  %v1115_v9 = vadd.f32 %v1114_v6, %v1113_v4  ;;  %v1116_v10 = vpop.f32.mrb[6].mxu0  ;;  %v774_v12 = vsel %vm738_vm2, %v668_v62, %v756_v2 }
 0x104   : > { %v1117_v11 = vpop.f32.mrb[7].mxu0 }
 0x105   : > { %v775_v13 = vsel %vm739_vm3, %v671_v3, %v757_v8  ;;  %v571_v14 = vadd.f32 %v1115_v9, %v1436_v55  ;;  %v1118_v15 = vadd.f32 %v1117_v11, %v1116_v10  ;;  %v699_v38 = vpop.f32.mrb[16].mxu1 }
 0x106   : > { %v1041_v16 = vpack.c.bf16 %v775_v13, %v774_v12  ;;  %v1194_v39 = vpop.f32.mrb[17].mxu1 }
 0x107   : > { %v676_v17 = vadd.f32 %v675_v50, %v571_v14  ;;  %v574_v18 = vadd.f32 %v1118_v15, %v1436_v55  ;;  %v702_v43 = vpop.f32.mrb[18].mxu1 }
 0x108   : > { %1042 = vst [vmem:[%s1444_s8] sm:$0xff] %v1041_v16   ;;  %v1195_v45 = vpop.f32.mrb[19].mxu1 }
 0x109   : > { %v758_v21 = vmul.f32 0.01, %v676_v17  ;;  %v679_v22 = vadd.f32 %v678_v53, %v574_v18  ;;  %v1119_v23 = vpop.f32.mrb[8].mxu0  ;;  %vm740_vm4 = vcmp.ge.f32.partialorder %v676_v17, 0.0 }
 0x10a   : > { %v1120_v25 = vpop.f32.mrb[9].mxu0 }
 0x10b   : > { %vm741_vm5 = vcmp.ge.f32.partialorder %v679_v22, 0.0  ;;  %v759_v27 = vmul.f32 0.01, %v679_v22  ;;  %v1121_v28 = vadd.f32 %v1120_v25, %v1119_v23  ;;  %v1122_v29 = vpop.f32.mrb[10].mxu0  ;;  %v776_v31 = vsel %vm740_vm4, %v676_v17, %v758_v21 }
 0x10c   : > { %v1123_v30 = vpop.f32.mrb[11].mxu0 }
 0x10d   : > { %v777_v32 = vsel %vm741_vm5, %v679_v22, %v759_v27  ;;  %v579_v33 = vadd.f32 %v1121_v28, %v1436_v55  ;;  %v1124_v34 = vadd.f32 %v1123_v30, %v1122_v29  ;;  %v707_v58 = vpop.f32.mrb[20].mxu1 }
 0x10e   : > { %v1046_v35 = vpack.c.bf16 %v777_v32, %v776_v31  ;;  %v1198_v59 = vpop.f32.mrb[21].mxu1 }
 0x10f   : > { %v684_v36 = vadd.f32 %v683_v0, %v579_v33  ;;  %v582_v37 = vadd.f32 %v1124_v34, %v1436_v55  ;;  %v710_v63 = vpop.f32.mrb[22].mxu1 }
 0x110   : > { %1083 = vst [vmem:[%s1444_s8 + $0x8] sm:$0xff] %v1046_v35   ;;  %v1199_v1 = vpop.f32.mrb[23].mxu1 }
 0x111   : > { %v760_v40 = vmul.f32 0.01, %v684_v36  ;;  %v687_v41 = vadd.f32 %v686_v5, %v582_v37  ;;  %v1125_v42 = vpop.f32.mrb[12].mxu0  ;;  %vm742_vm6 = vcmp.ge.f32.partialorder %v684_v36, 0.0 }
 0x112   : > { %v1126_v44 = vpop.f32.mrb[13].mxu0 }
 0x113   : > { %vm743_vm7 = vcmp.ge.f32.partialorder %v687_v41, 0.0  ;;  %v761_v46 = vmul.f32 0.01, %v687_v41  ;;  %v1127_v47 = vadd.f32 %v1126_v44, %v1125_v42  ;;  %v1128_v48 = vpop.f32.mrb[14].mxu0  ;;  %v778_v50 = vsel %vm742_vm6, %v684_v36, %v760_v40 }
 0x114   : > { %v1129_v49 = vpop.f32.mrb[15].mxu0 }
 0x115   : > { %v779_v51 = vsel %vm743_vm7, %v687_v41, %v761_v46  ;;  %v587_v52 = vadd.f32 %v1127_v47, %v1436_v55  ;;  %v1130_v53 = vadd.f32 %v1129_v49, %v1128_v48  ;;  %v715_v13 = vpop.f32.mrb[24].mxu1 }
 0x116   : > { %v1051_v54 = vpack.c.bf16 %v779_v51, %v778_v50  ;;  %v1202_v14 = vpop.f32.mrb[25].mxu1 }
 0x117   : > { %v692_v56 = vadd.f32 %v691_v19, %v587_v52  ;;  %v590_v57 = vadd.f32 %v1130_v53, %v1436_v55  ;;  %v718_v18 = vpop.f32.mrb[26].mxu1 }
 0x118   : > { %1084 = vst [vmem:[%s1444_s8 + $0x10] sm:$0xff] %v1051_v54   ;;  %v1203_v20 = vpop.f32.mrb[27].mxu1 }
 0x119   : > { %v762_v60 = vmul.f32 0.01, %v692_v56  ;;  %v695_v61 = vadd.f32 %v694_v24, %v590_v57  ;;  %v1131_v62 = vpop.f32.mrb[16].mxu0  ;;  %vm744_vm8 = vcmp.ge.f32.partialorder %v692_v56, 0.0 }
 0x11a   : > { %v1132_v0 = vpop.f32.mrb[17].mxu0 }
 0x11b   : > { %vm745_vm9 = vcmp.ge.f32.partialorder %v695_v61, 0.0  ;;  %v763_v2 = vmul.f32 0.01, %v695_v61  ;;  %v1133_v3 = vadd.f32 %v1132_v0, %v1131_v62  ;;  %v1134_v4 = vpop.f32.mrb[18].mxu0  ;;  %v780_v6 = vsel %vm744_vm8, %v692_v56, %v762_v60 }
 0x11c   : > { %v1135_v5 = vpop.f32.mrb[19].mxu0 }
 0x11d   : > { %v781_v7 = vsel %vm745_vm9, %v695_v61, %v763_v2  ;;  %v595_v8 = vadd.f32 %v1133_v3, %v1436_v55  ;;  %v1136_v9 = vadd.f32 %v1135_v5, %v1134_v4  ;;  %v723_v32 = vpop.f32.mrb[28].mxu1 }
 0x11e   : > { %v1056_v10 = vpack.c.bf16 %v781_v7, %v780_v6  ;;  %v1206_v33 = vpop.f32.mrb[29].mxu1 }
 0x11f   : > { %v700_v11 = vadd.f32 %v699_v38, %v595_v8  ;;  %v598_v12 = vadd.f32 %v1136_v9, %v1436_v55  ;;  %v726_v37 = vpop.f32.mrb[30].mxu1 }
 0x120   : > { %1085 = vst [vmem:[%s1444_s8 + $0x18] sm:$0xff] %v1056_v10   ;;  %v1207_v39 = vpop.f32.mrb[31].mxu1 }
 0x121   : > { %v764_v15 = vmul.f32 0.01, %v700_v11  ;;  %v703_v16 = vadd.f32 %v702_v43, %v598_v12  ;;  %v1137_v17 = vpop.f32.mrb[20].mxu0  ;;  %vm746_vm10 = vcmp.ge.f32.partialorder %v700_v11, 0.0 }
 0x122   : > { %v1138_v19 = vpop.f32.mrb[21].mxu0 }
 0x123   : > { %vm747_vm11 = vcmp.ge.f32.partialorder %v703_v16, 0.0  ;;  %v765_v21 = vmul.f32 0.01, %v703_v16  ;;  %v1139_v22 = vadd.f32 %v1138_v19, %v1137_v17  ;;  %v1140_v23 = vpop.f32.mrb[22].mxu0  ;;  %v782_v25 = vsel %vm746_vm10, %v700_v11, %v764_v15 }
 0x124   : > { %v1141_v24 = vpop.f32.mrb[23].mxu0 }
 0x125   : > { %v783_v26 = vsel %vm747_vm11, %v703_v16, %v765_v21  ;;  %v603_v27 = vadd.f32 %v1139_v22, %v1436_v55  ;;  %v1142_v28 = vadd.f32 %v1141_v24, %v1140_v23  ;;  %v731_v51 = vpop.f32.mrb[32].mxu1 }
 0x126   : > { %v1061_v29 = vpack.c.bf16 %v783_v26, %v782_v25  ;;  %v1210_v52 = vpop.f32.mrb[33].mxu1 }
 0x127   : > { %v708_v30 = vadd.f32 %v707_v58, %v603_v27  ;;  %v606_v31 = vadd.f32 %v1142_v28, %v1436_v55  ;;  %v734_v57 = vpop.f32.mrb[34].mxu1 }
 0x128   : > { %1086 = vst [vmem:[%s1444_s8 + $0x20] sm:$0xff] %v1061_v29   ;;  %v1211_v59 = vpop.f32.mrb[35].mxu1 }
 0x129   : > { %v766_v34 = vmul.f32 0.01, %v708_v30  ;;  %v711_v35 = vadd.f32 %v710_v63, %v606_v31  ;;  %v1143_v36 = vpop.f32.mrb[24].mxu0  ;;  %vm748_vm12 = vcmp.ge.f32.partialorder %v708_v30, 0.0 }
 0x12a   : > { %v1144_v38 = vpop.f32.mrb[25].mxu0 }
 0x12b   : > { %vm749_vm13 = vcmp.ge.f32.partialorder %v711_v35, 0.0  ;;  %v767_v40 = vmul.f32 0.01, %v711_v35  ;;  %v1145_v41 = vadd.f32 %v1144_v38, %v1143_v36  ;;  %v1146_v42 = vpop.f32.mrb[26].mxu0  ;;  %v784_v44 = vsel %vm748_vm12, %v708_v30, %v766_v34 }
 0x12c   : > { %v1147_v43 = vpop.f32.mrb[27].mxu0 }
 0x12d   : > { %v785_v45 = vsel %vm749_vm13, %v711_v35, %v767_v40  ;;  %v611_v46 = vadd.f32 %v1145_v41, %v1436_v55  ;;  %v1148_v47 = vadd.f32 %v1147_v43, %v1146_v42 }
 0x12e   : > { %v1066_v48 = vpack.c.bf16 %v785_v45, %v784_v44 }
 0x12f   : > { %v716_v49 = vadd.f32 %v715_v13, %v611_v46  ;;  %v614_v50 = vadd.f32 %v1148_v47, %v1436_v55 }
 0x130   : > { %1087 = vst [vmem:[%s1444_s8 + $0x28] sm:$0xff] %v1066_v48  }
 0x131   : > { %v768_v53 = vmul.f32 0.01, %v716_v49  ;;  %v719_v54 = vadd.f32 %v718_v18, %v614_v50  ;;  %v1149_v56 = vpop.f32.mrb[28].mxu0  ;;  %vm750_vm14 = vcmp.ge.f32.partialorder %v716_v49, 0.0 }
 0x132   : > { %v1150_v58 = vpop.f32.mrb[29].mxu0 }
 0x133   : > { %vm751_vm15 = vcmp.ge.f32.partialorder %v719_v54, 0.0  ;;  %v769_v60 = vmul.f32 0.01, %v719_v54  ;;  %v1151_v61 = vadd.f32 %v1150_v58, %v1149_v56  ;;  %v1152_v62 = vpop.f32.mrb[30].mxu0  ;;  %v786_v0 = vsel %vm750_vm14, %v716_v49, %v768_v53 }
 0x134   : > { %v1153_v63 = vpop.f32.mrb[31].mxu0 }
 0x135   : > { %v787_v1 = vsel %vm751_vm15, %v719_v54, %v769_v60  ;;  %v619_v2 = vadd.f32 %v1151_v61, %v1436_v55  ;;  %v1154_v3 = vadd.f32 %v1153_v63, %v1152_v62 }
 0x136   : > { %v1071_v4 = vpack.c.bf16 %v787_v1, %v786_v0 }
 0x137   : > { %v724_v5 = vadd.f32 %v723_v32, %v619_v2  ;;  %v622_v6 = vadd.f32 %v1154_v3, %v1436_v55 }
 0x138   : > { %1088 = vst [vmem:[%s1444_s8 + $0x30] sm:$0xff] %v1071_v4  }
 0x139   : > { %v770_v7 = vmul.f32 0.01, %v724_v5  ;;  %v727_v8 = vadd.f32 %v726_v37, %v622_v6  ;;  %v1155_v9 = vpop.f32.mrb[32].mxu0  ;;  %vm752_vm0 = vcmp.ge.f32.partialorder %v724_v5, 0.0 }
 0x13a   : > { %v1156_v10 = vpop.f32.mrb[33].mxu0 }
 0x13b   : > { %vm753_vm1 = vcmp.ge.f32.partialorder %v727_v8, 0.0  ;;  %v771_v11 = vmul.f32 0.01, %v727_v8  ;;  %v1157_v12 = vadd.f32 %v1156_v10, %v1155_v9  ;;  %v1158_v13 = vpop.f32.mrb[34].mxu0  ;;  %v788_v15 = vsel %vm752_vm0, %v724_v5, %v770_v7 }
 0x13c   : > { %v1159_v14 = vpop.f32.mrb[35].mxu0 }
 0x13d   : > { %v789_v16 = vsel %vm753_vm1, %v727_v8, %v771_v11  ;;  %v627_v17 = vadd.f32 %v1157_v12, %v1436_v55  ;;  %v1160_v18 = vadd.f32 %v1159_v14, %v1158_v13 }
 0x13e   : > { %v1076_v19 = vpack.c.bf16 %v789_v16, %v788_v15 }
 0x13f   : > { %v732_v20 = vadd.f32 %v731_v51, %v627_v17  ;;  %v630_v21 = vadd.f32 %v1160_v18, %v1436_v55 }
 0x140   : > { %1089 = vst [vmem:[%s1444_s8 + $0x38] sm:$0xff] %v1076_v19  }
 0x141   : > { %v772_v22 = vmul.f32 0.01, %v732_v20  ;;  %v735_v23 = vadd.f32 %v734_v57, %v630_v21  ;;  %vm754_vm2 = vcmp.ge.f32.partialorder %v732_v20, 0.0 }
 0x143   : > { %vm755_vm3 = vcmp.ge.f32.partialorder %v735_v23, 0.0  ;;  %v773_v24 = vmul.f32 0.01, %v735_v23  ;;  %v790_v25 = vsel %vm754_vm2, %v732_v20, %v772_v22 }
 0x145   : > { %v791_v26 = vsel %vm755_vm3, %v735_v23, %v773_v24 }
 0x146   : > { %v1081_v27 = vpack.c.bf16 %v791_v26, %v790_v25 }
 0x148   : > { %1090 = vst [vmem:[%s1444_s8 + $0x40] sm:$0xff] %v1081_v27  }
 0x149 PF: > { %s13_s12 = sadd.s32 1, %s1283_s12  }
 0x14a   : > { %p10_p4 = scmp.ge.s32.totalorder %s13_s12, 10  }
 0x14c   :  { %12 = sbr.rel (!%p10_p4) target bundleno = 1 (0x1), region = 62 }

// kernel: _encoder_forward.6
= control target key start
LH: loop header
LB: loop body
LE: loop exit
PB: predicated region body
PF: predicated region fallthrough
CT: control target
= control target key end

     0   :  { %s1837_s12 = smov 0   ;;  %s2120_s0 = inlined_call_operand.vmem [shape: bf16[288,576], index: 0, kind: input, shape index: {}]   ;;  %s2121_s1 = inlined_call_operand.vmem [shape: bf16[576,128], index: 1, kind: input, shape index: {}]   ;;  %s2122_s2 = inlined_call_operand.vmem [shape: f32[1,128], index: 2, kind: input, shape index: {}]   ;;  %s2123_s3 = inlined_call_operand.vmem [shape: bf16[288,128], index: 3, kind: output, shape index: {}]  }
   0x1 LB: > { %s1295_s13 = sadd.s32 4294967295, %s1813_s12   ;;  %p1299_p0 = scmp.ge.s32.totalorder %s1813_s12, 1  ;;  %s1813_s12 = sphi %s1837_s12, %s13_s12  }
   0x2   : > { %p139_p1 = scmp.lt.s32.totalorder %s1813_s12, 3 }
   0x4   : > { %p140_p2 = pnand %p1299_p0, %p139_p1 }
   0x5   : > { %v1708_v0 = vld [vmem:[%s2121_s1 + $0x40] sm:$0xff] (!%p140_p2)   ;;  %s164_s16 = smul.u32 (!%p140_p2), 18, %s1295_s13  ;;  %v1710_v2 = vld [vmem:[%s2121_s1 + $0x48] sm:$0xff] (!%p140_p2)   ;;  %v1712_v4 = vld [vmem:[%s2121_s1 + $0x50] sm:$0xff] (!%p140_p2)   ;;  %v1815_v24 = vmov (!%p140_p2), 0.0   ;;  %vm1816_vm0 = vmmov (!%p140_p2), 0  }
   0x6   : > { %143 = sbr.rel (%p140_p2) target bundleno = 364 (0x16c), region = 32  ;;  %v1709_v1 = vld [vmem:[%s2121_s1] sm:$0xff] (!%p140_p2)   ;;  %1484 = vmatprep.subr.bf16.mxu0 (!%p140_p2), %v1708_v0  ;;  %1681 = vmatprep.subr.bf16.mxu1 (!%p140_p2), %v1708_v0  ;;  %v1711_v3 = vld [vmem:[%s2121_s1 + $0x8] sm:$0xff] (!%p140_p2)   ;;  %v1713_v5 = vld [vmem:[%s2121_s1 + $0x10] sm:$0xff] (!%p140_p2)   ;;  %vm752_vm1 = vcmask (!%p140_p2), 523264  }
   0x7   : > { %p165_p3 = scmp.lt.s32.totalorder (!%p140_p2), %s164_s16, 35  ;;  %1485 = vmatpush3.bf16.msra.mxu0 (!%p140_p2), %v1709_v1  ;;  %1689 = vmatpush3.bf16.msra.mxu1 (!%p140_p2), %v1709_v1  ;;  %v1714_v6 = vld [vmem:[%s2121_s1 + $0x58] sm:$0xff] (!%p140_p2)   ;;  %v1716_v8 = vld [vmem:[%s2121_s1 + $0x60] sm:$0xff] (!%p140_p2)   ;;  %v1718_v10 = vld [vmem:[%s2121_s1 + $0x68] sm:$0xff] (!%p140_p2)  }
   0x8   : > { %1486 = vmatprep.subr.bf16.mxu0 (!%p140_p2), %v1710_v2  ;;  %1682 = vmatprep.subr.bf16.mxu1 (!%p140_p2), %v1710_v2  ;;  %v1715_v7 = vld [vmem:[%s2121_s1 + $0x18] sm:$0xff] (!%p140_p2)   ;;  %v1717_v9 = vld [vmem:[%s2121_s1 + $0x20] sm:$0xff] (!%p140_p2)   ;;  %v1719_v13 = vld [vmem:[%s2121_s1 + $0x28] sm:$0xff] (!%p140_p2)  }
   0x9   : > { %v1720_v14 = vld [vmem:[%s2121_s1 + $0x70] sm:$0xff] (!%p140_p2)   ;;  %v1722_v16 = vld [vmem:[%s2121_s1 + $0x78] sm:$0xff] (!%p140_p2)   ;;  %v1730_v20 = vld [vmem:[%s2121_s1 + $0xc0] sm:$0xff] (!%p140_p2)  }
   0xa   : > { %v1721_v15 = vld [vmem:[%s2121_s1 + $0x30] sm:$0xff] (!%p140_p2)   ;;  %v1723_v17 = vld [vmem:[%s2121_s1 + $0x38] sm:$0xff] (!%p140_p2)   ;;  %v1731_v21 = vld [vmem:[%s2121_s1 + $0x80] sm:$0xff] (!%p140_p2)  }
   0xb   : > { %1487 = vmatpush3.bf16.msra.mxu0 (!%p140_p2), %v1711_v3  ;;  %1690 = vmatpush3.bf16.msra.mxu1 (!%p140_p2), %v1711_v3  ;;  %v1732_v22 = vld [vmem:[%s2121_s1 + $0x100] sm:$0xff] (!%p140_p2)   ;;  %v1733_v23 = vld [vmem:[%s2121_s1 + $0xc8] sm:$0xff] (!%p140_p2)   ;;  %v1741_v31 = vld [vmem:[%s2121_s1 + $0xd0] sm:$0xff] (!%p140_p2)  }
   0xc   : > { %1488 = vmatprep.subr.bf16.mxu0 (!%p140_p2), %v1712_v4  ;;  %1683 = vmatprep.subr.bf16.mxu1 (!%p140_p2), %v1712_v4  ;;  %v1734_v27 = vld [vmem:[%s2121_s1 + $0x88] sm:$0xff] (!%p140_p2)   ;;  %v1742_v32 = vld [vmem:[%s2121_s1 + $0x90] sm:$0xff] (!%p140_p2)   ;;  %v1744_v33 = vld [vmem:[%s2121_s1 + $0xd8] sm:$0xff] (!%p140_p2)  }
   0xd   : > { %s2125_s16 = smov (!%p165_p3, %s164_s16), 35  ;;  %v1743_v28 = vld [vmem:[%s2121_s1 + $0x108] sm:$0xff]   ;;  %v1756_v36 = vld [vmem:[%s2121_s1 + $0x110] sm:$0xff]   ;;  %v1745_v37 = vld [vmem:[%s2121_s1 + $0x98] sm:$0xff]  }
   0xe   : > { %s1697_s29 = smul.u32 20, %s2125_s16  ;;  %v1752_v39 = vld [vmem:[%s2121_s1 + $0xe0] sm:$0xff]   ;;  %v1754_v42 = vld [vmem:[%s2121_s1 + $0xe8] sm:$0xff]   ;;  %v1772_v45 = vld [vmem:[%s2121_s1 + $0x118] sm:$0xff]   ;;  %s1301_s19 = sshll.u32 %s2125_s16, 2 }
   0xf   : > { %1489 = vmatpush3.bf16.msra.mxu0 %v1713_v5  ;;  %1691 = vmatpush3.bf16.msra.mxu1 %v1713_v5  ;;  %v1753_v41 = vld [vmem:[%s2121_s1 + $0xa0] sm:$0xff]   ;;  %v1755_v46 = vld [vmem:[%s2121_s1 + $0xa8] sm:$0xff]   ;;  %v1763_v49 = vld [vmem:[%s2121_s1 + $0xf0] sm:$0xff]   ;;  %s2080_s22 = scalar_lea.vmem %s2123_s3, %s1301_s19 }
  0x10   : > { %1490 = vmatprep.subr.bf16.mxu0 %v1714_v6  ;;  %1684 = vmatprep.subr.bf16.mxu1 %v1714_v6  ;;  %s1878_s9 = scalar_lea.vmem %s2120_s0, %s1697_s29  ;;  %v1764_v50 = vld [vmem:[%s2121_s1 + $0xb0] sm:$0xff]   ;;  %v1765_v51 = vld [vmem:[%s2121_s1 + $0xf8] sm:$0xff]  }
  0x11   : > { %v1726_v11 = vld [vmem:[%s1878_s9 + $0x4] ss:$20 sps:$4 sm:$0xff]   ;;  %v1729_v12 = vld [vmem:[%s1878_s9 + $0xcc] ss:$20 sps:$4 sm:$0xff]   ;;  %v1727_v19 = vld [vmem:[%s1878_s9 + $0xc8] ss:$20 sps:$4 sm:$0xff]  }
  0x12   : > { %812 = vmatprep.mubr.bf16.mxu0 %v1726_v11  ;;  %852 = vmatprep.mubr.bf16.mxu1 %v1729_v12  ;;  %v1724_v18 = vld [vmem:[%s1878_s9] ss:$20 sps:$4 sm:$0xff]   ;;  %v1739_v29 = vld [vmem:[%s1878_s9 + $0x28] ss:$20 sps:$4 sm:$0xff]   ;;  %v1740_v30 = vld [vmem:[%s1878_s9 + $0xf0] ss:$20 sps:$4 sm:$0xff]  }
  0x13   : > { %1491 = vmatpush3.bf16.msra.mxu0 %v1715_v7  ;;  %1692 = vmatpush3.bf16.msra.mxu1 %v1715_v7  ;;  %v1735_v25 = vld [vmem:[%s1878_s9 + $0x2c] ss:$20 sps:$4 sm:$0xff]   ;;  %v1737_v26 = vld [vmem:[%s1878_s9 + $0xf4] ss:$20 sps:$4 sm:$0xff]   ;;  %v1748_v35 = vld [vmem:[%s1878_s9 + $0x11c] ss:$20 sps:$4 sm:$0xff]  }
  0x14   : > { %1492 = vmatprep.subr.bf16.mxu0 %v1716_v8  ;;  %1685 = vmatprep.subr.bf16.mxu1 %v1716_v8  ;;  %v1746_v34 = vld [vmem:[%s1878_s9 + $0x54] ss:$20 sps:$4 sm:$0xff]   ;;  %v1750_v38 = vld [vmem:[%s1878_s9 + $0x50] ss:$20 sps:$4 sm:$0xff]   ;;  %v1751_v40 = vld [vmem:[%s1878_s9 + $0x118] ss:$20 sps:$4 sm:$0xff]  }
  0x15   : > { %v1757_v43 = vld [vmem:[%s1878_s9 + $0x7c] ss:$20 sps:$4 sm:$0xff]   ;;  %v1759_v44 = vld [vmem:[%s1878_s9 + $0x144] ss:$20 sps:$4 sm:$0xff]   ;;  %v1762_v48 = vld [vmem:[%s1878_s9 + $0x140] ss:$20 sps:$4 sm:$0xff]  }
  0x16   : > { %v1761_v47 = vld [vmem:[%s1878_s9 + $0x78] ss:$20 sps:$4 sm:$0xff]   ;;  %v1769_v55 = vld [vmem:[%s1878_s9 + $0x8] ss:$20 sps:$4 sm:$0xff]   ;;  %v1773_v56 = vld [vmem:[%s1878_s9 + $0xa0] ss:$20 sps:$4 sm:$0xff]  }
  0x17   : > { %1493 = vmatpush3.bf16.msra.mxu0 %v1717_v9  ;;  %1693 = vmatpush3.bf16.msra.mxu1 %v1717_v9  ;;  %v1767_v52 = vld [vmem:[%s1878_s9 + $0xa4] ss:$20 sps:$4 sm:$0xff]   ;;  %v1771_v53 = vld [vmem:[%s1878_s9 + $0xc] ss:$20 sps:$4 sm:$0xff]   ;;  %v1774_v57 = vld [vmem:[%s1878_s9 + $0x34] ss:$20 sps:$4 sm:$0xff]  }
  0x18   : > { %1494 = vmatprep.subr.bf16.mxu0 %v1718_v10  ;;  %1686 = vmatprep.subr.bf16.mxu1 %v1718_v10  ;;  %v1766_v54 = vld [vmem:[%s2121_s1 + $0xb8] sm:$0xff]   ;;  %v1776_v58 = vld [vmem:[%s1878_s9 + $0x30] ss:$20 sps:$4 sm:$0xff]   ;;  %v1784_v0 = vld [vmem:[%s1878_s9 + $0x80] ss:$20 sps:$4 sm:$0xff]  }
  0x19   : > { %v1777_v59 = vld [vmem:[%s1878_s9 + $0x10] ss:$20 sps:$4 sm:$0xff]   ;;  %v1780_v61 = vld [vmem:[%s1878_s9 + $0x58] ss:$20 sps:$4 sm:$0xff]   ;;  %v1785_v1 = vld [vmem:[%s1878_s9 + $0x60] ss:$20 sps:$4 sm:$0xff]  }
  0x1a   : > { %v1778_v60 = vld [vmem:[%s1878_s9 + $0x5c] ss:$20 sps:$4 sm:$0xff]   ;;  %v1781_v62 = vld [vmem:[%s1878_s9 + $0x38] ss:$20 sps:$4 sm:$0xff]   ;;  %v1790_v5 = vld [vmem:[%s1878_s9 + $0xd4] ss:$20 sps:$4 sm:$0xff]  }
  0x1b   : > { %1495 = vmatpush3.bf16.msra.mxu0 %v1719_v13  ;;  %1694 = vmatpush3.bf16.msra.mxu1 %v1719_v13  ;;  %v1782_v63 = vld [vmem:[%s1878_s9 + $0x84] ss:$20 sps:$4 sm:$0xff]   ;;  %v1786_v2 = vld [vmem:[%s1878_s9 + $0xac] ss:$20 sps:$4 sm:$0xff]   ;;  %v1788_v3 = vld [vmem:[%s1878_s9 + $0xa8] ss:$20 sps:$4 sm:$0xff]  }
  0x1c   : > { %1496 = vmatprep.subr.bf16.mxu0 %v1720_v14  ;;  %1687 = vmatprep.subr.bf16.mxu1 %v1720_v14  ;;  %v1789_v4 = vld [vmem:[%s1878_s9 + $0x88] ss:$20 sps:$4 sm:$0xff]   ;;  %v1792_v6 = vld [vmem:[%s1878_s9 + $0xd0] ss:$20 sps:$4 sm:$0xff]   ;;  %v1796_v9 = vld [vmem:[%s1878_s9 + $0xf8] ss:$20 sps:$4 sm:$0xff]  }
  0x1d   : > { %v1793_v7 = vld [vmem:[%s1878_s9 + $0xb0] ss:$20 sps:$4 sm:$0xff]   ;;  %v1797_v10 = vld [vmem:[%s1878_s9 + $0xd8] ss:$20 sps:$4 sm:$0xff]   ;;  %v1800_v12 = vld [vmem:[%s1878_s9 + $0x120] ss:$20 sps:$4 sm:$0xff]  }
  0x1e   : > { %v1794_v8 = vld [vmem:[%s1878_s9 + $0xfc] ss:$20 sps:$4 sm:$0xff]   ;;  %v1798_v11 = vld [vmem:[%s1878_s9 + $0x124] ss:$20 sps:$4 sm:$0xff]   ;;  %v1801_v13 = vld [vmem:[%s1878_s9 + $0x100] ss:$20 sps:$4 sm:$0xff]  }
  0x1f   : > { %1497 = vmatpush3.bf16.msra.mxu0 %v1721_v15  ;;  %1695 = vmatpush3.bf16.msra.mxu1 %v1721_v15  ;;  %v1802_v14 = vld [vmem:[%s1878_s9 + $0x14c] ss:$20 sps:$4 sm:$0xff]   ;;  %v1804_v15 = vld [vmem:[%s1878_s9 + $0x148] ss:$20 sps:$4 sm:$0xff]  }
  0x20   : > { %1498 = vmatprep.subr.bf16.mxu0 %v1722_v16  ;;  %1688 = vmatprep.subr.bf16.mxu1 %v1722_v16  ;;  %v1805_v16 = vld [vmem:[%s1878_s9 + $0x128] ss:$20 sps:$4 sm:$0xff]  }
  0x23   : > { %1499 = vmatpush3.bf16.msra.mxu0 %v1723_v17  ;;  %1696 = vmatpush3.bf16.msra.mxu1 %v1723_v17  ;;  %v1806_v17 = vld [vmem:[%s1878_s9 + $0x150] ss:$20 sps:$4 sm:$0xff]  }
  0x24   : > { %1554 = vmatprep.subr.bf16.mxu1 %v1730_v20  ;;  %1637 = vmatprep.subr.bf16.mxu0 %v1815_v24 }
  0x26   : > { %813 = vmatmul.mubr.bf16.vlgmr.msra.gmra.mrb[0].mxu0 %v1724_v18  ;;  %853 = vmatmul.mubr.bf16.vlgmr.msra.gmra.mrb[0].mxu1 %v1727_v19 }
  0x27   : > { %1555 = vmatpush3.bf16.msra.mxu1 %v1731_v21  ;;  %1638 = vmatpush3.bf16.msra.mxu0 %v1732_v22 }
  0x28   : > { %1556 = vmatprep.subr.bf16.mxu1 %v1733_v23  ;;  %820 = vmatprep.mubr.bf16.mxu0 %v1735_v25 }
  0x29   : > { %860 = vmatprep.mubr.bf16.mxu1 %v1737_v26  ;;  %1639 = vmatprep.subr.bf16.mxu0 %v1815_v24 }
  0x2b   : > { %1557 = vmatpush3.bf16.msra.mxu1 %v1734_v27  ;;  %1640 = vmatpush3.bf16.msra.mxu0 %v1743_v28 }
  0x2c   : > { %1558 = vmatprep.subr.bf16.mxu1 %v1741_v31  ;;  %1641 = vmatprep.subr.bf16.mxu0 %v1815_v24 }
  0x2e   : > { %821 = vmatmul.mubr.bf16.gmra.mrb[4].mxu0 %v1739_v29  ;;  %861 = vmatmul.mubr.bf16.gmra.mrb[4].mxu1 %v1740_v30 }
  0x2f   : > { %1559 = vmatpush3.bf16.msra.mxu1 %v1742_v32  ;;  %828 = vmatprep.mubr.bf16.mxu0 %v1746_v34 }
  0x30   : > { %1560 = vmatprep.subr.bf16.mxu1 %v1744_v33  ;;  %868 = vmatprep.mubr.bf16.mxu1 %v1748_v35 }
  0x31   : > { %1642 = vmatpush3.bf16.msra.mxu0 %v1756_v36 }
  0x32   : > { %1643 = vmatprep.subr.bf16.mxu0 %v1815_v24 }
  0x33   : > { %1561 = vmatpush3.bf16.msra.mxu1 %v1745_v37 }
  0x34   : > { %1562 = vmatprep.subr.bf16.mxu1 %v1752_v39 }
  0x35   : > { %1644 = vmatpush3.bf16.msra.mxu0 %v1772_v45 }
  0x36   : > { %829 = vmatmul.mubr.bf16.gmra.mrb[8].mxu0 %v1750_v38  ;;  %869 = vmatmul.mubr.bf16.gmra.mrb[8].mxu1 %v1751_v40 }
  0x37   : > { %1563 = vmatpush3.bf16.msra.mxu1 %v1753_v41  ;;  %836 = vmatprep.mubr.bf16.mxu0 %v1757_v43 }
  0x38   : > { %1564 = vmatprep.subr.bf16.mxu1 %v1754_v42  ;;  %876 = vmatprep.mubr.bf16.mxu1 %v1759_v44 }
  0x3b   : > { %1565 = vmatpush3.bf16.msra.mxu1 %v1755_v46 }
  0x3c   : > { %1566 = vmatprep.subr.bf16.mxu1 %v1763_v49 }
  0x3e   : > { %837 = vmatmul.mubr.bf16.gmra.mrb[12].mxu0 %v1761_v47  ;;  %877 = vmatmul.mubr.bf16.gmra.mrb[12].mxu1 %v1762_v48 }
  0x3f   : > { %1567 = vmatpush3.bf16.msra.mxu1 %v1764_v50  ;;  %844 = vmatprep.mubr.bf16.mxu0 %v1767_v52 }
  0x40   : > { %1568 = vmatprep.subr.bf16.mxu1 %v1765_v51  ;;  %917 = vmatprep.mubr.bf16.mxu1 %v1771_v53 }
  0x43   : > { %1569 = vmatpush3.bf16.msra.mxu1 %v1766_v54 }
  0x46   : > { %845 = vmatmul.mubr.bf16.gmra.mrb[16].mxu0 %v1773_v56  ;;  %918 = vmatmul.mubr.bf16.vlgmr.msra.gmra.mrb[16].mxu1 %v1769_v55 }
  0x47   : > { %925 = vmatprep.mubr.bf16.mxu1 %v1774_v57  ;;  %1645 = vmatprep.mubr.msk.bf16.mxu0 %vm1816_vm0, %v1815_v24 }
  0x4e   : > { %926 = vmatmul.mubr.bf16.gmra.mrb[20].mxu1 %v1776_v58  ;;  %1646 = vmatmul.mubr.msk.bf16.vlgmr.msra.gmra.mrb[20].mxu0 %vm752_vm1, %v1777_v59 }
  0x4f   : > { %933 = vmatprep.mubr.bf16.mxu1 %v1778_v60  ;;  %1649 = vmatprep.mubr.msk.bf16.mxu0 %vm1816_vm0, %v1815_v24 }
  0x56   : > { %934 = vmatmul.mubr.bf16.gmra.mrb[24].mxu1 %v1780_v61  ;;  %1650 = vmatmul.mubr.msk.bf16.gmra.mrb[24].mxu0 %vm752_vm1, %v1781_v62  ;;  %v2058_v62 = vld [vmem:[%s2122_s2] ss:$0 sm:$0xff] }
  0x57   : > { %941 = vmatprep.mubr.bf16.mxu1 %v1782_v63  ;;  %1653 = vmatprep.mubr.msk.bf16.mxu0 %vm1816_vm0, %v1815_v24 }
  0x5e   : > { %942 = vmatmul.mubr.bf16.gmra.mrb[28].mxu1 %v1784_v0  ;;  %1654 = vmatmul.mubr.msk.bf16.gmra.mrb[28].mxu0 %vm752_vm1, %v1785_v1 }
  0x5f   : > { %949 = vmatprep.mubr.bf16.mxu1 %v1786_v2  ;;  %1657 = vmatprep.mubr.msk.bf16.mxu0 %vm1816_vm0, %v1815_v24 }
  0x66   : > { %950 = vmatmul.mubr.bf16.gmra.mrb[32].mxu1 %v1788_v3  ;;  %1658 = vmatmul.mubr.msk.bf16.gmra.mrb[32].mxu0 %vm752_vm1, %v1789_v4 }
  0x67   : > { %957 = vmatprep.mubr.bf16.mxu1 %v1790_v5  ;;  %1661 = vmatprep.mubr.msk.bf16.mxu0 %vm1816_vm0, %v1815_v24 }
  0x6e   : > { %958 = vmatmul.mubr.bf16.gmra.mrb[36].mxu1 %v1792_v6  ;;  %1662 = vmatmul.mubr.msk.bf16.gmra.mrb[36].mxu0 %vm752_vm1, %v1793_v7 }
  0x6f   : > { %965 = vmatprep.mubr.bf16.mxu1 %v1794_v8  ;;  %1665 = vmatprep.mubr.msk.bf16.mxu0 %vm1816_vm0, %v1815_v24 }
  0x76   : > { %966 = vmatmul.mubr.bf16.gmra.mrb[40].mxu1 %v1796_v9  ;;  %1666 = vmatmul.mubr.msk.bf16.gmra.mrb[40].mxu0 %vm752_vm1, %v1797_v10 }
  0x77   : > { %973 = vmatprep.mubr.bf16.mxu1 %v1798_v11  ;;  %1669 = vmatprep.mubr.msk.bf16.mxu0 %vm1816_vm0, %v1815_v24 }
  0x7e   : > { %974 = vmatmul.mubr.bf16.gmra.mrb[44].mxu1 %v1800_v12  ;;  %1670 = vmatmul.mubr.msk.bf16.gmra.mrb[44].mxu0 %vm752_vm1, %v1801_v13 }
  0x7f   : > { %981 = vmatprep.mubr.bf16.mxu1 %v1802_v14  ;;  %1673 = vmatprep.mubr.msk.bf16.mxu0 %vm1816_vm0, %v1815_v24 }
  0x86   : > { %982 = vmatmul.mubr.bf16.gmra.mrb[48].mxu1 %v1804_v15  ;;  %1674 = vmatmul.mubr.msk.bf16.gmra.mrb[48].mxu0 %vm752_vm1, %v1805_v16 }
  0x87   : > { %1677 = vmatprep.mubr.msk.bf16.mxu0 %vm1816_vm0, %v1815_v24 }
  0x8e   : > { %1678 = vmatmul.mubr.msk.bf16.gmra.mrb[52].mxu0 %vm752_vm1, %v1806_v17 }
  0xf9   : > { %v1500_v18 = vpop.f32.mrb[0].mxu0  ;;  %v1530_v19 = vpop.f32.mrb[0].mxu1 }
  0xfa   : > { %v1501_v20 = vpop.f32.mrb[1].mxu0  ;;  %v1531_v21 = vpop.f32.mrb[1].mxu1 }
  0xfb   : > { %v1502_v22 = vadd.f32 %v1501_v20, %v1500_v18  ;;  %v1503_v23 = vpop.f32.mrb[2].mxu0  ;;  %v2037_v25 = vadd.f32 %v1531_v21, %v1530_v19  ;;  %v1533_v26 = vpop.f32.mrb[2].mxu1 }
  0xfc   : > { %v1504_v27 = vpop.f32.mrb[3].mxu0  ;;  %v1534_v28 = vpop.f32.mrb[3].mxu1 }
  0xfd   : > { %v1505_v29 = vadd.f32 %v1504_v27, %v1503_v23  ;;  %v2039_v30 = vadd.f32 %v1534_v28, %v1533_v26  ;;  %v815_v9 = vadd.f32 %v1502_v22, %v2058_v62 }
  0xff   : > { %v818_v16 = vadd.f32 %v1505_v29, %v2058_v62 }
 0x101   : > { %v1506_v31 = vpop.f32.mrb[4].mxu0  ;;  %v1536_v32 = vpop.f32.mrb[4].mxu1 }
 0x102   : > { %v1507_v24 = vpop.f32.mrb[5].mxu0  ;;  %v1537_v33 = vpop.f32.mrb[5].mxu1 }
 0x103   : > { %v1508_v34 = vadd.f32 %v1507_v24, %v1506_v31  ;;  %v1509_v35 = vpop.f32.mrb[6].mxu0  ;;  %v2041_v36 = vadd.f32 %v1537_v33, %v1536_v32  ;;  %v1539_v37 = vpop.f32.mrb[6].mxu1 }
 0x104   : > { %v1510_v38 = vpop.f32.mrb[7].mxu0  ;;  %v1540_v39 = vpop.f32.mrb[7].mxu1 }
 0x105   : > { %v1511_v40 = vadd.f32 %v1510_v38, %v1509_v35  ;;  %v2043_v41 = vadd.f32 %v1540_v39, %v1539_v37  ;;  %v823_v28 = vadd.f32 %v1508_v34, %v2058_v62 }
 0x107   : > { %v826_v38 = vadd.f32 %v1511_v40, %v2058_v62 }
 0x109   : > { %v1512_v42 = vpop.f32.mrb[8].mxu0  ;;  %v1542_v43 = vpop.f32.mrb[8].mxu1 }
 0x10a   : > { %v1513_v44 = vpop.f32.mrb[9].mxu0  ;;  %v1543_v45 = vpop.f32.mrb[9].mxu1 }
 0x10b   : > { %v2045_v46 = vadd.f32 %v1513_v44, %v1512_v42  ;;  %v1515_v47 = vpop.f32.mrb[10].mxu0  ;;  %v2047_v48 = vadd.f32 %v1543_v45, %v1542_v43  ;;  %v1545_v49 = vpop.f32.mrb[10].mxu1 }
 0x10c   : > { %v1516_v50 = vpop.f32.mrb[11].mxu0  ;;  %v1546_v51 = vpop.f32.mrb[11].mxu1 }
 0x10d   : > { %v2049_v52 = vadd.f32 %v1516_v50, %v1515_v47  ;;  %v2051_v53 = vadd.f32 %v1546_v51, %v1545_v49 }
 0x111   : > { %v1518_v54 = vpop.f32.mrb[12].mxu0  ;;  %v1548_v55 = vpop.f32.mrb[12].mxu1 }
 0x112   : > { %v1519_v56 = vpop.f32.mrb[13].mxu0  ;;  %v1549_v57 = vpop.f32.mrb[13].mxu1 }
 0x113   : > { %v2053_v58 = vadd.f32 %v1519_v56, %v1518_v54  ;;  %v1521_v59 = vpop.f32.mrb[14].mxu0  ;;  %v1550_v60 = vadd.f32 %v1549_v57, %v1548_v55  ;;  %v1551_v61 = vpop.f32.mrb[14].mxu1  ;;  %v831_v55 = vadd.f32 %v2045_v46, %v2058_v62 }
 0x114   : > { %v1522_v63 = vpop.f32.mrb[15].mxu0  ;;  %v1552_v0 = vpop.f32.mrb[15].mxu1 }
 0x115   : > { %v2061_v1 = vadd.f32 %v1550_v60, %v2058_v62  ;;  %v2063_v2 = vadd.f32 %v1522_v63, %v1521_v59  ;;  %v1553_v3 = vadd.f32 %v1552_v0, %v1551_v61 }
 0x117   : > { %v2066_v4 = vadd.f32 %v1553_v3, %v2058_v62  ;;  %v834_v3 = vadd.f32 %v2049_v52, %v2058_v62 }
 0x119   : > { %v1524_v5 = vpop.f32.mrb[16].mxu0  ;;  %v1570_v6 = vpop.f32.mrb[16].mxu1 }
 0x11a   : > { %v1525_v7 = vpop.f32.mrb[17].mxu0  ;;  %v1571_v8 = vpop.f32.mrb[17].mxu1 }
 0x11b   : > { %v2069_v10 = vadd.f32 %v1525_v7, %v1524_v5  ;;  %v1572_v11 = vadd.f32 %v1571_v8, %v1570_v6  ;;  %v1527_v12 = vpop.f32.mrb[18].mxu0  ;;  %v1573_v13 = vpop.f32.mrb[18].mxu1 }
 0x11c   : > { %v1528_v14 = vpop.f32.mrb[19].mxu0  ;;  %v1574_v15 = vpop.f32.mrb[19].mxu1 }
 0x11d   : > { %v2072_v17 = vadd.f32 %v1528_v14, %v1527_v12  ;;  %v1575_v18 = vadd.f32 %v1574_v15, %v1573_v13  ;;  %v920_v19 = vadd.f32 %v1572_v11, %v815_v9 }
 0x11f   : > { %v923_v20 = vadd.f32 %v1575_v18, %v818_v16  ;;  %v839_v18 = vadd.f32 %v2053_v58, %v2058_v62 }
 0x121   : > { %v1576_v21 = vpop.f32.mrb[20].mxu1  ;;  %v1024_v23 = vpop.f32.mrb[20].mxu0 }
 0x122   : > { %v1025_v26 = vadd.f32 %v1024_v23, %v920_v19  ;;  %v1577_v27 = vpop.f32.mrb[21].mxu1  ;;  %v1647_v22 = vpop.f32.mrb[21].mxu0 }
 0x123   : > { %v1578_v31 = vadd.f32 %v1577_v27, %v1576_v21  ;;  %v1579_v32 = vpop.f32.mrb[22].mxu1  ;;  %v1027_v24 = vpop.f32.mrb[22].mxu0  ;;  %v842_v22 = vadd.f32 %v2063_v2, %v2058_v62 }
 0x124   : > { %v1113_v33 = vmul.f32 0.01, %v1025_v26  ;;  %v1028_v35 = vadd.f32 %v1027_v24, %v923_v20  ;;  %v1580_v37 = vpop.f32.mrb[23].mxu1  ;;  %v1648_v29 = vpop.f32.mrb[23].mxu0  ;;  %vm1095_vm2 = vcmp.ge.f32.partialorder %v1025_v26, 0.0 }
 0x125   : > { %v1581_v39 = vadd.f32 %v1580_v37, %v1579_v32  ;;  %v928_v42 = vadd.f32 %v1578_v31, %v823_v28 }
 0x126   : > { %vm1096_vm3 = vcmp.ge.f32.partialorder %v1028_v35, 0.0  ;;  %v1114_v43 = vmul.f32 0.01, %v1028_v35  ;;  %v1131_v45 = vsel %vm1095_vm2, %v1025_v26, %v1113_v33 }
 0x127   : > { %v931_v44 = vadd.f32 %v1581_v39, %v826_v38 }
 0x128   : > { %v1132_v34 = vsel %vm1096_vm3, %v1028_v35, %v1114_v43  ;;  %v847_v43 = vadd.f32 %v2069_v10, %v2058_v62 }
 0x129   : > { %v1434_v47 = vpack.c.bf16 %v1132_v34, %v1131_v45  ;;  %v1582_v49 = vpop.f32.mrb[24].mxu1  ;;  %v1032_v50 = vpop.f32.mrb[24].mxu0 }
 0x12a   : > { %v1033_v51 = vadd.f32 %v1032_v50, %v928_v42  ;;  %v1583_v40 = vpop.f32.mrb[25].mxu1  ;;  %v1651_v54 = vpop.f32.mrb[25].mxu0 }
 0x12b   : > { %1435 = vst [vmem:[%s2080_s22] sm:$0xff] %v1434_v47   ;;  %v1584_v56 = vadd.f32 %v1583_v40, %v1582_v49  ;;  %v1585_v57 = vpop.f32.mrb[26].mxu1  ;;  %v1035_v59 = vpop.f32.mrb[26].mxu0 }
 0x12c   : > { %v1115_v60 = vmul.f32 0.01, %v1033_v51  ;;  %v1036_v61 = vadd.f32 %v1035_v59, %v931_v44  ;;  %v1586_v63 = vpop.f32.mrb[27].mxu1  ;;  %v1652_v0 = vpop.f32.mrb[27].mxu0  ;;  %vm1097_vm4 = vcmp.ge.f32.partialorder %v1033_v51, 0.0 }
 0x12d   : > { %v1587_v5 = vadd.f32 %v1586_v63, %v1585_v57  ;;  %v936_v6 = vadd.f32 %v1584_v56, %v831_v55 }
 0x12e   : > { %vm1098_vm5 = vcmp.ge.f32.partialorder %v1036_v61, 0.0  ;;  %v1116_v7 = vmul.f32 0.01, %v1036_v61  ;;  %v1133_v9 = vsel %vm1097_vm4, %v1033_v51, %v1115_v60  ;;  %v850_v51 = vadd.f32 %v2072_v17, %v2058_v62 }
 0x12f   : > { %v939_v8 = vadd.f32 %v1587_v5, %v834_v3  ;;  %v855_v5 = vadd.f32 %v2037_v25, %v2058_v62 }
 0x130   : > { %v1134_v46 = vsel %vm1098_vm5, %v1036_v61, %v1116_v7 }
 0x131   : > { %v1439_v11 = vpack.c.bf16 %v1134_v46, %v1133_v9  ;;  %v1588_v12 = vpop.f32.mrb[28].mxu1  ;;  %v1040_v13 = vpop.f32.mrb[28].mxu0 }
 0x132   : > { %v1041_v14 = vadd.f32 %v1040_v13, %v936_v6  ;;  %v1589_v15 = vpop.f32.mrb[29].mxu1  ;;  %v1655_v16 = vpop.f32.mrb[29].mxu0 }
 0x133   : > { %1476 = vst [vmem:[%s2080_s22 + $0x8] sm:$0xff] %v1439_v11   ;;  %v1590_v52 = vadd.f32 %v1589_v15, %v1588_v12  ;;  %v1591_v19 = vpop.f32.mrb[30].mxu1  ;;  %v1043_v20 = vpop.f32.mrb[30].mxu0  ;;  %v858_v12 = vadd.f32 %v2039_v30, %v2058_v62 }
 0x134   : > { %v1117_v21 = vmul.f32 0.01, %v1041_v14  ;;  %v1044_v23 = vadd.f32 %v1043_v20, %v939_v8  ;;  %v1592_v26 = vpop.f32.mrb[31].mxu1  ;;  %v1656_v27 = vpop.f32.mrb[31].mxu0  ;;  %vm1099_vm6 = vcmp.ge.f32.partialorder %v1041_v14, 0.0 }
 0x135   : > { %v1593_v28 = vadd.f32 %v1592_v26, %v1591_v19  ;;  %v944_v31 = vadd.f32 %v1590_v52, %v839_v18  ;;  %v863_v27 = vadd.f32 %v2041_v36, %v2058_v62 }
 0x136   : > { %vm1100_vm7 = vcmp.ge.f32.partialorder %v1044_v23, 0.0  ;;  %v1118_v32 = vmul.f32 0.01, %v1044_v23  ;;  %v1135_v33 = vsel %vm1099_vm6, %v1041_v14, %v1117_v21 }
 0x137   : > { %v947_v24 = vadd.f32 %v1593_v28, %v842_v22 }
 0x138   : > { %v1136_v58 = vsel %vm1100_vm7, %v1044_v23, %v1118_v32 }
 0x139   : > { %v1444_v35 = vpack.c.bf16 %v1136_v58, %v1135_v33  ;;  %v1594_v37 = vpop.f32.mrb[32].mxu1  ;;  %v1048_v29 = vpop.f32.mrb[32].mxu0  ;;  %v866_v58 = vadd.f32 %v2043_v41, %v2058_v62 }
 0x13a   : > { %v1049_v38 = vadd.f32 %v1048_v29, %v944_v31  ;;  %v1595_v39 = vpop.f32.mrb[33].mxu1  ;;  %v1659_v42 = vpop.f32.mrb[33].mxu0 }
 0x13b   : > { %1477 = vst [vmem:[%s2080_s22 + $0x10] sm:$0xff] %v1444_v35   ;;  %v1596_v2 = vadd.f32 %v1595_v39, %v1594_v37  ;;  %v1597_v44 = vpop.f32.mrb[34].mxu1  ;;  %v1051_v45 = vpop.f32.mrb[34].mxu0 }
 0x13c   : > { %v1119_v34 = vmul.f32 0.01, %v1049_v38  ;;  %v1052_v47 = vadd.f32 %v1051_v45, %v947_v24  ;;  %v1598_v49 = vpop.f32.mrb[35].mxu1  ;;  %v1660_v50 = vpop.f32.mrb[35].mxu0  ;;  %vm1101_vm8 = vcmp.ge.f32.partialorder %v1049_v38, 0.0 }
 0x13d   : > { %v1599_v40 = vadd.f32 %v1598_v49, %v1597_v44  ;;  %v952_v54 = vadd.f32 %v1596_v2, %v847_v43 }
 0x13e   : > { %vm1102_vm9 = vcmp.ge.f32.partialorder %v1052_v47, 0.0  ;;  %v1120_v55 = vmul.f32 0.01, %v1052_v47  ;;  %v1137_v57 = vsel %vm1101_vm8, %v1049_v38, %v1119_v34 }
 0x13f   : > { %v955_v56 = vadd.f32 %v1599_v40, %v850_v51 }
 0x140   : > { %v1138_v10 = vsel %vm1102_vm9, %v1052_v47, %v1120_v55  ;;  %v871_v47 = vadd.f32 %v2047_v48, %v2058_v62 }
 0x141   : > { %v1449_v59 = vpack.c.bf16 %v1138_v10, %v1137_v57  ;;  %v1600_v60 = vpop.f32.mrb[36].mxu1  ;;  %v1056_v61 = vpop.f32.mrb[36].mxu0 }
 0x142   : > { %v1057_v63 = vadd.f32 %v1056_v61, %v952_v54  ;;  %v1601_v0 = vpop.f32.mrb[37].mxu1  ;;  %v1663_v3 = vpop.f32.mrb[37].mxu0 }
 0x143   : > { %1478 = vst [vmem:[%s2080_s22 + $0x18] sm:$0xff] %v1449_v59   ;;  %v1602_v17 = vadd.f32 %v1601_v0, %v1600_v60  ;;  %v1603_v6 = vpop.f32.mrb[38].mxu1  ;;  %v1059_v7 = vpop.f32.mrb[38].mxu0 }
 0x144   : > { %v1121_v8 = vmul.f32 0.01, %v1057_v63  ;;  %v1060_v9 = vadd.f32 %v1059_v7, %v955_v56  ;;  %v1604_v46 = vpop.f32.mrb[39].mxu1  ;;  %v1664_v11 = vpop.f32.mrb[39].mxu0  ;;  %vm1103_vm10 = vcmp.ge.f32.partialorder %v1057_v63, 0.0  ;;  %v874_v56 = vadd.f32 %v2051_v53, %v2058_v62 }
 0x145   : > { %v1605_v13 = vadd.f32 %v1604_v46, %v1603_v6  ;;  %v960_v14 = vadd.f32 %v1602_v17, %v855_v5 }
 0x146   : > { %vm1104_vm11 = vcmp.ge.f32.partialorder %v1060_v9, 0.0  ;;  %v1122_v15 = vmul.f32 0.01, %v1060_v9  ;;  %v1139_v18 = vsel %vm1103_vm10, %v1057_v63, %v1121_v8 }
 0x147   : > { %v963_v16 = vadd.f32 %v1605_v13, %v858_v12 }
 0x148   : > { %v1140_v25 = vsel %vm1104_vm11, %v1060_v9, %v1122_v15 }
 0x149   : > { %v1454_v52 = vpack.c.bf16 %v1140_v25, %v1139_v18  ;;  %v1606_v19 = vpop.f32.mrb[40].mxu1  ;;  %v1064_v20 = vpop.f32.mrb[40].mxu0 }
 0x14a   : > { %v1065_v21 = vadd.f32 %v1064_v20, %v960_v14  ;;  %v1607_v23 = vpop.f32.mrb[41].mxu1  ;;  %v1667_v26 = vpop.f32.mrb[41].mxu0 }
 0x14b   : > { %1479 = vst [vmem:[%s2080_s22 + $0x20] sm:$0xff] %v1454_v52   ;;  %v1608_v30 = vadd.f32 %v1607_v23, %v1606_v19  ;;  %v1609_v22 = vpop.f32.mrb[42].mxu1  ;;  %v1067_v28 = vpop.f32.mrb[42].mxu0 }
 0x14c   : > { %v1123_v31 = vmul.f32 0.01, %v1065_v21  ;;  %v1068_v32 = vadd.f32 %v1067_v28, %v963_v16  ;;  %v1610_v24 = vpop.f32.mrb[43].mxu1  ;;  %v1668_v33 = vpop.f32.mrb[43].mxu0  ;;  %vm1105_vm12 = vcmp.ge.f32.partialorder %v1065_v21, 0.0 }
 0x14d   : > { %v1611_v35 = vadd.f32 %v1610_v24, %v1609_v22  ;;  %v968_v37 = vadd.f32 %v1608_v30, %v863_v27 }
 0x14e   : > { %vm1106_vm13 = vcmp.ge.f32.partialorder %v1068_v32, 0.0  ;;  %v1124_v29 = vmul.f32 0.01, %v1068_v32  ;;  %v1141_v39 = vsel %vm1105_vm12, %v1065_v21, %v1123_v31 }
 0x14f   : > { %v971_v38 = vadd.f32 %v1611_v35, %v866_v58 }
 0x150   : > { %v1142_v36 = vsel %vm1106_vm13, %v1068_v32, %v1124_v29 }
 0x151   : > { %v1459_v42 = vpack.c.bf16 %v1142_v36, %v1141_v39  ;;  %v1612_v43 = vpop.f32.mrb[44].mxu1  ;;  %v1072_v2 = vpop.f32.mrb[44].mxu0 }
 0x152   : > { %v1073_v44 = vadd.f32 %v1072_v2, %v968_v37  ;;  %v1613_v45 = vpop.f32.mrb[45].mxu1  ;;  %v1671_v34 = vpop.f32.mrb[45].mxu0 }
 0x153   : > { %1480 = vst [vmem:[%s2080_s22 + $0x28] sm:$0xff] %v1459_v42   ;;  %v1614_v41 = vadd.f32 %v1613_v45, %v1612_v43  ;;  %v1615_v49 = vpop.f32.mrb[46].mxu1  ;;  %v1075_v50 = vpop.f32.mrb[46].mxu0 }
 0x154   : > { %v1125_v51 = vmul.f32 0.01, %v1073_v44  ;;  %v1076_v40 = vadd.f32 %v1075_v50, %v971_v38  ;;  %v1616_v54 = vpop.f32.mrb[47].mxu1  ;;  %v1672_v55 = vpop.f32.mrb[47].mxu0  ;;  %vm1107_vm14 = vcmp.ge.f32.partialorder %v1073_v44, 0.0 }
 0x155   : > { %v1617_v57 = vadd.f32 %v1616_v54, %v1615_v49  ;;  %v976_v10 = vadd.f32 %v1614_v41, %v871_v47 }
 0x156   : > { %vm1108_vm15 = vcmp.ge.f32.partialorder %v1076_v40, 0.0  ;;  %v1126_v59 = vmul.f32 0.01, %v1076_v40  ;;  %v1143_v61 = vsel %vm1107_vm14, %v1073_v44, %v1125_v51 }
 0x157   : > { %v979_v60 = vadd.f32 %v1617_v57, %v874_v56 }
 0x158   : > { %v1144_v48 = vsel %vm1108_vm15, %v1076_v40, %v1126_v59 }
 0x159   : > { %v1464_v63 = vpack.c.bf16 %v1144_v48, %v1143_v61  ;;  %v1618_v0 = vpop.f32.mrb[48].mxu1  ;;  %v1080_v3 = vpop.f32.mrb[48].mxu0 }
 0x15a   : > { %v1081_v5 = vadd.f32 %v1080_v3, %v976_v10  ;;  %v1619_v17 = vpop.f32.mrb[49].mxu1  ;;  %v1675_v6 = vpop.f32.mrb[49].mxu0 }
 0x15b   : > { %1481 = vst [vmem:[%s2080_s22 + $0x30] sm:$0xff] %v1464_v63   ;;  %v1620_v7 = vadd.f32 %v1619_v17, %v1618_v0  ;;  %v1621_v8 = vpop.f32.mrb[50].mxu1  ;;  %v1083_v9 = vpop.f32.mrb[50].mxu0 }
 0x15c   : > { %v1127_v46 = vmul.f32 0.01, %v1081_v5  ;;  %v1084_v53 = vadd.f32 %v1083_v9, %v979_v60  ;;  %v1622_v62 = vpop.f32.mrb[51].mxu1  ;;  %v1676_v11 = vpop.f32.mrb[51].mxu0  ;;  %vm1109_vm0 = vcmp.ge.f32.partialorder %v1081_v5, 0.0 }
 0x15d   : > { %v1623_v12 = vadd.f32 %v1622_v62, %v1621_v8  ;;  %v984_v13 = vadd.f32 %v1620_v7, %v2061_v1 }
 0x15e   : > { %vm1110_vm1 = vcmp.ge.f32.partialorder %v1084_v53, 0.0  ;;  %v1128_v14 = vmul.f32 0.01, %v1084_v53  ;;  %v1145_v16 = vsel %vm1109_vm0, %v1081_v5, %v1127_v46 }
 0x15f   : > { %v987_v15 = vadd.f32 %v1623_v12, %v2066_v4 }
 0x160   : > { %v1146_v18 = vsel %vm1110_vm1, %v1084_v53, %v1128_v14 }
 0x161   : > { %v1469_v25 = vpack.c.bf16 %v1146_v18, %v1145_v16  ;;  %v1088_v52 = vpop.f32.mrb[52].mxu0 }
 0x162   : > { %v1089_v19 = vadd.f32 %v1088_v52, %v984_v13  ;;  %v1679_v20 = vpop.f32.mrb[53].mxu0 }
 0x163   : > { %1482 = vst [vmem:[%s2080_s22 + $0x38] sm:$0xff] %v1469_v25   ;;  %v1091_v21 = vpop.f32.mrb[54].mxu0 }
 0x164   : > { %v1129_v23 = vmul.f32 0.01, %v1089_v19  ;;  %v1092_v26 = vadd.f32 %v1091_v21, %v987_v15  ;;  %v1680_v27 = vpop.f32.mrb[55].mxu0  ;;  %vm1111_vm2 = vcmp.ge.f32.partialorder %v1089_v19, 0.0 }
 0x166   : > { %vm1112_vm3 = vcmp.ge.f32.partialorder %v1092_v26, 0.0  ;;  %v1130_v30 = vmul.f32 0.01, %v1092_v26  ;;  %v1147_v1 = vsel %vm1111_vm2, %v1089_v19, %v1129_v23 }
 0x168   : > { %v1148_v22 = vsel %vm1112_vm3, %v1092_v26, %v1130_v30 }
 0x169   : > { %v1474_v28 = vpack.c.bf16 %v1148_v22, %v1147_v1 }
 0x16b   : > { %1483 = vst [vmem:[%s2080_s22 + $0x40] sm:$0xff] %v1474_v28  }
 0x16c PF: > { %s13_s12 = sadd.s32 1, %s1813_s12  }
 0x16d   : > { %p10_p4 = scmp.ge.s32.totalorder %s13_s12, 4  }
 0x16f   :  { %12 = sbr.rel (!%p10_p4) target bundleno = 1 (0x1), region = 62 }

// kernel: _encoder_forward.7
= control target key start
LH: loop header
LB: loop body
LE: loop exit
PB: predicated region body
PF: predicated region fallthrough
CT: control target
= control target key end

     0   :  { %s14025_s1 = inlined_call_operand.vmem [shape: bf16[1152,256], index: 1, kind: input, shape index: {}]   ;;  %s14026_s0 = inlined_call_operand.vmem [shape: bf16[72,1152], index: 0, kind: input, shape index: {}]   ;;  %s14027_s3 = inlined_call_operand.vmem [shape: bf16[36,256,128], index: 3, kind: input, shape index: {}]   ;;  %s14028_s2 = inlined_call_operand.vmem [shape: f32[1,256], index: 2, kind: input, shape index: {}]   ;;  %s14029_s4 = inlined_call_operand.vmem [shape: f32[1,128], index: 4, kind: input, shape index: {}]   ;;  %s14030_s5 = inlined_call_operand.vmem [shape: f32[2,128], index: 5, kind: output, shape index: {}]  }
   0x1   :  { %v10668_v0 = vld [vmem:[%s14025_s1 + $0x4] ss:$8 sps:$4 sm:$0xff]   ;;  %v10670_v1 = vld [vmem:[%s14025_s1] ss:$8 sps:$4 sm:$0xff]   ;;  %v10671_v2 = vld [vmem:[%s14025_s1 + $0x14] ss:$8 sps:$4 sm:$0xff]  }
   0x2   :  { %1158 = vmatprep.subr.bf16.mxu0 %v10668_v0  ;;  %v10673_v3 = vld [vmem:[%s14025_s1 + $0x10] ss:$8 sps:$4 sm:$0xff]   ;;  %v10674_v4 = vld [vmem:[%s14025_s1 + $0x24] ss:$8 sps:$4 sm:$0xff]   ;;  %v10676_v5 = vld [vmem:[%s14025_s1 + $0x20] ss:$8 sps:$4 sm:$0xff]  }
   0x3   :  { %1159 = vmatpush1.bf16.msra.mxu0 %v10670_v1  ;;  %v10677_v6 = vld [vmem:[%s14025_s1 + $0x34] ss:$8 sps:$4 sm:$0xff]   ;;  %v10679_v7 = vld [vmem:[%s14025_s1 + $0x30] ss:$8 sps:$4 sm:$0xff]   ;;  %v10680_v8 = vld [vmem:[%s14025_s1 + $0x44] ss:$8 sps:$4 sm:$0xff]  }
   0x4   :  { %1160 = vmatprep.subr.bf16.mxu0 %v10671_v2  ;;  %v10682_v9 = vld [vmem:[%s14025_s1 + $0x40] ss:$8 sps:$4 sm:$0xff]   ;;  %v10683_v10 = vld [vmem:[%s14025_s1 + $0x54] ss:$8 sps:$4 sm:$0xff]   ;;  %v10685_v11 = vld [vmem:[%s14025_s1 + $0x50] ss:$8 sps:$4 sm:$0xff]  }
   0x5   :  { %v10686_v12 = vld [vmem:[%s14025_s1 + $0x64] ss:$8 sps:$4 sm:$0xff]   ;;  %v10688_v14 = vld [vmem:[%s14025_s1 + $0x60] ss:$8 sps:$4 sm:$0xff]   ;;  %v10689_v15 = vld [vmem:[%s14025_s1 + $0x74] ss:$8 sps:$4 sm:$0xff]  }
   0x6   :  { %v10718_v13 = vld [vmem:[%s14026_s0 + $0x4] ss:$36 sps:$4 sm:$0xff]   ;;  %v10691_v16 = vld [vmem:[%s14025_s1 + $0x70] ss:$8 sps:$4 sm:$0xff]   ;;  %v10695_v19 = vld [vmem:[%s14025_s1 + $0x94] ss:$8 sps:$4 sm:$0xff]  }
   0x7   :  { %1161 = vmatpush1.bf16.msra.mxu0 %v10673_v3  ;;  %1190 = vmatprep.mubr.bf16.mxu0 %v10718_v13  ;;  %v10692_v17 = vld [vmem:[%s14025_s1 + $0x84] ss:$8 sps:$4 sm:$0xff]   ;;  %v10694_v18 = vld [vmem:[%s14025_s1 + $0x80] ss:$8 sps:$4 sm:$0xff]   ;;  %v10697_v20 = vld [vmem:[%s14025_s1 + $0x90] ss:$8 sps:$4 sm:$0xff]  }
   0x8   :  { %1162 = vmatprep.subr.bf16.mxu0 %v10674_v4  ;;  %v10698_v21 = vld [vmem:[%s14025_s1 + $0xa4] ss:$8 sps:$4 sm:$0xff]   ;;  %v10700_v22 = vld [vmem:[%s14025_s1 + $0xa0] ss:$8 sps:$4 sm:$0xff]   ;;  %v10701_v23 = vld [vmem:[%s14025_s1 + $0xb4] ss:$8 sps:$4 sm:$0xff]  }
   0x9   :  { %v10703_v24 = vld [vmem:[%s14025_s1 + $0xb0] ss:$8 sps:$4 sm:$0xff]   ;;  %v10704_v25 = vld [vmem:[%s14025_s1 + $0xc4] ss:$8 sps:$4 sm:$0xff]   ;;  %v10706_v26 = vld [vmem:[%s14025_s1 + $0xc0] ss:$8 sps:$4 sm:$0xff]  }
   0xa   :  { %v10707_v27 = vld [vmem:[%s14025_s1 + $0xd4] ss:$8 sps:$4 sm:$0xff]   ;;  %v10709_v28 = vld [vmem:[%s14025_s1 + $0xd0] ss:$8 sps:$4 sm:$0xff]   ;;  %v10710_v29 = vld [vmem:[%s14025_s1 + $0xe4] ss:$8 sps:$4 sm:$0xff]  }
   0xb   :  { %1163 = vmatpush1.bf16.msra.mxu0 %v10676_v5  ;;  %v10712_v30 = vld [vmem:[%s14025_s1 + $0xe0] ss:$8 sps:$4 sm:$0xff]   ;;  %v10713_v31 = vld [vmem:[%s14025_s1 + $0xf4] ss:$8 sps:$4 sm:$0xff]   ;;  %v10715_v32 = vld [vmem:[%s14025_s1 + $0xf0] ss:$8 sps:$4 sm:$0xff]  }
   0xc   :  { %1164 = vmatprep.subr.bf16.mxu0 %v10677_v6  ;;  %v10721_v33 = vld [vmem:[%s14025_s1 + $0x104] ss:$8 sps:$4 sm:$0xff]   ;;  %v10719_v35 = vld [vmem:[%s14025_s1 + $0x100] ss:$8 sps:$4 sm:$0xff]   ;;  %v10724_v37 = vld [vmem:[%s14025_s1 + $0x114] ss:$8 sps:$4 sm:$0xff]  }
   0xd   :  { %v10716_v34 = vld [vmem:[%s14026_s0] ss:$36 sps:$4 sm:$0xff]   ;;  %v10743_v36 = vld [vmem:[%s14026_s0 + $0x4c] ss:$36 sps:$4 sm:$0xff]   ;;  %v10752_v42 = vld [vmem:[%s14026_s0 + $0x94] ss:$36 sps:$4 sm:$0xff]  }
   0xe   :  { %v10722_v38 = vld [vmem:[%s14025_s1 + $0x110] ss:$8 sps:$4 sm:$0xff]   ;;  %v10727_v39 = vld [vmem:[%s14025_s1 + $0x124] ss:$8 sps:$4 sm:$0xff]   ;;  %v10725_v40 = vld [vmem:[%s14025_s1 + $0x120] ss:$8 sps:$4 sm:$0xff]  }
   0xf   :  { %1165 = vmatpush1.bf16.msra.mxu0 %v10679_v7  ;;  %v10748_v41 = vld [vmem:[%s14026_s0 + $0x48] ss:$36 sps:$4 sm:$0xff]   ;;  %v10730_v43 = vld [vmem:[%s14025_s1 + $0x134] ss:$8 sps:$4 sm:$0xff]   ;;  %v10728_v44 = vld [vmem:[%s14025_s1 + $0x130] ss:$8 sps:$4 sm:$0xff]  }
  0x10   :  { %1166 = vmatprep.subr.bf16.mxu0 %v10680_v8  ;;  %v10733_v45 = vld [vmem:[%s14025_s1 + $0x144] ss:$8 sps:$4 sm:$0xff]   ;;  %v10731_v46 = vld [vmem:[%s14025_s1 + $0x140] ss:$8 sps:$4 sm:$0xff]   ;;  %v10757_v47 = vld [vmem:[%s14026_s0 + $0x90] ss:$36 sps:$4 sm:$0xff]  }
  0x11   :  { %v10761_v48 = vld [vmem:[%s14026_s0 + $0xdc] ss:$36 sps:$4 sm:$0xff]   ;;  %v10734_v50 = vld [vmem:[%s14025_s1 + $0x150] ss:$8 sps:$4 sm:$0xff]   ;;  %v10739_v51 = vld [vmem:[%s14025_s1 + $0x164] ss:$8 sps:$4 sm:$0xff]  }
  0x12   :  { %v10736_v49 = vld [vmem:[%s14025_s1 + $0x154] ss:$8 sps:$4 sm:$0xff]   ;;  %v61_v53 = vld [vmem:[%s14026_s0 + $0x120] sm:$0xff]  ;;  %v10740_v57 = vld [vmem:[%s14025_s1 + $0x170] ss:$8 sps:$4 sm:$0xff]  }
  0x13   :  { %1167 = vmatpush1.bf16.msra.mxu0 %v10682_v9  ;;  %v10766_v52 = vld [vmem:[%s14026_s0 + $0xd8] ss:$36 sps:$4 sm:$0xff]   ;;  %v10737_v54 = vld [vmem:[%s14025_s1 + $0x160] ss:$8 sps:$4 sm:$0xff]   ;;  %v7928_v56 = vcombine.high %v61_v53, %v61_v53  ;;  %v10747_v58 = vld [vmem:[%s14025_s1 + $0x184] ss:$8 sps:$4 sm:$0xff]   ;;  %v7927_v59 = vcombine.low %v61_v53, %v61_v53 }
  0x14   :  { %1168 = vmatprep.subr.bf16.mxu0 %v10683_v10  ;;  %v10742_v55 = vld [vmem:[%s14025_s1 + $0x174] ss:$8 sps:$4 sm:$0xff]   ;;  %v10745_v60 = vld [vmem:[%s14025_s1 + $0x180] ss:$8 sps:$4 sm:$0xff]   ;;  %v10780_v61 = vld [vmem:[%s14026_s0 + $0xc] ss:$36 sps:$4 sm:$0xff]  }
  0x15   :  { %v10751_v62 = vld [vmem:[%s14025_s1 + $0x194] ss:$8 sps:$4 sm:$0xff]   ;;  %v10749_v63 = vld [vmem:[%s14025_s1 + $0x190] ss:$8 sps:$4 sm:$0xff]   ;;  %v10756_v0 = vld [vmem:[%s14025_s1 + $0x1a4] ss:$8 sps:$4 sm:$0xff]  }
  0x16   :  { %v10754_v1 = vld [vmem:[%s14025_s1 + $0x1a0] ss:$8 sps:$4 sm:$0xff]   ;;  %v10760_v2 = vld [vmem:[%s14025_s1 + $0x1b4] ss:$8 sps:$4 sm:$0xff]   ;;  %v10758_v3 = vld [vmem:[%s14025_s1 + $0x1b0] ss:$8 sps:$4 sm:$0xff]  }
  0x17   :  { %1169 = vmatpush1.bf16.msra.mxu0 %v10685_v11  ;;  %v10765_v4 = vld [vmem:[%s14025_s1 + $0x1c4] ss:$8 sps:$4 sm:$0xff]   ;;  %v10763_v5 = vld [vmem:[%s14025_s1 + $0x1c0] ss:$8 sps:$4 sm:$0xff]   ;;  %v10769_v6 = vld [vmem:[%s14025_s1 + $0x1d4] ss:$8 sps:$4 sm:$0xff]  }
  0x18   :  { %1170 = vmatprep.subr.bf16.mxu0 %v10686_v12  ;;  %v10767_v7 = vld [vmem:[%s14025_s1 + $0x1d0] ss:$8 sps:$4 sm:$0xff]   ;;  %v10773_v8 = vld [vmem:[%s14025_s1 + $0x1e4] ss:$8 sps:$4 sm:$0xff]   ;;  %v10771_v9 = vld [vmem:[%s14025_s1 + $0x1e0] ss:$8 sps:$4 sm:$0xff]  }
  0x19   :  { %v10777_v10 = vld [vmem:[%s14025_s1 + $0x1f4] ss:$8 sps:$4 sm:$0xff]   ;;  %v10775_v11 = vld [vmem:[%s14025_s1 + $0x1f0] ss:$8 sps:$4 sm:$0xff]   ;;  %v10783_v12 = vld [vmem:[%s14025_s1 + $0x204] ss:$8 sps:$4 sm:$0xff]  }
  0x1a   :  { %v10778_v13 = vld [vmem:[%s14026_s0 + $0x8] ss:$36 sps:$4 sm:$0xff]   ;;  %v10839_v53 = vld [vmem:[%s14025_s1 + $0x2f4] ss:$8 sps:$4 sm:$0xff]  }
  0x1b   :  { %1171 = vmatpush1.bf16.msra.mxu0 %v10688_v14  ;;  %v10781_v14 = vld [vmem:[%s14025_s1 + $0x200] ss:$8 sps:$4 sm:$0xff]  }
  0x1c   :  { %1172 = vmatprep.subr.bf16.mxu0 %v10689_v15  ;;  %v10805_v15 = vld [vmem:[%s14026_s0 + $0x54] ss:$36 sps:$4 sm:$0xff]  }
  0x1f   :  { %1173 = vmatpush1.bf16.msra.mxu0 %v10691_v16  ;;  %v10786_v16 = vld [vmem:[%s14025_s1 + $0x214] ss:$8 sps:$4 sm:$0xff]  }
  0x20   :  { %1174 = vmatprep.subr.bf16.mxu0 %v10692_v17  ;;  %v10784_v17 = vld [vmem:[%s14025_s1 + $0x210] ss:$8 sps:$4 sm:$0xff]  }
  0x23   :  { %1175 = vmatpush1.bf16.msra.mxu0 %v10694_v18  ;;  %v10789_v18 = vld [vmem:[%s14025_s1 + $0x224] ss:$8 sps:$4 sm:$0xff]  }
  0x24   :  { %1176 = vmatprep.subr.bf16.mxu0 %v10695_v19  ;;  %v10810_v19 = vld [vmem:[%s14026_s0 + $0x50] ss:$36 sps:$4 sm:$0xff]  }
  0x27   :  { %1177 = vmatpush1.bf16.msra.mxu0 %v10697_v20  ;;  %v10787_v20 = vld [vmem:[%s14025_s1 + $0x220] ss:$8 sps:$4 sm:$0xff]  }
  0x28   :  { %1178 = vmatprep.subr.bf16.mxu0 %v10698_v21  ;;  %v10814_v21 = vld [vmem:[%s14026_s0 + $0x9c] ss:$36 sps:$4 sm:$0xff]  }
  0x2b   :  { %1179 = vmatpush1.bf16.msra.mxu0 %v10700_v22  ;;  %v10792_v22 = vld [vmem:[%s14025_s1 + $0x234] ss:$8 sps:$4 sm:$0xff]  }
  0x2c   :  { %1180 = vmatprep.subr.bf16.mxu0 %v10701_v23  ;;  %v10790_v23 = vld [vmem:[%s14025_s1 + $0x230] ss:$8 sps:$4 sm:$0xff]  }
  0x2f   :  { %1181 = vmatpush1.bf16.msra.mxu0 %v10703_v24  ;;  %v10795_v24 = vld [vmem:[%s14025_s1 + $0x244] ss:$8 sps:$4 sm:$0xff]  }
  0x30   :  { %1182 = vmatprep.subr.bf16.mxu0 %v10704_v25  ;;  %v10819_v25 = vld [vmem:[%s14026_s0 + $0x98] ss:$36 sps:$4 sm:$0xff]  }
  0x33   :  { %1183 = vmatpush1.bf16.msra.mxu0 %v10706_v26  ;;  %v10793_v26 = vld [vmem:[%s14025_s1 + $0x240] ss:$8 sps:$4 sm:$0xff]  }
  0x34   :  { %1184 = vmatprep.subr.bf16.mxu0 %v10707_v27  ;;  %v10823_v27 = vld [vmem:[%s14026_s0 + $0xe4] ss:$36 sps:$4 sm:$0xff]  }
  0x37   :  { %1185 = vmatpush1.bf16.msra.mxu0 %v10709_v28  ;;  %v10798_v28 = vld [vmem:[%s14025_s1 + $0x254] ss:$8 sps:$4 sm:$0xff]  }
  0x38   :  { %1186 = vmatprep.subr.bf16.mxu0 %v10710_v29  ;;  %v10796_v29 = vld [vmem:[%s14025_s1 + $0x250] ss:$8 sps:$4 sm:$0xff]  }
  0x3b   :  { %1187 = vmatpush1.bf16.msra.mxu0 %v10712_v30  ;;  %v10801_v30 = vld [vmem:[%s14025_s1 + $0x264] ss:$8 sps:$4 sm:$0xff]  }
  0x3c   :  { %1188 = vmatprep.subr.bf16.mxu0 %v10713_v31  ;;  %v62_v31 = vld [vmem:[%s14026_s0 + $0x128] sm:$0xff] }
  0x3f   :  { %1189 = vmatpush1.bf16.msra.mxu0 %v10715_v32  ;;  %v10828_v32 = vld [vmem:[%s14026_s0 + $0xe0] ss:$36 sps:$4 sm:$0xff]  }
  0x40   :  { %1239 = vmatprep.subr.bf16.mxu0 %v10721_v33  ;;  %v10799_v33 = vld [vmem:[%s14025_s1 + $0x260] ss:$8 sps:$4 sm:$0xff]  }
  0x42   :  { %1191 = vmatmul.mubr.bf16.vlgmr.msra.gmra.mrb[0].mxu0 %v10716_v34  ;;  %v7930_v34 = vcombine.high %v62_v31, %v62_v31 }
  0x43   :  { %1240 = vmatpush1.bf16.msra.mxu0 %v10719_v35  ;;  %1200 = vmatprep.mubr.bf16.mxu0 %v10743_v36  ;;  %v10804_v35 = vld [vmem:[%s14025_s1 + $0x274] ss:$8 sps:$4 sm:$0xff]   ;;  %v10802_v36 = vld [vmem:[%s14025_s1 + $0x270] ss:$8 sps:$4 sm:$0xff]  }
  0x44   :  { %1241 = vmatprep.subr.bf16.mxu0 %v10724_v37  ;;  %v10809_v37 = vld [vmem:[%s14025_s1 + $0x284] ss:$8 sps:$4 sm:$0xff]  }
  0x47   :  { %1242 = vmatpush1.bf16.msra.mxu0 %v10722_v38  ;;  %v7929_v38 = vcombine.low %v62_v31, %v62_v31  ;;  %v10873_v31 = vld [vmem:[%s14025_s1 + $0x390] ss:$8 sps:$4 sm:$0xff]  }
  0x48   :  { %1243 = vmatprep.subr.bf16.mxu0 %v10727_v39  ;;  %v10807_v39 = vld [vmem:[%s14025_s1 + $0x280] ss:$8 sps:$4 sm:$0xff]  }
  0x4a   :  { %1201 = vmatmul.mubr.bf16.gmra.mrb[4].mxu0 %v10748_v41  ;;  %v10813_v41 = vld [vmem:[%s14025_s1 + $0x294] ss:$8 sps:$4 sm:$0xff]  }
  0x4b   :  { %1244 = vmatpush1.bf16.msra.mxu0 %v10725_v40  ;;  %1210 = vmatprep.mubr.bf16.mxu0 %v10752_v42  ;;  %v10842_v40 = vld [vmem:[%s14026_s0 + $0x14] ss:$36 sps:$4 sm:$0xff]  }
  0x4c   :  { %1245 = vmatprep.subr.bf16.mxu0 %v10730_v43  ;;  %v10811_v42 = vld [vmem:[%s14025_s1 + $0x290] ss:$8 sps:$4 sm:$0xff]   ;;  %v10818_v43 = vld [vmem:[%s14025_s1 + $0x2a4] ss:$8 sps:$4 sm:$0xff]  }
  0x4f   :  { %1246 = vmatpush1.bf16.msra.mxu0 %v10728_v44  ;;  %v10816_v44 = vld [vmem:[%s14025_s1 + $0x2a0] ss:$8 sps:$4 sm:$0xff]  }
  0x50   :  { %1247 = vmatprep.subr.bf16.mxu0 %v10733_v45  ;;  %v10822_v45 = vld [vmem:[%s14025_s1 + $0x2b4] ss:$8 sps:$4 sm:$0xff]  }
  0x52   :  { %1211 = vmatmul.mubr.bf16.gmra.mrb[8].mxu0 %v10757_v47  ;;  %v10827_v47 = vld [vmem:[%s14025_s1 + $0x2c4] ss:$8 sps:$4 sm:$0xff]  }
  0x53   :  { %1248 = vmatpush1.bf16.msra.mxu0 %v10731_v46  ;;  %1220 = vmatprep.mubr.bf16.mxu0 %v10761_v48  ;;  %v10820_v46 = vld [vmem:[%s14025_s1 + $0x2b0] ss:$8 sps:$4 sm:$0xff]   ;;  %v10825_v48 = vld [vmem:[%s14025_s1 + $0x2c0] ss:$8 sps:$4 sm:$0xff]  }
  0x54   :  { %1249 = vmatprep.subr.bf16.mxu0 %v10736_v49  ;;  %v10831_v49 = vld [vmem:[%s14025_s1 + $0x2d4] ss:$8 sps:$4 sm:$0xff]  }
  0x57   :  { %1250 = vmatpush1.bf16.msra.mxu0 %v10734_v50  ;;  %v10829_v50 = vld [vmem:[%s14025_s1 + $0x2d0] ss:$8 sps:$4 sm:$0xff]  }
  0x58   :  { %1251 = vmatprep.subr.bf16.mxu0 %v10739_v51  ;;  %v10835_v51 = vld [vmem:[%s14025_s1 + $0x2e4] ss:$8 sps:$4 sm:$0xff]  }
  0x5a   :  { %1221 = vmatmul.mubr.bf16.gmra.mrb[12].mxu0 %v10766_v52  ;;  %v10833_v52 = vld [vmem:[%s14025_s1 + $0x2e0] ss:$8 sps:$4 sm:$0xff]  }
  0x5b   :  { %1252 = vmatpush1.bf16.msra.mxu0 %v10737_v54  ;;  %1230 = vmatprep.mubr.bf16.mxu0 %v7928_v56  ;;  %v10837_v54 = vld [vmem:[%s14025_s1 + $0x2f0] ss:$8 sps:$4 sm:$0xff]  }
  0x5c   :  { %1253 = vmatprep.subr.bf16.mxu0 %v10742_v55  ;;  %v10845_v55 = vld [vmem:[%s14025_s1 + $0x304] ss:$8 sps:$4 sm:$0xff]   ;;  %v10840_v56 = vld [vmem:[%s14026_s0 + $0x10] ss:$36 sps:$4 sm:$0xff]  }
  0x5f   :  { %1254 = vmatpush1.bf16.msra.mxu0 %v10740_v57  ;;  %v10843_v57 = vld [vmem:[%s14025_s1 + $0x300] ss:$8 sps:$4 sm:$0xff]  }
  0x60   :  { %1255 = vmatprep.subr.bf16.mxu0 %v10747_v58  ;;  %v10867_v58 = vld [vmem:[%s14026_s0 + $0x5c] ss:$36 sps:$4 sm:$0xff]  }
  0x62   :  { %1231 = vmatmul.mubr.bf16.gmra.mrb[16].mxu0 %v7927_v59  ;;  %v10848_v59 = vld [vmem:[%s14025_s1 + $0x314] ss:$8 sps:$4 sm:$0xff]  }
  0x63   :  { %1256 = vmatpush1.bf16.msra.mxu0 %v10745_v60  ;;  %1271 = vmatprep.mubr.bf16.mxu0 %v10780_v61  ;;  %v10846_v60 = vld [vmem:[%s14025_s1 + $0x310] ss:$8 sps:$4 sm:$0xff]   ;;  %v10851_v61 = vld [vmem:[%s14025_s1 + $0x324] ss:$8 sps:$4 sm:$0xff]  }
  0x64   :  { %1257 = vmatprep.subr.bf16.mxu0 %v10751_v62  ;;  %v10869_v62 = vld [vmem:[%s14026_s0 + $0x58] ss:$36 sps:$4 sm:$0xff]  }
  0x67   :  { %1258 = vmatpush1.bf16.msra.mxu0 %v10749_v63  ;;  %v10849_v63 = vld [vmem:[%s14025_s1 + $0x320] ss:$8 sps:$4 sm:$0xff]  }
  0x68   :  { %1259 = vmatprep.subr.bf16.mxu0 %v10756_v0  ;;  %v10876_v0 = vld [vmem:[%s14026_s0 + $0xa4] ss:$36 sps:$4 sm:$0xff]  }
  0x6b   :  { %1260 = vmatpush1.bf16.msra.mxu0 %v10754_v1  ;;  %v10854_v1 = vld [vmem:[%s14025_s1 + $0x334] ss:$8 sps:$4 sm:$0xff]  }
  0x6c   :  { %1261 = vmatprep.subr.bf16.mxu0 %v10760_v2  ;;  %v10852_v2 = vld [vmem:[%s14025_s1 + $0x330] ss:$8 sps:$4 sm:$0xff]  }
  0x6f   :  { %1262 = vmatpush1.bf16.msra.mxu0 %v10758_v3  ;;  %v10857_v3 = vld [vmem:[%s14025_s1 + $0x344] ss:$8 sps:$4 sm:$0xff]  }
  0x70   :  { %1263 = vmatprep.subr.bf16.mxu0 %v10765_v4  ;;  %v10945_v4 = vld [vmem:[%s14027_s3 + $0xc0] sm:$0xff]  }
  0x71   :  { %9777 = vmatprep.subr.bf16.mxu1 %v10945_v4  ;;  %v10937_v4 = vld [vmem:[%s14025_s1 + $0x470] ss:$8 sps:$4 sm:$0xff]  }
  0x73   :  { %1264 = vmatpush1.bf16.msra.mxu0 %v10763_v5  ;;  %v10878_v5 = vld [vmem:[%s14026_s0 + $0xa0] ss:$36 sps:$4 sm:$0xff]  }
  0x74   :  { %1265 = vmatprep.subr.bf16.mxu0 %v10769_v6  ;;  %v10946_v6 = vld [vmem:[%s14027_s3 + $0x80] sm:$0xff]  }
  0x75   :  { %9778 = vmatpush3.bf16.msra.mxu1 %v10946_v6 }
  0x77   :  { %1266 = vmatpush1.bf16.msra.mxu0 %v10767_v7  ;;  %v10855_v7 = vld [vmem:[%s14025_s1 + $0x340] ss:$8 sps:$4 sm:$0xff]  }
  0x78   :  { %1267 = vmatprep.subr.bf16.mxu0 %v10773_v8  ;;  %v10947_v8 = vld [vmem:[%s14027_s3 + $0xc8] sm:$0xff]  }
  0x79   :  { %9779 = vmatprep.subr.bf16.mxu1 %v10947_v8  ;;  %v10940_v8 = vld [vmem:[%s14026_s0 + $0x20] ss:$36 sps:$4 sm:$0xff]  }
  0x7b   :  { %1268 = vmatpush1.bf16.msra.mxu0 %v10771_v9  ;;  %v10860_v9 = vld [vmem:[%s14025_s1 + $0x354] ss:$8 sps:$4 sm:$0xff]  }
  0x7c   :  { %1269 = vmatprep.subr.bf16.mxu0 %v10777_v10  ;;  %v10948_v10 = vld [vmem:[%s14027_s3 + $0x88] sm:$0xff]  }
  0x7d   :  { %9780 = vmatpush3.bf16.msra.mxu1 %v10948_v10  ;;  %v10954_v10 = vld [vmem:[%s14027_s3 + $0x548] sm:$0xff]  }
  0x7f   :  { %1270 = vmatpush1.bf16.msra.mxu0 %v10775_v11  ;;  %v10885_v11 = vld [vmem:[%s14026_s0 + $0xec] ss:$36 sps:$4 sm:$0xff]  }
  0x80   :  { %1320 = vmatprep.subr.bf16.mxu0 %v10783_v12  ;;  %v10949_v12 = vld [vmem:[%s14027_s3 + $0xd0] sm:$0xff]  }
  0x81   :  { %9781 = vmatprep.subr.bf16.mxu1 %v10949_v12  ;;  %v10958_v12 = vld [vmem:[%s14027_s3 + $0x550] sm:$0xff]  }
  0x82   :  { %1272 = vmatmul.mubr.bf16.vlgmr.msra.gmra.mrb[0].mxu0 %v10778_v13  ;;  %v10858_v13 = vld [vmem:[%s14025_s1 + $0x350] ss:$8 sps:$4 sm:$0xff]  }
  0x83   :  { %1321 = vmatpush1.bf16.msra.mxu0 %v10781_v14  ;;  %1281 = vmatprep.mubr.bf16.mxu0 %v10805_v15  ;;  %v10863_v14 = vld [vmem:[%s14025_s1 + $0x364] ss:$8 sps:$4 sm:$0xff]   ;;  %v10951_v15 = vld [vmem:[%s14027_s3 + $0x90] sm:$0xff]  }
  0x84   :  { %1322 = vmatprep.subr.bf16.mxu0 %v10786_v16  ;;  %v10953_v16 = vld [vmem:[%s14027_s3 + $0xd8] sm:$0xff]   ;;  %9782 = vmatpush3.bf16.msra.mxu1 %v10951_v15  ;;  %v10942_v15 = vld [vmem:[%s14026_s0 + $0xb0] ss:$36 sps:$4 sm:$0xff]  }
  0x85   :  { %9783 = vmatprep.subr.bf16.mxu1 %v10953_v16  ;;  %v10943_v16 = vld [vmem:[%s14026_s0 + $0xf8] ss:$36 sps:$4 sm:$0xff]  }
  0x87   :  { %1323 = vmatpush1.bf16.msra.mxu0 %v10784_v17  ;;  %v63_v17 = vld [vmem:[%s14026_s0 + $0x130] sm:$0xff] }
  0x88   :  { %1324 = vmatprep.subr.bf16.mxu0 %v10789_v18  ;;  %v10861_v18 = vld [vmem:[%s14025_s1 + $0x360] ss:$8 sps:$4 sm:$0xff]  }
  0x8a   :  { %1282 = vmatmul.mubr.bf16.gmra.mrb[4].mxu0 %v10810_v19  ;;  %v10887_v19 = vld [vmem:[%s14026_s0 + $0xe8] ss:$36 sps:$4 sm:$0xff]  }
  0x8b   :  { %1325 = vmatpush1.bf16.msra.mxu0 %v10787_v20  ;;  %1291 = vmatprep.mubr.bf16.mxu0 %v10814_v21  ;;  %v10955_v20 = vld [vmem:[%s14027_s3 + $0x98] sm:$0xff]  }
  0x8c   :  { %1326 = vmatprep.subr.bf16.mxu0 %v10792_v22  ;;  %v10866_v21 = vld [vmem:[%s14025_s1 + $0x374] ss:$8 sps:$4 sm:$0xff]   ;;  %v7932_v22 = vcombine.high %v63_v17, %v63_v17  ;;  %9784 = vmatpush3.bf16.msra.mxu1 %v10955_v20  ;;  %v10963_v20 = vld [vmem:[%s14027_s3 + $0xa8] sm:$0xff]  }
  0x8f   :  { %1327 = vmatpush1.bf16.msra.mxu0 %v10790_v23  ;;  %v10957_v23 = vld [vmem:[%s14027_s3 + $0xe0] sm:$0xff]  }
  0x90   :  { %1328 = vmatprep.subr.bf16.mxu0 %v10795_v24  ;;  %v10864_v24 = vld [vmem:[%s14025_s1 + $0x370] ss:$8 sps:$4 sm:$0xff]   ;;  %9785 = vmatprep.subr.bf16.mxu1 %v10957_v23  ;;  %v10966_v23 = vld [vmem:[%s14027_s3 + $0x560] sm:$0xff]  }
  0x92   :  { %1292 = vmatmul.mubr.bf16.gmra.mrb[8].mxu0 %v10819_v25  ;;  %v10872_v25 = vld [vmem:[%s14025_s1 + $0x384] ss:$8 sps:$4 sm:$0xff]  }
  0x93   :  { %1329 = vmatpush1.bf16.msra.mxu0 %v10793_v26  ;;  %1301 = vmatprep.mubr.bf16.mxu0 %v10823_v27  ;;  %v10959_v26 = vld [vmem:[%s14027_s3 + $0xa0] sm:$0xff]  }
  0x94   :  { %1330 = vmatprep.subr.bf16.mxu0 %v10798_v28  ;;  %v10870_v27 = vld [vmem:[%s14025_s1 + $0x380] ss:$8 sps:$4 sm:$0xff]   ;;  %9786 = vmatpush3.bf16.msra.mxu1 %v10959_v26  ;;  %v10969_v26 = vld [vmem:[%s14027_s3 + $0xf8] sm:$0xff]  }
  0x95   :  { %v10904_v28 = vld [vmem:[%s14026_s0 + $0x1c] ss:$36 sps:$4 sm:$0xff]  }
  0x97   :  { %1331 = vmatpush1.bf16.msra.mxu0 %v10796_v29  ;;  %v10875_v29 = vld [vmem:[%s14025_s1 + $0x394] ss:$8 sps:$4 sm:$0xff]  }
  0x98   :  { %1332 = vmatprep.subr.bf16.mxu0 %v10801_v30  ;;  %v7931_v30 = vcombine.low %v63_v17, %v63_v17  ;;  %v10944_v17 = vld [vmem:[%s14026_s0 + $0x140] ss:$0 sps:$4 sm:$0xff]  }
  0x9a   :  { %1302 = vmatmul.mubr.bf16.gmra.mrb[12].mxu0 %v10828_v32  ;;  %v10881_v32 = vld [vmem:[%s14025_s1 + $0x3a4] ss:$8 sps:$4 sm:$0xff]  }
  0x9b   :  { %1333 = vmatpush1.bf16.msra.mxu0 %v10799_v33  ;;  %1311 = vmatprep.mubr.bf16.mxu0 %v7930_v34  ;;  %v10879_v33 = vld [vmem:[%s14025_s1 + $0x3a0] ss:$8 sps:$4 sm:$0xff]   ;;  %v10884_v34 = vld [vmem:[%s14025_s1 + $0x3b4] ss:$8 sps:$4 sm:$0xff]  }
  0x9c   :  { %1334 = vmatprep.subr.bf16.mxu0 %v10804_v35  ;;  %v10882_v35 = vld [vmem:[%s14025_s1 + $0x3b0] ss:$8 sps:$4 sm:$0xff]  }
  0x9f   :  { %1335 = vmatpush1.bf16.msra.mxu0 %v10802_v36  ;;  %v10890_v36 = vld [vmem:[%s14025_s1 + $0x3c4] ss:$8 sps:$4 sm:$0xff]  }
  0xa0   :  { %1336 = vmatprep.subr.bf16.mxu0 %v10809_v37  ;;  %v10888_v37 = vld [vmem:[%s14025_s1 + $0x3c0] ss:$8 sps:$4 sm:$0xff]  }
  0xa2   :  { %1312 = vmatmul.mubr.bf16.gmra.mrb[16].mxu0 %v7929_v38  ;;  %v10893_v38 = vld [vmem:[%s14025_s1 + $0x3d4] ss:$8 sps:$4 sm:$0xff]  }
  0xa3   :  { %1337 = vmatpush1.bf16.msra.mxu0 %v10807_v39  ;;  %1352 = vmatprep.mubr.bf16.mxu0 %v10842_v40  ;;  %v10891_v39 = vld [vmem:[%s14025_s1 + $0x3d0] ss:$8 sps:$4 sm:$0xff]   ;;  %v10898_v40 = vld [vmem:[%s14025_s1 + $0x3e4] ss:$8 sps:$4 sm:$0xff]  }
  0xa4   :  { %1338 = vmatprep.subr.bf16.mxu0 %v10813_v41  ;;  %v10896_v41 = vld [vmem:[%s14025_s1 + $0x3e0] ss:$8 sps:$4 sm:$0xff]  }
  0xa7   :  { %1339 = vmatpush1.bf16.msra.mxu0 %v10811_v42  ;;  %v10901_v42 = vld [vmem:[%s14025_s1 + $0x3f4] ss:$8 sps:$4 sm:$0xff]  }
  0xa8   :  { %1340 = vmatprep.subr.bf16.mxu0 %v10818_v43  ;;  %v10899_v43 = vld [vmem:[%s14025_s1 + $0x3f0] ss:$8 sps:$4 sm:$0xff]  }
  0xab   :  { %1341 = vmatpush1.bf16.msra.mxu0 %v10816_v44  ;;  %v10907_v44 = vld [vmem:[%s14025_s1 + $0x404] ss:$8 sps:$4 sm:$0xff]  }
  0xac   :  { %1342 = vmatprep.subr.bf16.mxu0 %v10822_v45  ;;  %v10902_v45 = vld [vmem:[%s14026_s0 + $0x18] ss:$36 sps:$4 sm:$0xff]  }
  0xaf   :  { %1343 = vmatpush1.bf16.msra.mxu0 %v10820_v46  ;;  %v10905_v46 = vld [vmem:[%s14025_s1 + $0x400] ss:$8 sps:$4 sm:$0xff]  }
  0xb0   :  { %1344 = vmatprep.subr.bf16.mxu0 %v10827_v47  ;;  %v10911_v47 = vld [vmem:[%s14026_s0 + $0x64] ss:$36 sps:$4 sm:$0xff]  }
  0xb3   :  { %1345 = vmatpush1.bf16.msra.mxu0 %v10825_v48  ;;  %v10910_v48 = vld [vmem:[%s14025_s1 + $0x414] ss:$8 sps:$4 sm:$0xff]  }
  0xb4   :  { %1346 = vmatprep.subr.bf16.mxu0 %v10831_v49  ;;  %v10908_v49 = vld [vmem:[%s14025_s1 + $0x410] ss:$8 sps:$4 sm:$0xff]  }
  0xb7   :  { %1347 = vmatpush1.bf16.msra.mxu0 %v10829_v50  ;;  %v10916_v50 = vld [vmem:[%s14025_s1 + $0x424] ss:$8 sps:$4 sm:$0xff]  }
  0xb8   :  { %1348 = vmatprep.subr.bf16.mxu0 %v10835_v51  ;;  %v10913_v51 = vld [vmem:[%s14026_s0 + $0x60] ss:$36 sps:$4 sm:$0xff]  }
  0xbb   :  { %1349 = vmatpush1.bf16.msra.mxu0 %v10833_v52  ;;  %v10914_v52 = vld [vmem:[%s14025_s1 + $0x420] ss:$8 sps:$4 sm:$0xff]  }
  0xbc   :  { %1350 = vmatprep.subr.bf16.mxu0 %v10839_v53  ;;  %v10917_v53 = vld [vmem:[%s14026_s0 + $0xac] ss:$36 sps:$4 sm:$0xff]  }
  0xbf   :  { %1351 = vmatpush1.bf16.msra.mxu0 %v10837_v54  ;;  %v10921_v54 = vld [vmem:[%s14025_s1 + $0x434] ss:$8 sps:$4 sm:$0xff]  }
  0xc0   :  { %1401 = vmatprep.subr.bf16.mxu0 %v10845_v55  ;;  %v10919_v55 = vld [vmem:[%s14025_s1 + $0x430] ss:$8 sps:$4 sm:$0xff]  }
  0xc2   :  { %1353 = vmatmul.mubr.bf16.vlgmr.msra.gmra.mrb[0].mxu0 %v10840_v56  ;;  %v10925_v56 = vld [vmem:[%s14025_s1 + $0x444] ss:$8 sps:$4 sm:$0xff]  }
  0xc3   :  { %1402 = vmatpush1.bf16.msra.mxu0 %v10843_v57  ;;  %1362 = vmatprep.mubr.bf16.mxu0 %v10867_v58  ;;  %v10922_v57 = vld [vmem:[%s14026_s0 + $0xa8] ss:$36 sps:$4 sm:$0xff]  }
  0xc4   :  { %1403 = vmatprep.subr.bf16.mxu0 %v10848_v59  ;;  %v10923_v58 = vld [vmem:[%s14025_s1 + $0x440] ss:$8 sps:$4 sm:$0xff]   ;;  %v10926_v59 = vld [vmem:[%s14026_s0 + $0xf4] ss:$36 sps:$4 sm:$0xff]  }
  0xc7   :  { %1404 = vmatpush1.bf16.msra.mxu0 %v10846_v60  ;;  %v10931_v60 = vld [vmem:[%s14025_s1 + $0x454] ss:$8 sps:$4 sm:$0xff]  }
  0xc8   :  { %1405 = vmatprep.subr.bf16.mxu0 %v10851_v61  ;;  %v10929_v61 = vld [vmem:[%s14025_s1 + $0x450] ss:$8 sps:$4 sm:$0xff]  }
  0xca   :  { %1363 = vmatmul.mubr.bf16.gmra.mrb[4].mxu0 %v10869_v62  ;;  %v10934_v62 = vld [vmem:[%s14025_s1 + $0x464] ss:$8 sps:$4 sm:$0xff]  }
  0xcb   :  { %1406 = vmatpush1.bf16.msra.mxu0 %v10849_v63  ;;  %1372 = vmatprep.mubr.bf16.mxu0 %v10876_v0  ;;  %v64_v63 = vld [vmem:[%s14026_s0 + $0x138] sm:$0xff]  ;;  %v10928_v0 = vld [vmem:[%s14026_s0 + $0xf0] ss:$36 sps:$4 sm:$0xff]  }
  0xcc   :  { %1407 = vmatprep.subr.bf16.mxu0 %v10854_v1  ;;  %v10932_v1 = vld [vmem:[%s14025_s1 + $0x460] ss:$8 sps:$4 sm:$0xff]   ;;  %v7933_v6 = vcombine.low %v64_v63, %v64_v63 }
  0xcf   :  { %1408 = vmatpush1.bf16.msra.mxu0 %v10852_v2  ;;  %v10939_v2 = vld [vmem:[%s14025_s1 + $0x474] ss:$8 sps:$4 sm:$0xff]  }
  0xd0   :  { %1409 = vmatprep.subr.bf16.mxu0 %v10857_v3  ;;  %v7934_v3 = vcombine.high %v64_v63, %v64_v63 }
  0xd2   :  { %1373 = vmatmul.mubr.bf16.gmra.mrb[8].mxu0 %v10878_v5  ;;  %v10950_v5 = vld [vmem:[%s14027_s3 + $0x540] sm:$0xff]  }
  0xd3   :  { %1410 = vmatpush1.bf16.msra.mxu0 %v10855_v7  ;;  %1382 = vmatprep.mubr.bf16.mxu0 %v10885_v11  ;;  %v11521_v7 = vmov 0   ;;  %v10956_v11 = vld [vmem:[%s14027_s3 + $0x508] sm:$0xff]  }
  0xd4   :  { %1411 = vmatprep.subr.bf16.mxu0 %v10860_v9  ;;  %v10952_v9 = vld [vmem:[%s14027_s3 + $0x500] sm:$0xff]  }
  0xd7   :  { %1412 = vmatpush1.bf16.msra.mxu0 %v10858_v13  ;;  %v10941_v13 = vld [vmem:[%s14026_s0 + $0x68] ss:$36 sps:$4 sm:$0xff]  }
  0xd8   :  { %1413 = vmatprep.subr.bf16.mxu0 %v10863_v14  ;;  %v10960_v14 = vld [vmem:[%s14027_s3 + $0x510] sm:$0xff]  }
  0xda   :  { %1383 = vmatmul.mubr.bf16.gmra.mrb[12].mxu0 %v10887_v19  ;;  %v10962_v19 = vld [vmem:[%s14027_s3 + $0x558] sm:$0xff]  }
  0xdb   :  { %1414 = vmatpush1.bf16.msra.mxu0 %v10861_v18  ;;  %1392 = vmatprep.mubr.bf16.mxu0 %v7932_v22  ;;  %v10961_v18 = vld [vmem:[%s14027_s3 + $0xe8] sm:$0xff]   ;;  %v10965_v22 = vld [vmem:[%s14027_s3 + $0xf0] sm:$0xff]  }
  0xdc   :  { %1415 = vmatprep.subr.bf16.mxu0 %v10866_v21  ;;  %v10964_v21 = vld [vmem:[%s14027_s3 + $0x518] sm:$0xff]   ;;  %9787 = vmatprep.subr.bf16.mxu1 %v10961_v18 }
  0xdd   :  { %9788 = vmatpush3.bf16.msra.mxu1 %v10963_v20  ;;  %v10981_v20 = vld [vmem:[%s14027_s3 + $0x50] sm:$0xff]  }
  0xde   :  { %9789 = vmatprep.subr.bf16.mxu1 %v10965_v22 }
  0xdf   :  { %1416 = vmatpush1.bf16.msra.mxu0 %v10864_v24  ;;  %v10967_v24 = vld [vmem:[%s14027_s3 + $0xb0] sm:$0xff]  }
  0xe0   :  { %1417 = vmatprep.subr.bf16.mxu0 %v10872_v25  ;;  %v10968_v25 = vld [vmem:[%s14027_s3 + $0x520] sm:$0xff]  }
  0xe1   :  { %9790 = vmatpush3.bf16.msra.mxu1 %v10967_v24 }
  0xe2   :  { %1393 = vmatmul.mubr.bf16.gmra.mrb[16].mxu0 %v7931_v30  ;;  %9791 = vmatprep.subr.bf16.mxu1 %v10969_v26  ;;  %v10973_v30 = vld [vmem:[%s14027_s3 + $0x40] sm:$0xff]  }
  0xe3   :  { %1418 = vmatpush1.bf16.msra.mxu0 %v10870_v27  ;;  %1433 = vmatprep.mubr.bf16.mxu0 %v10904_v28  ;;  %v10970_v27 = vld [vmem:[%s14027_s3 + $0x568] sm:$0xff]   ;;  %v10971_v28 = vld [vmem:[%s14027_s3 + $0xb8] sm:$0xff]  }
  0xe4   :  { %1419 = vmatprep.subr.bf16.mxu0 %v10875_v29  ;;  %v10972_v29 = vld [vmem:[%s14027_s3 + $0x528] sm:$0xff]  }
  0xe5   :  { %9792 = vmatpush3.bf16.msra.mxu1 %v10971_v28 }
  0xe6   :  { %9799 = vmatprep.subr.bf16.mxu1 %v10973_v30  ;;  %v10983_v30 = vld [vmem:[%s14027_s3 + $0x10] sm:$0xff]  }
  0xe7   :  { %1420 = vmatpush1.bf16.msra.mxu0 %v10873_v31  ;;  %v10974_v31 = vld [vmem:[%s14027_s3 + $0x570] sm:$0xff]  }
  0xe8   :  { %1421 = vmatprep.subr.bf16.mxu0 %v10881_v32  ;;  %v10976_v32 = vld [vmem:[%s14027_s3 + $0x530] sm:$0xff]  }
  0xeb   :  { %1422 = vmatpush1.bf16.msra.mxu0 %v10879_v33  ;;  %v10978_v33 = vld [vmem:[%s14027_s3 + $0x578] sm:$0xff]  }
  0xec   :  { %1423 = vmatprep.subr.bf16.mxu0 %v10884_v34  ;;  %v10980_v34 = vld [vmem:[%s14027_s3 + $0x538] sm:$0xff]  }
  0xef   :  { %1424 = vmatpush1.bf16.msra.mxu0 %v10882_v35  ;;  %v10982_v35 = vld [vmem:[%s14027_s3 + $0x640] sm:$0xff]  }
  0xf0   :  { %1425 = vmatprep.subr.bf16.mxu0 %v10890_v36  ;;  %v212_v36 = vlaneseq }
  0xf3   :  { %1426 = vmatpush1.bf16.msra.mxu0 %v10888_v37  ;;  %v213_v37 = vshrl.u32 %v212_v36, 7  ;;  %v10986_v36 = vld [vmem:[%s14027_s3 + $0x648] sm:$0xff]  }
  0xf4   :  { %1427 = vmatprep.subr.bf16.mxu0 %v10893_v38  ;;  %v210_v38 = vld [vmem:[%s14028_s2] sm:$0x3] }
  0xf7   :  { %1428 = vmatpush1.bf16.msra.mxu0 %v10891_v39  ;;  %v214_v39 = vsub.s32 0, %v213_v37 }
  0xf8   :  { %1429 = vmatprep.subr.bf16.mxu0 %v10898_v40  ;;  %v218_v40 = vsub.s32 1, %v213_v37 }
  0xfb   :  { %1430 = vmatpush1.bf16.msra.mxu0 %v10896_v41  ;;  %v12212_v41 = vrot.slane %v210_v38, %v214_v39 }
  0xfc   :  { %1431 = vmatprep.subr.bf16.mxu0 %v10901_v42  ;;  %v12214_v42 = vrot.slane %v210_v38, %v218_v40 }
  0xff   :  { %1432 = vmatpush1.bf16.msra.mxu0 %v10899_v43 }
 0x100   :  { %1482 = vmatprep.subr.bf16.mxu0 %v10907_v44 }
 0x102   :  { %1434 = vmatmul.mubr.bf16.vlgmr.msra.gmra.mrb[0].mxu0 %v10902_v45 }
 0x103   :  { %1483 = vmatpush1.bf16.msra.mxu0 %v10905_v46  ;;  %1443 = vmatprep.mubr.bf16.mxu0 %v10911_v47 }
 0x104   :  { %1484 = vmatprep.subr.bf16.mxu0 %v10910_v48 }
 0x107   :  { %1485 = vmatpush1.bf16.msra.mxu0 %v10908_v49 }
 0x108   :  { %1486 = vmatprep.subr.bf16.mxu0 %v10916_v50 }
 0x10a   :  { %1444 = vmatmul.mubr.bf16.gmra.mrb[4].mxu0 %v10913_v51 }
 0x10b   :  { %1487 = vmatpush1.bf16.msra.mxu0 %v10914_v52  ;;  %1453 = vmatprep.mubr.bf16.mxu0 %v10917_v53 }
 0x10c   :  { %1488 = vmatprep.subr.bf16.mxu0 %v10921_v54 }
 0x10f   :  { %1489 = vmatpush1.bf16.msra.mxu0 %v10919_v55 }
 0x110   :  { %1490 = vmatprep.subr.bf16.mxu0 %v10925_v56 }
 0x112   :  { %1454 = vmatmul.mubr.bf16.gmra.mrb[8].mxu0 %v10922_v57 }
 0x113   :  { %1491 = vmatpush1.bf16.msra.mxu0 %v10923_v58  ;;  %1463 = vmatprep.mubr.bf16.mxu0 %v10926_v59 }
 0x114   :  { %1492 = vmatprep.subr.bf16.mxu0 %v10931_v60 }
 0x117   :  { %1493 = vmatpush1.bf16.msra.mxu0 %v10929_v61 }
 0x118   :  { %1494 = vmatprep.subr.bf16.mxu0 %v10934_v62 }
 0x11a   :  { %1464 = vmatmul.mubr.bf16.gmra.mrb[12].mxu0 %v10928_v0 }
 0x11b   :  { %1473 = vmatprep.mubr.bf16.mxu0 %v7934_v3  ;;  %1495 = vmatpush1.bf16.msra.mxu0 %v10932_v1 }
 0x11c   :  { %1496 = vmatprep.subr.bf16.mxu0 %v10939_v2 }
 0x11f   :  { %1497 = vmatpush1.bf16.msra.mxu0 %v10937_v4 }
 0x120   :  { %9997 = vmatprep.subr.bf16.mxu0 %v10950_v5 }
 0x122   :  { %1474 = vmatmul.mubr.bf16.gmra.mrb[16].mxu0 %v7933_v6  ;;  %v10975_v6 = vld [vmem:[%s14027_s3] sm:$0xff]  }
 0x123   :  { %1514 = vmatprep.mubr.bf16.mxu0 %v11521_v7 }
 0x12a   :  { %1515 = vmatmul.mubr.bf16.vlgmr.msra.gmra.mrb[0].mxu0 %v10940_v8 }
 0x12b   :  { %1524 = vmatprep.mubr.bf16.mxu0 %v11521_v7  ;;  %9998 = vmatpush3.bf16.msra.mxu0 %v10952_v9 }
 0x12c   :  { %9999 = vmatprep.subr.bf16.mxu0 %v10954_v10 }
 0x12f   :  { %10000 = vmatpush3.bf16.msra.mxu0 %v10956_v11 }
 0x130   :  { %10001 = vmatprep.subr.bf16.mxu0 %v10958_v12 }
 0x132   :  { %1525 = vmatmul.mubr.bf16.gmra.mrb[4].mxu0 %v10941_v13 }
 0x133   :  { %1534 = vmatprep.mubr.bf16.mxu0 %v11521_v7  ;;  %10002 = vmatpush3.bf16.msra.mxu0 %v10960_v14 }
 0x134   :  { %10003 = vmatprep.subr.bf16.mxu0 %v10962_v19 }
 0x137   :  { %10004 = vmatpush3.bf16.msra.mxu0 %v10964_v21 }
 0x138   :  { %10005 = vmatprep.subr.bf16.mxu0 %v10966_v23 }
 0x13a   :  { %1535 = vmatmul.mubr.bf16.gmra.mrb[8].mxu0 %v10942_v15  ;;  %v10979_v15 = vld [vmem:[%s14027_s3 + $0x8] sm:$0xff]  }
 0x13b   :  { %1544 = vmatprep.mubr.bf16.mxu0 %v11521_v7  ;;  %10006 = vmatpush3.bf16.msra.mxu0 %v10968_v25 }
 0x13c   :  { %10007 = vmatprep.subr.bf16.mxu0 %v10970_v27 }
 0x13f   :  { %10008 = vmatpush3.bf16.msra.mxu0 %v10972_v29 }
 0x140   :  { %10009 = vmatprep.subr.bf16.mxu0 %v10974_v31  ;;  %v10984_v31 = vld [vmem:[%s14027_s3 + $0x600] sm:$0xff]  }
 0x142   :  { %1545 = vmatmul.mubr.bf16.gmra.mrb[12].mxu0 %v10943_v16 }
 0x143   :  { %1554 = vmatprep.mubr.bf16.mxu0 %v11521_v7  ;;  %10010 = vmatpush3.bf16.msra.mxu0 %v10976_v32  ;;  %v10977_v7 = vld [vmem:[%s14027_s3 + $0x48] sm:$0xff]  }
 0x144   :  { %10011 = vmatprep.subr.bf16.mxu0 %v10978_v33 }
 0x147   :  { %10012 = vmatpush3.bf16.msra.mxu0 %v10980_v34 }
 0x148   :  { %10041 = vmatprep.subr.bf16.mxu0 %v10982_v35  ;;  %v10985_v35 = vld [vmem:[%s14027_s3 + $0x58] sm:$0xff]  }
 0x14a   :  { %1555 = vmatmul.mubr.bf16.gmra.mrb[16].mxu0 %v10944_v17 }
 0x1fd   :  { %v1516_v43 = vpop.f32.mrb[0].mxu0 }
 0x1fe   :  { %v10569_v44 = vadd.f32 %v1516_v43, %v12212_v41  ;;  %v1518_v45 = vpop.f32.mrb[1].mxu0 }
 0x1ff   :  { %v10570_v46 = vadd.f32 %v1518_v45, %v12214_v42  ;;  %v1520_v47 = vpop.f32.mrb[2].mxu0  ;;  %v10988_v45 = vld [vmem:[%s14027_s3 + $0x608] sm:$0xff]  }
 0x200   :  { %v1581_v48 = vmul.f32 0.01, %v10569_v44  ;;  %v10571_v49 = vadd.f32 %v1520_v47, %v12212_v41  ;;  %v1522_v50 = vpop.f32.mrb[3].mxu0  ;;  %vm1563_vm0 = vcmp.ge.f32.partialorder %v10569_v44, 0.0 }
 0x201   :  { %v1582_v51 = vmul.f32 0.01, %v10570_v46  ;;  %v10572_v52 = vadd.f32 %v1522_v50, %v12214_v42  ;;  %vm1564_vm1 = vcmp.ge.f32.partialorder %v10570_v46, 0.0  ;;  %v10989_v50 = vld [vmem:[%s14027_s3 + $0x60] sm:$0xff]  }
 0x202   :  { %vm1565_vm2 = vcmp.ge.f32.partialorder %v10571_v49, 0.0  ;;  %v1583_v53 = vmul.f32 0.01, %v10571_v49  ;;  %v1599_v55 = vsel %vm1563_vm0, %v10569_v44, %v1581_v48  ;;  %v10987_v44 = vld [vmem:[%s14027_s3 + $0x18] sm:$0xff]  }
 0x203   :  { %vm1566_vm3 = vcmp.ge.f32.partialorder %v10572_v52, 0.0  ;;  %v1584_v54 = vmul.f32 0.01, %v10572_v52  ;;  %v1600_v57 = vsel %vm1564_vm1, %v10570_v46, %v1582_v51  ;;  %v10990_v51 = vld [vmem:[%s14027_s3 + $0x650] sm:$0xff]  }
 0x204   :  { %v1601_v56 = vsel %vm1565_vm2, %v10571_v49, %v1583_v53 }
 0x205   :  { %v12220_v58 = vpack.c.bf16 %v1601_v56, %v1599_v55  ;;  %v1602_v59 = vsel %vm1566_vm3, %v10572_v52, %v1584_v54  ;;  %v1526_v60 = vpop.f32.mrb[4].mxu0 }
 0x206   :  { %v12222_v61 = vpack.c.bf16 %v1602_v59, %v1600_v57  ;;  %v10573_v62 = vadd.f32 %v1526_v60, %v12212_v41  ;;  %v1528_v63 = vpop.f32.mrb[5].mxu0 }
 0x207   :  { %v10574_v0 = vadd.f32 %v1528_v63, %v12214_v42  ;;  %v1530_v1 = vpop.f32.mrb[6].mxu0  ;;  %v1694_v10 = vrot.slane %v12220_v58, 1  ;;  %v10992_v63 = vld [vmem:[%s14027_s3 + $0x610] sm:$0xff]  }
 0x208   :  { %v1585_v2 = vmul.f32 0.01, %v10573_v62  ;;  %v10575_v3 = vadd.f32 %v1530_v1, %v12212_v41  ;;  %v1532_v4 = vpop.f32.mrb[7].mxu0  ;;  %v1695_v5 = vrot.slane %v12222_v61, 1  ;;  %vm1567_vm4 = vcmp.ge.f32.partialorder %v10573_v62, 0.0 }
 0x209   :  { %v1586_v8 = vmul.f32 0.01, %v10574_v0  ;;  %v10576_v9 = vadd.f32 %v1532_v4, %v12214_v42  ;;  %vm1568_vm5 = vcmp.ge.f32.partialorder %v10574_v0, 0.0 }
 0x20a   :  { %vm1569_vm6 = vcmp.ge.f32.partialorder %v10575_v3, 0.0  ;;  %v1587_v11 = vmul.f32 0.01, %v10575_v3  ;;  %1826 = vmatprep.mubr.bf16.mxu1 %v1695_v5  ;;  %v1603_v13 = vsel %vm1567_vm4, %v10573_v62, %v1585_v2  ;;  %v10991_v62 = vld [vmem:[%s14027_s3 + $0x20] sm:$0xff]   ;;  %v10993_v2 = vld [vmem:[%s14027_s3 + $0x68] sm:$0xff]  }
 0x20b   :  { %vm1570_vm7 = vcmp.ge.f32.partialorder %v10576_v9, 0.0  ;;  %v1588_v12 = vmul.f32 0.01, %v10576_v9  ;;  %1827 = vmatmul.mubr.bf16.vlgmr.msra.gmra.mrb[0].mxu1 %v1694_v10  ;;  %v1604_v16 = vsel %vm1568_vm5, %v10574_v0, %v1586_v8 }
 0x20c   :  { %v1605_v14 = vsel %vm1569_vm6, %v10575_v3, %v1587_v11  ;;  %9800 = vmatpush3.bf16.msra.mxu1 %v10975_v6  ;;  %1962 = vmatprep.mubr.bf16.mxu1 %v12222_v61  ;;  %v10994_v3 = vld [vmem:[%s14027_s3 + $0x658] sm:$0xff]   ;;  %v10995_v6 = vld [vmem:[%s14027_s3 + $0x28] sm:$0xff]  }
 0x20d   :  { %v12240_v17 = vpack.c.bf16 %v1605_v14, %v1603_v13  ;;  %v1606_v18 = vsel %vm1570_vm7, %v10576_v9, %v1588_v12  ;;  %v1536_v19 = vpop.f32.mrb[8].mxu0  ;;  %9801 = vmatprep.subr.bf16.mxu1 %v10977_v7  ;;  %v10996_v9 = vld [vmem:[%s14027_s3 + $0x618] sm:$0xff]   ;;  %v10997_v14 = vld [vmem:[%s14027_s3 + $0x70] sm:$0xff]  }
 0x20e   :  { %v12245_v21 = vpack.c.bf16 %v1606_v18, %v1604_v16  ;;  %v10577_v22 = vadd.f32 %v1536_v19, %v12212_v41  ;;  %v1538_v23 = vpop.f32.mrb[9].mxu0 }
 0x20f   :  { %v10578_v24 = vadd.f32 %v1538_v23, %v12214_v42  ;;  %v1540_v25 = vpop.f32.mrb[10].mxu0  ;;  %v3393_v34 = vrot.slane %v12240_v17, 2 }
 0x210   :  { %v1589_v26 = vmul.f32 0.01, %v10577_v22  ;;  %v10579_v27 = vadd.f32 %v1540_v25, %v12212_v41  ;;  %9802 = vmatpush3.bf16.msra.mxu1 %v10979_v15  ;;  %v1542_v28 = vpop.f32.mrb[11].mxu0  ;;  %v3394_v29 = vrot.slane %v12245_v21, 2  ;;  %vm1571_vm8 = vcmp.ge.f32.partialorder %v10577_v22, 0.0  ;;  %v10998_v15 = vld [vmem:[%s14027_s3 + $0x660] sm:$0xff]  }
 0x211   :  { %v1590_v32 = vmul.f32 0.01, %v10578_v24  ;;  %v10580_v33 = vadd.f32 %v1542_v28, %v12214_v42  ;;  %9803 = vmatprep.subr.bf16.mxu1 %v10981_v20  ;;  %vm1572_vm9 = vcmp.ge.f32.partialorder %v10578_v24, 0.0  ;;  %v3742_v39 = vrot.slane %v12245_v21, 4  ;;  %v11000_v25 = vld [vmem:[%s14027_s3 + $0x620] sm:$0xff]  }
 0x212   :  { %vm1573_vm10 = vcmp.ge.f32.partialorder %v10579_v27, 0.0  ;;  %v1591_v37 = vmul.f32 0.01, %v10579_v27  ;;  %3525 = vmatprep.mubr.bf16.mxu0 %v3394_v29  ;;  %v1607_v40 = vsel %vm1571_vm8, %v10577_v22, %v1589_v26  ;;  %v11003_v26 = vld [vmem:[%s14027_s3 + $0x38] sm:$0xff]   ;;  %v11005_v28 = vld [vmem:[%s14027_s3 + $0x140] sm:$0xff]   ;;  %v11006_v29 = vld [vmem:[%s14027_s3 + $0x670] sm:$0xff]  }
 0x213   :  { %vm1574_vm11 = vcmp.ge.f32.partialorder %v10580_v33, 0.0  ;;  %v1592_v38 = vmul.f32 0.01, %v10580_v33  ;;  %3526 = vmatmul.mubr.bf16.vlgmr.msra.gmra.mrb[20].mxu0 %v3393_v34  ;;  %v1608_v46 = vsel %vm1572_vm9, %v10578_v24, %v1590_v32  ;;  %v10999_v24 = vld [vmem:[%s14027_s3 + $0x30] sm:$0xff]   ;;  %v11009_v32 = vld [vmem:[%s14027_s3 + $0x148] sm:$0xff]   ;;  %v11010_v34 = vld [vmem:[%s14027_s3 + $0x678] sm:$0xff]  }
 0x214   :  { %v1609_v43 = vsel %vm1573_vm10, %v10579_v27, %v1591_v37  ;;  %9804 = vmatpush3.bf16.msra.mxu1 %v10983_v30  ;;  %10042 = vmatpush3.bf16.msra.mxu0 %v10984_v31  ;;  %v11004_v27 = vld [vmem:[%s14027_s3 + $0x628] sm:$0xff]   ;;  %v11007_v30 = vld [vmem:[%s14027_s3 + $0x100] sm:$0xff]   ;;  %v11008_v31 = vld [vmem:[%s14027_s3 + $0x630] sm:$0xff]  }
 0x215   :  { %v12272_v47 = vpack.c.bf16 %v1609_v43, %v1607_v40  ;;  %v1610_v48 = vsel %vm1574_vm11, %v10580_v33, %v1592_v38  ;;  %3873 = vmatprep.mubr.bf16.mxu0 %v3742_v39  ;;  %v1546_v49 = vpop.f32.mrb[12].mxu0  ;;  %9805 = vmatprep.subr.bf16.mxu1 %v10985_v35  ;;  %v2004_v33 = vrot.slane %v12222_v61, 2  ;;  %v11011_v35 = vld [vmem:[%s14027_s3 + $0x108] sm:$0xff]   ;;  %v11013_v37 = vld [vmem:[%s14027_s3 + $0x150] sm:$0xff]   ;;  %v11014_v38 = vld [vmem:[%s14027_s3 + $0x740] sm:$0xff]  }
 0x216   :  { %v12280_v52 = vpack.c.bf16 %v1610_v48, %v1608_v46  ;;  %v10581_v53 = vadd.f32 %v1546_v49, %v12212_v41  ;;  %v1548_v54 = vpop.f32.mrb[13].mxu0  ;;  %10043 = vmatprep.subr.bf16.mxu0 %v10986_v36  ;;  %v11012_v36 = vld [vmem:[%s14027_s3 + $0x638] sm:$0xff]   ;;  %v11015_v39 = vld [vmem:[%s14027_s3 + $0x110] sm:$0xff]   ;;  %v11016_v40 = vld [vmem:[%s14027_s3 + $0x700] sm:$0xff]   ;;  %v4090_v46 = vrot.slane %v12245_v21, 6 }
 0x217   :  { %v10582_v55 = vadd.f32 %v1548_v54, %v12214_v42  ;;  %v1550_v56 = vpop.f32.mrb[14].mxu0  ;;  %v11017_v43 = vld [vmem:[%s14027_s3 + $0x158] sm:$0xff]   ;;  %v11020_v49 = vld [vmem:[%s14027_s3 + $0x708] sm:$0xff]   ;;  %v11024_v54 = vld [vmem:[%s14027_s3 + $0x710] sm:$0xff]  }
 0x218   :  { %v1593_v57 = vmul.f32 0.01, %v10581_v53  ;;  %v10583_v59 = vadd.f32 %v1550_v56, %v12212_v41  ;;  %9806 = vmatpush3.bf16.msra.mxu1 %v10987_v44  ;;  %10044 = vmatpush3.bf16.msra.mxu0 %v10988_v45  ;;  %v1552_v60 = vpop.f32.mrb[15].mxu0  ;;  %vm1575_vm12 = vcmp.ge.f32.partialorder %v10581_v53, 0.0  ;;  %v11018_v44 = vld [vmem:[%s14027_s3 + $0x748] sm:$0xff]   ;;  %v3741_v45 = vrot.slane %v12240_v17, 4 }
 0x219   :  { %v1594_v0 = vmul.f32 0.01, %v10582_v55  ;;  %v10584_v1 = vadd.f32 %v1552_v60, %v12214_v42  ;;  %9807 = vmatprep.subr.bf16.mxu1 %v10989_v50  ;;  %10045 = vmatprep.subr.bf16.mxu0 %v10990_v51  ;;  %vm1576_vm13 = vcmp.ge.f32.partialorder %v10582_v55, 0.0  ;;  %v11019_v48 = vld [vmem:[%s14027_s3 + $0x118] sm:$0xff]   ;;  %v11021_v50 = vld [vmem:[%s14027_s3 + $0x160] sm:$0xff]   ;;  %v11022_v51 = vld [vmem:[%s14027_s3 + $0x750] sm:$0xff]  }
 0x21a   :  { %vm1577_vm14 = vcmp.ge.f32.partialorder %v10583_v59, 0.0  ;;  %v1595_v4 = vmul.f32 0.01, %v10583_v59  ;;  %v1611_v7 = vsel %vm1575_vm12, %v10581_v53, %v1593_v57  ;;  %v11023_v53 = vld [vmem:[%s14027_s3 + $0x120] sm:$0xff]   ;;  %v11026_v56 = vld [vmem:[%s14027_s3 + $0x758] sm:$0xff]   ;;  %v11027_v57 = vld [vmem:[%s14027_s3 + $0x128] sm:$0xff]  }
 0x21b   :  { %vm1578_vm15 = vcmp.ge.f32.partialorder %v10584_v1, 0.0  ;;  %v1596_v5 = vmul.f32 0.01, %v10584_v1  ;;  %v1612_v10 = vsel %vm1576_vm13, %v10582_v55, %v1594_v0  ;;  %v11025_v55 = vld [vmem:[%s14027_s3 + $0x168] sm:$0xff]   ;;  %v11029_v60 = vld [vmem:[%s14027_s3 + $0x170] sm:$0xff]   ;;  %v11032_v0 = vld [vmem:[%s14027_s3 + $0x720] sm:$0xff]  }
 0x21c   :  { %v1613_v8 = vsel %vm1577_vm14, %v10583_v59, %v1595_v4  ;;  %9808 = vmatpush3.bf16.msra.mxu1 %v10991_v62  ;;  %10046 = vmatpush3.bf16.msra.mxu0 %v10992_v63  ;;  %v11028_v59 = vld [vmem:[%s14027_s3 + $0x718] sm:$0xff]   ;;  %v11030_v62 = vld [vmem:[%s14027_s3 + $0x760] sm:$0xff]   ;;  %v11031_v63 = vld [vmem:[%s14027_s3 + $0x130] sm:$0xff]  }
 0x21d   :  { %v12304_v11 = vpack.c.bf16 %v1613_v8, %v1611_v7  ;;  %v1614_v12 = vsel %vm1578_vm15, %v10584_v1, %v1596_v5  ;;  %v1556_v13 = vpop.f32.mrb[16].mxu0  ;;  %9809 = vmatprep.subr.bf16.mxu1 %v10993_v2  ;;  %10047 = vmatprep.subr.bf16.mxu0 %v10994_v3  ;;  %v11033_v1 = vld [vmem:[%s14027_s3 + $0x178] sm:$0xff]   ;;  %v11034_v2 = vld [vmem:[%s14027_s3 + $0x768] sm:$0xff]   ;;  %v11037_v5 = vld [vmem:[%s14027_s3 + $0x1c0] sm:$0xff]  }
 0x21e   :  { %v12312_v16 = vpack.c.bf16 %v1614_v12, %v1612_v10  ;;  %v12315_v18 = vadd.f32 %v1556_v13, %v12212_v41  ;;  %v1558_v19 = vpop.f32.mrb[17].mxu0  ;;  %v11001_v41 = vld [vmem:[%s14027_s3 + $0x78] sm:$0xff]   ;;  %v11036_v4 = vld [vmem:[%s14027_s3 + $0x728] sm:$0xff]   ;;  %v11039_v7 = vld [vmem:[%s14027_s3 + $0x180] sm:$0xff]   ;;  %v2003_v10 = vrot.slane %v12220_v58, 2  ;;  %v2178_v12 = vrot.slane %v12222_v61, 3 }
 0x21f   :  { %v12318_v20 = vadd.f32 %v1558_v19, %v12214_v42  ;;  %v1560_v22 = vpop.f32.mrb[18].mxu0  ;;  %v11002_v42 = vld [vmem:[%s14027_s3 + $0x668] sm:$0xff]   ;;  %v11035_v3 = vld [vmem:[%s14027_s3 + $0x138] sm:$0xff]   ;;  %v11040_v8 = vld [vmem:[%s14027_s3 + $0x730] sm:$0xff]  }
 0x220   :  { %9810 = vmatpush3.bf16.msra.mxu1 %v10995_v6  ;;  %10048 = vmatpush3.bf16.msra.mxu0 %v10996_v9  ;;  %v1561_v23 = vpop.f32.mrb[19].mxu0  ;;  %v11038_v6 = vld [vmem:[%s14027_s3 + $0x770] sm:$0xff]   ;;  %v11041_v9 = vld [vmem:[%s14027_s3 + $0x1c8] sm:$0xff]   ;;  %v11042_v13 = vld [vmem:[%s14027_s3 + $0x778] sm:$0xff]   ;;  %vm1579_vm1 = vcmp.ge.f32.partialorder %v12315_v18, 0.0 }
 0x221   :  { %9811 = vmatprep.subr.bf16.mxu1 %v10997_v14  ;;  %10049 = vmatprep.subr.bf16.mxu0 %v10998_v15  ;;  %v11043_v14 = vld [vmem:[%s14027_s3 + $0x188] sm:$0xff]   ;;  %v11044_v15 = vld [vmem:[%s14027_s3 + $0x738] sm:$0xff]   ;;  %v11045_v19 = vld [vmem:[%s14027_s3 + $0x1d0] sm:$0xff]   ;;  %vm1580_vm0 = vcmp.ge.f32.partialorder %v12318_v20, 0.0 }
 0x222   :  { %v11046_v22 = vld [vmem:[%s14027_s3 + $0x840] sm:$0xff]   ;;  %v11047_v23 = vld [vmem:[%s14027_s3 + $0x190] sm:$0xff]  }
 0x224   :  { %9812 = vmatpush3.bf16.msra.mxu1 %v10999_v24  ;;  %10050 = vmatpush3.bf16.msra.mxu0 %v11000_v25  ;;  %v11048_v24 = vld [vmem:[%s14027_s3 + $0x800] sm:$0xff]   ;;  %v11049_v25 = vld [vmem:[%s14027_s3 + $0x1d8] sm:$0xff]  }
 0x225   :  { %9813 = vmatprep.subr.bf16.mxu1 %v11001_v41  ;;  %10051 = vmatprep.subr.bf16.mxu0 %v11002_v42  ;;  %v4089_v41 = vrot.slane %v12240_v17, 6  ;;  %v11050_v42 = vld [vmem:[%s14027_s3 + $0x848] sm:$0xff]  }
 0x228   :  { %9814 = vmatpush3.bf16.msra.mxu1 %v11003_v26  ;;  %10052 = vmatpush3.bf16.msra.mxu0 %v11004_v27  ;;  %v11051_v26 = vld [vmem:[%s14027_s3 + $0x198] sm:$0xff]   ;;  %v11052_v27 = vld [vmem:[%s14027_s3 + $0x808] sm:$0xff]  }
 0x229   :  { %9821 = vmatprep.subr.bf16.mxu1 %v11005_v28  ;;  %10053 = vmatprep.subr.bf16.mxu0 %v11006_v29  ;;  %v11053_v28 = vld [vmem:[%s14027_s3 + $0x1e0] sm:$0xff]   ;;  %v11054_v29 = vld [vmem:[%s14027_s3 + $0x850] sm:$0xff]  }
 0x22b   :  { %1963 = vmatmul.mubr.bf16.vlgmr.msra.gmra.mrb[4].mxu1 %v12220_v58 }
 0x22c   :  { %9822 = vmatpush3.bf16.msra.mxu1 %v11007_v30  ;;  %2135 = vmatprep.mubr.bf16.mxu1 %v2004_v33  ;;  %v11055_v30 = vld [vmem:[%s14027_s3 + $0x1a0] sm:$0xff]   ;;  %v11058_v33 = vld [vmem:[%s14027_s3 + $0x858] sm:$0xff]  }
 0x22d   :  { %10054 = vmatpush3.bf16.msra.mxu0 %v11008_v31  ;;  %9823 = vmatprep.subr.bf16.mxu1 %v11009_v32  ;;  %v11056_v31 = vld [vmem:[%s14027_s3 + $0x810] sm:$0xff]   ;;  %v11057_v32 = vld [vmem:[%s14027_s3 + $0x1e8] sm:$0xff]  }
 0x22e   :  { %10055 = vmatprep.subr.bf16.mxu0 %v11010_v34  ;;  %v11059_v34 = vld [vmem:[%s14027_s3 + $0x1a8] sm:$0xff]  }
 0x230   :  { %9824 = vmatpush3.bf16.msra.mxu1 %v11011_v35  ;;  %v11060_v35 = vld [vmem:[%s14027_s3 + $0x818] sm:$0xff]  }
 0x231   :  { %10056 = vmatpush3.bf16.msra.mxu0 %v11012_v36  ;;  %9825 = vmatprep.subr.bf16.mxu1 %v11013_v37  ;;  %v11061_v36 = vld [vmem:[%s14027_s3 + $0x1f0] sm:$0xff]   ;;  %v11062_v37 = vld [vmem:[%s14027_s3 + $0x860] sm:$0xff]  }
 0x232   :  { %10085 = vmatprep.subr.bf16.mxu0 %v11014_v38  ;;  %v11063_v38 = vld [vmem:[%s14027_s3 + $0x1b0] sm:$0xff]  }
 0x234   :  { %3874 = vmatmul.mubr.bf16.vlgmr.msra.gmra.mrb[24].mxu0 %v3741_v45  ;;  %9826 = vmatpush3.bf16.msra.mxu1 %v11015_v39  ;;  %v11064_v39 = vld [vmem:[%s14027_s3 + $0x820] sm:$0xff]   ;;  %v11068_v45 = vld [vmem:[%s14027_s3 + $0x828] sm:$0xff]  }
 0x235   :  { %10086 = vmatpush3.bf16.msra.mxu0 %v11016_v40  ;;  %4221 = vmatprep.mubr.bf16.mxu0 %v4090_v46  ;;  %v11065_v40 = vld [vmem:[%s14027_s3 + $0x1f8] sm:$0xff]   ;;  %v11069_v46 = vld [vmem:[%s14027_s3 + $0x240] sm:$0xff]  }
 0x236   :  { %9827 = vmatprep.subr.bf16.mxu1 %v11017_v43  ;;  %10087 = vmatprep.subr.bf16.mxu0 %v11018_v44  ;;  %v11066_v43 = vld [vmem:[%s14027_s3 + $0x868] sm:$0xff]   ;;  %v11067_v44 = vld [vmem:[%s14027_s3 + $0x1b8] sm:$0xff]  }
 0x238   :  { %9828 = vmatpush3.bf16.msra.mxu1 %v11019_v48  ;;  %v11070_v48 = vld [vmem:[%s14027_s3 + $0x870] sm:$0xff]  }
 0x239   :  { %10088 = vmatpush3.bf16.msra.mxu0 %v11020_v49  ;;  %9829 = vmatprep.subr.bf16.mxu1 %v11021_v50  ;;  %v11071_v49 = vld [vmem:[%s14027_s3 + $0x200] sm:$0xff]   ;;  %v11072_v50 = vld [vmem:[%s14027_s3 + $0x830] sm:$0xff]  }
 0x23a   :  { %10089 = vmatprep.subr.bf16.mxu0 %v11022_v51  ;;  %v11073_v51 = vld [vmem:[%s14027_s3 + $0x248] sm:$0xff]  }
 0x23c   :  { %9830 = vmatpush3.bf16.msra.mxu1 %v11023_v53  ;;  %v2177_v53 = vrot.slane %v12220_v58, 3 }
 0x23d   :  { %10090 = vmatpush3.bf16.msra.mxu0 %v11024_v54  ;;  %9831 = vmatprep.subr.bf16.mxu1 %v11025_v55  ;;  %v2352_v54 = vrot.slane %v12222_v61, 4  ;;  %v11074_v55 = vld [vmem:[%s14027_s3 + $0x878] sm:$0xff]  }
 0x23e   :  { %10091 = vmatprep.subr.bf16.mxu0 %v11026_v56  ;;  %v11075_v56 = vld [vmem:[%s14027_s3 + $0x208] sm:$0xff]  }
 0x240   :  { %9832 = vmatpush3.bf16.msra.mxu1 %v11027_v57  ;;  %v11076_v57 = vld [vmem:[%s14027_s3 + $0x838] sm:$0xff]  }
 0x241   :  { %10092 = vmatpush3.bf16.msra.mxu0 %v11028_v59  ;;  %9833 = vmatprep.subr.bf16.mxu1 %v11029_v60  ;;  %v11077_v59 = vld [vmem:[%s14027_s3 + $0x250] sm:$0xff]   ;;  %v11078_v60 = vld [vmem:[%s14027_s3 + $0x940] sm:$0xff]  }
 0x242   :  { %10093 = vmatprep.subr.bf16.mxu0 %v11030_v62  ;;  %v11079_v62 = vld [vmem:[%s14027_s3 + $0x210] sm:$0xff]  }
 0x244   :  { %9834 = vmatpush3.bf16.msra.mxu1 %v11031_v63  ;;  %v11080_v63 = vld [vmem:[%s14027_s3 + $0x900] sm:$0xff]  }
 0x245   :  { %10094 = vmatpush3.bf16.msra.mxu0 %v11032_v0  ;;  %9835 = vmatprep.subr.bf16.mxu1 %v11033_v1  ;;  %v11081_v0 = vld [vmem:[%s14027_s3 + $0x258] sm:$0xff]   ;;  %v4784_v1 = vrot.slane %v12280_v52, 2 }
 0x246   :  { %10095 = vmatprep.subr.bf16.mxu0 %v11034_v2  ;;  %v11082_v2 = vld [vmem:[%s14027_s3 + $0x948] sm:$0xff]  }
 0x248   :  { %9836 = vmatpush3.bf16.msra.mxu1 %v11035_v3  ;;  %v11083_v3 = vld [vmem:[%s14027_s3 + $0x218] sm:$0xff]  }
 0x249   :  { %10096 = vmatpush3.bf16.msra.mxu0 %v11036_v4  ;;  %9843 = vmatprep.subr.bf16.mxu1 %v11037_v5  ;;  %v11084_v4 = vld [vmem:[%s14027_s3 + $0x908] sm:$0xff]   ;;  %v11085_v5 = vld [vmem:[%s14027_s3 + $0x260] sm:$0xff]  }
 0x24a   :  { %10097 = vmatprep.subr.bf16.mxu0 %v11038_v6  ;;  %v11086_v6 = vld [vmem:[%s14027_s3 + $0x950] sm:$0xff]  }
 0x24b   :  { %2136 = vmatmul.mubr.bf16.vlgmr.msra.gmra.mrb[8].mxu1 %v2003_v10  ;;  %v11090_v10 = vld [vmem:[%s14027_s3 + $0x958] sm:$0xff]  }
 0x24c   :  { %9844 = vmatpush3.bf16.msra.mxu1 %v11039_v7  ;;  %2309 = vmatprep.mubr.bf16.mxu1 %v2178_v12  ;;  %v11087_v7 = vld [vmem:[%s14027_s3 + $0x220] sm:$0xff]   ;;  %v11091_v12 = vld [vmem:[%s14027_s3 + $0x228] sm:$0xff]  }
 0x24d   :  { %10098 = vmatpush3.bf16.msra.mxu0 %v11040_v8  ;;  %9845 = vmatprep.subr.bf16.mxu1 %v11041_v9  ;;  %v11088_v8 = vld [vmem:[%s14027_s3 + $0x910] sm:$0xff]   ;;  %v11089_v9 = vld [vmem:[%s14027_s3 + $0x268] sm:$0xff]  }
 0x24e   :  { %10099 = vmatprep.subr.bf16.mxu0 %v11042_v13  ;;  %v11092_v13 = vld [vmem:[%s14027_s3 + $0x918] sm:$0xff]  }
 0x250   :  { %9846 = vmatpush3.bf16.msra.mxu1 %v11043_v14  ;;  %v11093_v14 = vld [vmem:[%s14027_s3 + $0x270] sm:$0xff]  }
 0x251   :  { %10100 = vmatpush3.bf16.msra.mxu0 %v11044_v15  ;;  %9847 = vmatprep.subr.bf16.mxu1 %v11045_v19  ;;  %v11094_v15 = vld [vmem:[%s14027_s3 + $0x960] sm:$0xff]   ;;  %v11095_v19 = vld [vmem:[%s14027_s3 + $0x230] sm:$0xff]  }
 0x252   :  { %10129 = vmatprep.subr.bf16.mxu0 %v11046_v22  ;;  %v11096_v22 = vld [vmem:[%s14027_s3 + $0x920] sm:$0xff]  }
 0x254   :  { %4222 = vmatmul.mubr.bf16.vlgmr.msra.gmra.mrb[28].mxu0 %v4089_v41  ;;  %9848 = vmatpush3.bf16.msra.mxu1 %v11047_v23  ;;  %v11097_v23 = vld [vmem:[%s14027_s3 + $0x278] sm:$0xff]   ;;  %v11100_v41 = vld [vmem:[%s14027_s3 + $0x928] sm:$0xff]  }
 0x255   :  { %10130 = vmatpush3.bf16.msra.mxu0 %v11048_v24  ;;  %4565 = vmatprep.mubr.bf16.mxu0 %v12280_v52  ;;  %v11098_v24 = vld [vmem:[%s14027_s3 + $0x968] sm:$0xff]  }
 0x256   :  { %9849 = vmatprep.subr.bf16.mxu1 %v11049_v25  ;;  %10131 = vmatprep.subr.bf16.mxu0 %v11050_v42  ;;  %v11099_v25 = vld [vmem:[%s14027_s3 + $0x238] sm:$0xff]   ;;  %v11101_v42 = vld [vmem:[%s14027_s3 + $0x2c0] sm:$0xff]  }
 0x258   :  { %9850 = vmatpush3.bf16.msra.mxu1 %v11051_v26  ;;  %v11102_v26 = vld [vmem:[%s14027_s3 + $0x970] sm:$0xff]  }
 0x259   :  { %10132 = vmatpush3.bf16.msra.mxu0 %v11052_v27  ;;  %9851 = vmatprep.subr.bf16.mxu1 %v11053_v28  ;;  %v11103_v27 = vld [vmem:[%s14027_s3 + $0x280] sm:$0xff]   ;;  %v2351_v28 = vrot.slane %v12220_v58, 4 }
 0x25a   :  { %10133 = vmatprep.subr.bf16.mxu0 %v11054_v29  ;;  %v2526_v29 = vrot.slane %v12222_v61, 5 }
 0x25c   :  { %9852 = vmatpush3.bf16.msra.mxu1 %v11055_v30  ;;  %v11104_v30 = vld [vmem:[%s14027_s3 + $0x930] sm:$0xff]  }
 0x25d   :  { %10134 = vmatpush3.bf16.msra.mxu0 %v11056_v31  ;;  %9853 = vmatprep.subr.bf16.mxu1 %v11057_v32  ;;  %v11105_v31 = vld [vmem:[%s14027_s3 + $0x2c8] sm:$0xff]   ;;  %v11106_v32 = vld [vmem:[%s14027_s3 + $0x978] sm:$0xff]  }
 0x25e   :  { %10135 = vmatprep.subr.bf16.mxu0 %v11058_v33  ;;  %v11107_v33 = vld [vmem:[%s14027_s3 + $0x288] sm:$0xff]  }
 0x260   :  { %9854 = vmatpush3.bf16.msra.mxu1 %v11059_v34  ;;  %v11108_v34 = vld [vmem:[%s14027_s3 + $0x938] sm:$0xff]  }
 0x261   :  { %10136 = vmatpush3.bf16.msra.mxu0 %v11060_v35  ;;  %9855 = vmatprep.subr.bf16.mxu1 %v11061_v36  ;;  %v11109_v35 = vld [vmem:[%s14027_s3 + $0x2d0] sm:$0xff]   ;;  %v11110_v36 = vld [vmem:[%s14027_s3 + $0xa40] sm:$0xff]  }
 0x262   :  { %10137 = vmatprep.subr.bf16.mxu0 %v11062_v37  ;;  %v11111_v37 = vld [vmem:[%s14027_s3 + $0x290] sm:$0xff]  }
 0x264   :  { %9856 = vmatpush3.bf16.msra.mxu1 %v11063_v38  ;;  %v11112_v38 = vld [vmem:[%s14027_s3 + $0xa00] sm:$0xff]  }
 0x265   :  { %10138 = vmatpush3.bf16.msra.mxu0 %v11064_v39  ;;  %9857 = vmatprep.subr.bf16.mxu1 %v11065_v40  ;;  %v11113_v39 = vld [vmem:[%s14027_s3 + $0x2d8] sm:$0xff]   ;;  %v11114_v40 = vld [vmem:[%s14027_s3 + $0xa48] sm:$0xff]  }
 0x266   :  { %10139 = vmatprep.subr.bf16.mxu0 %v11066_v43  ;;  %v4783_v43 = vrot.slane %v12272_v47, 2 }
 0x268   :  { %9858 = vmatpush3.bf16.msra.mxu1 %v11067_v44  ;;  %v5132_v44 = vrot.slane %v12280_v52, 4 }
 0x269   :  { %10140 = vmatpush3.bf16.msra.mxu0 %v11068_v45  ;;  %9865 = vmatprep.subr.bf16.mxu1 %v11069_v46  ;;  %v11115_v45 = vld [vmem:[%s14027_s3 + $0x298] sm:$0xff]   ;;  %v11116_v46 = vld [vmem:[%s14027_s3 + $0xa08] sm:$0xff]  }
 0x26a   :  { %10141 = vmatprep.subr.bf16.mxu0 %v11070_v48  ;;  %v11117_v48 = vld [vmem:[%s14027_s3 + $0x2e0] sm:$0xff]  }
 0x26b   :  { %2310 = vmatmul.mubr.bf16.vlgmr.msra.gmra.mrb[12].mxu1 %v2177_v53  ;;  %v11121_v53 = vld [vmem:[%s14027_s3 + $0x2e8] sm:$0xff]  }
 0x26c   :  { %9866 = vmatpush3.bf16.msra.mxu1 %v11071_v49  ;;  %2483 = vmatprep.mubr.bf16.mxu1 %v2352_v54  ;;  %v11118_v49 = vld [vmem:[%s14027_s3 + $0xa50] sm:$0xff]   ;;  %v11122_v54 = vld [vmem:[%s14027_s3 + $0xa58] sm:$0xff]  }
 0x26d   :  { %10142 = vmatpush3.bf16.msra.mxu0 %v11072_v50  ;;  %9867 = vmatprep.subr.bf16.mxu1 %v11073_v51  ;;  %v11119_v50 = vld [vmem:[%s14027_s3 + $0x2a0] sm:$0xff]   ;;  %v11120_v51 = vld [vmem:[%s14027_s3 + $0xa10] sm:$0xff]  }
 0x26e   :  { %10143 = vmatprep.subr.bf16.mxu0 %v11074_v55  ;;  %v11123_v55 = vld [vmem:[%s14027_s3 + $0x2a8] sm:$0xff]  }
 0x270   :  { %9868 = vmatpush3.bf16.msra.mxu1 %v11075_v56  ;;  %v11124_v56 = vld [vmem:[%s14027_s3 + $0xa18] sm:$0xff]  }
 0x271   :  { %10144 = vmatpush3.bf16.msra.mxu0 %v11076_v57  ;;  %9869 = vmatprep.subr.bf16.mxu1 %v11077_v59  ;;  %v11125_v57 = vld [vmem:[%s14027_s3 + $0x2f0] sm:$0xff]   ;;  %v11126_v59 = vld [vmem:[%s14027_s3 + $0xa60] sm:$0xff]  }
 0x272   :  { %10173 = vmatprep.subr.bf16.mxu0 %v11078_v60  ;;  %v11127_v60 = vld [vmem:[%s14027_s3 + $0x2b0] sm:$0xff]  }
 0x274   :  { %4566 = vmatmul.mubr.bf16.vlgmr.msra.gmra.mrb[32].mxu0 %v12272_v47  ;;  %9870 = vmatpush3.bf16.msra.mxu1 %v11079_v62  ;;  %v11128_v62 = vld [vmem:[%s14027_s3 + $0xa20] sm:$0xff]  }
 0x275   :  { %10174 = vmatpush3.bf16.msra.mxu0 %v11080_v63  ;;  %4915 = vmatprep.mubr.bf16.mxu0 %v4784_v1  ;;  %v11129_v63 = vld [vmem:[%s14027_s3 + $0x2f8] sm:$0xff]  }
 0x276   :  { %9871 = vmatprep.subr.bf16.mxu1 %v11081_v0  ;;  %10175 = vmatprep.subr.bf16.mxu0 %v11082_v2  ;;  %v11130_v0 = vld [vmem:[%s14027_s3 + $0xa68] sm:$0xff]   ;;  %v11131_v1 = vld [vmem:[%s14027_s3 + $0x2b8] sm:$0xff]  }
 0x277   :  { %v11132_v2 = vld [vmem:[%s14027_s3 + $0xa28] sm:$0xff]  }
 0x278   :  { %9872 = vmatpush3.bf16.msra.mxu1 %v11083_v3  ;;  %v11133_v3 = vld [vmem:[%s14027_s3 + $0x340] sm:$0xff]  }
 0x279   :  { %10176 = vmatpush3.bf16.msra.mxu0 %v11084_v4  ;;  %9873 = vmatprep.subr.bf16.mxu1 %v11085_v5  ;;  %v11134_v4 = vld [vmem:[%s14027_s3 + $0xa70] sm:$0xff]   ;;  %v11135_v5 = vld [vmem:[%s14027_s3 + $0x300] sm:$0xff]  }
 0x27a   :  { %10177 = vmatprep.subr.bf16.mxu0 %v11086_v6  ;;  %v2525_v6 = vrot.slane %v12220_v58, 5 }
 0x27c   :  { %9874 = vmatpush3.bf16.msra.mxu1 %v11087_v7  ;;  %v2700_v7 = vrot.slane %v12222_v61, 6 }
 0x27d   :  { %10178 = vmatpush3.bf16.msra.mxu0 %v11088_v8  ;;  %9875 = vmatprep.subr.bf16.mxu1 %v11089_v9  ;;  %v11136_v8 = vld [vmem:[%s14027_s3 + $0xa30] sm:$0xff]   ;;  %v11137_v9 = vld [vmem:[%s14027_s3 + $0x348] sm:$0xff]  }
 0x27e   :  { %10179 = vmatprep.subr.bf16.mxu0 %v11090_v10  ;;  %v11138_v10 = vld [vmem:[%s14027_s3 + $0xa78] sm:$0xff]  }
 0x280   :  { %9876 = vmatpush3.bf16.msra.mxu1 %v11091_v12  ;;  %v11139_v12 = vld [vmem:[%s14027_s3 + $0x308] sm:$0xff]  }
 0x281   :  { %10180 = vmatpush3.bf16.msra.mxu0 %v11092_v13  ;;  %9877 = vmatprep.subr.bf16.mxu1 %v11093_v14  ;;  %v11140_v13 = vld [vmem:[%s14027_s3 + $0xa38] sm:$0xff]   ;;  %v11141_v14 = vld [vmem:[%s14027_s3 + $0x350] sm:$0xff]  }
 0x282   :  { %10181 = vmatprep.subr.bf16.mxu0 %v11094_v15  ;;  %v11142_v15 = vld [vmem:[%s14027_s3 + $0xb40] sm:$0xff]  }
 0x284   :  { %9878 = vmatpush3.bf16.msra.mxu1 %v11095_v19  ;;  %v11143_v19 = vld [vmem:[%s14027_s3 + $0x310] sm:$0xff]  }
 0x285   :  { %10182 = vmatpush3.bf16.msra.mxu0 %v11096_v22  ;;  %9879 = vmatprep.subr.bf16.mxu1 %v11097_v23  ;;  %v11144_v22 = vld [vmem:[%s14027_s3 + $0xb00] sm:$0xff]   ;;  %v5131_v23 = vrot.slane %v12272_v47, 4 }
 0x286   :  { %10183 = vmatprep.subr.bf16.mxu0 %v11098_v24  ;;  %v11145_v24 = vld [vmem:[%s14027_s3 + $0x358] sm:$0xff]  }
 0x288   :  { %9880 = vmatpush3.bf16.msra.mxu1 %v11099_v25  ;;  %v5480_v25 = vrot.slane %v12280_v52, 6 }
 0x289   :  { %10184 = vmatpush3.bf16.msra.mxu0 %v11100_v41  ;;  %9887 = vmatprep.subr.bf16.mxu1 %v11101_v42  ;;  %v11146_v41 = vld [vmem:[%s14027_s3 + $0xb48] sm:$0xff]   ;;  %v11147_v42 = vld [vmem:[%s14027_s3 + $0x318] sm:$0xff]  }
 0x28a   :  { %10185 = vmatprep.subr.bf16.mxu0 %v11102_v26  ;;  %v11148_v26 = vld [vmem:[%s14027_s3 + $0xb08] sm:$0xff]  }
 0x28b   :  { %2484 = vmatmul.mubr.bf16.vlgmr.msra.gmra.mrb[16].mxu1 %v2351_v28  ;;  %v11150_v28 = vld [vmem:[%s14027_s3 + $0xb50] sm:$0xff]  }
 0x28c   :  { %9888 = vmatpush3.bf16.msra.mxu1 %v11103_v27  ;;  %2657 = vmatprep.mubr.bf16.mxu1 %v2526_v29  ;;  %v11149_v27 = vld [vmem:[%s14027_s3 + $0x360] sm:$0xff]  }
 0x28d   :  { %10186 = vmatpush3.bf16.msra.mxu0 %v11104_v30  ;;  %9889 = vmatprep.subr.bf16.mxu1 %v11105_v31  ;;  %v11151_v29 = vld [vmem:[%s14027_s3 + $0x320] sm:$0xff]   ;;  %v11152_v30 = vld [vmem:[%s14027_s3 + $0xb10] sm:$0xff]   ;;  %v11153_v31 = vld [vmem:[%s14027_s3 + $0x368] sm:$0xff]  }
 0x28e   :  { %10187 = vmatprep.subr.bf16.mxu0 %v11106_v32  ;;  %v11154_v32 = vld [vmem:[%s14027_s3 + $0xb58] sm:$0xff]  }
 0x290   :  { %9890 = vmatpush3.bf16.msra.mxu1 %v11107_v33  ;;  %v11155_v33 = vld [vmem:[%s14027_s3 + $0x328] sm:$0xff]  }
 0x291   :  { %10188 = vmatpush3.bf16.msra.mxu0 %v11108_v34  ;;  %9891 = vmatprep.subr.bf16.mxu1 %v11109_v35  ;;  %v11156_v34 = vld [vmem:[%s14027_s3 + $0xb18] sm:$0xff]   ;;  %v11157_v35 = vld [vmem:[%s14027_s3 + $0x370] sm:$0xff]  }
 0x292   :  { %10217 = vmatprep.subr.bf16.mxu0 %v11110_v36  ;;  %v11158_v36 = vld [vmem:[%s14027_s3 + $0xb60] sm:$0xff]  }
 0x294   :  { %4916 = vmatmul.mubr.bf16.vlgmr.msra.gmra.mrb[36].mxu0 %v4783_v43  ;;  %9892 = vmatpush3.bf16.msra.mxu1 %v11111_v37  ;;  %v11159_v37 = vld [vmem:[%s14027_s3 + $0x330] sm:$0xff]   ;;  %v11163_v43 = vld [vmem:[%s14027_s3 + $0x338] sm:$0xff]  }
 0x295   :  { %10218 = vmatpush3.bf16.msra.mxu0 %v11112_v38  ;;  %5263 = vmatprep.mubr.bf16.mxu0 %v5132_v44  ;;  %v11160_v38 = vld [vmem:[%s14027_s3 + $0xb20] sm:$0xff]   ;;  %v11164_v44 = vld [vmem:[%s14027_s3 + $0xb28] sm:$0xff]  }
 0x296   :  { %9893 = vmatprep.subr.bf16.mxu1 %v11113_v39  ;;  %10219 = vmatprep.subr.bf16.mxu0 %v11114_v40  ;;  %v11161_v39 = vld [vmem:[%s14027_s3 + $0x378] sm:$0xff]   ;;  %v11162_v40 = vld [vmem:[%s14027_s3 + $0xb68] sm:$0xff]  }
 0x298   :  { %9894 = vmatpush3.bf16.msra.mxu1 %v11115_v45  ;;  %v11165_v45 = vld [vmem:[%s14027_s3 + $0x3c0] sm:$0xff]  }
 0x299   :  { %10220 = vmatpush3.bf16.msra.mxu0 %v11116_v46  ;;  %9895 = vmatprep.subr.bf16.mxu1 %v11117_v48  ;;  %v11166_v46 = vld [vmem:[%s14027_s3 + $0xb70] sm:$0xff]   ;;  %v11167_v48 = vld [vmem:[%s14027_s3 + $0x380] sm:$0xff]  }
 0x29a   :  { %10221 = vmatprep.subr.bf16.mxu0 %v11118_v49  ;;  %v2699_v49 = vrot.slane %v12220_v58, 6 }
 0x29c   :  { %9896 = vmatpush3.bf16.msra.mxu1 %v11119_v50  ;;  %v2874_v50 = vrot.slane %v12222_v61, 7  ;;  %v11171_v61 = vld [vmem:[%s14027_s3 + $0x388] sm:$0xff]  }
 0x29d   :  { %10222 = vmatpush3.bf16.msra.mxu0 %v11120_v51  ;;  %9897 = vmatprep.subr.bf16.mxu1 %v11121_v53  ;;  %v11168_v51 = vld [vmem:[%s14027_s3 + $0xb30] sm:$0xff]   ;;  %v11169_v53 = vld [vmem:[%s14027_s3 + $0x3c8] sm:$0xff]  }
 0x29e   :  { %10223 = vmatprep.subr.bf16.mxu0 %v11122_v54  ;;  %v11170_v54 = vld [vmem:[%s14027_s3 + $0xb78] sm:$0xff]  }
 0x2a0   :  { %9898 = vmatpush3.bf16.msra.mxu1 %v11123_v55  ;;  %v11172_v55 = vld [vmem:[%s14027_s3 + $0xb38] sm:$0xff]  }
 0x2a1   :  { %10224 = vmatpush3.bf16.msra.mxu0 %v11124_v56  ;;  %9899 = vmatprep.subr.bf16.mxu1 %v11125_v57  ;;  %v11173_v56 = vld [vmem:[%s14027_s3 + $0x3d0] sm:$0xff]   ;;  %v11174_v57 = vld [vmem:[%s14027_s3 + $0xc40] sm:$0xff]  }
 0x2a2   :  { %10225 = vmatprep.subr.bf16.mxu0 %v11126_v59  ;;  %v11175_v59 = vld [vmem:[%s14027_s3 + $0x390] sm:$0xff]  }
 0x2a4   :  { %9900 = vmatpush3.bf16.msra.mxu1 %v11127_v60  ;;  %v11176_v60 = vld [vmem:[%s14027_s3 + $0xc00] sm:$0xff]  }
 0x2a5   :  { %10226 = vmatpush3.bf16.msra.mxu0 %v11128_v62  ;;  %9901 = vmatprep.subr.bf16.mxu1 %v11129_v63  ;;  %v5479_v62 = vrot.slane %v12272_v47, 6  ;;  %v11177_v63 = vld [vmem:[%s14027_s3 + $0x3d8] sm:$0xff]  }
 0x2a6   :  { %10227 = vmatprep.subr.bf16.mxu0 %v11130_v0  ;;  %v11178_v0 = vld [vmem:[%s14027_s3 + $0xc48] sm:$0xff]  }
 0x2a8   :  { %9902 = vmatpush3.bf16.msra.mxu1 %v11131_v1  ;;  %v11179_v1 = vld [vmem:[%s14027_s3 + $0x398] sm:$0xff]  }
 0x2a9   :  { %10228 = vmatpush3.bf16.msra.mxu0 %v11132_v2  ;;  %9909 = vmatprep.subr.bf16.mxu1 %v11133_v3  ;;  %v11180_v2 = vld [vmem:[%s14027_s3 + $0xc08] sm:$0xff]   ;;  %v11181_v3 = vld [vmem:[%s14027_s3 + $0x3e0] sm:$0xff]  }
 0x2aa   :  { %10229 = vmatprep.subr.bf16.mxu0 %v11134_v4  ;;  %v11182_v4 = vld [vmem:[%s14027_s3 + $0xc50] sm:$0xff]  }
 0x2ab   :  { %2658 = vmatmul.mubr.bf16.vlgmr.msra.gmra.mrb[20].mxu1 %v2525_v6  ;;  %v11184_v6 = vld [vmem:[%s14027_s3 + $0xc10] sm:$0xff]  }
 0x2ac   :  { %9910 = vmatpush3.bf16.msra.mxu1 %v11135_v5  ;;  %2831 = vmatprep.mubr.bf16.mxu1 %v2700_v7  ;;  %v11183_v5 = vld [vmem:[%s14027_s3 + $0x3a0] sm:$0xff]   ;;  %v11185_v7 = vld [vmem:[%s14027_s3 + $0x3e8] sm:$0xff]  }
 0x2ad   :  { %10230 = vmatpush3.bf16.msra.mxu0 %v11136_v8  ;;  %9911 = vmatprep.subr.bf16.mxu1 %v11137_v9  ;;  %v11186_v8 = vld [vmem:[%s14027_s3 + $0xc58] sm:$0xff]   ;;  %v11187_v9 = vld [vmem:[%s14027_s3 + $0x3a8] sm:$0xff]  }
 0x2ae   :  { %10231 = vmatprep.subr.bf16.mxu0 %v11138_v10  ;;  %v11188_v10 = vld [vmem:[%s14027_s3 + $0xc18] sm:$0xff]  }
 0x2b0   :  { %9912 = vmatpush3.bf16.msra.mxu1 %v11139_v12  ;;  %v11189_v12 = vld [vmem:[%s14027_s3 + $0x3f0] sm:$0xff]  }
 0x2b1   :  { %10232 = vmatpush3.bf16.msra.mxu0 %v11140_v13  ;;  %9913 = vmatprep.subr.bf16.mxu1 %v11141_v14  ;;  %v11190_v14 = vld [vmem:[%s14027_s3 + $0xc60] sm:$0xff]  }
 0x2b2   :  { %10261 = vmatprep.subr.bf16.mxu0 %v11142_v15 }
 0x2b4   :  { %5264 = vmatmul.mubr.bf16.vlgmr.msra.gmra.mrb[40].mxu0 %v5131_v23  ;;  %9914 = vmatpush3.bf16.msra.mxu1 %v11143_v19  ;;  %v11191_v23 = vld [vmem:[%s14027_s3 + $0x3b0] sm:$0xff]  }
 0x2b5   :  { %10262 = vmatpush3.bf16.msra.mxu0 %v11144_v22  ;;  %5611 = vmatprep.mubr.bf16.mxu0 %v5480_v25  ;;  %v11192_v25 = vld [vmem:[%s14027_s3 + $0xc20] sm:$0xff]  }
 0x2b6   :  { %9915 = vmatprep.subr.bf16.mxu1 %v11145_v24  ;;  %10263 = vmatprep.subr.bf16.mxu0 %v11146_v41  ;;  %v11193_v41 = vld [vmem:[%s14027_s3 + $0x3f8] sm:$0xff]  }
 0x2b8   :  { %9916 = vmatpush3.bf16.msra.mxu1 %v11147_v42  ;;  %v11194_v42 = vld [vmem:[%s14027_s3 + $0xc68] sm:$0xff]  }
 0x2b9   :  { %10264 = vmatpush3.bf16.msra.mxu0 %v11148_v26  ;;  %9917 = vmatprep.subr.bf16.mxu1 %v11149_v27  ;;  %v11195_v26 = vld [vmem:[%s14027_s3 + $0x3b8] sm:$0xff]   ;;  %v11196_v27 = vld [vmem:[%s14027_s3 + $0xc28] sm:$0xff]  }
 0x2ba   :  { %10265 = vmatprep.subr.bf16.mxu0 %v11150_v28  ;;  %v11197_v28 = vld [vmem:[%s14027_s3 + $0x440] sm:$0xff]  }
 0x2bc   :  { %9918 = vmatpush3.bf16.msra.mxu1 %v11151_v29 }
 0x2bd   :  { %10266 = vmatpush3.bf16.msra.mxu0 %v11152_v30  ;;  %9919 = vmatprep.subr.bf16.mxu1 %v11153_v31  ;;  %v11198_v30 = vld [vmem:[%s14027_s3 + $0xc70] sm:$0xff]  }
 0x2be   :  { %10267 = vmatprep.subr.bf16.mxu0 %v11154_v32 }
 0x2c0   :  { %9920 = vmatpush3.bf16.msra.mxu1 %v11155_v33 }
 0x2c1   :  { %10268 = vmatpush3.bf16.msra.mxu0 %v11156_v34  ;;  %9921 = vmatprep.subr.bf16.mxu1 %v11157_v35  ;;  %v11199_v34 = vld [vmem:[%s14027_s3 + $0x400] sm:$0xff]  }
 0x2c2   :  { %10269 = vmatprep.subr.bf16.mxu0 %v11158_v36  ;;  %v2873_v36 = vrot.slane %v12220_v58, 7  ;;  %v11203_v58 = vld [vmem:[%s14027_s3 + $0x408] sm:$0xff]  }
 0x2c4   :  { %9922 = vmatpush3.bf16.msra.mxu1 %v11159_v37  ;;  %v11200_v37 = vld [vmem:[%s14027_s3 + $0xc30] sm:$0xff]  }
 0x2c5   :  { %10270 = vmatpush3.bf16.msra.mxu0 %v11160_v38  ;;  %9923 = vmatprep.subr.bf16.mxu1 %v11161_v39  ;;  %v11201_v38 = vld [vmem:[%s14027_s3 + $0x448] sm:$0xff]   ;;  %v11202_v39 = vld [vmem:[%s14027_s3 + $0xc78] sm:$0xff]  }
 0x2c6   :  { %10271 = vmatprep.subr.bf16.mxu0 %v11162_v40  ;;  %v11204_v40 = vld [vmem:[%s14027_s3 + $0xc38] sm:$0xff]  }
 0x2c8   :  { %9924 = vmatpush3.bf16.msra.mxu1 %v11163_v43  ;;  %v11205_v43 = vld [vmem:[%s14027_s3 + $0x450] sm:$0xff]  }
 0x2c9   :  { %10272 = vmatpush3.bf16.msra.mxu0 %v11164_v44  ;;  %9931 = vmatprep.subr.bf16.mxu1 %v11165_v45  ;;  %v11206_v44 = vld [vmem:[%s14027_s3 + $0xd40] sm:$0xff]   ;;  %v11207_v45 = vld [vmem:[%s14027_s3 + $0x410] sm:$0xff]  }
 0x2ca   :  { %10273 = vmatprep.subr.bf16.mxu0 %v11166_v46  ;;  %v11208_v46 = vld [vmem:[%s14027_s3 + $0xd00] sm:$0xff]  }
 0x2cb   :  { %2832 = vmatmul.mubr.bf16.vlgmr.msra.gmra.mrb[24].mxu1 %v2699_v49  ;;  %v11210_v49 = vld [vmem:[%s14027_s3 + $0xd48] sm:$0xff]  }
 0x2cc   :  { %9932 = vmatpush3.bf16.msra.mxu1 %v11167_v48  ;;  %3005 = vmatprep.mubr.bf16.mxu1 %v2874_v50  ;;  %v11209_v48 = vld [vmem:[%s14027_s3 + $0x458] sm:$0xff]   ;;  %v6174_v50 = vrot.slane %v12312_v16, 2 }
 0x2cd   :  { %10274 = vmatpush3.bf16.msra.mxu0 %v11168_v51  ;;  %9933 = vmatprep.subr.bf16.mxu1 %v11169_v53  ;;  %v11211_v51 = vld [vmem:[%s14027_s3 + $0x418] sm:$0xff]   ;;  %v11212_v53 = vld [vmem:[%s14027_s3 + $0xd08] sm:$0xff]  }
 0x2ce   :  { %10275 = vmatprep.subr.bf16.mxu0 %v11170_v54  ;;  %v11213_v54 = vld [vmem:[%s14027_s3 + $0x460] sm:$0xff]  }
 0x2d0   :  { %9934 = vmatpush3.bf16.msra.mxu1 %v11171_v61  ;;  %v11214_v61 = vld [vmem:[%s14027_s3 + $0xd50] sm:$0xff]  }
 0x2d1   :  { %10276 = vmatpush3.bf16.msra.mxu0 %v11172_v55  ;;  %9935 = vmatprep.subr.bf16.mxu1 %v11173_v56  ;;  %v11215_v55 = vld [vmem:[%s14027_s3 + $0x420] sm:$0xff]   ;;  %v11216_v56 = vld [vmem:[%s14027_s3 + $0xd10] sm:$0xff]  }
 0x2d2   :  { %10305 = vmatprep.subr.bf16.mxu0 %v11174_v57  ;;  %v11217_v57 = vld [vmem:[%s14027_s3 + $0x468] sm:$0xff]  }
 0x2d4   :  { %5612 = vmatmul.mubr.bf16.vlgmr.msra.gmra.mrb[44].mxu0 %v5479_v62  ;;  %9936 = vmatpush3.bf16.msra.mxu1 %v11175_v59  ;;  %v11218_v59 = vld [vmem:[%s14027_s3 + $0xd58] sm:$0xff]  }
 0x2d5   :  { %10306 = vmatpush3.bf16.msra.mxu0 %v11176_v60  ;;  %5955 = vmatprep.mubr.bf16.mxu0 %v12312_v16  ;;  %v11219_v60 = vld [vmem:[%s14027_s3 + $0x428] sm:$0xff]   ;;  %v11220_v62 = vld [vmem:[%s14027_s3 + $0xd18] sm:$0xff]  }
 0x2d6   :  { %9937 = vmatprep.subr.bf16.mxu1 %v11177_v63  ;;  %10307 = vmatprep.subr.bf16.mxu0 %v11178_v0  ;;  %v11221_v63 = vld [vmem:[%s14027_s3 + $0x470] sm:$0xff]  }
 0x2d8   :  { %9938 = vmatpush3.bf16.msra.mxu1 %v11179_v1  ;;  %v11222_v1 = vld [vmem:[%s14027_s3 + $0xd60] sm:$0xff]  }
 0x2d9   :  { %10308 = vmatpush3.bf16.msra.mxu0 %v11180_v2  ;;  %9939 = vmatprep.subr.bf16.mxu1 %v11181_v3 }
 0x2da   :  { %10309 = vmatprep.subr.bf16.mxu0 %v11182_v4 }
 0x2dc   :  { %9940 = vmatpush3.bf16.msra.mxu1 %v11183_v5  ;;  %v11223_v5 = vld [vmem:[%s14027_s3 + $0x430] sm:$0xff]  }
 0x2dd   :  { %10310 = vmatpush3.bf16.msra.mxu0 %v11184_v6  ;;  %9941 = vmatprep.subr.bf16.mxu1 %v11185_v7  ;;  %v11224_v7 = vld [vmem:[%s14027_s3 + $0xd20] sm:$0xff]  }
 0x2de   :  { %v9793_v13 = vpop.f32.mrb[0].mxu1  ;;  %10311 = vmatprep.subr.bf16.mxu0 %v11186_v8  ;;  %v11225_v8 = vld [vmem:[%s14027_s3 + $0x478] sm:$0xff]  }
 0x2df   :  { %v9794_v15 = vpop.f32.mrb[1].mxu1 }
 0x2e0   :  { %v12920_v19 = vadd.f32 %v9794_v15, %v9793_v13  ;;  %9942 = vmatpush3.bf16.msra.mxu1 %v11187_v9  ;;  %v9796_v22 = vpop.f32.mrb[2].mxu1  ;;  %v11228_v13 = vld [vmem:[%s14027_s3 + $0xd28] sm:$0xff]   ;;  %v11230_v15 = vld [vmem:[%s14027_s3 + $0xd70] sm:$0xff]  }
 0x2e1   :  { %10312 = vmatpush3.bf16.msra.mxu0 %v11188_v10  ;;  %v9797_v24 = vpop.f32.mrb[3].mxu1  ;;  %9943 = vmatprep.subr.bf16.mxu1 %v11189_v12  ;;  %v11226_v10 = vld [vmem:[%s14027_s3 + $0xd68] sm:$0xff]   ;;  %v11227_v12 = vld [vmem:[%s14027_s3 + $0x438] sm:$0xff]  }
 0x2e2   :  { %10313 = vmatprep.subr.bf16.mxu0 %v11190_v14  ;;  %v11229_v14 = vld [vmem:[%s14027_s3 + $0x4c0] sm:$0xff]  }
 0x2e4   :  { %9944 = vmatpush3.bf16.msra.mxu1 %v11191_v23  ;;  %v11231_v23 = vld [vmem:[%s14027_s3 + $0x480] sm:$0xff]  }
 0x2e5   :  { %10314 = vmatpush3.bf16.msra.mxu0 %v11192_v25  ;;  %9945 = vmatprep.subr.bf16.mxu1 %v11193_v41  ;;  %v11232_v41 = vld [vmem:[%s14027_s3 + $0xd30] sm:$0xff]  }
 0x2e6   :  { %v10013_v29 = vpop.f32.mrb[20].mxu0  ;;  %10315 = vmatprep.subr.bf16.mxu0 %v11194_v42  ;;  %v11233_v42 = vld [vmem:[%s14027_s3 + $0x4c8] sm:$0xff]  }
 0x2e7   :  { %v10014_v31 = vpop.f32.mrb[21].mxu0 }
 0x2e8   :  { %9946 = vmatpush3.bf16.msra.mxu1 %v11195_v26  ;;  %v12946_v32 = vadd.f32 %v10014_v31, %v10013_v29  ;;  %v10016_v33 = vpop.f32.mrb[22].mxu0  ;;  %v11235_v29 = vld [vmem:[%s14027_s3 + $0x488] sm:$0xff]   ;;  %v11237_v31 = vld [vmem:[%s14027_s3 + $0x4d0] sm:$0xff]  }
 0x2e9   :  { %10316 = vmatpush3.bf16.msra.mxu0 %v11196_v27  ;;  %v10017_v35 = vpop.f32.mrb[23].mxu0  ;;  %9953 = vmatprep.subr.bf16.mxu1 %v11197_v28  ;;  %v3220_v27 = vrot.slane %v12245_v21, 1  ;;  %v11234_v28 = vld [vmem:[%s14027_s3 + $0xd78] sm:$0xff]   ;;  %v11238_v33 = vld [vmem:[%s14027_s3 + $0xe40] sm:$0xff]  }
 0x2ea   :  { %10317 = vmatprep.subr.bf16.mxu0 %v11198_v30  ;;  %v11236_v30 = vld [vmem:[%s14027_s3 + $0xd38] sm:$0xff]   ;;  %v11240_v35 = vld [vmem:[%s14027_s3 + $0xe00] sm:$0xff]  }
 0x2eb   :  { %3006 = vmatmul.mubr.bf16.vlgmr.msra.gmra.mrb[28].mxu1 %v2873_v36  ;;  %v6173_v36 = vrot.slane %v12304_v11, 2 }
 0x2ec   :  { %9954 = vmatpush3.bf16.msra.mxu1 %v11199_v34  ;;  %3175 = vmatprep.mubr.bf16.mxu1 %v12245_v21  ;;  %v11239_v34 = vld [vmem:[%s14027_s3 + $0x490] sm:$0xff]  }
 0x2ed   :  { %10318 = vmatpush3.bf16.msra.mxu0 %v11200_v37  ;;  %9955 = vmatprep.subr.bf16.mxu1 %v11201_v38  ;;  %v11241_v37 = vld [vmem:[%s14027_s3 + $0x4d8] sm:$0xff]   ;;  %v11242_v38 = vld [vmem:[%s14027_s3 + $0xe48] sm:$0xff]  }
 0x2ee   :  { %10319 = vmatprep.subr.bf16.mxu0 %v11202_v39  ;;  %v6522_v39 = vrot.slane %v12312_v16, 4 }
 0x2f0   :  { %9956 = vmatpush3.bf16.msra.mxu1 %v11203_v58  ;;  %v11243_v58 = vld [vmem:[%s14027_s3 + $0x498] sm:$0xff]  }
 0x2f1   :  { %10320 = vmatpush3.bf16.msra.mxu0 %v11204_v40  ;;  %9957 = vmatprep.subr.bf16.mxu1 %v11205_v43  ;;  %v11244_v40 = vld [vmem:[%s14027_s3 + $0xe08] sm:$0xff]   ;;  %v11245_v43 = vld [vmem:[%s14027_s3 + $0x4e0] sm:$0xff]  }
 0x2f2   :  { %10349 = vmatprep.subr.bf16.mxu0 %v11206_v44  ;;  %v11246_v44 = vld [vmem:[%s14027_s3 + $0xe50] sm:$0xff]  }
 0x2f4   :  { %5956 = vmatmul.mubr.bf16.vlgmr.msra.gmra.mrb[48].mxu0 %v12304_v11  ;;  %9958 = vmatpush3.bf16.msra.mxu1 %v11207_v45  ;;  %v11247_v45 = vld [vmem:[%s14027_s3 + $0x4a0] sm:$0xff]  }
 0x2f5   :  { %10350 = vmatpush3.bf16.msra.mxu0 %v11208_v46  ;;  %6305 = vmatprep.mubr.bf16.mxu0 %v6174_v50  ;;  %v11248_v46 = vld [vmem:[%s14027_s3 + $0xe10] sm:$0xff]   ;;  %v11251_v50 = vld [vmem:[%s14027_s3 + $0x4a8] sm:$0xff]  }
 0x2f6   :  { %9959 = vmatprep.subr.bf16.mxu1 %v11209_v48  ;;  %10351 = vmatprep.subr.bf16.mxu0 %v11210_v49  ;;  %v11249_v48 = vld [vmem:[%s14027_s3 + $0x4e8] sm:$0xff]   ;;  %v11250_v49 = vld [vmem:[%s14027_s3 + $0xe58] sm:$0xff]  }
 0x2f8   :  { %9960 = vmatpush3.bf16.msra.mxu1 %v11211_v51  ;;  %v11252_v51 = vld [vmem:[%s14027_s3 + $0xe18] sm:$0xff]  }
 0x2f9   :  { %10352 = vmatpush3.bf16.msra.mxu0 %v11212_v53  ;;  %9961 = vmatprep.subr.bf16.mxu1 %v11213_v54  ;;  %v11253_v53 = vld [vmem:[%s14027_s3 + $0x4f0] sm:$0xff]  }
 0x2fa   :  { %10353 = vmatprep.subr.bf16.mxu0 %v11214_v61  ;;  %v11254_v61 = vld [vmem:[%s14027_s3 + $0xe60] sm:$0xff]  }
 0x2fc   :  { %9962 = vmatpush3.bf16.msra.mxu1 %v11215_v55 }
 0x2fd   :  { %10354 = vmatpush3.bf16.msra.mxu0 %v11216_v56  ;;  %9963 = vmatprep.subr.bf16.mxu1 %v11217_v57 }
 0x2fe   :  { %v9815_v0 = vpop.f32.mrb[4].mxu1  ;;  %10355 = vmatprep.subr.bf16.mxu0 %v11218_v59  ;;  %v11255_v59 = vld [vmem:[%s14027_s3 + $0x4b0] sm:$0xff]  }
 0x2ff   :  { %v9816_v2 = vpop.f32.mrb[5].mxu1 }
 0x300   :  { %v9817_v3 = vadd.f32 %v9816_v2, %v9815_v0  ;;  %v9818_v4 = vpop.f32.mrb[6].mxu1  ;;  %9964 = vmatpush3.bf16.msra.mxu1 %v11219_v60  ;;  %v11259_v2 = vld [vmem:[%s14027_s3 + $0x4b8] sm:$0xff]  }
 0x301   :  { %10356 = vmatpush3.bf16.msra.mxu0 %v11220_v62  ;;  %v9819_v6 = vpop.f32.mrb[7].mxu1  ;;  %9965 = vmatprep.subr.bf16.mxu1 %v11221_v63  ;;  %v11256_v62 = vld [vmem:[%s14027_s3 + $0xe20] sm:$0xff]   ;;  %v11257_v63 = vld [vmem:[%s14027_s3 + $0x4f8] sm:$0xff]  }
 0x302   :  { %v13034_v9 = vadd.f32 %v9817_v3, %v12920_v19  ;;  %10357 = vmatprep.subr.bf16.mxu0 %v11222_v1  ;;  %v11258_v1 = vld [vmem:[%s14027_s3 + $0xe68] sm:$0xff]   ;;  %v11261_v4 = vld [vmem:[%s14027_s3 + $0x5c0] sm:$0xff]  }
 0x303   :  { %v11260_v3 = vld [vmem:[%s14027_s3 + $0xe28] sm:$0xff]  }
 0x304   :  { %9966 = vmatpush3.bf16.msra.mxu1 %v11223_v5  ;;  %v11262_v5 = vld [vmem:[%s14027_s3 + $0xe70] sm:$0xff]  }
 0x305   :  { %10358 = vmatpush3.bf16.msra.mxu0 %v11224_v7  ;;  %9967 = vmatprep.subr.bf16.mxu1 %v11225_v8  ;;  %v11263_v8 = vld [vmem:[%s14027_s3 + $0x580] sm:$0xff]  }
 0x306   :  { %10359 = vmatprep.subr.bf16.mxu0 %v11226_v10 }
 0x307   :  { %v10057_v19 = vpop.f32.mrb[24].mxu0 }
 0x308   :  { %v10058_v22 = vpop.f32.mrb[25].mxu0  ;;  %9968 = vmatpush3.bf16.msra.mxu1 %v11227_v12  ;;  %v3219_v12 = vrot.slane %v12240_v17, 1 }
 0x309   :  { %v13054_v24 = vadd.f32 %v10058_v22, %v10057_v19  ;;  %v10060_v25 = vpop.f32.mrb[26].mxu0  ;;  %10360 = vmatpush3.bf16.msra.mxu0 %v11228_v13  ;;  %9975 = vmatprep.subr.bf16.mxu1 %v11229_v14  ;;  %v11264_v13 = vld [vmem:[%s14027_s3 + $0xe30] sm:$0xff]   ;;  %v11265_v14 = vld [vmem:[%s14027_s3 + $0x5c8] sm:$0xff]   ;;  %v3568_v19 = vrot.slane %v12245_v21, 3  ;;  %v11266_v22 = vld [vmem:[%s14027_s3 + $0xe78] sm:$0xff]  }
 0x30a   :  { %v10061_v26 = vpop.f32.mrb[27].mxu0  ;;  %10361 = vmatprep.subr.bf16.mxu0 %v11230_v15  ;;  %v11268_v25 = vld [vmem:[%s14027_s3 + $0xe38] sm:$0xff]  }
 0x30b   :  { %3176 = vmatmul.mubr.bf16.vlgmr.msra.gmra.mrb[32].mxu1 %v12240_v17  ;;  %v11271_v26 = vld [vmem:[%s14027_s3 + $0x590] sm:$0xff]  }
 0x30c   :  { %9976 = vmatpush3.bf16.msra.mxu1 %v11231_v23  ;;  %3351 = vmatprep.mubr.bf16.mxu1 %v3220_v27  ;;  %v11267_v23 = vld [vmem:[%s14027_s3 + $0x588] sm:$0xff]   ;;  %v11272_v27 = vld [vmem:[%s14027_s3 + $0xf00] sm:$0xff]  }
 0x30d   :  { %10362 = vmatpush3.bf16.msra.mxu0 %v11232_v41  ;;  %9977 = vmatprep.subr.bf16.mxu1 %v11233_v42  ;;  %v11269_v41 = vld [vmem:[%s14027_s3 + $0x5d0] sm:$0xff]   ;;  %v11270_v42 = vld [vmem:[%s14027_s3 + $0xf40] sm:$0xff]  }
 0x30e   :  { %10363 = vmatprep.subr.bf16.mxu0 %v11234_v28  ;;  %v6521_v28 = vrot.slane %v12304_v11, 4 }
 0x310   :  { %9978 = vmatpush3.bf16.msra.mxu1 %v11235_v29  ;;  %v11273_v29 = vld [vmem:[%s14027_s3 + $0x5d8] sm:$0xff]  }
 0x311   :  { %10364 = vmatpush3.bf16.msra.mxu0 %v11236_v30  ;;  %9979 = vmatprep.subr.bf16.mxu1 %v11237_v31  ;;  %v11274_v30 = vld [vmem:[%s14027_s3 + $0xf48] sm:$0xff]   ;;  %v6870_v31 = vrot.slane %v12312_v16, 6 }
 0x312   :  { %10393 = vmatprep.subr.bf16.mxu0 %v11238_v33  ;;  %v11275_v33 = vld [vmem:[%s14027_s3 + $0x598] sm:$0xff]  }
 0x314   :  { %6306 = vmatmul.mubr.bf16.vlgmr.msra.gmra.mrb[52].mxu0 %v6173_v36  ;;  %9980 = vmatpush3.bf16.msra.mxu1 %v11239_v34  ;;  %v11276_v34 = vld [vmem:[%s14027_s3 + $0xf08] sm:$0xff]   ;;  %v11278_v36 = vld [vmem:[%s14027_s3 + $0xf50] sm:$0xff]  }
 0x315   :  { %10394 = vmatpush3.bf16.msra.mxu0 %v11240_v35  ;;  %6653 = vmatprep.mubr.bf16.mxu0 %v6522_v39  ;;  %v11277_v35 = vld [vmem:[%s14027_s3 + $0x5e0] sm:$0xff]   ;;  %v11281_v39 = vld [vmem:[%s14027_s3 + $0x5e8] sm:$0xff]  }
 0x316   :  { %9981 = vmatprep.subr.bf16.mxu1 %v11241_v37  ;;  %10395 = vmatprep.subr.bf16.mxu0 %v11242_v38  ;;  %v11279_v37 = vld [vmem:[%s14027_s3 + $0x5a0] sm:$0xff]   ;;  %v11280_v38 = vld [vmem:[%s14027_s3 + $0xf10] sm:$0xff]  }
 0x318   :  { %9982 = vmatpush3.bf16.msra.mxu1 %v11243_v58  ;;  %v11282_v58 = vld [vmem:[%s14027_s3 + $0xf58] sm:$0xff]  }
 0x319   :  { %10396 = vmatpush3.bf16.msra.mxu0 %v11244_v40  ;;  %9983 = vmatprep.subr.bf16.mxu1 %v11245_v43  ;;  %v11283_v40 = vld [vmem:[%s14027_s3 + $0x5a8] sm:$0xff]   ;;  %v11284_v43 = vld [vmem:[%s14027_s3 + $0xf18] sm:$0xff]  }
 0x31a   :  { %10397 = vmatprep.subr.bf16.mxu0 %v11246_v44  ;;  %v11285_v44 = vld [vmem:[%s14027_s3 + $0x5f0] sm:$0xff]  }
 0x31c   :  { %9984 = vmatpush3.bf16.msra.mxu1 %v11247_v45 }
 0x31d   :  { %10398 = vmatpush3.bf16.msra.mxu0 %v11248_v46  ;;  %9985 = vmatprep.subr.bf16.mxu1 %v11249_v48  ;;  %v11286_v46 = vld [vmem:[%s14027_s3 + $0xf60] sm:$0xff]  }
 0x31e   :  { %v9837_v54 = vpop.f32.mrb[8].mxu1  ;;  %10399 = vmatprep.subr.bf16.mxu0 %v11250_v49 }
 0x31f   :  { %v9838_v55 = vpop.f32.mrb[9].mxu1 }
 0x320   :  { %v9839_v56 = vadd.f32 %v9838_v55, %v9837_v54  ;;  %v9840_v57 = vpop.f32.mrb[10].mxu1  ;;  %9986 = vmatpush3.bf16.msra.mxu1 %v11251_v50  ;;  %v11288_v54 = vld [vmem:[%s14027_s3 + $0xf20] sm:$0xff]  }
 0x321   :  { %10400 = vmatpush3.bf16.msra.mxu0 %v11252_v51  ;;  %v9841_v60 = vpop.f32.mrb[11].mxu1  ;;  %9987 = vmatprep.subr.bf16.mxu1 %v11253_v53  ;;  %v11287_v51 = vld [vmem:[%s14027_s3 + $0x5b0] sm:$0xff]   ;;  %v11291_v57 = vld [vmem:[%s14027_s3 + $0x5b8] sm:$0xff]  }
 0x322   :  { %v13139_v0 = vadd.f32 %v9839_v56, %v13034_v9  ;;  %10401 = vmatprep.subr.bf16.mxu0 %v11254_v61  ;;  %v11289_v61 = vld [vmem:[%s14027_s3 + $0x5f8] sm:$0xff]   ;;  %v11290_v56 = vld [vmem:[%s14027_s3 + $0xf68] sm:$0xff]   ;;  %v11293_v60 = vld [vmem:[%s14027_s3 + $0x6c0] sm:$0xff]  }
 0x324   :  { %9988 = vmatpush3.bf16.msra.mxu1 %v11255_v59  ;;  %v11292_v59 = vld [vmem:[%s14027_s3 + $0xf28] sm:$0xff]  }
 0x325   :  { %10402 = vmatpush3.bf16.msra.mxu0 %v11256_v62  ;;  %9989 = vmatprep.subr.bf16.mxu1 %v11257_v63  ;;  %v11294_v62 = vld [vmem:[%s14027_s3 + $0xf70] sm:$0xff]  }
 0x326   :  { %10403 = vmatprep.subr.bf16.mxu0 %v11258_v1  ;;  %v11295_v1 = vld [vmem:[%s14027_s3 + $0x680] sm:$0xff]  }
 0x327   :  { %v10101_v6 = vpop.f32.mrb[28].mxu0 }
 0x328   :  { %v10102_v7 = vpop.f32.mrb[29].mxu0  ;;  %9990 = vmatpush3.bf16.msra.mxu1 %v11259_v2 }
 0x329   :  { %v13159_v9 = vadd.f32 %v10102_v7, %v10101_v6  ;;  %v10104_v10 = vpop.f32.mrb[30].mxu0  ;;  %10404 = vmatpush3.bf16.msra.mxu0 %v11260_v3  ;;  %10019 = vmatprep.subr.bf16.mxu1 %v11261_v4  ;;  %v3567_v4 = vrot.slane %v12240_v17, 3  ;;  %v11297_v6 = vld [vmem:[%s14027_s3 + $0x6c8] sm:$0xff]  }
 0x32a   :  { %v10105_v15 = vpop.f32.mrb[31].mxu0  ;;  %10405 = vmatprep.subr.bf16.mxu0 %v11262_v5  ;;  %v11296_v5 = vld [vmem:[%s14027_s3 + $0xf30] sm:$0xff]   ;;  %v11298_v10 = vld [vmem:[%s14027_s3 + $0xf78] sm:$0xff]  }
 0x32b   :  { %3352 = vmatmul.mubr.bf16.vlgmr.msra.gmra.mrb[36].mxu1 %v3219_v12  ;;  %v1598_v12 = vmul.f32 0.01, %v12318_v20  ;;  %v11301_v15 = vld [vmem:[%s14027_s3 + $0x6d0] sm:$0xff]  }
 0x32c   :  { %10020 = vmatpush3.bf16.msra.mxu1 %v11263_v8  ;;  %3699 = vmatprep.mubr.bf16.mxu1 %v3568_v19  ;;  %v3916_v8 = vrot.slane %v12245_v21, 5  ;;  %v11302_v19 = vld [vmem:[%s14027_s3 + $0x1040] sm:$0xff]  }
 0x32d   :  { %10406 = vmatpush3.bf16.msra.mxu0 %v11264_v13  ;;  %10021 = vmatprep.subr.bf16.mxu1 %v11265_v14  ;;  %v11299_v13 = vld [vmem:[%s14027_s3 + $0x688] sm:$0xff]   ;;  %v11300_v14 = vld [vmem:[%s14027_s3 + $0xf38] sm:$0xff]  }
 0x32e   :  { %10407 = vmatprep.subr.bf16.mxu0 %v11266_v22  ;;  %v1616_v22 = vsel %vm1580_vm0, %v12318_v20, %v1598_v12  ;;  %v11306_v20 = vld [vmem:[%s14027_s3 + $0x1048] sm:$0xff]  }
 0x330   :  { %10022 = vmatpush3.bf16.msra.mxu1 %v11267_v23  ;;  %v11303_v23 = vld [vmem:[%s14027_s3 + $0x690] sm:$0xff]  }
 0x331   :  { %10408 = vmatpush3.bf16.msra.mxu0 %v11268_v25  ;;  %10023 = vmatprep.subr.bf16.mxu1 %v11269_v41  ;;  %v11304_v25 = vld [vmem:[%s14027_s3 + $0x1000] sm:$0xff]   ;;  %v6869_v41 = vrot.slane %v12304_v11, 6 }
 0x332   :  { %10437 = vmatprep.subr.bf16.mxu0 %v11270_v42  ;;  %v11305_v42 = vld [vmem:[%s14027_s3 + $0x6d8] sm:$0xff]  }
 0x334   :  { %6654 = vmatmul.mubr.bf16.vlgmr.msra.gmra.mrb[56].mxu0 %v6521_v28  ;;  %10024 = vmatpush3.bf16.msra.mxu1 %v11271_v26  ;;  %v13305_v26 = vpack.c.bf16 %v1616_v22, %v1616_v22  ;;  %v11308_v28 = vld [vmem:[%s14027_s3 + $0x1008] sm:$0xff]  }
 0x335   :  { %10438 = vmatpush3.bf16.msra.mxu0 %v11272_v27  ;;  %7001 = vmatprep.mubr.bf16.mxu0 %v6870_v31  ;;  %v11307_v27 = vld [vmem:[%s14027_s3 + $0x698] sm:$0xff]   ;;  %v11311_v31 = vld [vmem:[%s14027_s3 + $0x6a0] sm:$0xff]  }
 0x336   :  { %10025 = vmatprep.subr.bf16.mxu1 %v11273_v29  ;;  %10439 = vmatprep.subr.bf16.mxu0 %v11274_v30  ;;  %v11309_v29 = vld [vmem:[%s14027_s3 + $0x6e0] sm:$0xff]   ;;  %v11310_v30 = vld [vmem:[%s14027_s3 + $0x1050] sm:$0xff]   ;;  %v7564_v22 = vrot.slane %v13305_v26, 2 }
 0x338   :  { %10026 = vmatpush3.bf16.msra.mxu1 %v11275_v33  ;;  %v11312_v33 = vld [vmem:[%s14027_s3 + $0x1010] sm:$0xff]  }
 0x339   :  { %10440 = vmatpush3.bf16.msra.mxu0 %v11276_v34  ;;  %10027 = vmatprep.subr.bf16.mxu1 %v11277_v35  ;;  %v11313_v34 = vld [vmem:[%s14027_s3 + $0x6e8] sm:$0xff]   ;;  %v11314_v35 = vld [vmem:[%s14027_s3 + $0x1058] sm:$0xff]  }
 0x33a   :  { %10441 = vmatprep.subr.bf16.mxu0 %v11278_v36  ;;  %v11315_v36 = vld [vmem:[%s14027_s3 + $0x6a8] sm:$0xff]  }
 0x33c   :  { %10028 = vmatpush3.bf16.msra.mxu1 %v11279_v37  ;;  %v11316_v37 = vld [vmem:[%s14027_s3 + $0x1018] sm:$0xff]  }
 0x33d   :  { %10442 = vmatpush3.bf16.msra.mxu0 %v11280_v38  ;;  %10029 = vmatprep.subr.bf16.mxu1 %v11281_v39  ;;  %v11317_v38 = vld [vmem:[%s14027_s3 + $0x6f0] sm:$0xff]  }
 0x33e   :  { %v9859_v45 = vpop.f32.mrb[12].mxu1  ;;  %10443 = vmatprep.subr.bf16.mxu0 %v11282_v58  ;;  %v11318_v58 = vld [vmem:[%s14027_s3 + $0x1060] sm:$0xff]  }
 0x33f   :  { %v9860_v48 = vpop.f32.mrb[13].mxu1 }
 0x340   :  { %v9861_v49 = vadd.f32 %v9860_v48, %v9859_v45  ;;  %v9862_v50 = vpop.f32.mrb[14].mxu1  ;;  %10030 = vmatpush3.bf16.msra.mxu1 %v11283_v40  ;;  %v11319_v45 = vld [vmem:[%s14027_s3 + $0x6b0] sm:$0xff]   ;;  %v11320_v48 = vld [vmem:[%s14027_s3 + $0x1020] sm:$0xff]  }
 0x341   :  { %10444 = vmatpush3.bf16.msra.mxu0 %v11284_v43  ;;  %v9863_v53 = vpop.f32.mrb[15].mxu1  ;;  %10031 = vmatprep.subr.bf16.mxu1 %v11285_v44 }
 0x342   :  { %v13244_v55 = vadd.f32 %v9861_v49, %v13139_v0  ;;  %10445 = vmatprep.subr.bf16.mxu0 %v11286_v46  ;;  %v11321_v49 = vld [vmem:[%s14027_s3 + $0x6f8] sm:$0xff]  }
 0x343   :  { %v11323_v53 = vld [vmem:[%s14027_s3 + $0x6b8] sm:$0xff]  }
 0x344   :  { %10032 = vmatpush3.bf16.msra.mxu1 %v11287_v51  ;;  %v11322_v51 = vld [vmem:[%s14027_s3 + $0x1068] sm:$0xff]  }
 0x345   :  { %10446 = vmatpush3.bf16.msra.mxu0 %v11288_v54  ;;  %10033 = vmatprep.subr.bf16.mxu1 %v11289_v61  ;;  %v11324_v54 = vld [vmem:[%s14027_s3 + $0x1028] sm:$0xff]   ;;  %v11325_v61 = vld [vmem:[%s14027_s3 + $0x7c0] sm:$0xff]  }
 0x346   :  { %10447 = vmatprep.subr.bf16.mxu0 %v11290_v56 }
 0x347   :  { %v10145_v63 = vpop.f32.mrb[32].mxu0 }
 0x348   :  { %v10146_v0 = vpop.f32.mrb[33].mxu0  ;;  %10034 = vmatpush3.bf16.msra.mxu1 %v11291_v57 }
 0x349   :  { %v13264_v2 = vadd.f32 %v10146_v0, %v10145_v63  ;;  %v10148_v3 = vpop.f32.mrb[34].mxu0  ;;  %10448 = vmatpush3.bf16.msra.mxu0 %v11292_v59  ;;  %10063 = vmatprep.subr.bf16.mxu1 %v11293_v60  ;;  %v11327_v59 = vld [vmem:[%s14027_s3 + $0x780] sm:$0xff]   ;;  %v3915_v63 = vrot.slane %v12240_v17, 5  ;;  %v11328_v0 = vld [vmem:[%s14027_s3 + $0x1030] sm:$0xff]  }
 0x34a   :  { %v10149_v7 = vpop.f32.mrb[35].mxu0  ;;  %10449 = vmatprep.subr.bf16.mxu0 %v11294_v62 }
 0x34b   :  { %3700 = vmatmul.mubr.bf16.vlgmr.msra.gmra.mrb[40].mxu1 %v3567_v4  ;;  %v4264_v4 = vrot.slane %v12245_v21, 7  ;;  %v11331_v7 = vld [vmem:[%s14027_s3 + $0x788] sm:$0xff]   ;;  %v11332_v21 = vld [vmem:[%s14027_s3 + $0x1038] sm:$0xff]  }
 0x34c   :  { %10064 = vmatpush3.bf16.msra.mxu1 %v11295_v1  ;;  %4047 = vmatprep.mubr.bf16.mxu1 %v3916_v8  ;;  %v11329_v1 = vld [vmem:[%s14027_s3 + $0x7c8] sm:$0xff]   ;;  %v11333_v8 = vld [vmem:[%s14027_s3 + $0x7d0] sm:$0xff]  }
 0x34d   :  { %10450 = vmatpush3.bf16.msra.mxu0 %v11296_v5  ;;  %10065 = vmatprep.subr.bf16.mxu1 %v11297_v6  ;;  %v11330_v5 = vld [vmem:[%s14027_s3 + $0x1078] sm:$0xff]   ;;  %v1597_v6 = vmul.f32 0.01, %v12315_v18 }
 0x34e   :  { %10451 = vmatprep.subr.bf16.mxu0 %v11298_v10  ;;  %v11334_v10 = vld [vmem:[%s14027_s3 + $0x1140] sm:$0xff]  }
 0x34f   :  { %v1615_v12 = vsel %vm1579_vm1, %v12315_v18, %v1597_v6  ;;  %v11338_v18 = vld [vmem:[%s14027_s3 + $0x1148] sm:$0xff]  }
 0x350   :  { %10066 = vmatpush3.bf16.msra.mxu1 %v11299_v13  ;;  %v11335_v13 = vld [vmem:[%s14027_s3 + $0x790] sm:$0xff]  }
 0x351   :  { %10452 = vmatpush3.bf16.msra.mxu0 %v11300_v14  ;;  %10067 = vmatprep.subr.bf16.mxu1 %v11301_v15  ;;  %v11336_v14 = vld [vmem:[%s14027_s3 + $0x1100] sm:$0xff]   ;;  %v13408_v15 = vpack.c.bf16 %v1615_v12, %v1615_v12  ;;  %v11372_v12 = vld [vmem:[%s14027_s3 + $0x8a8] sm:$0xff]  }
 0x352   :  { %10481 = vmatprep.subr.bf16.mxu0 %v11302_v19  ;;  %v11337_v19 = vld [vmem:[%s14027_s3 + $0x7d8] sm:$0xff]  }
 0x353   :  { %v7563_v6 = vrot.slane %v13408_v15, 2 }
 0x354   :  { %7002 = vmatmul.mubr.bf16.vlgmr.msra.gmra.mrb[60].mxu0 %v6869_v41  ;;  %10068 = vmatpush3.bf16.msra.mxu1 %v11303_v23  ;;  %v11339_v23 = vld [vmem:[%s14027_s3 + $0x798] sm:$0xff]   ;;  %v11341_v41 = vld [vmem:[%s14027_s3 + $0x7e0] sm:$0xff]  }
 0x355   :  { %10482 = vmatpush3.bf16.msra.mxu0 %v11304_v25  ;;  %7345 = vmatprep.mubr.bf16.mxu0 %v13305_v26  ;;  %v11340_v25 = vld [vmem:[%s14027_s3 + $0x1108] sm:$0xff]  }
 0x356   :  { %10069 = vmatprep.subr.bf16.mxu1 %v11305_v42  ;;  %10483 = vmatprep.subr.bf16.mxu0 %v11306_v20  ;;  %v11342_v42 = vld [vmem:[%s14027_s3 + $0x1150] sm:$0xff]   ;;  %v11343_v20 = vld [vmem:[%s14027_s3 + $0x7a0] sm:$0xff]  }
 0x358   :  { %10070 = vmatpush3.bf16.msra.mxu1 %v11307_v27  ;;  %v11344_v27 = vld [vmem:[%s14027_s3 + $0x1110] sm:$0xff]  }
 0x359   :  { %10484 = vmatpush3.bf16.msra.mxu0 %v11308_v28  ;;  %10071 = vmatprep.subr.bf16.mxu1 %v11309_v29  ;;  %v11345_v28 = vld [vmem:[%s14027_s3 + $0x7e8] sm:$0xff]   ;;  %v11346_v29 = vld [vmem:[%s14027_s3 + $0x1158] sm:$0xff]  }
 0x35a   :  { %10485 = vmatprep.subr.bf16.mxu0 %v11310_v30  ;;  %v11347_v30 = vld [vmem:[%s14027_s3 + $0x7a8] sm:$0xff]  }
 0x35c   :  { %10072 = vmatpush3.bf16.msra.mxu1 %v11311_v31  ;;  %v11348_v31 = vld [vmem:[%s14027_s3 + $0x1118] sm:$0xff]  }
 0x35d   :  { %10486 = vmatpush3.bf16.msra.mxu0 %v11312_v33  ;;  %10073 = vmatprep.subr.bf16.mxu1 %v11313_v34  ;;  %v11349_v33 = vld [vmem:[%s14027_s3 + $0x7f0] sm:$0xff]  }
 0x35e   :  { %v9881_v39 = vpop.f32.mrb[16].mxu1  ;;  %10487 = vmatprep.subr.bf16.mxu0 %v11314_v35  ;;  %v11350_v35 = vld [vmem:[%s14027_s3 + $0x1160] sm:$0xff]  }
 0x35f   :  { %v9882_v40 = vpop.f32.mrb[17].mxu1 }
 0x360   :  { %v9883_v43 = vadd.f32 %v9882_v40, %v9881_v39  ;;  %v9884_v44 = vpop.f32.mrb[18].mxu1  ;;  %10074 = vmatpush3.bf16.msra.mxu1 %v11315_v36  ;;  %v11351_v39 = vld [vmem:[%s14027_s3 + $0x7b0] sm:$0xff]   ;;  %v11352_v40 = vld [vmem:[%s14027_s3 + $0x1120] sm:$0xff]  }
 0x361   :  { %10488 = vmatpush3.bf16.msra.mxu0 %v11316_v37  ;;  %v9885_v46 = vpop.f32.mrb[19].mxu1  ;;  %10075 = vmatprep.subr.bf16.mxu1 %v11317_v38 }
 0x362   :  { %v13354_v50 = vadd.f32 %v9883_v43, %v13244_v55  ;;  %10489 = vmatprep.subr.bf16.mxu0 %v11318_v58  ;;  %v11326_v55 = vld [vmem:[%s14027_s3 + $0x1070] sm:$0xff]   ;;  %v11353_v43 = vld [vmem:[%s14027_s3 + $0x7f8] sm:$0xff]  }
 0x363   :  { %v11355_v46 = vld [vmem:[%s14027_s3 + $0x7b8] sm:$0xff]  }
 0x364   :  { %10076 = vmatpush3.bf16.msra.mxu1 %v11319_v45  ;;  %v11354_v45 = vld [vmem:[%s14027_s3 + $0x1168] sm:$0xff]  }
 0x365   :  { %10490 = vmatpush3.bf16.msra.mxu0 %v11320_v48  ;;  %10077 = vmatprep.subr.bf16.mxu1 %v11321_v49  ;;  %v11356_v48 = vld [vmem:[%s14027_s3 + $0x1128] sm:$0xff]   ;;  %v11357_v49 = vld [vmem:[%s14027_s3 + $0x8c0] sm:$0xff]  }
 0x366   :  { %10491 = vmatprep.subr.bf16.mxu0 %v11322_v51 }
 0x367   :  { %v10189_v56 = vpop.f32.mrb[36].mxu0 }
 0x368   :  { %v10190_v57 = vpop.f32.mrb[37].mxu0  ;;  %10078 = vmatpush3.bf16.msra.mxu1 %v11323_v53 }
 0x369   :  { %v13374_v60 = vadd.f32 %v10190_v57, %v10189_v56  ;;  %v10192_v62 = vpop.f32.mrb[38].mxu0  ;;  %10492 = vmatpush3.bf16.msra.mxu0 %v11324_v54  ;;  %10107 = vmatprep.subr.bf16.mxu1 %v11325_v61  ;;  %v11359_v54 = vld [vmem:[%s14027_s3 + $0x880] sm:$0xff]   ;;  %v4263_v56 = vrot.slane %v12240_v17, 7  ;;  %v11360_v57 = vld [vmem:[%s14027_s3 + $0x1130] sm:$0xff]   ;;  %v11363_v17 = vld [vmem:[%s14027_s3 + $0x888] sm:$0xff]  }
 0x36a   :  { %v10193_v3 = vpop.f32.mrb[39].mxu0  ;;  %10493 = vmatprep.subr.bf16.mxu0 %v11326_v55 }
 0x36b   :  { %4048 = vmatmul.mubr.bf16.vlgmr.msra.gmra.mrb[44].mxu1 %v3915_v63  ;;  %v4610_v63 = vrot.slane %v12280_v52, 1  ;;  %v11365_v3 = vld [vmem:[%s14027_s3 + $0x8d0] sm:$0xff]  }
 0x36c   :  { %10108 = vmatpush3.bf16.msra.mxu1 %v11327_v59  ;;  %4395 = vmatprep.mubr.bf16.mxu1 %v4264_v4  ;;  %v11361_v59 = vld [vmem:[%s14027_s3 + $0x8c8] sm:$0xff]   ;;  %v11366_v4 = vld [vmem:[%s14027_s3 + $0x890] sm:$0xff]  }
 0x36d   :  { %10494 = vmatpush3.bf16.msra.mxu0 %v11328_v0  ;;  %10109 = vmatprep.subr.bf16.mxu1 %v11329_v1  ;;  %v11362_v0 = vld [vmem:[%s14027_s3 + $0x1178] sm:$0xff]  }
 0x36e   :  { %10495 = vmatprep.subr.bf16.mxu0 %v11330_v5  ;;  %v11364_v1 = vld [vmem:[%s14027_s3 + $0x1138] sm:$0xff]  }
 0x36f   :  { %v11367_v5 = vld [vmem:[%s14027_s3 + $0x8d8] sm:$0xff]  }
 0x370   :  { %10110 = vmatpush3.bf16.msra.mxu1 %v11331_v7  ;;  %v11368_v7 = vld [vmem:[%s14027_s3 + $0x898] sm:$0xff]  }
 0x371   :  { %10496 = vmatpush3.bf16.msra.mxu0 %v11332_v21  ;;  %10111 = vmatprep.subr.bf16.mxu1 %v11333_v8  ;;  %v11369_v21 = vld [vmem:[%s14027_s3 + $0x8e0] sm:$0xff]  }
 0x372   :  { %10525 = vmatprep.subr.bf16.mxu0 %v11334_v10  ;;  %v11370_v8 = vld [vmem:[%s14027_s3 + $0x8a0] sm:$0xff]   ;;  %v11371_v10 = vld [vmem:[%s14027_s3 + $0x8e8] sm:$0xff]  }
 0x374   :  { %7346 = vmatmul.mubr.bf16.vlgmr.msra.gmra.mrb[64].mxu0 %v13408_v15  ;;  %10112 = vmatpush3.bf16.msra.mxu1 %v11335_v13  ;;  %v11373_v13 = vld [vmem:[%s14027_s3 + $0x8f0] sm:$0xff]  }
 0x375   :  { %10526 = vmatpush3.bf16.msra.mxu0 %v11336_v14  ;;  %7695 = vmatprep.mubr.bf16.mxu0 %v7564_v22 }
 0x376   :  { %10113 = vmatprep.subr.bf16.mxu1 %v11337_v19  ;;  %10527 = vmatprep.subr.bf16.mxu0 %v11338_v18 }
 0x378   :  { %10114 = vmatpush3.bf16.msra.mxu1 %v11339_v23  ;;  %v11374_v23 = vld [vmem:[%s14027_s3 + $0x8b0] sm:$0xff]  }
 0x379   :  { %10528 = vmatpush3.bf16.msra.mxu0 %v11340_v25  ;;  %10115 = vmatprep.subr.bf16.mxu1 %v11341_v41  ;;  %v11375_v41 = vld [vmem:[%s14027_s3 + $0x8f8] sm:$0xff]  }
 0x37a   :  { %10529 = vmatprep.subr.bf16.mxu0 %v11342_v42 }
 0x37c   :  { %10116 = vmatpush3.bf16.msra.mxu1 %v11343_v20  ;;  %v11376_v20 = vld [vmem:[%s14027_s3 + $0x8b8] sm:$0xff]  }
 0x37d   :  { %10530 = vmatpush3.bf16.msra.mxu0 %v11344_v27  ;;  %10117 = vmatprep.subr.bf16.mxu1 %v11345_v28  ;;  %v11377_v27 = vld [vmem:[%s14027_s3 + $0x9c0] sm:$0xff]  }
 0x37e   :  { %v9903_v34 = vpop.f32.mrb[20].mxu1  ;;  %10531 = vmatprep.subr.bf16.mxu0 %v11346_v29 }
 0x37f   :  { %v9904_v36 = vpop.f32.mrb[21].mxu1 }
 0x380   :  { %v9905_v37 = vadd.f32 %v9904_v36, %v9903_v34  ;;  %v9906_v38 = vpop.f32.mrb[22].mxu1  ;;  %10118 = vmatpush3.bf16.msra.mxu1 %v11347_v30  ;;  %v11378_v30 = vld [vmem:[%s14027_s3 + $0x980] sm:$0xff]   ;;  %v4609_v34 = vrot.slane %v12272_v47, 1 }
 0x381   :  { %10532 = vmatpush3.bf16.msra.mxu0 %v11348_v31  ;;  %v9907_v58 = vpop.f32.mrb[23].mxu1  ;;  %10119 = vmatprep.subr.bf16.mxu1 %v11349_v33  ;;  %v11380_v38 = vld [vmem:[%s14027_s3 + $0x988] sm:$0xff]  }
 0x382   :  { %v13464_v44 = vadd.f32 %v9905_v37, %v13354_v50  ;;  %10533 = vmatprep.subr.bf16.mxu0 %v11350_v35  ;;  %v11358_v50 = vld [vmem:[%s14027_s3 + $0x1170] sm:$0xff]   ;;  %v11379_v35 = vld [vmem:[%s14027_s3 + $0x9c8] sm:$0xff]   ;;  %v4958_v37 = vrot.slane %v12280_v52, 3 }
 0x383   :  { %v11382_v58 = vld [vmem:[%s14027_s3 + $0x990] sm:$0xff]  }
 0x384   :  { %10120 = vmatpush3.bf16.msra.mxu1 %v11351_v39  ;;  %v11381_v39 = vld [vmem:[%s14027_s3 + $0x9d0] sm:$0xff]  }
 0x385   :  { %10534 = vmatpush3.bf16.msra.mxu0 %v11352_v40  ;;  %10121 = vmatprep.subr.bf16.mxu1 %v11353_v43  ;;  %v11383_v40 = vld [vmem:[%s14027_s3 + $0x9d8] sm:$0xff]  }
 0x386   :  { %10535 = vmatprep.subr.bf16.mxu0 %v11354_v45  ;;  %v11384_v43 = vld [vmem:[%s14027_s3 + $0x998] sm:$0xff]   ;;  %v11386_v45 = vld [vmem:[%s14027_s3 + $0x9a0] sm:$0xff]  }
 0x387   :  { %v10233_v51 = vpop.f32.mrb[40].mxu0 }
 0x388   :  { %v10234_v53 = vpop.f32.mrb[41].mxu0  ;;  %10122 = vmatpush3.bf16.msra.mxu1 %v11355_v46  ;;  %v11387_v46 = vld [vmem:[%s14027_s3 + $0x9e8] sm:$0xff]  }
 0x389   :  { %v13484_v61 = vadd.f32 %v10234_v53, %v10233_v51  ;;  %v10236_v55 = vpop.f32.mrb[42].mxu0  ;;  %10536 = vmatpush3.bf16.msra.mxu0 %v11356_v48  ;;  %10151 = vmatprep.subr.bf16.mxu1 %v11357_v49  ;;  %v11388_v48 = vld [vmem:[%s14027_s3 + $0x9a8] sm:$0xff]   ;;  %v11389_v49 = vld [vmem:[%s14027_s3 + $0x9f0] sm:$0xff]  }
 0x38a   :  { %v10237_v62 = vpop.f32.mrb[43].mxu0  ;;  %10537 = vmatprep.subr.bf16.mxu0 %v11358_v50  ;;  %v11390_v55 = vld [vmem:[%s14027_s3 + $0x9b0] sm:$0xff]  }
 0x38b   :  { %4396 = vmatmul.mubr.bf16.vlgmr.msra.gmra.mrb[48].mxu1 %v4263_v56  ;;  %v11392_v62 = vld [vmem:[%s14027_s3 + $0x9b8] sm:$0xff]  }
 0x38c   :  { %10152 = vmatpush3.bf16.msra.mxu1 %v11359_v54  ;;  %4741 = vmatprep.mubr.bf16.mxu1 %v4610_v63  ;;  %v11393_v63 = vld [vmem:[%s14027_s3 + $0xac0] sm:$0xff]  }
 0x38d   :  { %10538 = vmatpush3.bf16.msra.mxu0 %v11360_v57  ;;  %10153 = vmatprep.subr.bf16.mxu1 %v11361_v59  ;;  %v11391_v57 = vld [vmem:[%s14027_s3 + $0x9f8] sm:$0xff]  }
 0x38e   :  { %10539 = vmatprep.subr.bf16.mxu0 %v11362_v0 }
 0x390   :  { %10154 = vmatpush3.bf16.msra.mxu1 %v11363_v17 }
 0x391   :  { %10540 = vmatpush3.bf16.msra.mxu0 %v11364_v1  ;;  %10155 = vmatprep.subr.bf16.mxu1 %v11365_v3  ;;  %v11394_v1 = vld [vmem:[%s14027_s3 + $0xa80] sm:$0xff]  }
 0x394   :  { %7696 = vmatmul.mubr.bf16.vlgmr.msra.gmra.mrb[68].mxu0 %v7563_v6  ;;  %10156 = vmatpush3.bf16.msra.mxu1 %v11366_v4  ;;  %v11395_v6 = vld [vmem:[%s14027_s3 + $0xac8] sm:$0xff]  }
 0x395   :  { %10157 = vmatprep.subr.bf16.mxu1 %v11367_v5  ;;  %v4957_v5 = vrot.slane %v12272_v47, 3 }
 0x398   :  { %10158 = vmatpush3.bf16.msra.mxu1 %v11368_v7 }
 0x399   :  { %10159 = vmatprep.subr.bf16.mxu1 %v11369_v21  ;;  %v5306_v21 = vrot.slane %v12280_v52, 5 }
 0x39c   :  { %10160 = vmatpush3.bf16.msra.mxu1 %v11370_v8  ;;  %v11396_v8 = vld [vmem:[%s14027_s3 + $0xa88] sm:$0xff]  }
 0x39d   :  { %10161 = vmatprep.subr.bf16.mxu1 %v11371_v10  ;;  %v11397_v10 = vld [vmem:[%s14027_s3 + $0xad0] sm:$0xff]  }
 0x39e   :  { %v9925_v14 = vpop.f32.mrb[24].mxu1 }
 0x39f   :  { %v9926_v19 = vpop.f32.mrb[25].mxu1 }
 0x3a0   :  { %v9927_v18 = vadd.f32 %v9926_v19, %v9925_v14  ;;  %v9928_v22 = vpop.f32.mrb[26].mxu1  ;;  %10162 = vmatpush3.bf16.msra.mxu1 %v11372_v12  ;;  %v11398_v12 = vld [vmem:[%s14027_s3 + $0xa90] sm:$0xff]   ;;  %v11400_v14 = vld [vmem:[%s14027_s3 + $0xa98] sm:$0xff]   ;;  %v11401_v19 = vld [vmem:[%s14027_s3 + $0xae0] sm:$0xff]  }
 0x3a1   :  { %v9929_v25 = vpop.f32.mrb[27].mxu1  ;;  %10163 = vmatprep.subr.bf16.mxu1 %v11373_v13  ;;  %v11399_v13 = vld [vmem:[%s14027_s3 + $0xad8] sm:$0xff]   ;;  %v11403_v22 = vld [vmem:[%s14027_s3 + $0xae8] sm:$0xff]  }
 0x3a2   :  { %v2839_v42 = vadd.f32 %v9927_v18, %v13464_v44  ;;  %v11385_v44 = vld [vmem:[%s14027_s3 + $0x9e0] sm:$0xff]   ;;  %v11405_v25 = vld [vmem:[%s14027_s3 + $0xaf0] sm:$0xff]  }
 0x3a3   :  { %v11402_v18 = vld [vmem:[%s14027_s3 + $0xaa0] sm:$0xff]  }
 0x3a4   :  { %10164 = vmatpush3.bf16.msra.mxu1 %v11374_v23  ;;  %v11404_v23 = vld [vmem:[%s14027_s3 + $0xaa8] sm:$0xff]  }
 0x3a5   :  { %10165 = vmatprep.subr.bf16.mxu1 %v11375_v41 }
 0x3a7   :  { %v10277_v28 = vpop.f32.mrb[44].mxu0 }
 0x3a8   :  { %v10278_v29 = vpop.f32.mrb[45].mxu0  ;;  %10166 = vmatpush3.bf16.msra.mxu1 %v11376_v20 }
 0x3a9   :  { %v13547_v31 = vadd.f32 %v10278_v29, %v10277_v28  ;;  %v10280_v33 = vpop.f32.mrb[46].mxu0  ;;  %10195 = vmatprep.subr.bf16.mxu1 %v11377_v27  ;;  %v11406_v28 = vld [vmem:[%s14027_s3 + $0xab0] sm:$0xff]  }
 0x3aa   :  { %v10281_v36 = vpop.f32.mrb[47].mxu0 }
 0x3ab   :  { %4742 = vmatmul.mubr.bf16.vlgmr.msra.gmra.mrb[52].mxu1 %v4609_v34  ;;  %v11408_v34 = vld [vmem:[%s14027_s3 + $0xab8] sm:$0xff]  }
 0x3ac   :  { %10196 = vmatpush3.bf16.msra.mxu1 %v11378_v30  ;;  %5089 = vmatprep.mubr.bf16.mxu1 %v4958_v37  ;;  %v11407_v30 = vld [vmem:[%s14027_s3 + $0xaf8] sm:$0xff]  }
 0x3ad   :  { %10197 = vmatprep.subr.bf16.mxu1 %v11379_v35  ;;  %v11409_v35 = vld [vmem:[%s14027_s3 + $0xbc0] sm:$0xff]  }
 0x3b0   :  { %10198 = vmatpush3.bf16.msra.mxu1 %v11380_v38  ;;  %v11410_v38 = vld [vmem:[%s14027_s3 + $0xb80] sm:$0xff]  }
 0x3b1   :  { %10199 = vmatprep.subr.bf16.mxu1 %v11381_v39 }
 0x3b4   :  { %10200 = vmatpush3.bf16.msra.mxu1 %v11382_v58 }
 0x3b5   :  { %10201 = vmatprep.subr.bf16.mxu1 %v11383_v40  ;;  %v5305_v40 = vrot.slane %v12272_v47, 5 }
 0x3b8   :  { %10202 = vmatpush3.bf16.msra.mxu1 %v11384_v43  ;;  %v11411_v43 = vld [vmem:[%s14027_s3 + $0xbc8] sm:$0xff]  }
 0x3b9   :  { %10203 = vmatprep.subr.bf16.mxu1 %v11385_v44 }
 0x3bc   :  { %10204 = vmatpush3.bf16.msra.mxu1 %v11386_v45  ;;  %v5654_v45 = vrot.slane %v12280_v52, 7  ;;  %v11415_v52 = vld [vmem:[%s14027_s3 + $0xbd8] sm:$0xff]  }
 0x3bd   :  { %10205 = vmatprep.subr.bf16.mxu1 %v11387_v46  ;;  %v11412_v46 = vld [vmem:[%s14027_s3 + $0xb88] sm:$0xff]  }
 0x3be   :  { %v9947_v50 = vpop.f32.mrb[28].mxu1 }
 0x3bf   :  { %v9948_v51 = vpop.f32.mrb[29].mxu1 }
 0x3c0   :  { %v9949_v53 = vadd.f32 %v9948_v51, %v9947_v50  ;;  %v9950_v54 = vpop.f32.mrb[30].mxu1  ;;  %10206 = vmatpush3.bf16.msra.mxu1 %v11388_v48  ;;  %v11413_v48 = vld [vmem:[%s14027_s3 + $0xbd0] sm:$0xff]   ;;  %v11416_v50 = vld [vmem:[%s14027_s3 + $0xb98] sm:$0xff]   ;;  %v11417_v51 = vld [vmem:[%s14027_s3 + $0xbe0] sm:$0xff]  }
 0x3c1   :  { %v9951_v56 = vpop.f32.mrb[31].mxu1  ;;  %10207 = vmatprep.subr.bf16.mxu1 %v11389_v49  ;;  %v11414_v49 = vld [vmem:[%s14027_s3 + $0xb90] sm:$0xff]   ;;  %v11419_v54 = vld [vmem:[%s14027_s3 + $0xbe8] sm:$0xff]  }
 0x3c2   :  { %v3013_v59 = vadd.f32 %v9949_v53, %v2839_v42  ;;  %v11418_v53 = vld [vmem:[%s14027_s3 + $0xba0] sm:$0xff]   ;;  %v11421_v56 = vld [vmem:[%s14027_s3 + $0xbf0] sm:$0xff]  }
 0x3c4   :  { %10208 = vmatpush3.bf16.msra.mxu1 %v11390_v55  ;;  %v11420_v55 = vld [vmem:[%s14027_s3 + $0xba8] sm:$0xff]  }
 0x3c5   :  { %10209 = vmatprep.subr.bf16.mxu1 %v11391_v57 }
 0x3c7   :  { %v10321_v0 = vpop.f32.mrb[48].mxu0 }
 0x3c8   :  { %v10322_v17 = vpop.f32.mrb[49].mxu0  ;;  %10210 = vmatpush3.bf16.msra.mxu1 %v11392_v62 }
 0x3c9   :  { %v13599_v3 = vadd.f32 %v10322_v17, %v10321_v0  ;;  %v10324_v4 = vpop.f32.mrb[50].mxu0  ;;  %10239 = vmatprep.subr.bf16.mxu1 %v11393_v63  ;;  %v11422_v0 = vld [vmem:[%s14027_s3 + $0xbb0] sm:$0xff]  }
 0x3ca   :  { %v10325_v7 = vpop.f32.mrb[51].mxu0 }
 0x3cb   :  { %5090 = vmatmul.mubr.bf16.vlgmr.msra.gmra.mrb[56].mxu1 %v4957_v5  ;;  %v11424_v5 = vld [vmem:[%s14027_s3 + $0xbb8] sm:$0xff]   ;;  %v11425_v7 = vld [vmem:[%s14027_s3 + $0xcc0] sm:$0xff]  }
 0x3cc   :  { %10240 = vmatpush3.bf16.msra.mxu1 %v11394_v1  ;;  %5437 = vmatprep.mubr.bf16.mxu1 %v5306_v21  ;;  %v11423_v1 = vld [vmem:[%s14027_s3 + $0xbf8] sm:$0xff]  }
 0x3cd   :  { %10241 = vmatprep.subr.bf16.mxu1 %v11395_v6 }
 0x3d0   :  { %10242 = vmatpush3.bf16.msra.mxu1 %v11396_v8 }
 0x3d1   :  { %10243 = vmatprep.subr.bf16.mxu1 %v11397_v10  ;;  %v11426_v10 = vld [vmem:[%s14027_s3 + $0xc80] sm:$0xff]  }
 0x3d4   :  { %10244 = vmatpush3.bf16.msra.mxu1 %v11398_v12 }
 0x3d5   :  { %10245 = vmatprep.subr.bf16.mxu1 %v11399_v13 }
 0x3d8   :  { %10246 = vmatpush3.bf16.msra.mxu1 %v11400_v14  ;;  %v5653_v14 = vrot.slane %v12272_v47, 7  ;;  %v11429_v47 = vld [vmem:[%s14027_s3 + $0xcd0] sm:$0xff]  }
 0x3d9   :  { %10247 = vmatprep.subr.bf16.mxu1 %v11401_v19 }
 0x3dc   :  { %10248 = vmatpush3.bf16.msra.mxu1 %v11402_v18  ;;  %v6000_v18 = vrot.slane %v12312_v16, 1 }
 0x3dd   :  { %10249 = vmatprep.subr.bf16.mxu1 %v11403_v22  ;;  %v11428_v22 = vld [vmem:[%s14027_s3 + $0xc88] sm:$0xff]  }
 0x3de   :  { %v9969_v41 = vpop.f32.mrb[32].mxu1 }
 0x3df   :  { %v9970_v42 = vpop.f32.mrb[33].mxu1 }
 0x3e0   :  { %v9971_v20 = vadd.f32 %v9970_v42, %v9969_v41  ;;  %v9972_v27 = vpop.f32.mrb[34].mxu1  ;;  %10250 = vmatpush3.bf16.msra.mxu1 %v11404_v23  ;;  %v11430_v23 = vld [vmem:[%s14027_s3 + $0xc90] sm:$0xff]   ;;  %v11432_v41 = vld [vmem:[%s14027_s3 + $0xc98] sm:$0xff]   ;;  %v11433_v42 = vld [vmem:[%s14027_s3 + $0xce0] sm:$0xff]  }
 0x3e1   :  { %v9973_v29 = vpop.f32.mrb[35].mxu1  ;;  %10251 = vmatprep.subr.bf16.mxu1 %v11405_v25  ;;  %v11431_v25 = vld [vmem:[%s14027_s3 + $0xcd8] sm:$0xff]   ;;  %v11435_v27 = vld [vmem:[%s14027_s3 + $0xce8] sm:$0xff]  }
 0x3e2   :  { %v3183_v33 = vadd.f32 %v9971_v20, %v3013_v59  ;;  %v11434_v20 = vld [vmem:[%s14027_s3 + $0xca0] sm:$0xff]   ;;  %v11437_v29 = vld [vmem:[%s14027_s3 + $0xcf0] sm:$0xff]  }
 0x3e4   :  { %10252 = vmatpush3.bf16.msra.mxu1 %v11406_v28  ;;  %v11436_v28 = vld [vmem:[%s14027_s3 + $0xca8] sm:$0xff]  }
 0x3e5   :  { %10253 = vmatprep.subr.bf16.mxu1 %v11407_v30 }
 0x3e7   :  { %v10365_v36 = vpop.f32.mrb[52].mxu0 }
 0x3e8   :  { %v10366_v37 = vpop.f32.mrb[53].mxu0  ;;  %10254 = vmatpush3.bf16.msra.mxu1 %v11408_v34 }
 0x3e9   :  { %v13651_v39 = vadd.f32 %v10366_v37, %v10365_v36  ;;  %v10368_v58 = vpop.f32.mrb[54].mxu0  ;;  %10283 = vmatprep.subr.bf16.mxu1 %v11409_v35  ;;  %v11438_v36 = vld [vmem:[%s14027_s3 + $0xcb0] sm:$0xff]  }
 0x3ea   :  { %v10369_v44 = vpop.f32.mrb[55].mxu0 }
 0x3eb   :  { %5438 = vmatmul.mubr.bf16.vlgmr.msra.gmra.mrb[60].mxu1 %v5305_v40  ;;  %v11440_v40 = vld [vmem:[%s14027_s3 + $0xcb8] sm:$0xff]   ;;  %v11441_v44 = vld [vmem:[%s14027_s3 + $0xdc0] sm:$0xff]  }
 0x3ec   :  { %10284 = vmatpush3.bf16.msra.mxu1 %v11410_v38  ;;  %5785 = vmatprep.mubr.bf16.mxu1 %v5654_v45  ;;  %v11439_v38 = vld [vmem:[%s14027_s3 + $0xcf8] sm:$0xff]  }
 0x3ed   :  { %10285 = vmatprep.subr.bf16.mxu1 %v11411_v43 }
 0x3f0   :  { %10286 = vmatpush3.bf16.msra.mxu1 %v11412_v46 }
 0x3f1   :  { %10287 = vmatprep.subr.bf16.mxu1 %v11413_v48  ;;  %v11442_v48 = vld [vmem:[%s14027_s3 + $0xd80] sm:$0xff]  }
 0x3f4   :  { %10288 = vmatpush3.bf16.msra.mxu1 %v11414_v49 }
 0x3f5   :  { %10289 = vmatprep.subr.bf16.mxu1 %v11415_v52 }
 0x3f8   :  { %10290 = vmatpush3.bf16.msra.mxu1 %v11416_v50  ;;  %v5999_v50 = vrot.slane %v12304_v11, 1 }
 0x3f9   :  { %10291 = vmatprep.subr.bf16.mxu1 %v11417_v51 }
 0x3fc   :  { %10292 = vmatpush3.bf16.msra.mxu1 %v11418_v53  ;;  %v6348_v53 = vrot.slane %v12312_v16, 3 }
 0x3fd   :  { %10293 = vmatprep.subr.bf16.mxu1 %v11419_v54  ;;  %v11444_v54 = vld [vmem:[%s14027_s3 + $0xd88] sm:$0xff]  }
 0x3fe   :  { %v9991_v57 = vpop.f32.mrb[36].mxu1 }
 0x3ff   :  { %v9992_v59 = vpop.f32.mrb[37].mxu1 }
 0x400   :  { %v9993_v62 = vadd.f32 %v9992_v59, %v9991_v57  ;;  %v9994_v63 = vpop.f32.mrb[38].mxu1  ;;  %10294 = vmatpush3.bf16.msra.mxu1 %v11420_v55  ;;  %v11445_v55 = vld [vmem:[%s14027_s3 + $0xdd0] sm:$0xff]   ;;  %v11447_v57 = vld [vmem:[%s14027_s3 + $0xdd8] sm:$0xff]  }
 0x401   :  { %v9995_v17 = vpop.f32.mrb[39].mxu1  ;;  %10295 = vmatprep.subr.bf16.mxu1 %v11421_v56  ;;  %v11446_v56 = vld [vmem:[%s14027_s3 + $0xd90] sm:$0xff]   ;;  %v11448_v59 = vld [vmem:[%s14027_s3 + $0xd98] sm:$0xff]   ;;  %v11450_v63 = vld [vmem:[%s14027_s3 + $0xda0] sm:$0xff]  }
 0x402   :  { %v3359_v4 = vadd.f32 %v9993_v62, %v3183_v33  ;;  %v11449_v62 = vld [vmem:[%s14027_s3 + $0xde0] sm:$0xff]   ;;  %v11452_v17 = vld [vmem:[%s14027_s3 + $0xda8] sm:$0xff]  }
 0x404   :  { %10296 = vmatpush3.bf16.msra.mxu1 %v11422_v0  ;;  %v3533_v6 = vadd.f32 %v12946_v32, %v3359_v4  ;;  %v11427_v32 = vld [vmem:[%s14027_s3 + $0xcc8] sm:$0xff]  }
 0x405   :  { %10297 = vmatprep.subr.bf16.mxu1 %v11423_v1  ;;  %v11451_v0 = vld [vmem:[%s14027_s3 + $0xde8] sm:$0xff]   ;;  %v11453_v1 = vld [vmem:[%s14027_s3 + $0xdf0] sm:$0xff]  }
 0x407   :  { %v10409_v21 = vpop.f32.mrb[56].mxu0 }
 0x408   :  { %v10410_v8 = vpop.f32.mrb[57].mxu0  ;;  %10298 = vmatpush3.bf16.msra.mxu1 %v11424_v5 }
 0x409   :  { %v13704_v12 = vadd.f32 %v10410_v8, %v10409_v21  ;;  %v10412_v13 = vpop.f32.mrb[58].mxu0  ;;  %10327 = vmatprep.subr.bf16.mxu1 %v11425_v7  ;;  %v11454_v21 = vld [vmem:[%s14027_s3 + $0xdb0] sm:$0xff]  }
 0x40a   :  { %v10413_v19 = vpop.f32.mrb[59].mxu0 }
 0x40b   :  { %5786 = vmatmul.mubr.bf16.vlgmr.msra.gmra.mrb[64].mxu1 %v5653_v14  ;;  %v11456_v14 = vld [vmem:[%s14027_s3 + $0xdb8] sm:$0xff]   ;;  %v11457_v19 = vld [vmem:[%s14027_s3 + $0xec0] sm:$0xff]  }
 0x40c   :  { %10328 = vmatpush3.bf16.msra.mxu1 %v11426_v10  ;;  %6131 = vmatprep.mubr.bf16.mxu1 %v6000_v18  ;;  %v11455_v10 = vld [vmem:[%s14027_s3 + $0xdf8] sm:$0xff]  }
 0x40d   :  { %10329 = vmatprep.subr.bf16.mxu1 %v11427_v32 }
 0x410   :  { %10330 = vmatpush3.bf16.msra.mxu1 %v11428_v22 }
 0x411   :  { %10331 = vmatprep.subr.bf16.mxu1 %v11429_v47  ;;  %v11458_v47 = vld [vmem:[%s14027_s3 + $0xe80] sm:$0xff]  }
 0x414   :  { %10332 = vmatpush3.bf16.msra.mxu1 %v11430_v23 }
 0x415   :  { %10333 = vmatprep.subr.bf16.mxu1 %v11431_v25 }
 0x418   :  { %10334 = vmatpush3.bf16.msra.mxu1 %v11432_v41  ;;  %v6347_v41 = vrot.slane %v12304_v11, 3 }
 0x419   :  { %10335 = vmatprep.subr.bf16.mxu1 %v11433_v42 }
 0x41c   :  { %10336 = vmatpush3.bf16.msra.mxu1 %v11434_v20  ;;  %v6696_v20 = vrot.slane %v12312_v16, 5 }
 0x41d   :  { %10337 = vmatprep.subr.bf16.mxu1 %v11435_v27  ;;  %v11460_v27 = vld [vmem:[%s14027_s3 + $0xe88] sm:$0xff]  }
 0x41e   :  { %v10035_v30 = vpop.f32.mrb[40].mxu1 }
 0x41f   :  { %v10036_v33 = vpop.f32.mrb[41].mxu1 }
 0x420   :  { %v10037_v34 = vadd.f32 %v10036_v33, %v10035_v30  ;;  %v10038_v35 = vpop.f32.mrb[42].mxu1  ;;  %10338 = vmatpush3.bf16.msra.mxu1 %v11436_v28  ;;  %v11461_v28 = vld [vmem:[%s14027_s3 + $0xed0] sm:$0xff]   ;;  %v11463_v30 = vld [vmem:[%s14027_s3 + $0xed8] sm:$0xff]  }
 0x421   :  { %v10039_v37 = vpop.f32.mrb[43].mxu1  ;;  %10339 = vmatprep.subr.bf16.mxu1 %v11437_v29  ;;  %v11462_v29 = vld [vmem:[%s14027_s3 + $0xe90] sm:$0xff]   ;;  %v11464_v33 = vld [vmem:[%s14027_s3 + $0xe98] sm:$0xff]   ;;  %v11466_v35 = vld [vmem:[%s14027_s3 + $0xea0] sm:$0xff]  }
 0x422   :  { %v3707_v58 = vadd.f32 %v10037_v34, %v3533_v6  ;;  %v11465_v34 = vld [vmem:[%s14027_s3 + $0xee0] sm:$0xff]   ;;  %v11468_v37 = vld [vmem:[%s14027_s3 + $0xea8] sm:$0xff]  }
 0x424   :  { %10340 = vmatpush3.bf16.msra.mxu1 %v11438_v36  ;;  %v3881_v43 = vadd.f32 %v13054_v24, %v3707_v58  ;;  %v11443_v24 = vld [vmem:[%s14027_s3 + $0xdc8] sm:$0xff]  }
 0x425   :  { %10341 = vmatprep.subr.bf16.mxu1 %v11439_v38  ;;  %v11467_v36 = vld [vmem:[%s14027_s3 + $0xee8] sm:$0xff]   ;;  %v11469_v38 = vld [vmem:[%s14027_s3 + $0xef0] sm:$0xff]  }
 0x427   :  { %v10453_v45 = vpop.f32.mrb[60].mxu0 }
 0x428   :  { %v10454_v46 = vpop.f32.mrb[61].mxu0  ;;  %10342 = vmatpush3.bf16.msra.mxu1 %v11440_v40 }
 0x429   :  { %v13757_v49 = vadd.f32 %v10454_v46, %v10453_v45  ;;  %v10456_v52 = vpop.f32.mrb[62].mxu0  ;;  %10371 = vmatprep.subr.bf16.mxu1 %v11441_v44  ;;  %v11470_v45 = vld [vmem:[%s14027_s3 + $0xeb0] sm:$0xff]  }
 0x42a   :  { %v10457_v51 = vpop.f32.mrb[63].mxu0 }
 0x42b   :  { %6132 = vmatmul.mubr.bf16.vlgmr.msra.gmra.mrb[68].mxu1 %v5999_v50  ;;  %v11472_v50 = vld [vmem:[%s14027_s3 + $0xeb8] sm:$0xff]   ;;  %v11473_v51 = vld [vmem:[%s14027_s3 + $0xfc0] sm:$0xff]  }
 0x42c   :  { %10372 = vmatpush3.bf16.msra.mxu1 %v11442_v48  ;;  %6479 = vmatprep.mubr.bf16.mxu1 %v6348_v53  ;;  %v11471_v48 = vld [vmem:[%s14027_s3 + $0xef8] sm:$0xff]  }
 0x42d   :  { %10373 = vmatprep.subr.bf16.mxu1 %v11443_v24 }
 0x430   :  { %10374 = vmatpush3.bf16.msra.mxu1 %v11444_v54 }
 0x431   :  { %10375 = vmatprep.subr.bf16.mxu1 %v11445_v55  ;;  %v11474_v55 = vld [vmem:[%s14027_s3 + $0xf80] sm:$0xff]  }
 0x434   :  { %10376 = vmatpush3.bf16.msra.mxu1 %v11446_v56 }
 0x435   :  { %10377 = vmatprep.subr.bf16.mxu1 %v11447_v57 }
 0x438   :  { %10378 = vmatpush3.bf16.msra.mxu1 %v11448_v59  ;;  %v6695_v59 = vrot.slane %v12304_v11, 5 }
 0x439   :  { %10379 = vmatprep.subr.bf16.mxu1 %v11449_v62 }
 0x43c   :  { %10380 = vmatpush3.bf16.msra.mxu1 %v11450_v63  ;;  %v7044_v63 = vrot.slane %v12312_v16, 7  ;;  %v11479_v16 = vld [vmem:[%s14027_s3 + $0xfd8] sm:$0xff]  }
 0x43d   :  { %10381 = vmatprep.subr.bf16.mxu1 %v11451_v0  ;;  %v11476_v0 = vld [vmem:[%s14027_s3 + $0xf88] sm:$0xff]  }
 0x43e   :  { %v10079_v4 = vpop.f32.mrb[44].mxu1 }
 0x43f   :  { %v10080_v5 = vpop.f32.mrb[45].mxu1 }
 0x440   :  { %v10081_v6 = vadd.f32 %v10080_v5, %v10079_v4  ;;  %v10082_v7 = vpop.f32.mrb[46].mxu1  ;;  %10382 = vmatpush3.bf16.msra.mxu1 %v11452_v17  ;;  %v11477_v17 = vld [vmem:[%s14027_s3 + $0xfd0] sm:$0xff]   ;;  %v11480_v4 = vld [vmem:[%s14027_s3 + $0xf98] sm:$0xff]   ;;  %v11481_v5 = vld [vmem:[%s14027_s3 + $0xfe0] sm:$0xff]  }
 0x441   :  { %v10083_v8 = vpop.f32.mrb[47].mxu1  ;;  %10383 = vmatprep.subr.bf16.mxu1 %v11453_v1  ;;  %v11478_v1 = vld [vmem:[%s14027_s3 + $0xf90] sm:$0xff]   ;;  %v11483_v7 = vld [vmem:[%s14027_s3 + $0xfe8] sm:$0xff]  }
 0x442   :  { %v4055_v13 = vadd.f32 %v10081_v6, %v3881_v43  ;;  %v11482_v6 = vld [vmem:[%s14027_s3 + $0xfa0] sm:$0xff]   ;;  %v11485_v8 = vld [vmem:[%s14027_s3 + $0xff0] sm:$0xff]  }
 0x444   :  { %10384 = vmatpush3.bf16.msra.mxu1 %v11454_v21  ;;  %v4229_v32 = vadd.f32 %v13159_v9, %v4055_v13  ;;  %v11459_v9 = vld [vmem:[%s14027_s3 + $0xec8] sm:$0xff]  }
 0x445   :  { %10385 = vmatprep.subr.bf16.mxu1 %v11455_v10  ;;  %v11484_v21 = vld [vmem:[%s14027_s3 + $0xfa8] sm:$0xff]  }
 0x447   :  { %v10497_v18 = vpop.f32.mrb[64].mxu0 }
 0x448   :  { %v10498_v22 = vpop.f32.mrb[65].mxu0  ;;  %10386 = vmatpush3.bf16.msra.mxu1 %v11456_v14 }
 0x449   :  { %v13810_v23 = vadd.f32 %v10498_v22, %v10497_v18  ;;  %v10500_v25 = vpop.f32.mrb[66].mxu0  ;;  %10415 = vmatprep.subr.bf16.mxu1 %v11457_v19  ;;  %v11486_v19 = vld [vmem:[%s14027_s3 + $0xfb0] sm:$0xff]   ;;  %v11487_v22 = vld [vmem:[%s14027_s3 + $0xff8] sm:$0xff]  }
 0x44a   :  { %v10501_v42 = vpop.f32.mrb[67].mxu0  ;;  %v11488_v25 = vld [vmem:[%s14027_s3 + $0xfb8] sm:$0xff]  }
 0x44b   :  { %6480 = vmatmul.mubr.bf16.vlgmr.msra.gmra.mrb[72].mxu1 %v6347_v41  ;;  %v11490_v42 = vld [vmem:[%s14027_s3 + $0x1080] sm:$0xff]  }
 0x44c   :  { %10416 = vmatpush3.bf16.msra.mxu1 %v11458_v47  ;;  %6827 = vmatprep.mubr.bf16.mxu1 %v6696_v20  ;;  %v7043_v20 = vrot.slane %v12304_v11, 7  ;;  %v11494_v11 = vld [vmem:[%s14027_s3 + $0x1090] sm:$0xff]  }
 0x44d   :  { %10417 = vmatprep.subr.bf16.mxu1 %v11459_v9  ;;  %v11489_v9 = vld [vmem:[%s14027_s3 + $0x10c0] sm:$0xff]  }
 0x450   :  { %10418 = vmatpush3.bf16.msra.mxu1 %v11460_v27  ;;  %v11491_v27 = vld [vmem:[%s14027_s3 + $0x10c8] sm:$0xff]  }
 0x451   :  { %10419 = vmatprep.subr.bf16.mxu1 %v11461_v28  ;;  %v7390_v28 = vrot.slane %v13305_v26, 1 }
 0x454   :  { %10420 = vmatpush3.bf16.msra.mxu1 %v11462_v29  ;;  %v11493_v29 = vld [vmem:[%s14027_s3 + $0x10d0] sm:$0xff]  }
 0x455   :  { %10421 = vmatprep.subr.bf16.mxu1 %v11463_v30  ;;  %v11495_v30 = vld [vmem:[%s14027_s3 + $0x10d8] sm:$0xff]  }
 0x458   :  { %10422 = vmatpush3.bf16.msra.mxu1 %v11464_v33  ;;  %v11496_v33 = vld [vmem:[%s14027_s3 + $0x1098] sm:$0xff]  }
 0x459   :  { %10423 = vmatprep.subr.bf16.mxu1 %v11465_v34  ;;  %v11497_v34 = vld [vmem:[%s14027_s3 + $0x10e0] sm:$0xff]  }
 0x45c   :  { %10424 = vmatpush3.bf16.msra.mxu1 %v11466_v35  ;;  %v11498_v35 = vld [vmem:[%s14027_s3 + $0x10a0] sm:$0xff]  }
 0x45d   :  { %10425 = vmatprep.subr.bf16.mxu1 %v11467_v36  ;;  %v11499_v36 = vld [vmem:[%s14027_s3 + $0x10e8] sm:$0xff]  }
 0x45e   :  { %v10123_v58 = vpop.f32.mrb[48].mxu1 }
 0x45f   :  { %v10124_v40 = vpop.f32.mrb[49].mxu1 }
 0x460   :  { %v10125_v43 = vadd.f32 %v10124_v40, %v10123_v58  ;;  %v10126_v44 = vpop.f32.mrb[50].mxu1  ;;  %10426 = vmatpush3.bf16.msra.mxu1 %v11468_v37  ;;  %v11500_v37 = vld [vmem:[%s14027_s3 + $0x10a8] sm:$0xff]  }
 0x461   :  { %v10127_v46 = vpop.f32.mrb[51].mxu1  ;;  %10427 = vmatprep.subr.bf16.mxu1 %v11469_v38  ;;  %v11501_v38 = vld [vmem:[%s14027_s3 + $0x10f0] sm:$0xff]  }
 0x462   :  { %v4403_v52 = vadd.f32 %v10125_v43, %v4229_v32 }
 0x464   :  { %10428 = vmatpush3.bf16.msra.mxu1 %v11470_v45  ;;  %v4573_v24 = vadd.f32 %v13264_v2, %v4403_v52  ;;  %v11475_v2 = vld [vmem:[%s14027_s3 + $0xfc8] sm:$0xff]   ;;  %v11502_v45 = vld [vmem:[%s14027_s3 + $0x10b0] sm:$0xff]  }
 0x465   :  { %10429 = vmatprep.subr.bf16.mxu1 %v11471_v48  ;;  %v11503_v48 = vld [vmem:[%s14027_s3 + $0x10f8] sm:$0xff]  }
 0x467   :  { %v10541_v53 = vpop.f32.mrb[68].mxu0 }
 0x468   :  { %v10542_v54 = vpop.f32.mrb[69].mxu0  ;;  %10430 = vmatpush3.bf16.msra.mxu1 %v11472_v50  ;;  %v11504_v50 = vld [vmem:[%s14027_s3 + $0x10b8] sm:$0xff]  }
 0x469   :  { %v13863_v56 = vadd.f32 %v10542_v54, %v10541_v53  ;;  %v10544_v57 = vpop.f32.mrb[70].mxu0  ;;  %10459 = vmatprep.subr.bf16.mxu1 %v11473_v51  ;;  %v11505_v51 = vld [vmem:[%s14027_s3 + $0x11c0] sm:$0xff]   ;;  %v7389_v54 = vrot.slane %v13408_v15, 1 }
 0x46a   :  { %v10545_v62 = vpop.f32.mrb[71].mxu0  ;;  %v11506_v53 = vld [vmem:[%s14027_s3 + $0x1180] sm:$0xff]   ;;  %v7738_v57 = vrot.slane %v13305_v26, 3  ;;  %v11511_v26 = vld [vmem:[%s14027_s3 + $0x11d8] sm:$0xff]  }
 0x46b   :  { %6828 = vmatmul.mubr.bf16.vlgmr.msra.gmra.mrb[76].mxu1 %v6695_v59  ;;  %v11509_v59 = vld [vmem:[%s14027_s3 + $0x11d0] sm:$0xff]   ;;  %v11512_v62 = vld [vmem:[%s14027_s3 + $0x1198] sm:$0xff]  }
 0x46c   :  { %10460 = vmatpush3.bf16.msra.mxu1 %v11474_v55  ;;  %7175 = vmatprep.mubr.bf16.mxu1 %v7044_v63  ;;  %v11507_v55 = vld [vmem:[%s14027_s3 + $0x11c8] sm:$0xff]   ;;  %v11513_v63 = vld [vmem:[%s14027_s3 + $0x11e0] sm:$0xff]  }
 0x46d   :  { %10461 = vmatprep.subr.bf16.mxu1 %v11475_v2  ;;  %v11510_v2 = vld [vmem:[%s14027_s3 + $0x1190] sm:$0xff]  }
 0x470   :  { %10462 = vmatpush3.bf16.msra.mxu1 %v11476_v0  ;;  %v11514_v0 = vld [vmem:[%s14027_s3 + $0x11a0] sm:$0xff]  }
 0x471   :  { %10463 = vmatprep.subr.bf16.mxu1 %v11477_v17  ;;  %v11515_v17 = vld [vmem:[%s14027_s3 + $0x11e8] sm:$0xff]  }
 0x474   :  { %10464 = vmatpush3.bf16.msra.mxu1 %v11478_v1  ;;  %v11516_v1 = vld [vmem:[%s14027_s3 + $0x11a8] sm:$0xff]  }
 0x475   :  { %10465 = vmatprep.subr.bf16.mxu1 %v11479_v16  ;;  %v11517_v16 = vld [vmem:[%s14027_s3 + $0x11f0] sm:$0xff]  }
 0x478   :  { %10466 = vmatpush3.bf16.msra.mxu1 %v11480_v4 }
 0x479   :  { %10467 = vmatprep.subr.bf16.mxu1 %v11481_v5 }
 0x47c   :  { %10468 = vmatpush3.bf16.msra.mxu1 %v11482_v6 }
 0x47d   :  { %10469 = vmatprep.subr.bf16.mxu1 %v11483_v7 }
 0x47e   :  { %v10167_v10 = vpop.f32.mrb[52].mxu1 }
 0x47f   :  { %v10168_v13 = vpop.f32.mrb[53].mxu1 }
 0x480   :  { %v10169_v14 = vadd.f32 %v10168_v13, %v10167_v10  ;;  %v10170_v32 = vpop.f32.mrb[54].mxu1  ;;  %10470 = vmatpush3.bf16.msra.mxu1 %v11484_v21  ;;  %v11518_v21 = vld [vmem:[%s14027_s3 + $0x11b0] sm:$0xff]   ;;  %v11519_v10 = vld [vmem:[%s14027_s3 + $0x11f8] sm:$0xff]  }
 0x481   :  { %v10171_v18 = vpop.f32.mrb[55].mxu1  ;;  %10471 = vmatprep.subr.bf16.mxu1 %v11485_v8 }
 0x482   :  { %v4749_v47 = vadd.f32 %v10169_v14, %v4573_v24  ;;  %v11520_v14 = vld [vmem:[%s14027_s3 + $0x11b8] sm:$0xff]  }
 0x484   :  { %10472 = vmatpush3.bf16.msra.mxu1 %v11486_v19  ;;  %v4923_v41 = vadd.f32 %v13374_v60, %v4749_v47  ;;  %v11492_v60 = vld [vmem:[%s14027_s3 + $0x1088] sm:$0xff]   ;;  %v7737_v19 = vrot.slane %v13408_v15, 3 }
 0x485   :  { %10473 = vmatprep.subr.bf16.mxu1 %v11487_v22 }
 0x488   :  { %10474 = vmatpush3.bf16.msra.mxu1 %v11488_v25 }
 0x489   :  { %10503 = vmatprep.subr.bf16.mxu1 %v11489_v9 }
 0x48b   :  { %7176 = vmatmul.mubr.bf16.vlgmr.msra.gmra.mrb[80].mxu1 %v7043_v20 }
 0x48c   :  { %10504 = vmatpush3.bf16.msra.mxu1 %v11490_v42  ;;  %7521 = vmatprep.mubr.bf16.mxu1 %v7390_v28 }
 0x48d   :  { %10505 = vmatprep.subr.bf16.mxu1 %v11491_v27 }
 0x490   :  { %10506 = vmatpush3.bf16.msra.mxu1 %v11492_v60 }
 0x491   :  { %10507 = vmatprep.subr.bf16.mxu1 %v11493_v29 }
 0x494   :  { %10508 = vmatpush3.bf16.msra.mxu1 %v11494_v11 }
 0x495   :  { %10509 = vmatprep.subr.bf16.mxu1 %v11495_v30 }
 0x498   :  { %10510 = vmatpush3.bf16.msra.mxu1 %v11496_v33 }
 0x499   :  { %10511 = vmatprep.subr.bf16.mxu1 %v11497_v34 }
 0x49c   :  { %10512 = vmatpush3.bf16.msra.mxu1 %v11498_v35 }
 0x49d   :  { %10513 = vmatprep.subr.bf16.mxu1 %v11499_v36 }
 0x49e   :  { %v10211_v58 = vpop.f32.mrb[56].mxu1 }
 0x49f   :  { %v10212_v40 = vpop.f32.mrb[57].mxu1 }
 0x4a0   :  { %v10213_v43 = vadd.f32 %v10212_v40, %v10211_v58  ;;  %v10214_v44 = vpop.f32.mrb[58].mxu1  ;;  %10514 = vmatpush3.bf16.msra.mxu1 %v11500_v37 }
 0x4a1   :  { %v10215_v46 = vpop.f32.mrb[59].mxu1  ;;  %10515 = vmatprep.subr.bf16.mxu1 %v11501_v38 }
 0x4a2   :  { %v5097_v52 = vadd.f32 %v10213_v43, %v4923_v41 }
 0x4a4   :  { %10516 = vmatpush3.bf16.msra.mxu1 %v11502_v45  ;;  %v5271_v24 = vadd.f32 %v13484_v61, %v5097_v52  ;;  %v11508_v61 = vld [vmem:[%s14027_s3 + $0x1188] sm:$0xff]  }
 0x4a5   :  { %10517 = vmatprep.subr.bf16.mxu1 %v11503_v48 }
 0x4a8   :  { %10518 = vmatpush3.bf16.msra.mxu1 %v11504_v50 }
 0x4a9   :  { %10547 = vmatprep.subr.bf16.mxu1 %v11505_v51 }
 0x4ab   :  { %7522 = vmatmul.mubr.bf16.vlgmr.msra.gmra.mrb[84].mxu1 %v7389_v54 }
 0x4ac   :  { %10548 = vmatpush3.bf16.msra.mxu1 %v11506_v53  ;;  %7869 = vmatprep.mubr.bf16.mxu1 %v7738_v57 }
 0x4ad   :  { %10549 = vmatprep.subr.bf16.mxu1 %v11507_v55 }
 0x4b0   :  { %10550 = vmatpush3.bf16.msra.mxu1 %v11508_v61 }
 0x4b1   :  { %10551 = vmatprep.subr.bf16.mxu1 %v11509_v59 }
 0x4b4   :  { %10552 = vmatpush3.bf16.msra.mxu1 %v11510_v2 }
 0x4b5   :  { %10553 = vmatprep.subr.bf16.mxu1 %v11511_v26 }
 0x4b8   :  { %10554 = vmatpush3.bf16.msra.mxu1 %v11512_v62 }
 0x4b9   :  { %10555 = vmatprep.subr.bf16.mxu1 %v11513_v63  ;;  %v9776_v63 = vld [vmem:[%s14029_s4] ss:$0 sm:$0xff] }
 0x4bc   :  { %10556 = vmatpush3.bf16.msra.mxu1 %v11514_v0 }
 0x4bd   :  { %10557 = vmatprep.subr.bf16.mxu1 %v11515_v17 }
 0x4be   :  { %v10255_v4 = vpop.f32.mrb[60].mxu1 }
 0x4bf   :  { %v10256_v5 = vpop.f32.mrb[61].mxu1 }
 0x4c0   :  { %v10257_v6 = vadd.f32 %v10256_v5, %v10255_v4  ;;  %v10258_v7 = vpop.f32.mrb[62].mxu1  ;;  %10558 = vmatpush3.bf16.msra.mxu1 %v11516_v1 }
 0x4c1   :  { %v10259_v8 = vpop.f32.mrb[63].mxu1  ;;  %10559 = vmatprep.subr.bf16.mxu1 %v11517_v16 }
 0x4c2   :  { %v5445_v13 = vadd.f32 %v10257_v6, %v5271_v24 }
 0x4c4   :  { %10560 = vmatpush3.bf16.msra.mxu1 %v11518_v21  ;;  %v5619_v32 = vadd.f32 %v13547_v31, %v5445_v13 }
 0x4c5   :  { %10561 = vmatprep.subr.bf16.mxu1 %v11519_v10 }
 0x4c8   :  { %10562 = vmatpush3.bf16.msra.mxu1 %v11520_v14 }
 0x4cb   :  { %7870 = vmatmul.mubr.bf16.vlgmr.msra.gmra.mrb[88].mxu1 %v7737_v19 }
 0x4de   :  { %v10299_v18 = vpop.f32.mrb[64].mxu1 }
 0x4df   :  { %v10300_v22 = vpop.f32.mrb[65].mxu1 }
 0x4e0   :  { %v10301_v47 = vadd.f32 %v10300_v22, %v10299_v18  ;;  %v10302_v25 = vpop.f32.mrb[66].mxu1 }
 0x4e1   :  { %v10303_v41 = vpop.f32.mrb[67].mxu1 }
 0x4e2   :  { %v5793_v9 = vadd.f32 %v10301_v47, %v5619_v32 }
 0x4e4   :  { %v5963_v42 = vadd.f32 %v13599_v3, %v5793_v9 }
 0x4fe   :  { %v10343_v20 = vpop.f32.mrb[68].mxu1 }
 0x4ff   :  { %v10344_v27 = vpop.f32.mrb[69].mxu1 }
 0x500   :  { %v10345_v28 = vadd.f32 %v10344_v27, %v10343_v20  ;;  %v10346_v60 = vpop.f32.mrb[70].mxu1 }
 0x501   :  { %v10347_v29 = vpop.f32.mrb[71].mxu1 }
 0x502   :  { %v6139_v11 = vadd.f32 %v10345_v28, %v5963_v42 }
 0x504   :  { %v6313_v31 = vadd.f32 %v13651_v39, %v6139_v11 }
 0x51e   :  { %v10387_v30 = vpop.f32.mrb[72].mxu1 }
 0x51f   :  { %v10388_v33 = vpop.f32.mrb[73].mxu1 }
 0x520   :  { %v10389_v15 = vadd.f32 %v10388_v33, %v10387_v30  ;;  %v10390_v34 = vpop.f32.mrb[74].mxu1 }
 0x521   :  { %v10391_v35 = vpop.f32.mrb[75].mxu1 }
 0x522   :  { %v6487_v36 = vadd.f32 %v10389_v15, %v6313_v31 }
 0x524   :  { %v6661_v37 = vadd.f32 %v13704_v12, %v6487_v36 }
 0x53e   :  { %v10431_v38 = vpop.f32.mrb[76].mxu1 }
 0x53f   :  { %v10432_v58 = vpop.f32.mrb[77].mxu1 }
 0x540   :  { %v10433_v40 = vadd.f32 %v10432_v58, %v10431_v38  ;;  %v10434_v3 = vpop.f32.mrb[78].mxu1 }
 0x541   :  { %v10435_v43 = vpop.f32.mrb[79].mxu1 }
 0x542   :  { %v6835_v44 = vadd.f32 %v10433_v40, %v6661_v37 }
 0x544   :  { %v7009_v45 = vadd.f32 %v13757_v49, %v6835_v44 }
 0x55e   :  { %v10475_v46 = vpop.f32.mrb[80].mxu1 }
 0x55f   :  { %v10476_v48 = vpop.f32.mrb[81].mxu1 }
 0x560   :  { %v10477_v52 = vadd.f32 %v10476_v48, %v10475_v46  ;;  %v10478_v39 = vpop.f32.mrb[82].mxu1 }
 0x561   :  { %v10479_v50 = vpop.f32.mrb[83].mxu1 }
 0x562   :  { %v7183_v24 = vadd.f32 %v10477_v52, %v7009_v45 }
 0x564   :  { %v7353_v51 = vadd.f32 %v13810_v23, %v7183_v24 }
 0x57e   :  { %v10519_v53 = vpop.f32.mrb[84].mxu1 }
 0x57f   :  { %v10520_v54 = vpop.f32.mrb[85].mxu1 }
 0x580   :  { %v10521_v55 = vadd.f32 %v10520_v54, %v10519_v53  ;;  %v10522_v12 = vpop.f32.mrb[86].mxu1 }
 0x581   :  { %v10523_v57 = vpop.f32.mrb[87].mxu1 }
 0x582   :  { %v7529_v61 = vadd.f32 %v10521_v55, %v7353_v51 }
 0x584   :  { %v7703_v59 = vadd.f32 %v13863_v56, %v7529_v61 }
 0x59e   :  { %v10563_v2 = vpop.f32.mrb[88].mxu1 }
 0x59f   :  { %v10564_v26 = vpop.f32.mrb[89].mxu1 }
 0x5a0   :  { %v10565_v62 = vadd.f32 %v10564_v26, %v10563_v2  ;;  %v10566_v49 = vpop.f32.mrb[90].mxu1 }
 0x5a1   :  { %v10567_v0 = vpop.f32.mrb[91].mxu1 }
 0x5a2   :  { %v7877_v17 = vadd.f32 %v10565_v62, %v7703_v59 }
 0x5a4   :  { %v7885_v1 = vadd.f32 %v9776_v63, %v7877_v17 }
 0x5a6   :  { %7886 = vst [vmem:[%s14030_s5] sm:$0x3] %v7885_v1 }

</bundles_post_ra>
